<compile_context>
chip_gen: v6e
topology: v6e:2x2x1
jax: 0.10.0
libtpu: 0.0.40
codegen_flags: <defaults>
</compile_context>

<pallas_src>
import jax
import jax.numpy as jnp
from jax.experimental import pallas as pl
from jax.experimental.pallas import tpu as pltpu

_VMEM_LIMIT = 48 * 1024 * 1024     # safe on v5e/v6e (128 MiB) and v7x (64 MiB physical)
_MM_TM, _MM_TN, _MM_TK = 256, 256, 512
_GAT_TQ, _GAT_TS = 128, 128
_GAT_FCHUNK = 64
SORT_K = 6


def _tile(dim, target, align):
    """Largest divisor of `dim` that is <= target and a multiple of `align`;
    falls back to the full dim (a full-extent block is always legal)."""
    if dim <= target:
        return dim
    t = (target // align) * align
    while t >= align:
        if dim % t == 0:
            return t
        t -= align
    return dim


# ----------------------------------------------------------------------------
# Tiled matmul (bf16 inputs, f32 accumulation directly into the output block)
# ----------------------------------------------------------------------------
def _matmul_kernel(a_ref, b_ref, o_ref):
    @pl.when(pl.program_id(2) == 0)
    def _():
        o_ref[...] = jnp.zeros_like(o_ref)

    o_ref[...] += jnp.dot(a_ref[...], b_ref[...],
                          preferred_element_type=jnp.float32)


def pallas_matmul(a, b):
    """(M, K) @ (K, N) -> (M, N) f32."""
    M, K = a.shape
    K2, N = b.shape
    assert K == K2
    # Degenerate shapes (K==1 outer products, single-lane outputs) would run the
    # MXU at <1% utilization with masked stores -- keep them on the VPU via XLA.
    if K < 8 or N < 8:
        return jnp.dot(a.astype(jnp.float32), b.astype(jnp.float32),
                       preferred_element_type=jnp.float32)
    tm = _tile(M, _MM_TM, 8)
    tn = _tile(N, _MM_TN, 128)
    tk = _tile(K, _MM_TK, 128)
    a = a.astype(jnp.bfloat16)
    b = b.astype(jnp.bfloat16)
    return pl.pallas_call(
        _matmul_kernel,
        out_shape=jax.ShapeDtypeStruct((M, N), jnp.float32),
        grid_spec=pltpu.PrefetchScalarGridSpec(
            num_scalar_prefetch=0,
            grid=(M // tm, N // tn, K // tk),
            in_specs=[pl.BlockSpec((tm, tk), lambda i, j, k: (i, k)),
                      pl.BlockSpec((tk, tn), lambda i, j, k: (k, j))],
            out_specs=pl.BlockSpec((tm, tn), lambda i, j, k: (i, j)),
        ),
        compiler_params=pltpu.CompilerParams(
            dimension_semantics=("parallel", "parallel", "arbitrary"),
            vmem_limit_bytes=_VMEM_LIMIT),
    )(a, b)


# ----------------------------------------------------------------------------
# Fused GATv2 attention: tiled scores + online masked softmax
# ----------------------------------------------------------------------------
def _gatv2_kernel(xl_ref, xr_ref, att_ref, mask_ref, bias_ref, o_ref,
                  m_sc, l_sc, acc_sc):
    j = pl.program_id(1)

    @pl.when(j == 0)
    def _():
        m_sc[...] = jnp.full(m_sc.shape, -jnp.inf, dtype=m_sc.dtype)
        l_sc[...] = jnp.zeros_like(l_sc)
        acc_sc[...] = jnp.zeros_like(acc_sc)

    xl = xl_ref[...]                               # (ts, F) source-side features
    xr = xr_ref[...]                               # (tq, F) target-side features
    att = att_ref[...]                             # (1, F)
    mask = mask_ref[...]                           # (tq, ts) 1.0 where edge j -> i
    tq, F = xr.shape
    ts = xl.shape[0]

    # e[i, j] = att . leaky_relu(x_r[i] + x_l[j]); accumulate per F-chunk so only a
    # (tq, ts, fc) slab lives at a time instead of an O(N^2 F) tensor.
    fc = min(F, _GAT_FCHUNK)
    e = jnp.zeros((tq, ts), jnp.float32)
    for f0 in range(0, F, fc):
        s = xr[:, None, f0:f0 + fc] + xl[None, :, f0:f0 + fc]
        s = jnp.where(s > 0, s, 0.2 * s)           # LeakyReLU(0.2)
        e = e + jnp.sum(s * att[:, None, f0:f0 + fc], axis=-1)
    e = jnp.where(mask > 0, e, -1e30)

    # Online (flash-style) masked softmax over source blocks.
    m_prev = m_sc[...]
    m_new = jnp.maximum(m_prev, jnp.max(e, axis=1, keepdims=True))
    corr = jnp.exp(m_prev - m_new)
    p = jnp.exp(e - m_new) * mask
    l_sc[...] = corr * l_sc[...] + jnp.sum(p, axis=1, keepdims=True)
    acc_sc[...] = corr * acc_sc[...] + jnp.dot(p, xl,
                                               preferred_element_type=jnp.float32)
    m_sc[...] = m_new

    @pl.when(j == pl.num_programs(1) - 1)
    def _():
        # Safe: self-loops guarantee every row has at least one unmasked source.
        inv_l = pl.reciprocal(l_sc[...], approx=True)
        o_ref[...] = acc_sc[...] * inv_l + bias_ref[...]


def gatv2_attention(x_l, x_r, att, mask, bias):
    N, F = x_l.shape
    tq = _tile(N, _GAT_TQ, 8)
    ts = _tile(N, _GAT_TS, 128)
    return pl.pallas_call(
        _gatv2_kernel,
        out_shape=jax.ShapeDtypeStruct((N, F), jnp.float32),
        grid_spec=pltpu.PrefetchScalarGridSpec(
            num_scalar_prefetch=0,
            grid=(N // tq, N // ts),
            in_specs=[pl.BlockSpec((ts, F), lambda i, j: (j, 0)),    # x_l (sources)
                      pl.BlockSpec((tq, F), lambda i, j: (i, 0)),    # x_r (targets)
                      pl.BlockSpec((1, F), lambda i, j: (0, 0)),     # att
                      pl.BlockSpec((tq, ts), lambda i, j: (i, j)),   # mask
                      pl.BlockSpec((1, F), lambda i, j: (0, 0))],    # bias
            out_specs=pl.BlockSpec((tq, F), lambda i, j: (i, 0)),
            scratch_shapes=[pltpu.VMEM((tq, 1), jnp.float32),
                            pltpu.VMEM((tq, 1), jnp.float32),
                            pltpu.VMEM((tq, F), jnp.float32)],
        ),
        compiler_params=pltpu.CompilerParams(
            dimension_semantics=("parallel", "arbitrary"),
            vmem_limit_bytes=_VMEM_LIMIT),
    )(x_l, x_r, att, mask, bias)


# ----------------------------------------------------------------------------
# GraphNorm: one stats pass (sum, sum of squares) + one apply pass
# ----------------------------------------------------------------------------
def _graphnorm_stats_kernel(x_ref, mt_ref, s1_ref, s2_ref):
    @pl.when(pl.program_id(0) == 0)
    def _():
        s1_ref[...] = jnp.zeros_like(s1_ref)
        s2_ref[...] = jnp.zeros_like(s2_ref)

    x = x_ref[...]                                 # (tr, F)
    mt = mt_ref[...]                               # (B, tr)
    s1_ref[...] += jnp.dot(mt, x, preferred_element_type=jnp.float32)
    s2_ref[...] += jnp.dot(mt, x * x, preferred_element_type=jnp.float32)


def _graphnorm_apply_kernel(x_ref, m_ref, mean_ref, rstd_ref,
                            w_ref, b_ref, ms_ref, o_ref):
    x = x_ref[...]                                 # (tr, F)
    m = m_ref[...]                                 # (tr, B)
    mean_n = jnp.dot(m, mean_ref[...], preferred_element_type=jnp.float32)
    rstd_n = jnp.dot(m, rstd_ref[...], preferred_element_type=jnp.float32)
    centered = x - ms_ref[...] * mean_n
    o_ref[...] = w_ref[...] * centered * rstd_n + b_ref[...]


def graph_norm(x, p, M, Mt, counts):
    N, F = x.shape
    B = Mt.shape[0]
    tr = _tile(N, 256, 128)

    sum_x, sum_sq = pl.pallas_call(
        _graphnorm_stats_kernel,
        out_shape=(jax.ShapeDtypeStruct((B, F), jnp.float32),
                   jax.ShapeDtypeStruct((B, F), jnp.float32)),
        grid_spec=pltpu.PrefetchScalarGridSpec(
            num_scalar_prefetch=0,
            grid=(N // tr,),
            in_specs=[pl.BlockSpec((tr, F), lambda i: (i, 0)),
                      pl.BlockSpec((B, tr), lambda i: (0, i))],
            out_specs=(pl.BlockSpec((B, F), lambda i: (0, 0)),
                       pl.BlockSpec((B, F), lambda i: (0, 0))),
        ),
        compiler_params=pltpu.CompilerParams(
            dimension_semantics=("arbitrary",),
            vmem_limit_bytes=_VMEM_LIMIT),
    )(x, Mt)

    # Tiny (B, F) math: E[(x - ms*mu)^2] = E[x^2] - (2*ms - ms^2) * mu^2
    cnt = counts[:, None]
    mean = sum_x / cnt
    meansq = sum_sq / cnt
    ms = p["mean_scale"][None, :]
    var = meansq - (2.0 * ms - ms * ms) * (mean * mean)
    rstd = jax.lax.rsqrt(jnp.maximum(var, 0.0) + 1e-5)

    return pl.pallas_call(
        _graphnorm_apply_kernel,
        out_shape=jax.ShapeDtypeStruct((N, F), jnp.float32),
        grid_spec=pltpu.PrefetchScalarGridSpec(
            num_scalar_prefetch=0,
            grid=(N // tr,),
            in_specs=[pl.BlockSpec((tr, F), lambda i: (i, 0)),
                      pl.BlockSpec((tr, B), lambda i: (i, 0)),
                      pl.BlockSpec((B, F), lambda i: (0, 0)),
                      pl.BlockSpec((B, F), lambda i: (0, 0)),
                      pl.BlockSpec((1, F), lambda i: (0, 0)),
                      pl.BlockSpec((1, F), lambda i: (0, 0)),
                      pl.BlockSpec((1, F), lambda i: (0, 0))],
            out_specs=pl.BlockSpec((tr, F), lambda i: (i, 0)),
        ),
        compiler_params=pltpu.CompilerParams(
            dimension_semantics=("parallel",),
            vmem_limit_bytes=_VMEM_LIMIT),
    )(x, M, mean, rstd, p["weight"][None, :], p["bias"][None, :], ms)


# ----------------------------------------------------------------------------
# Fused global add + max pooling (mean derived from add)
# ----------------------------------------------------------------------------
def _pool_kernel(x_ref, m_ref, mt_ref, add_ref, max_ref):
    @pl.when(pl.program_id(0) == 0)
    def _():
        add_ref[...] = jnp.zeros_like(add_ref)
        max_ref[...] = jnp.full(max_ref.shape, -jnp.inf, dtype=max_ref.dtype)

    x = x_ref[...]                                 # (tr, F)
    m = m_ref[...]                                 # (tr, B)
    mt = mt_ref[...]                               # (B, tr)
    add_ref[...] += jnp.dot(mt, x, preferred_element_type=jnp.float32)

    B = m.shape[1]
    rows = []
    for b in range(B):                             # B is small (batch of graphs)
        col = m[:, b:b + 1]                        # (tr, 1)
        rows.append(jnp.max(jnp.where(col > 0, x, -jnp.inf),
                            axis=0, keepdims=True))
    max_ref[...] = jnp.maximum(max_ref[...], jnp.concatenate(rows, axis=0))


def global_pools(x, M, Mt, counts):
    N, F = x.shape
    B = Mt.shape[0]
    tr = _tile(N, 256, 128)
    add, mx = pl.pallas_call(
        _pool_kernel,
        out_shape=(jax.ShapeDtypeStruct((B, F), jnp.float32),
                   jax.ShapeDtypeStruct((B, F), jnp.float32)),
        grid_spec=pltpu.PrefetchScalarGridSpec(
            num_scalar_prefetch=0,
            grid=(N // tr,),
            in_specs=[pl.BlockSpec((tr, F), lambda i: (i, 0)),
                      pl.BlockSpec((tr, B), lambda i: (i, 0)),
                      pl.BlockSpec((B, tr), lambda i: (0, i))],
            out_specs=(pl.BlockSpec((B, F), lambda i: (0, 0)),
                       pl.BlockSpec((B, F), lambda i: (0, 0))),
        ),
        compiler_params=pltpu.CompilerParams(
            dimension_semantics=("arbitrary",),
            vmem_limit_bytes=_VMEM_LIMIT),
    )(x, M, Mt)
    mean = add / counts[:, None]
    return add, mean, mx


# ----------------------------------------------------------------------------
# Layer wrappers (semantics of the PyG layers used by GNN_v5)
# ----------------------------------------------------------------------------
def gatv2_layer(x, p, mask_self_loops):
    # GATv2Conv(in, out), heads=1: x_l = lin_l(x), x_r = lin_r(x)
    xl = pallas_matmul(x, p["Wl"]) + p["bl"][None, :]
    xr = pallas_matmul(x, p["Wr"]) + p["br"][None, :]
    return gatv2_attention(xl, xr, p["att"], mask_self_loops, p["bias"])


def arma_layer(x, p, a_norm):
    # ARMAConv(in, out), num_stacks=1, num_layers=1, act=ReLU
    h = pallas_matmul(x, p["init_w"])
    h = pallas_matmul(a_norm, h)                    # \hat{L} @ (x W)
    h = h + pallas_matmul(x, p["root_w"]) + p["bias"][None, :]
    return jnp.maximum(h, 0.0)                      # ReLU


# ----------------------------------------------------------------------------
# Full forward pass
# ----------------------------------------------------------------------------
def gnn_v5_forward(x, A, M, counts, params):
    N = x.shape[0]
    B = M.shape[1]
    Mt = M.T                                        # built once, reused everywhere

    # GAT branch uses A + self-loops; ARMA branch uses gcn_norm without self loops.
    mask_sl = jnp.maximum(A, jnp.eye(N, dtype=A.dtype))
    deg = jnp.sum(A, axis=1)
    dinv = jnp.where(deg > 0, 1.0 / jnp.sqrt(deg), 0.0)
    a_norm = A * dinv[:, None] * dinv[None, :]

    h = gatv2_layer(x, params["gat1"], mask_sl)
    h = jax.nn.elu(h)
    h = graph_norm(h, params["gat1_norm"], M, Mt, counts)
    h = gatv2_layer(h, params["gat2"], mask_sl)
    h = jax.nn.elu(h)
    h = graph_norm(h, params["gat2_norm"], M, Mt, counts)
    h = gatv2_layer(h, params["gat3"], mask_sl)
    h = jax.nn.elu(h)
    gat3 = graph_norm(h, params["gat3_norm"], M, Mt, counts)

    g = arma_layer(x, params["gcn1"], a_norm)
    g = jax.nn.elu(g)
    g = graph_norm(g, params["gcn1_norm"], M, Mt, counts)
    g = arma_layer(g, params["gcn2"], a_norm)
    g = jax.nn.elu(g)
    g = graph_norm(g, params["gcn2_norm"], M, Mt, counts)
    g = arma_layer(g, params["gcn3"], a_norm)
    g = jax.nn.elu(g)
    gcn3 = graph_norm(g, params["gcn3_norm"], M, Mt, counts)

    gcn_gat = jnp.concatenate([gat3, gcn3], axis=1)           # (N, 1024)

    # Fused global add / mean / max pooling (one pass over gcn_gat).
    x_add, x_mean, x_max = global_pools(gcn_gat, M, Mt, counts)
    x_norm_pool = jnp.concatenate([x_max, x_mean, x_add], axis=1)   # (B, 3072)
    x_norm_pool = pallas_matmul(x_norm_pool, params["lin1_w"]) + params["lin1_b"][None, :]

    # SortAggregation(k=6): graphs here are contiguous and equal-sized, so the
    # dense-batch reshape is exact (no padding / fill-value handling needed).
    # TODO(synk): per-graph sort has no clean Pallas equivalent; done with jnp.argsort.
    dense = gcn_gat.reshape(B, N // B, -1)                    # (B, n_per_graph, 1024)
    order = jnp.argsort(-dense[:, :, -1], axis=1)             # descending by last channel
    dense = jnp.take_along_axis(dense, order[:, :, None], axis=1)
    x_agg = dense[:, :SORT_K, :].reshape(B, -1)               # (B, 6144)
    x_agg = pallas_matmul(x_agg, params["lin2_w"]) + params["lin2_b"][None, :]

    out = jnp.concatenate([x_norm_pool, x_agg], axis=1)       # (B, 1024)
    # F.dropout(p=0.2) is identity in eval mode.
    # lin3 has a single output lane -> plain VPU dot (MXU would be ~0% utilized).
    out = jnp.dot(out, params["lin3_w"], preferred_element_type=jnp.float32)
    return out


# ----------------------------------------------------------------------------
# Deterministic parameter construction
# ----------------------------------------------------------------------------
def _glorot(key, shape):
    fan_in, fan_out = shape[0], shape[-1]
    std = (2.0 / (fan_in + fan_out)) ** 0.5
    return std * jax.random.normal(key, shape, dtype=jnp.float32)


def make_params(key):
    out_hidden = 512
    keys = iter(jax.random.split(key, 64))

    def gat(cin, cout):
        return dict(
            Wl=_glorot(next(keys), (cin, cout)),
            bl=jnp.zeros((cout,), jnp.float32),
            Wr=_glorot(next(keys), (cin, cout)),
            br=jnp.zeros((cout,), jnp.float32),
            att=_glorot(next(keys), (1, cout)),
            bias=jnp.zeros((1, cout), jnp.float32),
        )

    def arma(cin, cout):
        return dict(
            init_w=_glorot(next(keys), (cin, cout)),
            root_w=_glorot(next(keys), (cin, cout)),
            bias=jnp.zeros((cout,), jnp.float32),
        )

    def gnorm(c):
        return dict(
            weight=jnp.ones((c,), jnp.float32),
            bias=jnp.zeros((c,), jnp.float32),
            mean_scale=jnp.ones((c,), jnp.float32),
        )

    return dict(
        gat1=gat(1, 64), gat1_norm=gnorm(64),
        gat2=gat(64, 128), gat2_norm=gnorm(128),
        gat3=gat(128, out_hidden), gat3_norm=gnorm(out_hidden),
        gcn1=arma(1, 64), gcn1_norm=gnorm(64),
        gcn2=arma(64, 128), gcn2_norm=gnorm(128),
        gcn3=arma(128, out_hidden), gcn3_norm=gnorm(out_hidden),
        lin1_w=_glorot(next(keys), (out_hidden * 3 * 2, out_hidden)),
        lin1_b=jnp.zeros((out_hidden,), jnp.float32),
        lin2_w=_glorot(next(keys), (out_hidden * 6 * 2, out_hidden)),
        lin2_b=jnp.zeros((out_hidden,), jnp.float32),
        lin3_w=_glorot(next(keys), (out_hidden * 2, 1)),
    )


# ----------------------------------------------------------------------------
# Example graph + run
# ----------------------------------------------------------------------------
if __name__ == "__main__":
    key = jax.random.PRNGKey(0)
    k_x, k_p = jax.random.split(key)

    N_PER, B = 8, 2
    N = N_PER * B

    # two undirected ring graphs of 8 nodes each
    src, dst = [], []
    for g in range(B):
        base = g * N_PER
        for i in range(N_PER):
            j = (i + 1) % N_PER
            src += [base + i, base + j]
            dst += [base + j, base + i]
    src = jnp.asarray(src, jnp.int32)
    dst = jnp.asarray(dst, jnp.int32)

    A = jnp.zeros((N, N), jnp.float32).at[dst, src].set(1.0)   # A[target, source]
    batch = jnp.repeat(jnp.arange(B, dtype=jnp.int32), N_PER)
    M = jax.nn.one_hot(batch, B, dtype=jnp.float32)            # (N, B)
    counts = M.sum(axis=0)                                     # nodes per graph

    x = jax.random.normal(k_x, (N, 1), dtype=jnp.float32)      # node feature dim = 1
    params = make_params(k_p)

    fwd = jax.jit(gnn_v5_forward)
    out = fwd(x, A, M, counts, params)
    jax.block_until_ready(out)
    assert out.shape == (B, 1)
    print("KERNEL_OK")
</pallas_src>

<mosaic_0001>
module attributes {stable_mosaic.version = 11 : i64} {
  func.func @_gatv2_kernel(%arg0: i32, %arg1: i32, %arg2: memref<16x64xf32, #tpu.memory_space<vmem>>, %arg3: memref<16x64xf32, #tpu.memory_space<vmem>>, %arg4: memref<1x64xf32, #tpu.memory_space<vmem>>, %arg5: memref<16x16xf32, #tpu.memory_space<vmem>>, %arg6: memref<1x64xf32, #tpu.memory_space<vmem>>, %arg7: memref<16x64xf32, #tpu.memory_space<vmem>>, %arg8: memref<16x1xf32, #tpu.memory_space<vmem>>, %arg9: memref<16x1xf32, #tpu.memory_space<vmem>>, %arg10: memref<16x64xf32, #tpu.memory_space<vmem>>) attributes {dimension_semantics = [#tpu.dimension_semantics<parallel>, #tpu.dimension_semantics<arbitrary>], iteration_bounds = array<i64: 1, 1>, scalar_prefetch = 0 : i64, scratch_operands = 3 : i64, tpu.core_type = #tpu.core_type<tc>, window_params = [{transform_indices = @transform_0, window_bounds = array<i64: 16, 64>}, {transform_indices = @transform_1, window_bounds = array<i64: 16, 64>}, {pipeline_mode = #tpu.pipeline_mode<synchronous>, transform_indices = @transform_2, window_bounds = array<i64: 1, 64>}, {transform_indices = @transform_3, window_bounds = array<i64: 16, 16>}, {pipeline_mode = #tpu.pipeline_mode<synchronous>, transform_indices = @transform_4, window_bounds = array<i64: 1, 64>}, {transform_indices = @transform_5, window_bounds = array<i64: 16, 64>}]} {
    %c0_i32 = arith.constant 0 : i32
    %0 = arith.cmpi eq, %arg1, %c0_i32 : i32
    %1 = arith.extui %0 : i1 to i32
    %c0_i32_0 = arith.constant 0 : i32
    %2 = arith.cmpi ne, %1, %c0_i32_0 : i32
    scf.if %2 {
      %cst_30 = arith.constant 0xFF800000 : f32
      %53 = vector.broadcast %cst_30 : f32 to vector<16x1xf32>
      %c0_31 = arith.constant 0 : index
      %c0_32 = arith.constant 0 : index
      %54 = vector.load %arg8[%c0_31, %c0_32] : memref<16x1xf32, #tpu.memory_space<vmem>>, vector<16x1xf32>
      tpu.vector_store %arg8[%c0_31, %c0_32], %53 {strides = array<i32>} : memref<16x1xf32, #tpu.memory_space<vmem>>, vector<16x1xf32>,
      %cst_33 = arith.constant 0.000000e+00 : f32
      %55 = vector.broadcast %cst_33 : f32 to vector<16x1xf32>
      %c0_34 = arith.constant 0 : index
      %c0_35 = arith.constant 0 : index
      %56 = vector.load %arg9[%c0_34, %c0_35] : memref<16x1xf32, #tpu.memory_space<vmem>>, vector<16x1xf32>
      tpu.vector_store %arg9[%c0_34, %c0_35], %55 {strides = array<i32>} : memref<16x1xf32, #tpu.memory_space<vmem>>, vector<16x1xf32>,
      %cst_36 = arith.constant 0.000000e+00 : f32
      %57 = vector.broadcast %cst_36 : f32 to vector<16x64xf32>
      %c0_37 = arith.constant 0 : index
      %c0_38 = arith.constant 0 : index
      %58 = vector.load %arg10[%c0_37, %c0_38] : memref<16x64xf32, #tpu.memory_space<vmem>>, vector<16x64xf32>
      tpu.vector_store %arg10[%c0_37, %c0_38], %57 {strides = array<i32>} : memref<16x64xf32, #tpu.memory_space<vmem>>, vector<16x64xf32>,
    } else {
    }
    %c0 = arith.constant 0 : index
    %c0_1 = arith.constant 0 : index
    %3 = vector.load %arg2[%c0, %c0_1] : memref<16x64xf32, #tpu.memory_space<vmem>>, vector<16x64xf32>
    %c0_2 = arith.constant 0 : index
    %c0_3 = arith.constant 0 : index
    %4 = vector.load %arg3[%c0_2, %c0_3] : memref<16x64xf32, #tpu.memory_space<vmem>>, vector<16x64xf32>
    %c0_4 = arith.constant 0 : index
    %c0_5 = arith.constant 0 : index
    %5 = vector.load %arg4[%c0_4, %c0_5] : memref<1x64xf32, #tpu.memory_space<vmem>>, vector<1x64xf32>
    %c0_6 = arith.constant 0 : index
    %c0_7 = arith.constant 0 : index
    %6 = vector.load %arg5[%c0_6, %c0_7] : memref<16x16xf32, #tpu.memory_space<vmem>>, vector<16x16xf32>
    %cst = arith.constant 0.000000e+00 : f32
    %7 = vector.broadcast %cst : f32 to vector<16x16xf32>
    %8 = vector.shape_cast %4 : vector<16x64xf32> to vector<16x1x64xf32>
    %9 = vector.shape_cast %3 : vector<16x64xf32> to vector<1x16x64xf32>
    %10 = vector.broadcast %8 : vector<16x1x64xf32> to vector<16x16x64xf32>
    %11 = vector.broadcast %9 : vector<1x16x64xf32> to vector<16x16x64xf32>
    %12 = arith.addf %10, %11 : vector<16x16x64xf32>
    %cst_8 = arith.constant 0.000000e+00 : f32
    %13 = vector.broadcast %cst_8 : f32 to vector<16x16x64xf32>
    %14 = arith.cmpf ogt, %12, %13 : vector<16x16x64xf32>
    %cst_9 = arith.constant 2.000000e-01 : f32
    %15 = vector.broadcast %cst_9 : f32 to vector<16x16x64xf32>
    %16 = arith.mulf %15, %12 : vector<16x16x64xf32>
    %17 = arith.select %14, %12, %16 : vector<16x16x64xi1>, vector<16x16x64xf32>
    %18 = vector.shape_cast %5 : vector<1x64xf32> to vector<1x1x64xf32>
    %19 = vector.broadcast %18 : vector<1x1x64xf32> to vector<16x16x64xf32>
    %20 = arith.mulf %17, %19 : vector<16x16x64xf32>
    %cst_10 = arith.constant dense<0.000000e+00> : vector<16x16xf32>
    %21 = vector.multi_reduction <add>, %20, %cst_10 [2] : vector<16x16x64xf32> to vector<16x16xf32>
    %22 = arith.addf %7, %21 : vector<16x16xf32>
    %cst_11 = arith.constant 0.000000e+00 : f32
    %23 = vector.broadcast %cst_11 : f32 to vector<16x16xf32>
    %24 = arith.cmpf ogt, %6, %23 : vector<16x16xf32>
    %cst_12 = arith.constant -1.000000e+30 : f32
    %25 = vector.broadcast %cst_12 : f32 to vector<16x16xf32>
    %26 = arith.select %24, %22, %25 : vector<16x16xi1>, vector<16x16xf32>
    %c0_13 = arith.constant 0 : index
    %c0_14 = arith.constant 0 : index
    %27 = vector.load %arg8[%c0_13, %c0_14] : memref<16x1xf32, #tpu.memory_space<vmem>>, vector<16x1xf32>
    %cst_15 = arith.constant dense<0xFF800000> : vector<16xf32>
    %28 = vector.multi_reduction <maximumf>, %26, %cst_15 [1] : vector<16x16xf32> to vector<16xf32>
    %29 = vector.shape_cast %28 : vector<16xf32> to vector<16x1xf32>
    %30 = arith.maximumf %27, %29 : vector<16x1xf32>
    %31 = arith.subf %27, %30 : vector<16x1xf32>
    %32 = math.exp %31 : vector<16x1xf32>
    %33 = vector.broadcast %30 : vector<16x1xf32> to vector<16x16xf32>
    %34 = arith.subf %26, %33 : vector<16x16xf32>
    %35 = math.exp %34 : vector<16x16xf32>
    %36 = arith.mulf %35, %6 : vector<16x16xf32>
    %c0_16 = arith.constant 0 : index
    %c0_17 = arith.constant 0 : index
    %37 = vector.load %arg9[%c0_16, %c0_17] : memref<16x1xf32, #tpu.memory_space<vmem>>, vector<16x1xf32>
    %38 = arith.mulf %32, %37 : vector<16x1xf32>
    %cst_18 = arith.constant dense<0.000000e+00> : vector<16xf32>
    %39 = vector.multi_reduction <add>, %36, %cst_18 [1] : vector<16x16xf32> to vector<16xf32>
    %40 = vector.shape_cast %39 : vector<16xf32> to vector<16x1xf32>
    %41 = arith.addf %38, %40 : vector<16x1xf32>
    %c0_19 = arith.constant 0 : index
    %c0_20 = arith.constant 0 : index
    %42 = vector.load %arg9[%c0_19, %c0_20] : memref<16x1xf32, #tpu.memory_space<vmem>>, vector<16x1xf32>
    tpu.vector_store %arg9[%c0_19, %c0_20], %41 {strides = array<i32>} : memref<16x1xf32, #tpu.memory_space<vmem>>, vector<16x1xf32>,
    %c0_21 = arith.constant 0 : index
    %c0_22 = arith.constant 0 : index
    %43 = vector.load %arg10[%c0_21, %c0_22] : memref<16x64xf32, #tpu.memory_space<vmem>>, vector<16x64xf32>
    %44 = vector.broadcast %32 : vector<16x1xf32> to vector<16x64xf32>
    %45 = arith.mulf %44, %43 : vector<16x64xf32>
    %cst_23 = arith.constant dense<0.000000e+00> : vector<16x64xf32>
    %46 = tpu.matmul %36, %3, %cst_23 {dimension_numbers = #tpu.dot_dimension_numbers<[1], [0], [0], [1], [0, 0, 1, 1], [], []>} : vector<16x16xf32>, vector<16x64xf32>, vector<16x64xf32> -> vector<16x64xf32>
    %47 = arith.addf %45, %46 : vector<16x64xf32>
    %c0_24 = arith.constant 0 : index
    %c0_25 = arith.constant 0 : index
    %48 = vector.load %arg10[%c0_24, %c0_25] : memref<16x64xf32, #tpu.memory_space<vmem>>, vector<16x64xf32>
    tpu.vector_store %arg10[%c0_24, %c0_25], %47 {strides = array<i32>} : memref<16x64xf32, #tpu.memory_space<vmem>>, vector<16x64xf32>,
    %c0_26 = arith.constant 0 : index
    %c0_27 = arith.constant 0 : index
    %49 = vector.load %arg8[%c0_26, %c0_27] : memref<16x1xf32, #tpu.memory_space<vmem>>, vector<16x1xf32>
    tpu.vector_store %arg8[%c0_26, %c0_27], %30 {strides = array<i32>} : memref<16x1xf32, #tpu.memory_space<vmem>>, vector<16x1xf32>,
    %c0_i32_28 = arith.constant 0 : i32
    %50 = arith.cmpi eq, %arg1, %c0_i32_28 : i32
    %51 = arith.extui %50 : i1 to i32
    %c0_i32_29 = arith.constant 0 : i32
    %52 = arith.cmpi ne, %51, %c0_i32_29 : i32
    scf.if %52 {
      %c0_30 = arith.constant 0 : index
      %c0_31 = arith.constant 0 : index
      %53 = vector.load %arg9[%c0_30, %c0_31] : memref<16x1xf32, #tpu.memory_space<vmem>>, vector<16x1xf32>
      %54 = tpu.reciprocal %53 {approx = true} : vector<16x1xf32> -> vector<16x1xf32>
      %c0_32 = arith.constant 0 : index
      %c0_33 = arith.constant 0 : index
      %55 = vector.load %arg10[%c0_32, %c0_33] : memref<16x64xf32, #tpu.memory_space<vmem>>, vector<16x64xf32>
      %56 = vector.broadcast %54 : vector<16x1xf32> to vector<16x64xf32>
      %57 = arith.mulf %55, %56 : vector<16x64xf32>
      %c0_34 = arith.constant 0 : index
      %c0_35 = arith.constant 0 : index
      %58 = vector.load %arg6[%c0_34, %c0_35] : memref<1x64xf32, #tpu.memory_space<vmem>>, vector<1x64xf32>
      %59 = vector.broadcast %58 : vector<1x64xf32> to vector<16x64xf32>
      %60 = arith.addf %57, %59 : vector<16x64xf32>
      %c0_36 = arith.constant 0 : index
      %c0_37 = arith.constant 0 : index
      %61 = vector.load %arg7[%c0_36, %c0_37] : memref<16x64xf32, #tpu.memory_space<vmem>>, vector<16x64xf32>
      tpu.vector_store %arg7[%c0_36, %c0_37], %60 {strides = array<i32>} : memref<16x64xf32, #tpu.memory_space<vmem>>, vector<16x64xf32>,
    } else {
    }
    return
  }
  func.func @transform_0(%arg0: i32, %arg1: i32) -> (i32, i32) {
    %c0_i32 = arith.constant 0 : i32
    %c0_i32_0 = arith.constant 0 : i32
    return %arg1, %c0_i32 : i32, i32
  }
  func.func @transform_1(%arg0: i32, %arg1: i32) -> (i32, i32) {
    %c0_i32 = arith.constant 0 : i32
    %c0_i32_0 = arith.constant 0 : i32
    return %arg0, %c0_i32 : i32, i32
  }
  func.func @transform_2(%arg0: i32, %arg1: i32) -> (i32, i32) {
    %c0_i32 = arith.constant 0 : i32
    %c0_i32_0 = arith.constant 0 : i32
    %c0_i32_1 = arith.constant 0 : i32
    return %c0_i32, %c0_i32_0 : i32, i32
  }
  func.func @transform_3(%arg0: i32, %arg1: i32) -> (i32, i32) {
    %c0_i32 = arith.constant 0 : i32
    return %arg0, %arg1 : i32, i32
  }
  func.func @transform_4(%arg0: i32, %arg1: i32) -> (i32, i32) {
    %c0_i32 = arith.constant 0 : i32
    %c0_i32_0 = arith.constant 0 : i32
    %c0_i32_1 = arith.constant 0 : i32
    return %c0_i32, %c0_i32_0 : i32, i32
  }
  func.func @transform_5(%arg0: i32, %arg1: i32) -> (i32, i32) {
    %c0_i32 = arith.constant 0 : i32
    %c0_i32_0 = arith.constant 0 : i32
    return %arg0, %c0_i32 : i32, i32
  }
}

module attributes {stable_mosaic.version = 11 : i64} {
  func.func @_matmul_kernel(%arg0: i32, %arg1: i32, %arg2: i32, %arg3: memref<16x16xbf16, #tpu.memory_space<vmem>>, %arg4: memref<16x64xbf16, #tpu.memory_space<vmem>>, %arg5: memref<16x64xf32, #tpu.memory_space<vmem>>) attributes {dimension_semantics = [#tpu.dimension_semantics<parallel>, #tpu.dimension_semantics<parallel>, #tpu.dimension_semantics<arbitrary>], iteration_bounds = array<i64: 1, 1, 1>, scalar_prefetch = 0 : i64, scratch_operands = 0 : i64, tpu.core_type = #tpu.core_type<tc>, window_params = [{transform_indices = @transform_0, window_bounds = array<i64: 16, 16>}, {transform_indices = @transform_1, window_bounds = array<i64: 16, 64>}, {transform_indices = @transform_2, window_bounds = array<i64: 16, 64>}]} {
    %c0_i32 = arith.constant 0 : i32
    %0 = arith.cmpi eq, %arg2, %c0_i32 : i32
    %1 = arith.extui %0 : i1 to i32
    %c0_i32_0 = arith.constant 0 : i32
    %2 = arith.cmpi ne, %1, %c0_i32_0 : i32
    scf.if %2 {
      %cst_8 = arith.constant 0.000000e+00 : f32
      %9 = vector.broadcast %cst_8 : f32 to vector<16x64xf32>
      %c0_9 = arith.constant 0 : index
      %c0_10 = arith.constant 0 : index
      %10 = vector.load %arg5[%c0_9, %c0_10] : memref<16x64xf32, #tpu.memory_space<vmem>>, vector<16x64xf32>
      tpu.vector_store %arg5[%c0_9, %c0_10], %9 {strides = array<i32>} : memref<16x64xf32, #tpu.memory_space<vmem>>, vector<16x64xf32>,
    } else {
    }
    %c0 = arith.constant 0 : index
    %c0_1 = arith.constant 0 : index
    %3 = vector.load %arg5[%c0, %c0_1] : memref<16x64xf32, #tpu.memory_space<vmem>>, vector<16x64xf32>
    %c0_2 = arith.constant 0 : index
    %c0_3 = arith.constant 0 : index
    %4 = vector.load %arg3[%c0_2, %c0_3] : memref<16x16xbf16, #tpu.memory_space<vmem>>, vector<16x16xbf16>
    %c0_4 = arith.constant 0 : index
    %c0_5 = arith.constant 0 : index
    %5 = vector.load %arg4[%c0_4, %c0_5] : memref<16x64xbf16, #tpu.memory_space<vmem>>, vector<16x64xbf16>
    %cst = arith.constant dense<0.000000e+00> : vector<16x64xf32>
    %6 = tpu.matmul %4, %5, %cst {dimension_numbers = #tpu.dot_dimension_numbers<[1], [0], [0], [1], [0, 0, 1, 1], [], []>} : vector<16x16xbf16>, vector<16x64xbf16>, vector<16x64xf32> -> vector<16x64xf32>
    %7 = arith.addf %3, %6 : vector<16x64xf32>
    %c0_6 = arith.constant 0 : index
    %c0_7 = arith.constant 0 : index
    %8 = vector.load %arg5[%c0_6, %c0_7] : memref<16x64xf32, #tpu.memory_space<vmem>>, vector<16x64xf32>
    tpu.vector_store %arg5[%c0_6, %c0_7], %7 {strides = array<i32>} : memref<16x64xf32, #tpu.memory_space<vmem>>, vector<16x64xf32>,
    return
  }
  func.func @transform_0(%arg0: i32, %arg1: i32, %arg2: i32) -> (i32, i32) {
    %c0_i32 = arith.constant 0 : i32
    return %arg0, %arg2 : i32, i32
  }
  func.func @transform_1(%arg0: i32, %arg1: i32, %arg2: i32) -> (i32, i32) {
    %c0_i32 = arith.constant 0 : i32
    return %arg2, %arg1 : i32, i32
  }
  func.func @transform_2(%arg0: i32, %arg1: i32, %arg2: i32) -> (i32, i32) {
    %c0_i32 = arith.constant 0 : i32
    return %arg0, %arg1 : i32, i32
  }
}

module attributes {stable_mosaic.version = 11 : i64} {
  func.func @_graphnorm_stats_kernel(%arg0: i32, %arg1: memref<16x64xf32, #tpu.memory_space<vmem>>, %arg2: memref<2x16xf32, #tpu.memory_space<vmem>>, %arg3: memref<2x64xf32, #tpu.memory_space<vmem>>, %arg4: memref<2x64xf32, #tpu.memory_space<vmem>>) attributes {dimension_semantics = [#tpu.dimension_semantics<arbitrary>], iteration_bounds = array<i64: 1>, scalar_prefetch = 0 : i64, scratch_operands = 0 : i64, tpu.core_type = #tpu.core_type<tc>, window_params = [{transform_indices = @transform_0, window_bounds = array<i64: 16, 64>}, {transform_indices = @transform_1, window_bounds = array<i64: 2, 16>}, {pipeline_mode = #tpu.pipeline_mode<synchronous>, transform_indices = @transform_2, window_bounds = array<i64: 2, 64>}, {pipeline_mode = #tpu.pipeline_mode<synchronous>, transform_indices = @transform_3, window_bounds = array<i64: 2, 64>}]} {
    %c0_i32 = arith.constant 0 : i32
    %0 = arith.cmpi eq, %arg0, %c0_i32 : i32
    %1 = arith.extui %0 : i1 to i32
    %c0_i32_0 = arith.constant 0 : i32
    %2 = arith.cmpi ne, %1, %c0_i32_0 : i32
    scf.if %2 {
      %cst_13 = arith.constant 0.000000e+00 : f32
      %14 = vector.broadcast %cst_13 : f32 to vector<2x64xf32>
      %c0_14 = arith.constant 0 : index
      %c0_15 = arith.constant 0 : index
      %15 = vector.load %arg3[%c0_14, %c0_15] : memref<2x64xf32, #tpu.memory_space<vmem>>, vector<2x64xf32>
      tpu.vector_store %arg3[%c0_14, %c0_15], %14 {strides = array<i32>} : memref<2x64xf32, #tpu.memory_space<vmem>>, vector<2x64xf32>,
      %cst_16 = arith.constant 0.000000e+00 : f32
      %16 = vector.broadcast %cst_16 : f32 to vector<2x64xf32>
      %c0_17 = arith.constant 0 : index
      %c0_18 = arith.constant 0 : index
      %17 = vector.load %arg4[%c0_17, %c0_18] : memref<2x64xf32, #tpu.memory_space<vmem>>, vector<2x64xf32>
      tpu.vector_store %arg4[%c0_17, %c0_18], %16 {strides = array<i32>} : memref<2x64xf32, #tpu.memory_space<vmem>>, vector<2x64xf32>,
    } else {
    }
    %c0 = arith.constant 0 : index
    %c0_1 = arith.constant 0 : index
    %3 = vector.load %arg1[%c0, %c0_1] : memref<16x64xf32, #tpu.memory_space<vmem>>, vector<16x64xf32>
    %c0_2 = arith.constant 0 : index
    %c0_3 = arith.constant 0 : index
    %4 = vector.load %arg2[%c0_2, %c0_3] : memref<2x16xf32, #tpu.memory_space<vmem>>, vector<2x16xf32>
    %c0_4 = arith.constant 0 : index
    %c0_5 = arith.constant 0 : index
    %5 = vector.load %arg3[%c0_4, %c0_5] : memref<2x64xf32, #tpu.memory_space<vmem>>, vector<2x64xf32>
    %cst = arith.constant dense<0.000000e+00> : vector<2x64xf32>
    %6 = tpu.matmul %4, %3, %cst {dimension_numbers = #tpu.dot_dimension_numbers<[1], [0], [0], [1], [0, 0, 1, 1], [], []>} : vector<2x16xf32>, vector<16x64xf32>, vector<2x64xf32> -> vector<2x64xf32>
    %7 = arith.addf %5, %6 : vector<2x64xf32>
    %c0_6 = arith.constant 0 : index
    %c0_7 = arith.constant 0 : index
    %8 = vector.load %arg3[%c0_6, %c0_7] : memref<2x64xf32, #tpu.memory_space<vmem>>, vector<2x64xf32>
    tpu.vector_store %arg3[%c0_6, %c0_7], %7 {strides = array<i32>} : memref<2x64xf32, #tpu.memory_space<vmem>>, vector<2x64xf32>,
    %c0_8 = arith.constant 0 : index
    %c0_9 = arith.constant 0 : index
    %9 = vector.load %arg4[%c0_8, %c0_9] : memref<2x64xf32, #tpu.memory_space<vmem>>, vector<2x64xf32>
    %10 = arith.mulf %3, %3 : vector<16x64xf32>
    %cst_10 = arith.constant dense<0.000000e+00> : vector<2x64xf32>
    %11 = tpu.matmul %4, %10, %cst_10 {dimension_numbers = #tpu.dot_dimension_numbers<[1], [0], [0], [1], [0, 0, 1, 1], [], []>} : vector<2x16xf32>, vector<16x64xf32>, vector<2x64xf32> -> vector<2x64xf32>
    %12 = arith.addf %9, %11 : vector<2x64xf32>
    %c0_11 = arith.constant 0 : index
    %c0_12 = arith.constant 0 : index
    %13 = vector.load %arg4[%c0_11, %c0_12] : memref<2x64xf32, #tpu.memory_space<vmem>>, vector<2x64xf32>
    tpu.vector_store %arg4[%c0_11, %c0_12], %12 {strides = array<i32>} : memref<2x64xf32, #tpu.memory_space<vmem>>, vector<2x64xf32>,
    return
  }
  func.func @transform_0(%arg0: i32) -> (i32, i32) {
    %c0_i32 = arith.constant 0 : i32
    %c0_i32_0 = arith.constant 0 : i32
    return %arg0, %c0_i32 : i32, i32
  }
  func.func @transform_1(%arg0: i32) -> (i32, i32) {
    %c0_i32 = arith.constant 0 : i32
    %c0_i32_0 = arith.constant 0 : i32
    return %c0_i32, %arg0 : i32, i32
  }
  func.func @transform_2(%arg0: i32) -> (i32, i32) {
    %c0_i32 = arith.constant 0 : i32
    %c0_i32_0 = arith.constant 0 : i32
    %c0_i32_1 = arith.constant 0 : i32
    return %c0_i32, %c0_i32_0 : i32, i32
  }
  func.func @transform_3(%arg0: i32) -> (i32, i32) {
    %c0_i32 = arith.constant 0 : i32
    %c0_i32_0 = arith.constant 0 : i32
    %c0_i32_1 = arith.constant 0 : i32
    return %c0_i32, %c0_i32_0 : i32, i32
  }
}

module attributes {stable_mosaic.version = 11 : i64} {
  func.func @_graphnorm_apply_kernel(%arg0: i32, %arg1: memref<16x64xf32, #tpu.memory_space<vmem>>, %arg2: memref<16x2xf32, #tpu.memory_space<vmem>>, %arg3: memref<2x64xf32, #tpu.memory_space<vmem>>, %arg4: memref<2x64xf32, #tpu.memory_space<vmem>>, %arg5: memref<1x64xf32, #tpu.memory_space<vmem>>, %arg6: memref<1x64xf32, #tpu.memory_space<vmem>>, %arg7: memref<1x64xf32, #tpu.memory_space<vmem>>, %arg8: memref<16x64xf32, #tpu.memory_space<vmem>>) attributes {dimension_semantics = [#tpu.dimension_semantics<parallel>], iteration_bounds = array<i64: 1>, scalar_prefetch = 0 : i64, scratch_operands = 0 : i64, tpu.core_type = #tpu.core_type<tc>, window_params = [{transform_indices = @transform_0, window_bounds = array<i64: 16, 64>}, {transform_indices = @transform_1, window_bounds = array<i64: 16, 2>}, {pipeline_mode = #tpu.pipeline_mode<synchronous>, transform_indices = @transform_2, window_bounds = array<i64: 2, 64>}, {pipeline_mode = #tpu.pipeline_mode<synchronous>, transform_indices = @transform_3, window_bounds = array<i64: 2, 64>}, {pipeline_mode = #tpu.pipeline_mode<synchronous>, transform_indices = @transform_4, window_bounds = array<i64: 1, 64>}, {pipeline_mode = #tpu.pipeline_mode<synchronous>, transform_indices = @transform_5, window_bounds = array<i64: 1, 64>}, {pipeline_mode = #tpu.pipeline_mode<synchronous>, transform_indices = @transform_6, window_bounds = array<i64: 1, 64>}, {transform_indices = @transform_7, window_bounds = array<i64: 16, 64>}]} {
    %c0 = arith.constant 0 : index
    %c0_0 = arith.constant 0 : index
    %0 = vector.load %arg1[%c0, %c0_0] : memref<16x64xf32, #tpu.memory_space<vmem>>, vector<16x64xf32>
    %c0_1 = arith.constant 0 : index
    %c0_2 = arith.constant 0 : index
    %1 = vector.load %arg2[%c0_1, %c0_2] : memref<16x2xf32, #tpu.memory_space<vmem>>, vector<16x2xf32>
    %c0_3 = arith.constant 0 : index
    %c0_4 = arith.constant 0 : index
    %2 = vector.load %arg3[%c0_3, %c0_4] : memref<2x64xf32, #tpu.memory_space<vmem>>, vector<2x64xf32>
    %cst = arith.constant dense<0.000000e+00> : vector<16x64xf32>
    %3 = tpu.matmul %1, %2, %cst {dimension_numbers = #tpu.dot_dimension_numbers<[1], [0], [0], [1], [0, 0, 1, 1], [], []>} : vector<16x2xf32>, vector<2x64xf32>, vector<16x64xf32> -> vector<16x64xf32>
    %c0_5 = arith.constant 0 : index
    %c0_6 = arith.constant 0 : index
    %4 = vector.load %arg4[%c0_5, %c0_6] : memref<2x64xf32, #tpu.memory_space<vmem>>, vector<2x64xf32>
    %cst_7 = arith.constant dense<0.000000e+00> : vector<16x64xf32>
    %5 = tpu.matmul %1, %4, %cst_7 {dimension_numbers = #tpu.dot_dimension_numbers<[1], [0], [0], [1], [0, 0, 1, 1], [], []>} : vector<16x2xf32>, vector<2x64xf32>, vector<16x64xf32> -> vector<16x64xf32>
    %c0_8 = arith.constant 0 : index
    %c0_9 = arith.constant 0 : index
    %6 = vector.load %arg7[%c0_8, %c0_9] : memref<1x64xf32, #tpu.memory_space<vmem>>, vector<1x64xf32>
    %7 = vector.broadcast %6 : vector<1x64xf32> to vector<16x64xf32>
    %8 = arith.mulf %7, %3 : vector<16x64xf32>
    %9 = arith.subf %0, %8 : vector<16x64xf32>
    %c0_10 = arith.constant 0 : index
    %c0_11 = arith.constant 0 : index
    %10 = vector.load %arg5[%c0_10, %c0_11] : memref<1x64xf32, #tpu.memory_space<vmem>>, vector<1x64xf32>
    %11 = vector.broadcast %10 : vector<1x64xf32> to vector<16x64xf32>
    %12 = arith.mulf %11, %9 : vector<16x64xf32>
    %13 = arith.mulf %12, %5 : vector<16x64xf32>
    %c0_12 = arith.constant 0 : index
    %c0_13 = arith.constant 0 : index
    %14 = vector.load %arg6[%c0_12, %c0_13] : memref<1x64xf32, #tpu.memory_space<vmem>>, vector<1x64xf32>
    %15 = vector.broadcast %14 : vector<1x64xf32> to vector<16x64xf32>
    %16 = arith.addf %13, %15 : vector<16x64xf32>
    %c0_14 = arith.constant 0 : index
    %c0_15 = arith.constant 0 : index
    %17 = vector.load %arg8[%c0_14, %c0_15] : memref<16x64xf32, #tpu.memory_space<vmem>>, vector<16x64xf32>
    tpu.vector_store %arg8[%c0_14, %c0_15], %16 {strides = array<i32>} : memref<16x64xf32, #tpu.memory_space<vmem>>, vector<16x64xf32>,
    return
  }
  func.func @transform_0(%arg0: i32) -> (i32, i32) {
    %c0_i32 = arith.constant 0 : i32
    %c0_i32_0 = arith.constant 0 : i32
    return %arg0, %c0_i32 : i32, i32
  }
  func.func @transform_1(%arg0: i32) -> (i32, i32) {
    %c0_i32 = arith.constant 0 : i32
    %c0_i32_0 = arith.constant 0 : i32
    return %arg0, %c0_i32 : i32, i32
  }
  func.func @transform_2(%arg0: i32) -> (i32, i32) {
    %c0_i32 = arith.constant 0 : i32
    %c0_i32_0 = arith.constant 0 : i32
    %c0_i32_1 = arith.constant 0 : i32
    return %c0_i32, %c0_i32_0 : i32, i32
  }
  func.func @transform_3(%arg0: i32) -> (i32, i32) {
    %c0_i32 = arith.constant 0 : i32
    %c0_i32_0 = arith.constant 0 : i32
    %c0_i32_1 = arith.constant 0 : i32
    return %c0_i32, %c0_i32_0 : i32, i32
  }
  func.func @transform_4(%arg0: i32) -> (i32, i32) {
    %c0_i32 = arith.constant 0 : i32
    %c0_i32_0 = arith.constant 0 : i32
    %c0_i32_1 = arith.constant 0 : i32
    return %c0_i32, %c0_i32_0 : i32, i32
  }
  func.func @transform_5(%arg0: i32) -> (i32, i32) {
    %c0_i32 = arith.constant 0 : i32
    %c0_i32_0 = arith.constant 0 : i32
    %c0_i32_1 = arith.constant 0 : i32
    return %c0_i32, %c0_i32_0 : i32, i32
  }
  func.func @transform_6(%arg0: i32) -> (i32, i32) {
    %c0_i32 = arith.constant 0 : i32
    %c0_i32_0 = arith.constant 0 : i32
    %c0_i32_1 = arith.constant 0 : i32
    return %c0_i32, %c0_i32_0 : i32, i32
  }
  func.func @transform_7(%arg0: i32) -> (i32, i32) {
    %c0_i32 = arith.constant 0 : i32
    %c0_i32_0 = arith.constant 0 : i32
    return %arg0, %c0_i32 : i32, i32
  }
}

module attributes {stable_mosaic.version = 11 : i64} {
  func.func @_matmul_kernel(%arg0: i32, %arg1: i32, %arg2: i32, %arg3: memref<16x64xbf16, #tpu.memory_space<vmem>>, %arg4: memref<64x128xbf16, #tpu.memory_space<vmem>>, %arg5: memref<16x128xf32, #tpu.memory_space<vmem>>) attributes {dimension_semantics = [#tpu.dimension_semantics<parallel>, #tpu.dimension_semantics<parallel>, #tpu.dimension_semantics<arbitrary>], iteration_bounds = array<i64: 1, 1, 1>, scalar_prefetch = 0 : i64, scratch_operands = 0 : i64, tpu.core_type = #tpu.core_type<tc>, window_params = [{transform_indices = @transform_0, window_bounds = array<i64: 16, 64>}, {transform_indices = @transform_1, window_bounds = array<i64: 64, 128>}, {transform_indices = @transform_2, window_bounds = array<i64: 16, 128>}]} {
    %c0_i32 = arith.constant 0 : i32
    %0 = arith.cmpi eq, %arg2, %c0_i32 : i32
    %1 = arith.extui %0 : i1 to i32
    %c0_i32_0 = arith.constant 0 : i32
    %2 = arith.cmpi ne, %1, %c0_i32_0 : i32
    scf.if %2 {
      %cst_8 = arith.constant 0.000000e+00 : f32
      %9 = vector.broadcast %cst_8 : f32 to vector<16x128xf32>
      %c0_9 = arith.constant 0 : index
      %c0_10 = arith.constant 0 : index
      %10 = vector.load %arg5[%c0_9, %c0_10] : memref<16x128xf32, #tpu.memory_space<vmem>>, vector<16x128xf32>
      tpu.vector_store %arg5[%c0_9, %c0_10], %9 {strides = array<i32>} : memref<16x128xf32, #tpu.memory_space<vmem>>, vector<16x128xf32>,
    } else {
    }
    %c0 = arith.constant 0 : index
    %c0_1 = arith.constant 0 : index
    %3 = vector.load %arg5[%c0, %c0_1] : memref<16x128xf32, #tpu.memory_space<vmem>>, vector<16x128xf32>
    %c0_2 = arith.constant 0 : index
    %c0_3 = arith.constant 0 : index
    %4 = vector.load %arg3[%c0_2, %c0_3] : memref<16x64xbf16, #tpu.memory_space<vmem>>, vector<16x64xbf16>
    %c0_4 = arith.constant 0 : index
    %c0_5 = arith.constant 0 : index
    %5 = vector.load %arg4[%c0_4, %c0_5] : memref<64x128xbf16, #tpu.memory_space<vmem>>, vector<64x128xbf16>
    %cst = arith.constant dense<0.000000e+00> : vector<16x128xf32>
    %6 = tpu.matmul %4, %5, %cst {dimension_numbers = #tpu.dot_dimension_numbers<[1], [0], [0], [1], [0, 0, 1, 1], [], []>} : vector<16x64xbf16>, vector<64x128xbf16>, vector<16x128xf32> -> vector<16x128xf32>
    %7 = arith.addf %3, %6 : vector<16x128xf32>
    %c0_6 = arith.constant 0 : index
    %c0_7 = arith.constant 0 : index
    %8 = vector.load %arg5[%c0_6, %c0_7] : memref<16x128xf32, #tpu.memory_space<vmem>>, vector<16x128xf32>
    tpu.vector_store %arg5[%c0_6, %c0_7], %7 {strides = array<i32>} : memref<16x128xf32, #tpu.memory_space<vmem>>, vector<16x128xf32>,
    return
  }
  func.func @transform_0(%arg0: i32, %arg1: i32, %arg2: i32) -> (i32, i32) {
    %c0_i32 = arith.constant 0 : i32
    return %arg0, %arg2 : i32, i32
  }
  func.func @transform_1(%arg0: i32, %arg1: i32, %arg2: i32) -> (i32, i32) {
    %c0_i32 = arith.constant 0 : i32
    return %arg2, %arg1 : i32, i32
  }
  func.func @transform_2(%arg0: i32, %arg1: i32, %arg2: i32) -> (i32, i32) {
    %c0_i32 = arith.constant 0 : i32
    return %arg0, %arg1 : i32, i32
  }
}

module attributes {stable_mosaic.version = 11 : i64} {
  func.func @_gatv2_kernel(%arg0: i32, %arg1: i32, %arg2: memref<16x128xf32, #tpu.memory_space<vmem>>, %arg3: memref<16x128xf32, #tpu.memory_space<vmem>>, %arg4: memref<1x128xf32, #tpu.memory_space<vmem>>, %arg5: memref<16x16xf32, #tpu.memory_space<vmem>>, %arg6: memref<1x128xf32, #tpu.memory_space<vmem>>, %arg7: memref<16x128xf32, #tpu.memory_space<vmem>>, %arg8: memref<16x1xf32, #tpu.memory_space<vmem>>, %arg9: memref<16x1xf32, #tpu.memory_space<vmem>>, %arg10: memref<16x128xf32, #tpu.memory_space<vmem>>) attributes {dimension_semantics = [#tpu.dimension_semantics<parallel>, #tpu.dimension_semantics<arbitrary>], iteration_bounds = array<i64: 1, 1>, scalar_prefetch = 0 : i64, scratch_operands = 3 : i64, tpu.core_type = #tpu.core_type<tc>, window_params = [{transform_indices = @transform_0, window_bounds = array<i64: 16, 128>}, {transform_indices = @transform_1, window_bounds = array<i64: 16, 128>}, {pipeline_mode = #tpu.pipeline_mode<synchronous>, transform_indices = @transform_2, window_bounds = array<i64: 1, 128>}, {transform_indices = @transform_3, window_bounds = array<i64: 16, 16>}, {pipeline_mode = #tpu.pipeline_mode<synchronous>, transform_indices = @transform_4, window_bounds = array<i64: 1, 128>}, {transform_indices = @transform_5, window_bounds = array<i64: 16, 128>}]} {
    %c0_i32 = arith.constant 0 : i32
    %0 = arith.cmpi eq, %arg1, %c0_i32 : i32
    %1 = arith.extui %0 : i1 to i32
    %c0_i32_0 = arith.constant 0 : i32
    %2 = arith.cmpi ne, %1, %c0_i32_0 : i32
    scf.if %2 {
      %cst_33 = arith.constant 0xFF800000 : f32
      %74 = vector.broadcast %cst_33 : f32 to vector<16x1xf32>
      %c0_34 = arith.constant 0 : index
      %c0_35 = arith.constant 0 : index
      %75 = vector.load %arg8[%c0_34, %c0_35] : memref<16x1xf32, #tpu.memory_space<vmem>>, vector<16x1xf32>
      tpu.vector_store %arg8[%c0_34, %c0_35], %74 {strides = array<i32>} : memref<16x1xf32, #tpu.memory_space<vmem>>, vector<16x1xf32>,
      %cst_36 = arith.constant 0.000000e+00 : f32
      %76 = vector.broadcast %cst_36 : f32 to vector<16x1xf32>
      %c0_37 = arith.constant 0 : index
      %c0_38 = arith.constant 0 : index
      %77 = vector.load %arg9[%c0_37, %c0_38] : memref<16x1xf32, #tpu.memory_space<vmem>>, vector<16x1xf32>
      tpu.vector_store %arg9[%c0_37, %c0_38], %76 {strides = array<i32>} : memref<16x1xf32, #tpu.memory_space<vmem>>, vector<16x1xf32>,
      %cst_39 = arith.constant 0.000000e+00 : f32
      %78 = vector.broadcast %cst_39 : f32 to vector<16x128xf32>
      %c0_40 = arith.constant 0 : index
      %c0_41 = arith.constant 0 : index
      %79 = vector.load %arg10[%c0_40, %c0_41] : memref<16x128xf32, #tpu.memory_space<vmem>>, vector<16x128xf32>
      tpu.vector_store %arg10[%c0_40, %c0_41], %78 {strides = array<i32>} : memref<16x128xf32, #tpu.memory_space<vmem>>, vector<16x128xf32>,
    } else {
    }
    %c0 = arith.constant 0 : index
    %c0_1 = arith.constant 0 : index
    %3 = vector.load %arg2[%c0, %c0_1] : memref<16x128xf32, #tpu.memory_space<vmem>>, vector<16x128xf32>
    %c0_2 = arith.constant 0 : index
    %c0_3 = arith.constant 0 : index
    %4 = vector.load %arg3[%c0_2, %c0_3] : memref<16x128xf32, #tpu.memory_space<vmem>>, vector<16x128xf32>
    %c0_4 = arith.constant 0 : index
    %c0_5 = arith.constant 0 : index
    %5 = vector.load %arg4[%c0_4, %c0_5] : memref<1x128xf32, #tpu.memory_space<vmem>>, vector<1x128xf32>
    %c0_6 = arith.constant 0 : index
    %c0_7 = arith.constant 0 : index
    %6 = vector.load %arg5[%c0_6, %c0_7] : memref<16x16xf32, #tpu.memory_space<vmem>>, vector<16x16xf32>
    %cst = arith.constant 0.000000e+00 : f32
    %7 = vector.broadcast %cst : f32 to vector<16x16xf32>
    %8 = vector.extract_strided_slice %4 {offsets = [0, 0], sizes = [16, 64], strides = [1, 1]} : vector<16x128xf32> to vector<16x64xf32>
    %9 = vector.shape_cast %8 : vector<16x64xf32> to vector<16x1x64xf32>
    %10 = vector.extract_strided_slice %3 {offsets = [0, 0], sizes = [16, 64], strides = [1, 1]} : vector<16x128xf32> to vector<16x64xf32>
    %11 = vector.shape_cast %10 : vector<16x64xf32> to vector<1x16x64xf32>
    %12 = vector.broadcast %9 : vector<16x1x64xf32> to vector<16x16x64xf32>
    %13 = vector.broadcast %11 : vector<1x16x64xf32> to vector<16x16x64xf32>
    %14 = arith.addf %12, %13 : vector<16x16x64xf32>
    %cst_8 = arith.constant 0.000000e+00 : f32
    %15 = vector.broadcast %cst_8 : f32 to vector<16x16x64xf32>
    %16 = arith.cmpf ogt, %14, %15 : vector<16x16x64xf32>
    %cst_9 = arith.constant 2.000000e-01 : f32
    %17 = vector.broadcast %cst_9 : f32 to vector<16x16x64xf32>
    %18 = arith.mulf %17, %14 : vector<16x16x64xf32>
    %19 = arith.select %16, %14, %18 : vector<16x16x64xi1>, vector<16x16x64xf32>
    %20 = vector.extract_strided_slice %5 {offsets = [0, 0], sizes = [1, 64], strides = [1, 1]} : vector<1x128xf32> to vector<1x64xf32>
    %21 = vector.shape_cast %20 : vector<1x64xf32> to vector<1x1x64xf32>
    %22 = vector.broadcast %21 : vector<1x1x64xf32> to vector<16x16x64xf32>
    %23 = arith.mulf %19, %22 : vector<16x16x64xf32>
    %cst_10 = arith.constant dense<0.000000e+00> : vector<16x16xf32>
    %24 = vector.multi_reduction <add>, %23, %cst_10 [2] : vector<16x16x64xf32> to vector<16x16xf32>
    %25 = arith.addf %7, %24 : vector<16x16xf32>
    %26 = vector.extract_strided_slice %4 {offsets = [0, 64], sizes = [16, 64], strides = [1, 1]} : vector<16x128xf32> to vector<16x64xf32>
    %27 = vector.shape_cast %26 : vector<16x64xf32> to vector<16x1x64xf32>
    %28 = vector.extract_strided_slice %3 {offsets = [0, 64], sizes = [16, 64], strides = [1, 1]} : vector<16x128xf32> to vector<16x64xf32>
    %29 = vector.shape_cast %28 : vector<16x64xf32> to vector<1x16x64xf32>
    %30 = vector.broadcast %27 : vector<16x1x64xf32> to vector<16x16x64xf32>
    %31 = vector.broadcast %29 : vector<1x16x64xf32> to vector<16x16x64xf32>
    %32 = arith.addf %30, %31 : vector<16x16x64xf32>
    %cst_11 = arith.constant 0.000000e+00 : f32
    %33 = vector.broadcast %cst_11 : f32 to vector<16x16x64xf32>
    %34 = arith.cmpf ogt, %32, %33 : vector<16x16x64xf32>
    %cst_12 = arith.constant 2.000000e-01 : f32
    %35 = vector.broadcast %cst_12 : f32 to vector<16x16x64xf32>
    %36 = arith.mulf %35, %32 : vector<16x16x64xf32>
    %37 = arith.select %34, %32, %36 : vector<16x16x64xi1>, vector<16x16x64xf32>
    %38 = vector.extract_strided_slice %5 {offsets = [0, 64], sizes = [1, 64], strides = [1, 1]} : vector<1x128xf32> to vector<1x64xf32>
    %39 = vector.shape_cast %38 : vector<1x64xf32> to vector<1x1x64xf32>
    %40 = vector.broadcast %39 : vector<1x1x64xf32> to vector<16x16x64xf32>
    %41 = arith.mulf %37, %40 : vector<16x16x64xf32>
    %cst_13 = arith.constant dense<0.000000e+00> : vector<16x16xf32>
    %42 = vector.multi_reduction <add>, %41, %cst_13 [2] : vector<16x16x64xf32> to vector<16x16xf32>
    %43 = arith.addf %25, %42 : vector<16x16xf32>
    %cst_14 = arith.constant 0.000000e+00 : f32
    %44 = vector.broadcast %cst_14 : f32 to vector<16x16xf32>
    %45 = arith.cmpf ogt, %6, %44 : vector<16x16xf32>
    %cst_15 = arith.constant -1.000000e+30 : f32
    %46 = vector.broadcast %cst_15 : f32 to vector<16x16xf32>
    %47 = arith.select %45, %43, %46 : vector<16x16xi1>, vector<16x16xf32>
    %c0_16 = arith.constant 0 : index
    %c0_17 = arith.constant 0 : index
    %48 = vector.load %arg8[%c0_16, %c0_17] : memref<16x1xf32, #tpu.memory_space<vmem>>, vector<16x1xf32>
    %cst_18 = arith.constant dense<0xFF800000> : vector<16xf32>
    %49 = vector.multi_reduction <maximumf>, %47, %cst_18 [1] : vector<16x16xf32> to vector<16xf32>
    %50 = vector.shape_cast %49 : vector<16xf32> to vector<16x1xf32>
    %51 = arith.maximumf %48, %50 : vector<16x1xf32>
    %52 = arith.subf %48, %51 : vector<16x1xf32>
    %53 = math.exp %52 : vector<16x1xf32>
    %54 = vector.broadcast %51 : vector<16x1xf32> to vector<16x16xf32>
    %55 = arith.subf %47, %54 : vector<16x16xf32>
    %56 = math.exp %55 : vector<16x16xf32>
    %57 = arith.mulf %56, %6 : vector<16x16xf32>
    %c0_19 = arith.constant 0 : index
    %c0_20 = arith.constant 0 : index
    %58 = vector.load %arg9[%c0_19, %c0_20] : memref<16x1xf32, #tpu.memory_space<vmem>>, vector<16x1xf32>
    %59 = arith.mulf %53, %58 : vector<16x1xf32>
    %cst_21 = arith.constant dense<0.000000e+00> : vector<16xf32>
    %60 = vector.multi_reduction <add>, %57, %cst_21 [1] : vector<16x16xf32> to vector<16xf32>
    %61 = vector.shape_cast %60 : vector<16xf32> to vector<16x1xf32>
    %62 = arith.addf %59, %61 : vector<16x1xf32>
    %c0_22 = arith.constant 0 : index
    %c0_23 = arith.constant 0 : index
    %63 = vector.load %arg9[%c0_22, %c0_23] : memref<16x1xf32, #tpu.memory_space<vmem>>, vector<16x1xf32>
    tpu.vector_store %arg9[%c0_22, %c0_23], %62 {strides = array<i32>} : memref<16x1xf32, #tpu.memory_space<vmem>>, vector<16x1xf32>,
    %c0_24 = arith.constant 0 : index
    %c0_25 = arith.constant 0 : index
    %64 = vector.load %arg10[%c0_24, %c0_25] : memref<16x128xf32, #tpu.memory_space<vmem>>, vector<16x128xf32>
    %65 = vector.broadcast %53 : vector<16x1xf32> to vector<16x128xf32>
    %66 = arith.mulf %65, %64 : vector<16x128xf32>
    %cst_26 = arith.constant dense<0.000000e+00> : vector<16x128xf32>
    %67 = tpu.matmul %57, %3, %cst_26 {dimension_numbers = #tpu.dot_dimension_numbers<[1], [0], [0], [1], [0, 0, 1, 1], [], []>} : vector<16x16xf32>, vector<16x128xf32>, vector<16x128xf32> -> vector<16x128xf32>
    %68 = arith.addf %66, %67 : vector<16x128xf32>
    %c0_27 = arith.constant 0 : index
    %c0_28 = arith.constant 0 : index
    %69 = vector.load %arg10[%c0_27, %c0_28] : memref<16x128xf32, #tpu.memory_space<vmem>>, vector<16x128xf32>
    tpu.vector_store %arg10[%c0_27, %c0_28], %68 {strides = array<i32>} : memref<16x128xf32, #tpu.memory_space<vmem>>, vector<16x128xf32>,
    %c0_29 = arith.constant 0 : index
    %c0_30 = arith.constant 0 : index
    %70 = vector.load %arg8[%c0_29, %c0_30] : memref<16x1xf32, #tpu.memory_space<vmem>>, vector<16x1xf32>
    tpu.vector_store %arg8[%c0_29, %c0_30], %51 {strides = array<i32>} : memref<16x1xf32, #tpu.memory_space<vmem>>, vector<16x1xf32>,
    %c0_i32_31 = arith.constant 0 : i32
    %71 = arith.cmpi eq, %arg1, %c0_i32_31 : i32
    %72 = arith.extui %71 : i1 to i32
    %c0_i32_32 = arith.constant 0 : i32
    %73 = arith.cmpi ne, %72, %c0_i32_32 : i32
    scf.if %73 {
      %c0_33 = arith.constant 0 : index
      %c0_34 = arith.constant 0 : index
      %74 = vector.load %arg9[%c0_33, %c0_34] : memref<16x1xf32, #tpu.memory_space<vmem>>, vector<16x1xf32>
      %75 = tpu.reciprocal %74 {approx = true} : vector<16x1xf32> -> vector<16x1xf32>
      %c0_35 = arith.constant 0 : index
      %c0_36 = arith.constant 0 : index
      %76 = vector.load %arg10[%c0_35, %c0_36] : memref<16x128xf32, #tpu.memory_space<vmem>>, vector<16x128xf32>
      %77 = vector.broadcast %75 : vector<16x1xf32> to vector<16x128xf32>
      %78 = arith.mulf %76, %77 : vector<16x128xf32>
      %c0_37 = arith.constant 0 : index
      %c0_38 = arith.constant 0 : index
      %79 = vector.load %arg6[%c0_37, %c0_38] : memref<1x128xf32, #tpu.memory_space<vmem>>, vector<1x128xf32>
      %80 = vector.broadcast %79 : vector<1x128xf32> to vector<16x128xf32>
      %81 = arith.addf %78, %80 : vector<16x128xf32>
      %c0_39 = arith.constant 0 : index
      %c0_40 = arith.constant 0 : index
      %82 = vector.load %arg7[%c0_39, %c0_40] : memref<16x128xf32, #tpu.memory_space<vmem>>, vector<16x128xf32>
      tpu.vector_store %arg7[%c0_39, %c0_40], %81 {strides = array<i32>} : memref<16x128xf32, #tpu.memory_space<vmem>>, vector<16x128xf32>,
    } else {
    }
    return
  }
  func.func @transform_0(%arg0: i32, %arg1: i32) -> (i32, i32) {
    %c0_i32 = arith.constant 0 : i32
    %c0_i32_0 = arith.constant 0 : i32
    return %arg1, %c0_i32 : i32, i32
  }
  func.func @transform_1(%arg0: i32, %arg1: i32) -> (i32, i32) {
    %c0_i32 = arith.constant 0 : i32
    %c0_i32_0 = arith.constant 0 : i32
    return %arg0, %c0_i32 : i32, i32
  }
  func.func @transform_2(%arg0: i32, %arg1: i32) -> (i32, i32) {
    %c0_i32 = arith.constant 0 : i32
    %c0_i32_0 = arith.constant 0 : i32
    %c0_i32_1 = arith.constant 0 : i32
    return %c0_i32, %c0_i32_0 : i32, i32
  }
  func.func @transform_3(%arg0: i32, %arg1: i32) -> (i32, i32) {
    %c0_i32 = arith.constant 0 : i32
    return %arg0, %arg1 : i32, i32
  }
  func.func @transform_4(%arg0: i32, %arg1: i32) -> (i32, i32) {
    %c0_i32 = arith.constant 0 : i32
    %c0_i32_0 = arith.constant 0 : i32
    %c0_i32_1 = arith.constant 0 : i32
    return %c0_i32, %c0_i32_0 : i32, i32
  }
  func.func @transform_5(%arg0: i32, %arg1: i32) -> (i32, i32) {
    %c0_i32 = arith.constant 0 : i32
    %c0_i32_0 = arith.constant 0 : i32
    return %arg0, %c0_i32 : i32, i32
  }
}

module attributes {stable_mosaic.version = 11 : i64} {
  func.func @_graphnorm_stats_kernel(%arg0: i32, %arg1: memref<16x128xf32, #tpu.memory_space<vmem>>, %arg2: memref<2x16xf32, #tpu.memory_space<vmem>>, %arg3: memref<2x128xf32, #tpu.memory_space<vmem>>, %arg4: memref<2x128xf32, #tpu.memory_space<vmem>>) attributes {dimension_semantics = [#tpu.dimension_semantics<arbitrary>], iteration_bounds = array<i64: 1>, scalar_prefetch = 0 : i64, scratch_operands = 0 : i64, tpu.core_type = #tpu.core_type<tc>, window_params = [{transform_indices = @transform_0, window_bounds = array<i64: 16, 128>}, {transform_indices = @transform_1, window_bounds = array<i64: 2, 16>}, {pipeline_mode = #tpu.pipeline_mode<synchronous>, transform_indices = @transform_2, window_bounds = array<i64: 2, 128>}, {pipeline_mode = #tpu.pipeline_mode<synchronous>, transform_indices = @transform_3, window_bounds = array<i64: 2, 128>}]} {
    %c0_i32 = arith.constant 0 : i32
    %0 = arith.cmpi eq, %arg0, %c0_i32 : i32
    %1 = arith.extui %0 : i1 to i32
    %c0_i32_0 = arith.constant 0 : i32
    %2 = arith.cmpi ne, %1, %c0_i32_0 : i32
    scf.if %2 {
      %cst_13 = arith.constant 0.000000e+00 : f32
      %14 = vector.broadcast %cst_13 : f32 to vector<2x128xf32>
      %c0_14 = arith.constant 0 : index
      %c0_15 = arith.constant 0 : index
      %15 = vector.load %arg3[%c0_14, %c0_15] : memref<2x128xf32, #tpu.memory_space<vmem>>, vector<2x128xf32>
      tpu.vector_store %arg3[%c0_14, %c0_15], %14 {strides = array<i32>} : memref<2x128xf32, #tpu.memory_space<vmem>>, vector<2x128xf32>,
      %cst_16 = arith.constant 0.000000e+00 : f32
      %16 = vector.broadcast %cst_16 : f32 to vector<2x128xf32>
      %c0_17 = arith.constant 0 : index
      %c0_18 = arith.constant 0 : index
      %17 = vector.load %arg4[%c0_17, %c0_18] : memref<2x128xf32, #tpu.memory_space<vmem>>, vector<2x128xf32>
      tpu.vector_store %arg4[%c0_17, %c0_18], %16 {strides = array<i32>} : memref<2x128xf32, #tpu.memory_space<vmem>>, vector<2x128xf32>,
    } else {
    }
    %c0 = arith.constant 0 : index
    %c0_1 = arith.constant 0 : index
    %3 = vector.load %arg1[%c0, %c0_1] : memref<16x128xf32, #tpu.memory_space<vmem>>, vector<16x128xf32>
    %c0_2 = arith.constant 0 : index
    %c0_3 = arith.constant 0 : index
    %4 = vector.load %arg2[%c0_2, %c0_3] : memref<2x16xf32, #tpu.memory_space<vmem>>, vector<2x16xf32>
    %c0_4 = arith.constant 0 : index
    %c0_5 = arith.constant 0 : index
    %5 = vector.load %arg3[%c0_4, %c0_5] : memref<2x128xf32, #tpu.memory_space<vmem>>, vector<2x128xf32>
    %cst = arith.constant dense<0.000000e+00> : vector<2x128xf32>
    %6 = tpu.matmul %4, %3, %cst {dimension_numbers = #tpu.dot_dimension_numbers<[1], [0], [0], [1], [0, 0, 1, 1], [], []>} : vector<2x16xf32>, vector<16x128xf32>, vector<2x128xf32> -> vector<2x128xf32>
    %7 = arith.addf %5, %6 : vector<2x128xf32>
    %c0_6 = arith.constant 0 : index
    %c0_7 = arith.constant 0 : index
    %8 = vector.load %arg3[%c0_6, %c0_7] : memref<2x128xf32, #tpu.memory_space<vmem>>, vector<2x128xf32>
    tpu.vector_store %arg3[%c0_6, %c0_7], %7 {strides = array<i32>} : memref<2x128xf32, #tpu.memory_space<vmem>>, vector<2x128xf32>,
    %c0_8 = arith.constant 0 : index
    %c0_9 = arith.constant 0 : index
    %9 = vector.load %arg4[%c0_8, %c0_9] : memref<2x128xf32, #tpu.memory_space<vmem>>, vector<2x128xf32>
    %10 = arith.mulf %3, %3 : vector<16x128xf32>
    %cst_10 = arith.constant dense<0.000000e+00> : vector<2x128xf32>
    %11 = tpu.matmul %4, %10, %cst_10 {dimension_numbers = #tpu.dot_dimension_numbers<[1], [0], [0], [1], [0, 0, 1, 1], [], []>} : vector<2x16xf32>, vector<16x128xf32>, vector<2x128xf32> -> vector<2x128xf32>
    %12 = arith.addf %9, %11 : vector<2x128xf32>
    %c0_11 = arith.constant 0 : index
    %c0_12 = arith.constant 0 : index
    %13 = vector.load %arg4[%c0_11, %c0_12] : memref<2x128xf32, #tpu.memory_space<vmem>>, vector<2x128xf32>
    tpu.vector_store %arg4[%c0_11, %c0_12], %12 {strides = array<i32>} : memref<2x128xf32, #tpu.memory_space<vmem>>, vector<2x128xf32>,
    return
  }
  func.func @transform_0(%arg0: i32) -> (i32, i32) {
    %c0_i32 = arith.constant 0 : i32
    %c0_i32_0 = arith.constant 0 : i32
    return %arg0, %c0_i32 : i32, i32
  }
  func.func @transform_1(%arg0: i32) -> (i32, i32) {
    %c0_i32 = arith.constant 0 : i32
    %c0_i32_0 = arith.constant 0 : i32
    return %c0_i32, %arg0 : i32, i32
  }
  func.func @transform_2(%arg0: i32) -> (i32, i32) {
    %c0_i32 = arith.constant 0 : i32
    %c0_i32_0 = arith.constant 0 : i32
    %c0_i32_1 = arith.constant 0 : i32
    return %c0_i32, %c0_i32_0 : i32, i32
  }
  func.func @transform_3(%arg0: i32) -> (i32, i32) {
    %c0_i32 = arith.constant 0 : i32
    %c0_i32_0 = arith.constant 0 : i32
    %c0_i32_1 = arith.constant 0 : i32
    return %c0_i32, %c0_i32_0 : i32, i32
  }
}

module attributes {stable_mosaic.version = 11 : i64} {
  func.func @_matmul_kernel(%arg0: i32, %arg1: i32, %arg2: i32, %arg3: memref<16x16xbf16, #tpu.memory_space<vmem>>, %arg4: memref<16x128xbf16, #tpu.memory_space<vmem>>, %arg5: memref<16x128xf32, #tpu.memory_space<vmem>>) attributes {dimension_semantics = [#tpu.dimension_semantics<parallel>, #tpu.dimension_semantics<parallel>, #tpu.dimension_semantics<arbitrary>], iteration_bounds = array<i64: 1, 1, 1>, scalar_prefetch = 0 : i64, scratch_operands = 0 : i64, tpu.core_type = #tpu.core_type<tc>, window_params = [{transform_indices = @transform_0, window_bounds = array<i64: 16, 16>}, {transform_indices = @transform_1, window_bounds = array<i64: 16, 128>}, {transform_indices = @transform_2, window_bounds = array<i64: 16, 128>}]} {
    %c0_i32 = arith.constant 0 : i32
    %0 = arith.cmpi eq, %arg2, %c0_i32 : i32
    %1 = arith.extui %0 : i1 to i32
    %c0_i32_0 = arith.constant 0 : i32
    %2 = arith.cmpi ne, %1, %c0_i32_0 : i32
    scf.if %2 {
      %cst_8 = arith.constant 0.000000e+00 : f32
      %9 = vector.broadcast %cst_8 : f32 to vector<16x128xf32>
      %c0_9 = arith.constant 0 : index
      %c0_10 = arith.constant 0 : index
      %10 = vector.load %arg5[%c0_9, %c0_10] : memref<16x128xf32, #tpu.memory_space<vmem>>, vector<16x128xf32>
      tpu.vector_store %arg5[%c0_9, %c0_10], %9 {strides = array<i32>} : memref<16x128xf32, #tpu.memory_space<vmem>>, vector<16x128xf32>,
    } else {
    }
    %c0 = arith.constant 0 : index
    %c0_1 = arith.constant 0 : index
    %3 = vector.load %arg5[%c0, %c0_1] : memref<16x128xf32, #tpu.memory_space<vmem>>, vector<16x128xf32>
    %c0_2 = arith.constant 0 : index
    %c0_3 = arith.constant 0 : index
    %4 = vector.load %arg3[%c0_2, %c0_3] : memref<16x16xbf16, #tpu.memory_space<vmem>>, vector<16x16xbf16>
    %c0_4 = arith.constant 0 : index
    %c0_5 = arith.constant 0 : index
    %5 = vector.load %arg4[%c0_4, %c0_5] : memref<16x128xbf16, #tpu.memory_space<vmem>>, vector<16x128xbf16>
    %cst = arith.constant dense<0.000000e+00> : vector<16x128xf32>
    %6 = tpu.matmul %4, %5, %cst {dimension_numbers = #tpu.dot_dimension_numbers<[1], [0], [0], [1], [0, 0, 1, 1], [], []>} : vector<16x16xbf16>, vector<16x128xbf16>, vector<16x128xf32> -> vector<16x128xf32>
    %7 = arith.addf %3, %6 : vector<16x128xf32>
    %c0_6 = arith.constant 0 : index
    %c0_7 = arith.constant 0 : index
    %8 = vector.load %arg5[%c0_6, %c0_7] : memref<16x128xf32, #tpu.memory_space<vmem>>, vector<16x128xf32>
    tpu.vector_store %arg5[%c0_6, %c0_7], %7 {strides = array<i32>} : memref<16x128xf32, #tpu.memory_space<vmem>>, vector<16x128xf32>,
    return
  }
  func.func @transform_0(%arg0: i32, %arg1: i32, %arg2: i32) -> (i32, i32) {
    %c0_i32 = arith.constant 0 : i32
    return %arg0, %arg2 : i32, i32
  }
  func.func @transform_1(%arg0: i32, %arg1: i32, %arg2: i32) -> (i32, i32) {
    %c0_i32 = arith.constant 0 : i32
    return %arg2, %arg1 : i32, i32
  }
  func.func @transform_2(%arg0: i32, %arg1: i32, %arg2: i32) -> (i32, i32) {
    %c0_i32 = arith.constant 0 : i32
    return %arg0, %arg1 : i32, i32
  }
}

module attributes {stable_mosaic.version = 11 : i64} {
  func.func @_graphnorm_apply_kernel(%arg0: i32, %arg1: memref<16x128xf32, #tpu.memory_space<vmem>>, %arg2: memref<16x2xf32, #tpu.memory_space<vmem>>, %arg3: memref<2x128xf32, #tpu.memory_space<vmem>>, %arg4: memref<2x128xf32, #tpu.memory_space<vmem>>, %arg5: memref<1x128xf32, #tpu.memory_space<vmem>>, %arg6: memref<1x128xf32, #tpu.memory_space<vmem>>, %arg7: memref<1x128xf32, #tpu.memory_space<vmem>>, %arg8: memref<16x128xf32, #tpu.memory_space<vmem>>) attributes {dimension_semantics = [#tpu.dimension_semantics<parallel>], iteration_bounds = array<i64: 1>, scalar_prefetch = 0 : i64, scratch_operands = 0 : i64, tpu.core_type = #tpu.core_type<tc>, window_params = [{transform_indices = @transform_0, window_bounds = array<i64: 16, 128>}, {transform_indices = @transform_1, window_bounds = array<i64: 16, 2>}, {pipeline_mode = #tpu.pipeline_mode<synchronous>, transform_indices = @transform_2, window_bounds = array<i64: 2, 128>}, {pipeline_mode = #tpu.pipeline_mode<synchronous>, transform_indices = @transform_3, window_bounds = array<i64: 2, 128>}, {pipeline_mode = #tpu.pipeline_mode<synchronous>, transform_indices = @transform_4, window_bounds = array<i64: 1, 128>}, {pipeline_mode = #tpu.pipeline_mode<synchronous>, transform_indices = @transform_5, window_bounds = array<i64: 1, 128>}, {pipeline_mode = #tpu.pipeline_mode<synchronous>, transform_indices = @transform_6, window_bounds = array<i64: 1, 128>}, {transform_indices = @transform_7, window_bounds = array<i64: 16, 128>}]} {
    %c0 = arith.constant 0 : index
    %c0_0 = arith.constant 0 : index
    %0 = vector.load %arg1[%c0, %c0_0] : memref<16x128xf32, #tpu.memory_space<vmem>>, vector<16x128xf32>
    %c0_1 = arith.constant 0 : index
    %c0_2 = arith.constant 0 : index
    %1 = vector.load %arg2[%c0_1, %c0_2] : memref<16x2xf32, #tpu.memory_space<vmem>>, vector<16x2xf32>
    %c0_3 = arith.constant 0 : index
    %c0_4 = arith.constant 0 : index
    %2 = vector.load %arg3[%c0_3, %c0_4] : memref<2x128xf32, #tpu.memory_space<vmem>>, vector<2x128xf32>
    %cst = arith.constant dense<0.000000e+00> : vector<16x128xf32>
    %3 = tpu.matmul %1, %2, %cst {dimension_numbers = #tpu.dot_dimension_numbers<[1], [0], [0], [1], [0, 0, 1, 1], [], []>} : vector<16x2xf32>, vector<2x128xf32>, vector<16x128xf32> -> vector<16x128xf32>
    %c0_5 = arith.constant 0 : index
    %c0_6 = arith.constant 0 : index
    %4 = vector.load %arg4[%c0_5, %c0_6] : memref<2x128xf32, #tpu.memory_space<vmem>>, vector<2x128xf32>
    %cst_7 = arith.constant dense<0.000000e+00> : vector<16x128xf32>
    %5 = tpu.matmul %1, %4, %cst_7 {dimension_numbers = #tpu.dot_dimension_numbers<[1], [0], [0], [1], [0, 0, 1, 1], [], []>} : vector<16x2xf32>, vector<2x128xf32>, vector<16x128xf32> -> vector<16x128xf32>
    %c0_8 = arith.constant 0 : index
    %c0_9 = arith.constant 0 : index
    %6 = vector.load %arg7[%c0_8, %c0_9] : memref<1x128xf32, #tpu.memory_space<vmem>>, vector<1x128xf32>
    %7 = vector.broadcast %6 : vector<1x128xf32> to vector<16x128xf32>
    %8 = arith.mulf %7, %3 : vector<16x128xf32>
    %9 = arith.subf %0, %8 : vector<16x128xf32>
    %c0_10 = arith.constant 0 : index
    %c0_11 = arith.constant 0 : index
    %10 = vector.load %arg5[%c0_10, %c0_11] : memref<1x128xf32, #tpu.memory_space<vmem>>, vector<1x128xf32>
    %11 = vector.broadcast %10 : vector<1x128xf32> to vector<16x128xf32>
    %12 = arith.mulf %11, %9 : vector<16x128xf32>
    %13 = arith.mulf %12, %5 : vector<16x128xf32>
    %c0_12 = arith.constant 0 : index
    %c0_13 = arith.constant 0 : index
    %14 = vector.load %arg6[%c0_12, %c0_13] : memref<1x128xf32, #tpu.memory_space<vmem>>, vector<1x128xf32>
    %15 = vector.broadcast %14 : vector<1x128xf32> to vector<16x128xf32>
    %16 = arith.addf %13, %15 : vector<16x128xf32>
    %c0_14 = arith.constant 0 : index
    %c0_15 = arith.constant 0 : index
    %17 = vector.load %arg8[%c0_14, %c0_15] : memref<16x128xf32, #tpu.memory_space<vmem>>, vector<16x128xf32>
    tpu.vector_store %arg8[%c0_14, %c0_15], %16 {strides = array<i32>} : memref<16x128xf32, #tpu.memory_space<vmem>>, vector<16x128xf32>,
    return
  }
  func.func @transform_0(%arg0: i32) -> (i32, i32) {
    %c0_i32 = arith.constant 0 : i32
    %c0_i32_0 = arith.constant 0 : i32
    return %arg0, %c0_i32 : i32, i32
  }
  func.func @transform_1(%arg0: i32) -> (i32, i32) {
    %c0_i32 = arith.constant 0 : i32
    %c0_i32_0 = arith.constant 0 : i32
    return %arg0, %c0_i32 : i32, i32
  }
  func.func @transform_2(%arg0: i32) -> (i32, i32) {
    %c0_i32 = arith.constant 0 : i32
    %c0_i32_0 = arith.constant 0 : i32
    %c0_i32_1 = arith.constant 0 : i32
    return %c0_i32, %c0_i32_0 : i32, i32
  }
  func.func @transform_3(%arg0: i32) -> (i32, i32) {
    %c0_i32 = arith.constant 0 : i32
    %c0_i32_0 = arith.constant 0 : i32
    %c0_i32_1 = arith.constant 0 : i32
    return %c0_i32, %c0_i32_0 : i32, i32
  }
  func.func @transform_4(%arg0: i32) -> (i32, i32) {
    %c0_i32 = arith.constant 0 : i32
    %c0_i32_0 = arith.constant 0 : i32
    %c0_i32_1 = arith.constant 0 : i32
    return %c0_i32, %c0_i32_0 : i32, i32
  }
  func.func @transform_5(%arg0: i32) -> (i32, i32) {
    %c0_i32 = arith.constant 0 : i32
    %c0_i32_0 = arith.constant 0 : i32
    %c0_i32_1 = arith.constant 0 : i32
    return %c0_i32, %c0_i32_0 : i32, i32
  }
  func.func @transform_6(%arg0: i32) -> (i32, i32) {
    %c0_i32 = arith.constant 0 : i32
    %c0_i32_0 = arith.constant 0 : i32
    %c0_i32_1 = arith.constant 0 : i32
    return %c0_i32, %c0_i32_0 : i32, i32
  }
  func.func @transform_7(%arg0: i32) -> (i32, i32) {
    %c0_i32 = arith.constant 0 : i32
    %c0_i32_0 = arith.constant 0 : i32
    return %arg0, %c0_i32 : i32, i32
  }
}

module attributes {stable_mosaic.version = 11 : i64} {
  func.func @_matmul_kernel(%arg0: i32, %arg1: i32, %arg2: i32, %arg3: memref<16x128xbf16, #tpu.memory_space<vmem>>, %arg4: memref<128x256xbf16, #tpu.memory_space<vmem>>, %arg5: memref<16x256xf32, #tpu.memory_space<vmem>>) attributes {dimension_semantics = [#tpu.dimension_semantics<parallel>, #tpu.dimension_semantics<parallel>, #tpu.dimension_semantics<arbitrary>], iteration_bounds = array<i64: 1, 2, 1>, scalar_prefetch = 0 : i64, scratch_operands = 0 : i64, tpu.core_type = #tpu.core_type<tc>, window_params = [{transform_indices = @transform_0, window_bounds = array<i64: 16, 128>}, {transform_indices = @transform_1, window_bounds = array<i64: 128, 256>}, {transform_indices = @transform_2, window_bounds = array<i64: 16, 256>}]} {
    %c0_i32 = arith.constant 0 : i32
    %0 = arith.cmpi eq, %arg2, %c0_i32 : i32
    %1 = arith.extui %0 : i1 to i32
    %c0_i32_0 = arith.constant 0 : i32
    %2 = arith.cmpi ne, %1, %c0_i32_0 : i32
    scf.if %2 {
      %cst_8 = arith.constant 0.000000e+00 : f32
      %9 = vector.broadcast %cst_8 : f32 to vector<16x256xf32>
      %c0_9 = arith.constant 0 : index
      %c0_10 = arith.constant 0 : index
      %10 = vector.load %arg5[%c0_9, %c0_10] : memref<16x256xf32, #tpu.memory_space<vmem>>, vector<16x256xf32>
      tpu.vector_store %arg5[%c0_9, %c0_10], %9 {strides = array<i32>} : memref<16x256xf32, #tpu.memory_space<vmem>>, vector<16x256xf32>,
    } else {
    }
    %c0 = arith.constant 0 : index
    %c0_1 = arith.constant 0 : index
    %3 = vector.load %arg5[%c0, %c0_1] : memref<16x256xf32, #tpu.memory_space<vmem>>, vector<16x256xf32>
    %c0_2 = arith.constant 0 : index
    %c0_3 = arith.constant 0 : index
    %4 = vector.load %arg3[%c0_2, %c0_3] : memref<16x128xbf16, #tpu.memory_space<vmem>>, vector<16x128xbf16>
    %c0_4 = arith.constant 0 : index
    %c0_5 = arith.constant 0 : index
    %5 = vector.load %arg4[%c0_4, %c0_5] : memref<128x256xbf16, #tpu.memory_space<vmem>>, vector<128x256xbf16>
    %cst = arith.constant dense<0.000000e+00> : vector<16x256xf32>
    %6 = tpu.matmul %4, %5, %cst {dimension_numbers = #tpu.dot_dimension_numbers<[1], [0], [0], [1], [0, 0, 1, 1], [], []>} : vector<16x128xbf16>, vector<128x256xbf16>, vector<16x256xf32> -> vector<16x256xf32>
    %7 = arith.addf %3, %6 : vector<16x256xf32>
    %c0_6 = arith.constant 0 : index
    %c0_7 = arith.constant 0 : index
    %8 = vector.load %arg5[%c0_6, %c0_7] : memref<16x256xf32, #tpu.memory_space<vmem>>, vector<16x256xf32>
    tpu.vector_store %arg5[%c0_6, %c0_7], %7 {strides = array<i32>} : memref<16x256xf32, #tpu.memory_space<vmem>>, vector<16x256xf32>,
    return
  }
  func.func @transform_0(%arg0: i32, %arg1: i32, %arg2: i32) -> (i32, i32) {
    %c0_i32 = arith.constant 0 : i32
    return %arg0, %arg2 : i32, i32
  }
  func.func @transform_1(%arg0: i32, %arg1: i32, %arg2: i32) -> (i32, i32) {
    %c0_i32 = arith.constant 0 : i32
    return %arg2, %arg1 : i32, i32
  }
  func.func @transform_2(%arg0: i32, %arg1: i32, %arg2: i32) -> (i32, i32) {
    %c0_i32 = arith.constant 0 : i32
    return %arg0, %arg1 : i32, i32
  }
}

module attributes {stable_mosaic.version = 11 : i64} {
  func.func @_gatv2_kernel(%arg0: i32, %arg1: i32, %arg2: memref<16x512xf32, #tpu.memory_space<vmem>>, %arg3: memref<16x512xf32, #tpu.memory_space<vmem>>, %arg4: memref<1x512xf32, #tpu.memory_space<vmem>>, %arg5: memref<16x16xf32, #tpu.memory_space<vmem>>, %arg6: memref<1x512xf32, #tpu.memory_space<vmem>>, %arg7: memref<16x512xf32, #tpu.memory_space<vmem>>, %arg8: memref<16x1xf32, #tpu.memory_space<vmem>>, %arg9: memref<16x1xf32, #tpu.memory_space<vmem>>, %arg10: memref<16x512xf32, #tpu.memory_space<vmem>>) attributes {dimension_semantics = [#tpu.dimension_semantics<parallel>, #tpu.dimension_semantics<arbitrary>], iteration_bounds = array<i64: 1, 1>, scalar_prefetch = 0 : i64, scratch_operands = 3 : i64, tpu.core_type = #tpu.core_type<tc>, window_params = [{transform_indices = @transform_0, window_bounds = array<i64: 16, 512>}, {transform_indices = @transform_1, window_bounds = array<i64: 16, 512>}, {pipeline_mode = #tpu.pipeline_mode<synchronous>, transform_indices = @transform_2, window_bounds = array<i64: 1, 512>}, {transform_indices = @transform_3, window_bounds = array<i64: 16, 16>}, {pipeline_mode = #tpu.pipeline_mode<synchronous>, transform_indices = @transform_4, window_bounds = array<i64: 1, 512>}, {transform_indices = @transform_5, window_bounds = array<i64: 16, 512>}]} {
    %c0_i32 = arith.constant 0 : i32
    %0 = arith.cmpi eq, %arg1, %c0_i32 : i32
    %1 = arith.extui %0 : i1 to i32
    %c0_i32_0 = arith.constant 0 : i32
    %2 = arith.cmpi ne, %1, %c0_i32_0 : i32
    scf.if %2 {
      %cst_51 = arith.constant 0xFF800000 : f32
      %182 = vector.broadcast %cst_51 : f32 to vector<16x1xf32>
      %c0_52 = arith.constant 0 : index
      %c0_53 = arith.constant 0 : index
      %183 = vector.load %arg8[%c0_52, %c0_53] : memref<16x1xf32, #tpu.memory_space<vmem>>, vector<16x1xf32>
      tpu.vector_store %arg8[%c0_52, %c0_53], %182 {strides = array<i32>} : memref<16x1xf32, #tpu.memory_space<vmem>>, vector<16x1xf32>,
      %cst_54 = arith.constant 0.000000e+00 : f32
      %184 = vector.broadcast %cst_54 : f32 to vector<16x1xf32>
      %c0_55 = arith.constant 0 : index
      %c0_56 = arith.constant 0 : index
      %185 = vector.load %arg9[%c0_55, %c0_56] : memref<16x1xf32, #tpu.memory_space<vmem>>, vector<16x1xf32>
      tpu.vector_store %arg9[%c0_55, %c0_56], %184 {strides = array<i32>} : memref<16x1xf32, #tpu.memory_space<vmem>>, vector<16x1xf32>,
      %cst_57 = arith.constant 0.000000e+00 : f32
      %186 = vector.broadcast %cst_57 : f32 to vector<16x512xf32>
      %c0_58 = arith.constant 0 : index
      %c0_59 = arith.constant 0 : index
      %187 = vector.load %arg10[%c0_58, %c0_59] : memref<16x512xf32, #tpu.memory_space<vmem>>, vector<16x512xf32>
      tpu.vector_store %arg10[%c0_58, %c0_59], %186 {strides = array<i32>} : memref<16x512xf32, #tpu.memory_space<vmem>>, vector<16x512xf32>,
    } else {
    }
    %c0 = arith.constant 0 : index
    %c0_1 = arith.constant 0 : index
    %3 = vector.load %arg2[%c0, %c0_1] : memref<16x512xf32, #tpu.memory_space<vmem>>, vector<16x512xf32>
    %c0_2 = arith.constant 0 : index
    %c0_3 = arith.constant 0 : index
    %4 = vector.load %arg3[%c0_2, %c0_3] : memref<16x512xf32, #tpu.memory_space<vmem>>, vector<16x512xf32>
    %c0_4 = arith.constant 0 : index
    %c0_5 = arith.constant 0 : index
    %5 = vector.load %arg4[%c0_4, %c0_5] : memref<1x512xf32, #tpu.memory_space<vmem>>, vector<1x512xf32>
    %c0_6 = arith.constant 0 : index
    %c0_7 = arith.constant 0 : index
    %6 = vector.load %arg5[%c0_6, %c0_7] : memref<16x16xf32, #tpu.memory_space<vmem>>, vector<16x16xf32>
    %cst = arith.constant 0.000000e+00 : f32
    %7 = vector.broadcast %cst : f32 to vector<16x16xf32>
    %8 = vector.extract_strided_slice %4 {offsets = [0, 0], sizes = [16, 64], strides = [1, 1]} : vector<16x512xf32> to vector<16x64xf32>
    %9 = vector.shape_cast %8 : vector<16x64xf32> to vector<16x1x64xf32>
    %10 = vector.extract_strided_slice %3 {offsets = [0, 0], sizes = [16, 64], strides = [1, 1]} : vector<16x512xf32> to vector<16x64xf32>
    %11 = vector.shape_cast %10 : vector<16x64xf32> to vector<1x16x64xf32>
    %12 = vector.broadcast %9 : vector<16x1x64xf32> to vector<16x16x64xf32>
    %13 = vector.broadcast %11 : vector<1x16x64xf32> to vector<16x16x64xf32>
    %14 = arith.addf %12, %13 : vector<16x16x64xf32>
    %cst_8 = arith.constant 0.000000e+00 : f32
    %15 = vector.broadcast %cst_8 : f32 to vector<16x16x64xf32>
    %16 = arith.cmpf ogt, %14, %15 : vector<16x16x64xf32>
    %cst_9 = arith.constant 2.000000e-01 : f32
    %17 = vector.broadcast %cst_9 : f32 to vector<16x16x64xf32>
    %18 = arith.mulf %17, %14 : vector<16x16x64xf32>
    %19 = arith.select %16, %14, %18 : vector<16x16x64xi1>, vector<16x16x64xf32>
    %20 = vector.extract_strided_slice %5 {offsets = [0, 0], sizes = [1, 64], strides = [1, 1]} : vector<1x512xf32> to vector<1x64xf32>
    %21 = vector.shape_cast %20 : vector<1x64xf32> to vector<1x1x64xf32>
    %22 = vector.broadcast %21 : vector<1x1x64xf32> to vector<16x16x64xf32>
    %23 = arith.mulf %19, %22 : vector<16x16x64xf32>
    %cst_10 = arith.constant dense<0.000000e+00> : vector<16x16xf32>
    %24 = vector.multi_reduction <add>, %23, %cst_10 [2] : vector<16x16x64xf32> to vector<16x16xf32>
    %25 = arith.addf %7, %24 : vector<16x16xf32>
    %26 = vector.extract_strided_slice %4 {offsets = [0, 64], sizes = [16, 64], strides = [1, 1]} : vector<16x512xf32> to vector<16x64xf32>
    %27 = vector.shape_cast %26 : vector<16x64xf32> to vector<16x1x64xf32>
    %28 = vector.extract_strided_slice %3 {offsets = [0, 64], sizes = [16, 64], strides = [1, 1]} : vector<16x512xf32> to vector<16x64xf32>
    %29 = vector.shape_cast %28 : vector<16x64xf32> to vector<1x16x64xf32>
    %30 = vector.broadcast %27 : vector<16x1x64xf32> to vector<16x16x64xf32>
    %31 = vector.broadcast %29 : vector<1x16x64xf32> to vector<16x16x64xf32>
    %32 = arith.addf %30, %31 : vector<16x16x64xf32>
    %cst_11 = arith.constant 0.000000e+00 : f32
    %33 = vector.broadcast %cst_11 : f32 to vector<16x16x64xf32>
    %34 = arith.cmpf ogt, %32, %33 : vector<16x16x64xf32>
    %cst_12 = arith.constant 2.000000e-01 : f32
    %35 = vector.broadcast %cst_12 : f32 to vector<16x16x64xf32>
    %36 = arith.mulf %35, %32 : vector<16x16x64xf32>
    %37 = arith.select %34, %32, %36 : vector<16x16x64xi1>, vector<16x16x64xf32>
    %38 = vector.extract_strided_slice %5 {offsets = [0, 64], sizes = [1, 64], strides = [1, 1]} : vector<1x512xf32> to vector<1x64xf32>
    %39 = vector.shape_cast %38 : vector<1x64xf32> to vector<1x1x64xf32>
    %40 = vector.broadcast %39 : vector<1x1x64xf32> to vector<16x16x64xf32>
    %41 = arith.mulf %37, %40 : vector<16x16x64xf32>
    %cst_13 = arith.constant dense<0.000000e+00> : vector<16x16xf32>
    %42 = vector.multi_reduction <add>, %41, %cst_13 [2] : vector<16x16x64xf32> to vector<16x16xf32>
    %43 = arith.addf %25, %42 : vector<16x16xf32>
    %44 = vector.extract_strided_slice %4 {offsets = [0, 128], sizes = [16, 64], strides = [1, 1]} : vector<16x512xf32> to vector<16x64xf32>
    %45 = vector.shape_cast %44 : vector<16x64xf32> to vector<16x1x64xf32>
    %46 = vector.extract_strided_slice %3 {offsets = [0, 128], sizes = [16, 64], strides = [1, 1]} : vector<16x512xf32> to vector<16x64xf32>
    %47 = vector.shape_cast %46 : vector<16x64xf32> to vector<1x16x64xf32>
    %48 = vector.broadcast %45 : vector<16x1x64xf32> to vector<16x16x64xf32>
    %49 = vector.broadcast %47 : vector<1x16x64xf32> to vector<16x16x64xf32>
    %50 = arith.addf %48, %49 : vector<16x16x64xf32>
    %cst_14 = arith.constant 0.000000e+00 : f32
    %51 = vector.broadcast %cst_14 : f32 to vector<16x16x64xf32>
    %52 = arith.cmpf ogt, %50, %51 : vector<16x16x64xf32>
    %cst_15 = arith.constant 2.000000e-01 : f32
    %53 = vector.broadcast %cst_15 : f32 to vector<16x16x64xf32>
    %54 = arith.mulf %53, %50 : vector<16x16x64xf32>
    %55 = arith.select %52, %50, %54 : vector<16x16x64xi1>, vector<16x16x64xf32>
    %56 = vector.extract_strided_slice %5 {offsets = [0, 128], sizes = [1, 64], strides = [1, 1]} : vector<1x512xf32> to vector<1x64xf32>
    %57 = vector.shape_cast %56 : vector<1x64xf32> to vector<1x1x64xf32>
    %58 = vector.broadcast %57 : vector<1x1x64xf32> to vector<16x16x64xf32>
    %59 = arith.mulf %55, %58 : vector<16x16x64xf32>
    %cst_16 = arith.constant dense<0.000000e+00> : vector<16x16xf32>
    %60 = vector.multi_reduction <add>, %59, %cst_16 [2] : vector<16x16x64xf32> to vector<16x16xf32>
    %61 = arith.addf %43, %60 : vector<16x16xf32>
    %62 = vector.extract_strided_slice %4 {offsets = [0, 192], sizes = [16, 64], strides = [1, 1]} : vector<16x512xf32> to vector<16x64xf32>
    %63 = vector.shape_cast %62 : vector<16x64xf32> to vector<16x1x64xf32>
    %64 = vector.extract_strided_slice %3 {offsets = [0, 192], sizes = [16, 64], strides = [1, 1]} : vector<16x512xf32> to vector<16x64xf32>
    %65 = vector.shape_cast %64 : vector<16x64xf32> to vector<1x16x64xf32>
    %66 = vector.broadcast %63 : vector<16x1x64xf32> to vector<16x16x64xf32>
    %67 = vector.broadcast %65 : vector<1x16x64xf32> to vector<16x16x64xf32>
    %68 = arith.addf %66, %67 : vector<16x16x64xf32>
    %cst_17 = arith.constant 0.000000e+00 : f32
    %69 = vector.broadcast %cst_17 : f32 to vector<16x16x64xf32>
    %70 = arith.cmpf ogt, %68, %69 : vector<16x16x64xf32>
    %cst_18 = arith.constant 2.000000e-01 : f32
    %71 = vector.broadcast %cst_18 : f32 to vector<16x16x64xf32>
    %72 = arith.mulf %71, %68 : vector<16x16x64xf32>
    %73 = arith.select %70, %68, %72 : vector<16x16x64xi1>, vector<16x16x64xf32>
    %74 = vector.extract_strided_slice %5 {offsets = [0, 192], sizes = [1, 64], strides = [1, 1]} : vector<1x512xf32> to vector<1x64xf32>
    %75 = vector.shape_cast %74 : vector<1x64xf32> to vector<1x1x64xf32>
    %76 = vector.broadcast %75 : vector<1x1x64xf32> to vector<16x16x64xf32>
    %77 = arith.mulf %73, %76 : vector<16x16x64xf32>
    %cst_19 = arith.constant dense<0.000000e+00> : vector<16x16xf32>
    %78 = vector.multi_reduction <add>, %77, %cst_19 [2] : vector<16x16x64xf32> to vector<16x16xf32>
    %79 = arith.addf %61, %78 : vector<16x16xf32>
    %80 = vector.extract_strided_slice %4 {offsets = [0, 256], sizes = [16, 64], strides = [1, 1]} : vector<16x512xf32> to vector<16x64xf32>
    %81 = vector.shape_cast %80 : vector<16x64xf32> to vector<16x1x64xf32>
    %82 = vector.extract_strided_slice %3 {offsets = [0, 256], sizes = [16, 64], strides = [1, 1]} : vector<16x512xf32> to vector<16x64xf32>
    %83 = vector.shape_cast %82 : vector<16x64xf32> to vector<1x16x64xf32>
    %84 = vector.broadcast %81 : vector<16x1x64xf32> to vector<16x16x64xf32>
    %85 = vector.broadcast %83 : vector<1x16x64xf32> to vector<16x16x64xf32>
    %86 = arith.addf %84, %85 : vector<16x16x64xf32>
    %cst_20 = arith.constant 0.000000e+00 : f32
    %87 = vector.broadcast %cst_20 : f32 to vector<16x16x64xf32>
    %88 = arith.cmpf ogt, %86, %87 : vector<16x16x64xf32>
    %cst_21 = arith.constant 2.000000e-01 : f32
    %89 = vector.broadcast %cst_21 : f32 to vector<16x16x64xf32>
    %90 = arith.mulf %89, %86 : vector<16x16x64xf32>
    %91 = arith.select %88, %86, %90 : vector<16x16x64xi1>, vector<16x16x64xf32>
    %92 = vector.extract_strided_slice %5 {offsets = [0, 256], sizes = [1, 64], strides = [1, 1]} : vector<1x512xf32> to vector<1x64xf32>
    %93 = vector.shape_cast %92 : vector<1x64xf32> to vector<1x1x64xf32>
    %94 = vector.broadcast %93 : vector<1x1x64xf32> to vector<16x16x64xf32>
    %95 = arith.mulf %91, %94 : vector<16x16x64xf32>
    %cst_22 = arith.constant dense<0.000000e+00> : vector<16x16xf32>
    %96 = vector.multi_reduction <add>, %95, %cst_22 [2] : vector<16x16x64xf32> to vector<16x16xf32>
    %97 = arith.addf %79, %96 : vector<16x16xf32>
    %98 = vector.extract_strided_slice %4 {offsets = [0, 320], sizes = [16, 64], strides = [1, 1]} : vector<16x512xf32> to vector<16x64xf32>
    %99 = vector.shape_cast %98 : vector<16x64xf32> to vector<16x1x64xf32>
    %100 = vector.extract_strided_slice %3 {offsets = [0, 320], sizes = [16, 64], strides = [1, 1]} : vector<16x512xf32> to vector<16x64xf32>
    %101 = vector.shape_cast %100 : vector<16x64xf32> to vector<1x16x64xf32>
    %102 = vector.broadcast %99 : vector<16x1x64xf32> to vector<16x16x64xf32>
    %103 = vector.broadcast %101 : vector<1x16x64xf32> to vector<16x16x64xf32>
    %104 = arith.addf %102, %103 : vector<16x16x64xf32>
    %cst_23 = arith.constant 0.000000e+00 : f32
    %105 = vector.broadcast %cst_23 : f32 to vector<16x16x64xf32>
    %106 = arith.cmpf ogt, %104, %105 : vector<16x16x64xf32>
    %cst_24 = arith.constant 2.000000e-01 : f32
    %107 = vector.broadcast %cst_24 : f32 to vector<16x16x64xf32>
    %108 = arith.mulf %107, %104 : vector<16x16x64xf32>
    %109 = arith.select %106, %104, %108 : vector<16x16x64xi1>, vector<16x16x64xf32>
    %110 = vector.extract_strided_slice %5 {offsets = [0, 320], sizes = [1, 64], strides = [1, 1]} : vector<1x512xf32> to vector<1x64xf32>
    %111 = vector.shape_cast %110 : vector<1x64xf32> to vector<1x1x64xf32>
    %112 = vector.broadcast %111 : vector<1x1x64xf32> to vector<16x16x64xf32>
    %113 = arith.mulf %109, %112 : vector<16x16x64xf32>
    %cst_25 = arith.constant dense<0.000000e+00> : vector<16x16xf32>
    %114 = vector.multi_reduction <add>, %113, %cst_25 [2] : vector<16x16x64xf32> to vector<16x16xf32>
    %115 = arith.addf %97, %114 : vector<16x16xf32>
    %116 = vector.extract_strided_slice %4 {offsets = [0, 384], sizes = [16, 64], strides = [1, 1]} : vector<16x512xf32> to vector<16x64xf32>
    %117 = vector.shape_cast %116 : vector<16x64xf32> to vector<16x1x64xf32>
    %118 = vector.extract_strided_slice %3 {offsets = [0, 384], sizes = [16, 64], strides = [1, 1]} : vector<16x512xf32> to vector<16x64xf32>
    %119 = vector.shape_cast %118 : vector<16x64xf32> to vector<1x16x64xf32>
    %120 = vector.broadcast %117 : vector<16x1x64xf32> to vector<16x16x64xf32>
    %121 = vector.broadcast %119 : vector<1x16x64xf32> to vector<16x16x64xf32>
    %122 = arith.addf %120, %121 : vector<16x16x64xf32>
    %cst_26 = arith.constant 0.000000e+00 : f32
    %123 = vector.broadcast %cst_26 : f32 to vector<16x16x64xf32>
    %124 = arith.cmpf ogt, %122, %123 : vector<16x16x64xf32>
    %cst_27 = arith.constant 2.000000e-01 : f32
    %125 = vector.broadcast %cst_27 : f32 to vector<16x16x64xf32>
    %126 = arith.mulf %125, %122 : vector<16x16x64xf32>
    %127 = arith.select %124, %122, %126 : vector<16x16x64xi1>, vector<16x16x64xf32>
    %128 = vector.extract_strided_slice %5 {offsets = [0, 384], sizes = [1, 64], strides = [1, 1]} : vector<1x512xf32> to vector<1x64xf32>
    %129 = vector.shape_cast %128 : vector<1x64xf32> to vector<1x1x64xf32>
    %130 = vector.broadcast %129 : vector<1x1x64xf32> to vector<16x16x64xf32>
    %131 = arith.mulf %127, %130 : vector<16x16x64xf32>
    %cst_28 = arith.constant dense<0.000000e+00> : vector<16x16xf32>
    %132 = vector.multi_reduction <add>, %131, %cst_28 [2] : vector<16x16x64xf32> to vector<16x16xf32>
    %133 = arith.addf %115, %132 : vector<16x16xf32>
    %134 = vector.extract_strided_slice %4 {offsets = [0, 448], sizes = [16, 64], strides = [1, 1]} : vector<16x512xf32> to vector<16x64xf32>
    %135 = vector.shape_cast %134 : vector<16x64xf32> to vector<16x1x64xf32>
    %136 = vector.extract_strided_slice %3 {offsets = [0, 448], sizes = [16, 64], strides = [1, 1]} : vector<16x512xf32> to vector<16x64xf32>
    %137 = vector.shape_cast %136 : vector<16x64xf32> to vector<1x16x64xf32>
    %138 = vector.broadcast %135 : vector<16x1x64xf32> to vector<16x16x64xf32>
    %139 = vector.broadcast %137 : vector<1x16x64xf32> to vector<16x16x64xf32>
    %140 = arith.addf %138, %139 : vector<16x16x64xf32>
    %cst_29 = arith.constant 0.000000e+00 : f32
    %141 = vector.broadcast %cst_29 : f32 to vector<16x16x64xf32>
    %142 = arith.cmpf ogt, %140, %141 : vector<16x16x64xf32>
    %cst_30 = arith.constant 2.000000e-01 : f32
    %143 = vector.broadcast %cst_30 : f32 to vector<16x16x64xf32>
    %144 = arith.mulf %143, %140 : vector<16x16x64xf32>
    %145 = arith.select %142, %140, %144 : vector<16x16x64xi1>, vector<16x16x64xf32>
    %146 = vector.extract_strided_slice %5 {offsets = [0, 448], sizes = [1, 64], strides = [1, 1]} : vector<1x512xf32> to vector<1x64xf32>
    %147 = vector.shape_cast %146 : vector<1x64xf32> to vector<1x1x64xf32>
    %148 = vector.broadcast %147 : vector<1x1x64xf32> to vector<16x16x64xf32>
    %149 = arith.mulf %145, %148 : vector<16x16x64xf32>
    %cst_31 = arith.constant dense<0.000000e+00> : vector<16x16xf32>
    %150 = vector.multi_reduction <add>, %149, %cst_31 [2] : vector<16x16x64xf32> to vector<16x16xf32>
    %151 = arith.addf %133, %150 : vector<16x16xf32>
    %cst_32 = arith.constant 0.000000e+00 : f32
    %152 = vector.broadcast %cst_32 : f32 to vector<16x16xf32>
    %153 = arith.cmpf ogt, %6, %152 : vector<16x16xf32>
    %cst_33 = arith.constant -1.000000e+30 : f32
    %154 = vector.broadcast %cst_33 : f32 to vector<16x16xf32>
    %155 = arith.select %153, %151, %154 : vector<16x16xi1>, vector<16x16xf32>
    %c0_34 = arith.constant 0 : index
    %c0_35 = arith.constant 0 : index
    %156 = vector.load %arg8[%c0_34, %c0_35] : memref<16x1xf32, #tpu.memory_space<vmem>>, vector<16x1xf32>
    %cst_36 = arith.constant dense<0xFF800000> : vector<16xf32>
    %157 = vector.multi_reduction <maximumf>, %155, %cst_36 [1] : vector<16x16xf32> to vector<16xf32>
    %158 = vector.shape_cast %157 : vector<16xf32> to vector<16x1xf32>
    %159 = arith.maximumf %156, %158 : vector<16x1xf32>
    %160 = arith.subf %156, %159 : vector<16x1xf32>
    %161 = math.exp %160 : vector<16x1xf32>
    %162 = vector.broadcast %159 : vector<16x1xf32> to vector<16x16xf32>
    %163 = arith.subf %155, %162 : vector<16x16xf32>
    %164 = math.exp %163 : vector<16x16xf32>
    %165 = arith.mulf %164, %6 : vector<16x16xf32>
    %c0_37 = arith.constant 0 : index
    %c0_38 = arith.constant 0 : index
    %166 = vector.load %arg9[%c0_37, %c0_38] : memref<16x1xf32, #tpu.memory_space<vmem>>, vector<16x1xf32>
    %167 = arith.mulf %161, %166 : vector<16x1xf32>
    %cst_39 = arith.constant dense<0.000000e+00> : vector<16xf32>
    %168 = vector.multi_reduction <add>, %165, %cst_39 [1] : vector<16x16xf32> to vector<16xf32>
    %169 = vector.shape_cast %168 : vector<16xf32> to vector<16x1xf32>
    %170 = arith.addf %167, %169 : vector<16x1xf32>
    %c0_40 = arith.constant 0 : index
    %c0_41 = arith.constant 0 : index
    %171 = vector.load %arg9[%c0_40, %c0_41] : memref<16x1xf32, #tpu.memory_space<vmem>>, vector<16x1xf32>
    tpu.vector_store %arg9[%c0_40, %c0_41], %170 {strides = array<i32>} : memref<16x1xf32, #tpu.memory_space<vmem>>, vector<16x1xf32>,
    %c0_42 = arith.constant 0 : index
    %c0_43 = arith.constant 0 : index
    %172 = vector.load %arg10[%c0_42, %c0_43] : memref<16x512xf32, #tpu.memory_space<vmem>>, vector<16x512xf32>
    %173 = vector.broadcast %161 : vector<16x1xf32> to vector<16x512xf32>
    %174 = arith.mulf %173, %172 : vector<16x512xf32>
    %cst_44 = arith.constant dense<0.000000e+00> : vector<16x512xf32>
    %175 = tpu.matmul %165, %3, %cst_44 {dimension_numbers = #tpu.dot_dimension_numbers<[1], [0], [0], [1], [0, 0, 1, 1], [], []>} : vector<16x16xf32>, vector<16x512xf32>, vector<16x512xf32> -> vector<16x512xf32>
    %176 = arith.addf %174, %175 : vector<16x512xf32>
    %c0_45 = arith.constant 0 : index
    %c0_46 = arith.constant 0 : index
    %177 = vector.load %arg10[%c0_45, %c0_46] : memref<16x512xf32, #tpu.memory_space<vmem>>, vector<16x512xf32>
    tpu.vector_store %arg10[%c0_45, %c0_46], %176 {strides = array<i32>} : memref<16x512xf32, #tpu.memory_space<vmem>>, vector<16x512xf32>,
    %c0_47 = arith.constant 0 : index
    %c0_48 = arith.constant 0 : index
    %178 = vector.load %arg8[%c0_47, %c0_48] : memref<16x1xf32, #tpu.memory_space<vmem>>, vector<16x1xf32>
    tpu.vector_store %arg8[%c0_47, %c0_48], %159 {strides = array<i32>} : memref<16x1xf32, #tpu.memory_space<vmem>>, vector<16x1xf32>,
    %c0_i32_49 = arith.constant 0 : i32
    %179 = arith.cmpi eq, %arg1, %c0_i32_49 : i32
    %180 = arith.extui %179 : i1 to i32
    %c0_i32_50 = arith.constant 0 : i32
    %181 = arith.cmpi ne, %180, %c0_i32_50 : i32
    scf.if %181 {
      %c0_51 = arith.constant 0 : index
      %c0_52 = arith.constant 0 : index
      %182 = vector.load %arg9[%c0_51, %c0_52] : memref<16x1xf32, #tpu.memory_space<vmem>>, vector<16x1xf32>
      %183 = tpu.reciprocal %182 {approx = true} : vector<16x1xf32> -> vector<16x1xf32>
      %c0_53 = arith.constant 0 : index
      %c0_54 = arith.constant 0 : index
      %184 = vector.load %arg10[%c0_53, %c0_54] : memref<16x512xf32, #tpu.memory_space<vmem>>, vector<16x512xf32>
      %185 = vector.broadcast %183 : vector<16x1xf32> to vector<16x512xf32>
      %186 = arith.mulf %184, %185 : vector<16x512xf32>
      %c0_55 = arith.constant 0 : index
      %c0_56 = arith.constant 0 : index
      %187 = vector.load %arg6[%c0_55, %c0_56] : memref<1x512xf32, #tpu.memory_space<vmem>>, vector<1x512xf32>
      %188 = vector.broadcast %187 : vector<1x512xf32> to vector<16x512xf32>
      %189 = arith.addf %186, %188 : vector<16x512xf32>
      %c0_57 = arith.constant 0 : index
      %c0_58 = arith.constant 0 : index
      %190 = vector.load %arg7[%c0_57, %c0_58] : memref<16x512xf32, #tpu.memory_space<vmem>>, vector<16x512xf32>
      tpu.vector_store %arg7[%c0_57, %c0_58], %189 {strides = array<i32>} : memref<16x512xf32, #tpu.memory_space<vmem>>, vector<16x512xf32>,
    } else {
    }
    return
  }
  func.func @transform_0(%arg0: i32, %arg1: i32) -> (i32, i32) {
    %c0_i32 = arith.constant 0 : i32
    %c0_i32_0 = arith.constant 0 : i32
    return %arg1, %c0_i32 : i32, i32
  }
  func.func @transform_1(%arg0: i32, %arg1: i32) -> (i32, i32) {
    %c0_i32 = arith.constant 0 : i32
    %c0_i32_0 = arith.constant 0 : i32
    return %arg0, %c0_i32 : i32, i32
  }
  func.func @transform_2(%arg0: i32, %arg1: i32) -> (i32, i32) {
    %c0_i32 = arith.constant 0 : i32
    %c0_i32_0 = arith.constant 0 : i32
    %c0_i32_1 = arith.constant 0 : i32
    return %c0_i32, %c0_i32_0 : i32, i32
  }
  func.func @transform_3(%arg0: i32, %arg1: i32) -> (i32, i32) {
    %c0_i32 = arith.constant 0 : i32
    return %arg0, %arg1 : i32, i32
  }
  func.func @transform_4(%arg0: i32, %arg1: i32) -> (i32, i32) {
    %c0_i32 = arith.constant 0 : i32
    %c0_i32_0 = arith.constant 0 : i32
    %c0_i32_1 = arith.constant 0 : i32
    return %c0_i32, %c0_i32_0 : i32, i32
  }
  func.func @transform_5(%arg0: i32, %arg1: i32) -> (i32, i32) {
    %c0_i32 = arith.constant 0 : i32
    %c0_i32_0 = arith.constant 0 : i32
    return %arg0, %c0_i32 : i32, i32
  }
}

module attributes {stable_mosaic.version = 11 : i64} {
  func.func @_graphnorm_stats_kernel(%arg0: i32, %arg1: memref<16x512xf32, #tpu.memory_space<vmem>>, %arg2: memref<2x16xf32, #tpu.memory_space<vmem>>, %arg3: memref<2x512xf32, #tpu.memory_space<vmem>>, %arg4: memref<2x512xf32, #tpu.memory_space<vmem>>) attributes {dimension_semantics = [#tpu.dimension_semantics<arbitrary>], iteration_bounds = array<i64: 1>, scalar_prefetch = 0 : i64, scratch_operands = 0 : i64, tpu.core_type = #tpu.core_type<tc>, window_params = [{transform_indices = @transform_0, window_bounds = array<i64: 16, 512>}, {transform_indices = @transform_1, window_bounds = array<i64: 2, 16>}, {pipeline_mode = #tpu.pipeline_mode<synchronous>, transform_indices = @transform_2, window_bounds = array<i64: 2, 512>}, {pipeline_mode = #tpu.pipeline_mode<synchronous>, transform_indices = @transform_3, window_bounds = array<i64: 2, 512>}]} {
    %c0_i32 = arith.constant 0 : i32
    %0 = arith.cmpi eq, %arg0, %c0_i32 : i32
    %1 = arith.extui %0 : i1 to i32
    %c0_i32_0 = arith.constant 0 : i32
    %2 = arith.cmpi ne, %1, %c0_i32_0 : i32
    scf.if %2 {
      %cst_13 = arith.constant 0.000000e+00 : f32
      %14 = vector.broadcast %cst_13 : f32 to vector<2x512xf32>
      %c0_14 = arith.constant 0 : index
      %c0_15 = arith.constant 0 : index
      %15 = vector.load %arg3[%c0_14, %c0_15] : memref<2x512xf32, #tpu.memory_space<vmem>>, vector<2x512xf32>
      tpu.vector_store %arg3[%c0_14, %c0_15], %14 {strides = array<i32>} : memref<2x512xf32, #tpu.memory_space<vmem>>, vector<2x512xf32>,
      %cst_16 = arith.constant 0.000000e+00 : f32
      %16 = vector.broadcast %cst_16 : f32 to vector<2x512xf32>
      %c0_17 = arith.constant 0 : index
      %c0_18 = arith.constant 0 : index
      %17 = vector.load %arg4[%c0_17, %c0_18] : memref<2x512xf32, #tpu.memory_space<vmem>>, vector<2x512xf32>
      tpu.vector_store %arg4[%c0_17, %c0_18], %16 {strides = array<i32>} : memref<2x512xf32, #tpu.memory_space<vmem>>, vector<2x512xf32>,
    } else {
    }
    %c0 = arith.constant 0 : index
    %c0_1 = arith.constant 0 : index
    %3 = vector.load %arg1[%c0, %c0_1] : memref<16x512xf32, #tpu.memory_space<vmem>>, vector<16x512xf32>
    %c0_2 = arith.constant 0 : index
    %c0_3 = arith.constant 0 : index
    %4 = vector.load %arg2[%c0_2, %c0_3] : memref<2x16xf32, #tpu.memory_space<vmem>>, vector<2x16xf32>
    %c0_4 = arith.constant 0 : index
    %c0_5 = arith.constant 0 : index
    %5 = vector.load %arg3[%c0_4, %c0_5] : memref<2x512xf32, #tpu.memory_space<vmem>>, vector<2x512xf32>
    %cst = arith.constant dense<0.000000e+00> : vector<2x512xf32>
    %6 = tpu.matmul %4, %3, %cst {dimension_numbers = #tpu.dot_dimension_numbers<[1], [0], [0], [1], [0, 0, 1, 1], [], []>} : vector<2x16xf32>, vector<16x512xf32>, vector<2x512xf32> -> vector<2x512xf32>
    %7 = arith.addf %5, %6 : vector<2x512xf32>
    %c0_6 = arith.constant 0 : index
    %c0_7 = arith.constant 0 : index
    %8 = vector.load %arg3[%c0_6, %c0_7] : memref<2x512xf32, #tpu.memory_space<vmem>>, vector<2x512xf32>
    tpu.vector_store %arg3[%c0_6, %c0_7], %7 {strides = array<i32>} : memref<2x512xf32, #tpu.memory_space<vmem>>, vector<2x512xf32>,
    %c0_8 = arith.constant 0 : index
    %c0_9 = arith.constant 0 : index
    %9 = vector.load %arg4[%c0_8, %c0_9] : memref<2x512xf32, #tpu.memory_space<vmem>>, vector<2x512xf32>
    %10 = arith.mulf %3, %3 : vector<16x512xf32>
    %cst_10 = arith.constant dense<0.000000e+00> : vector<2x512xf32>
    %11 = tpu.matmul %4, %10, %cst_10 {dimension_numbers = #tpu.dot_dimension_numbers<[1], [0], [0], [1], [0, 0, 1, 1], [], []>} : vector<2x16xf32>, vector<16x512xf32>, vector<2x512xf32> -> vector<2x512xf32>
    %12 = arith.addf %9, %11 : vector<2x512xf32>
    %c0_11 = arith.constant 0 : index
    %c0_12 = arith.constant 0 : index
    %13 = vector.load %arg4[%c0_11, %c0_12] : memref<2x512xf32, #tpu.memory_space<vmem>>, vector<2x512xf32>
    tpu.vector_store %arg4[%c0_11, %c0_12], %12 {strides = array<i32>} : memref<2x512xf32, #tpu.memory_space<vmem>>, vector<2x512xf32>,
    return
  }
  func.func @transform_0(%arg0: i32) -> (i32, i32) {
    %c0_i32 = arith.constant 0 : i32
    %c0_i32_0 = arith.constant 0 : i32
    return %arg0, %c0_i32 : i32, i32
  }
  func.func @transform_1(%arg0: i32) -> (i32, i32) {
    %c0_i32 = arith.constant 0 : i32
    %c0_i32_0 = arith.constant 0 : i32
    return %c0_i32, %arg0 : i32, i32
  }
  func.func @transform_2(%arg0: i32) -> (i32, i32) {
    %c0_i32 = arith.constant 0 : i32
    %c0_i32_0 = arith.constant 0 : i32
    %c0_i32_1 = arith.constant 0 : i32
    return %c0_i32, %c0_i32_0 : i32, i32
  }
  func.func @transform_3(%arg0: i32) -> (i32, i32) {
    %c0_i32 = arith.constant 0 : i32
    %c0_i32_0 = arith.constant 0 : i32
    %c0_i32_1 = arith.constant 0 : i32
    return %c0_i32, %c0_i32_0 : i32, i32
  }
}

module attributes {stable_mosaic.version = 11 : i64} {
  func.func @_matmul_kernel(%arg0: i32, %arg1: i32, %arg2: i32, %arg3: memref<16x16xbf16, #tpu.memory_space<vmem>>, %arg4: memref<16x256xbf16, #tpu.memory_space<vmem>>, %arg5: memref<16x256xf32, #tpu.memory_space<vmem>>) attributes {dimension_semantics = [#tpu.dimension_semantics<parallel>, #tpu.dimension_semantics<parallel>, #tpu.dimension_semantics<arbitrary>], iteration_bounds = array<i64: 1, 2, 1>, scalar_prefetch = 0 : i64, scratch_operands = 0 : i64, tpu.core_type = #tpu.core_type<tc>, window_params = [{transform_indices = @transform_0, window_bounds = array<i64: 16, 16>}, {transform_indices = @transform_1, window_bounds = array<i64: 16, 256>}, {transform_indices = @transform_2, window_bounds = array<i64: 16, 256>}]} {
    %c0_i32 = arith.constant 0 : i32
    %0 = arith.cmpi eq, %arg2, %c0_i32 : i32
    %1 = arith.extui %0 : i1 to i32
    %c0_i32_0 = arith.constant 0 : i32
    %2 = arith.cmpi ne, %1, %c0_i32_0 : i32
    scf.if %2 {
      %cst_8 = arith.constant 0.000000e+00 : f32
      %9 = vector.broadcast %cst_8 : f32 to vector<16x256xf32>
      %c0_9 = arith.constant 0 : index
      %c0_10 = arith.constant 0 : index
      %10 = vector.load %arg5[%c0_9, %c0_10] : memref<16x256xf32, #tpu.memory_space<vmem>>, vector<16x256xf32>
      tpu.vector_store %arg5[%c0_9, %c0_10], %9 {strides = array<i32>} : memref<16x256xf32, #tpu.memory_space<vmem>>, vector<16x256xf32>,
    } else {
    }
    %c0 = arith.constant 0 : index
    %c0_1 = arith.constant 0 : index
    %3 = vector.load %arg5[%c0, %c0_1] : memref<16x256xf32, #tpu.memory_space<vmem>>, vector<16x256xf32>
    %c0_2 = arith.constant 0 : index
    %c0_3 = arith.constant 0 : index
    %4 = vector.load %arg3[%c0_2, %c0_3] : memref<16x16xbf16, #tpu.memory_space<vmem>>, vector<16x16xbf16>
    %c0_4 = arith.constant 0 : index
    %c0_5 = arith.constant 0 : index
    %5 = vector.load %arg4[%c0_4, %c0_5] : memref<16x256xbf16, #tpu.memory_space<vmem>>, vector<16x256xbf16>
    %cst = arith.constant dense<0.000000e+00> : vector<16x256xf32>
    %6 = tpu.matmul %4, %5, %cst {dimension_numbers = #tpu.dot_dimension_numbers<[1], [0], [0], [1], [0, 0, 1, 1], [], []>} : vector<16x16xbf16>, vector<16x256xbf16>, vector<16x256xf32> -> vector<16x256xf32>
    %7 = arith.addf %3, %6 : vector<16x256xf32>
    %c0_6 = arith.constant 0 : index
    %c0_7 = arith.constant 0 : index
    %8 = vector.load %arg5[%c0_6, %c0_7] : memref<16x256xf32, #tpu.memory_space<vmem>>, vector<16x256xf32>
    tpu.vector_store %arg5[%c0_6, %c0_7], %7 {strides = array<i32>} : memref<16x256xf32, #tpu.memory_space<vmem>>, vector<16x256xf32>,
    return
  }
  func.func @transform_0(%arg0: i32, %arg1: i32, %arg2: i32) -> (i32, i32) {
    %c0_i32 = arith.constant 0 : i32
    return %arg0, %arg2 : i32, i32
  }
  func.func @transform_1(%arg0: i32, %arg1: i32, %arg2: i32) -> (i32, i32) {
    %c0_i32 = arith.constant 0 : i32
    return %arg2, %arg1 : i32, i32
  }
  func.func @transform_2(%arg0: i32, %arg1: i32, %arg2: i32) -> (i32, i32) {
    %c0_i32 = arith.constant 0 : i32
    return %arg0, %arg1 : i32, i32
  }
}

module attributes {stable_mosaic.version = 11 : i64} {
  func.func @_graphnorm_apply_kernel(%arg0: i32, %arg1: memref<16x512xf32, #tpu.memory_space<vmem>>, %arg2: memref<16x2xf32, #tpu.memory_space<vmem>>, %arg3: memref<2x512xf32, #tpu.memory_space<vmem>>, %arg4: memref<2x512xf32, #tpu.memory_space<vmem>>, %arg5: memref<1x512xf32, #tpu.memory_space<vmem>>, %arg6: memref<1x512xf32, #tpu.memory_space<vmem>>, %arg7: memref<1x512xf32, #tpu.memory_space<vmem>>, %arg8: memref<16x512xf32, #tpu.memory_space<vmem>>) attributes {dimension_semantics = [#tpu.dimension_semantics<parallel>], iteration_bounds = array<i64: 1>, scalar_prefetch = 0 : i64, scratch_operands = 0 : i64, tpu.core_type = #tpu.core_type<tc>, window_params = [{transform_indices = @transform_0, window_bounds = array<i64: 16, 512>}, {transform_indices = @transform_1, window_bounds = array<i64: 16, 2>}, {pipeline_mode = #tpu.pipeline_mode<synchronous>, transform_indices = @transform_2, window_bounds = array<i64: 2, 512>}, {pipeline_mode = #tpu.pipeline_mode<synchronous>, transform_indices = @transform_3, window_bounds = array<i64: 2, 512>}, {pipeline_mode = #tpu.pipeline_mode<synchronous>, transform_indices = @transform_4, window_bounds = array<i64: 1, 512>}, {pipeline_mode = #tpu.pipeline_mode<synchronous>, transform_indices = @transform_5, window_bounds = array<i64: 1, 512>}, {pipeline_mode = #tpu.pipeline_mode<synchronous>, transform_indices = @transform_6, window_bounds = array<i64: 1, 512>}, {transform_indices = @transform_7, window_bounds = array<i64: 16, 512>}]} {
    %c0 = arith.constant 0 : index
    %c0_0 = arith.constant 0 : index
    %0 = vector.load %arg1[%c0, %c0_0] : memref<16x512xf32, #tpu.memory_space<vmem>>, vector<16x512xf32>
    %c0_1 = arith.constant 0 : index
    %c0_2 = arith.constant 0 : index
    %1 = vector.load %arg2[%c0_1, %c0_2] : memref<16x2xf32, #tpu.memory_space<vmem>>, vector<16x2xf32>
    %c0_3 = arith.constant 0 : index
    %c0_4 = arith.constant 0 : index
    %2 = vector.load %arg3[%c0_3, %c0_4] : memref<2x512xf32, #tpu.memory_space<vmem>>, vector<2x512xf32>
    %cst = arith.constant dense<0.000000e+00> : vector<16x512xf32>
    %3 = tpu.matmul %1, %2, %cst {dimension_numbers = #tpu.dot_dimension_numbers<[1], [0], [0], [1], [0, 0, 1, 1], [], []>} : vector<16x2xf32>, vector<2x512xf32>, vector<16x512xf32> -> vector<16x512xf32>
    %c0_5 = arith.constant 0 : index
    %c0_6 = arith.constant 0 : index
    %4 = vector.load %arg4[%c0_5, %c0_6] : memref<2x512xf32, #tpu.memory_space<vmem>>, vector<2x512xf32>
    %cst_7 = arith.constant dense<0.000000e+00> : vector<16x512xf32>
    %5 = tpu.matmul %1, %4, %cst_7 {dimension_numbers = #tpu.dot_dimension_numbers<[1], [0], [0], [1], [0, 0, 1, 1], [], []>} : vector<16x2xf32>, vector<2x512xf32>, vector<16x512xf32> -> vector<16x512xf32>
    %c0_8 = arith.constant 0 : index
    %c0_9 = arith.constant 0 : index
    %6 = vector.load %arg7[%c0_8, %c0_9] : memref<1x512xf32, #tpu.memory_space<vmem>>, vector<1x512xf32>
    %7 = vector.broadcast %6 : vector<1x512xf32> to vector<16x512xf32>
    %8 = arith.mulf %7, %3 : vector<16x512xf32>
    %9 = arith.subf %0, %8 : vector<16x512xf32>
    %c0_10 = arith.constant 0 : index
    %c0_11 = arith.constant 0 : index
    %10 = vector.load %arg5[%c0_10, %c0_11] : memref<1x512xf32, #tpu.memory_space<vmem>>, vector<1x512xf32>
    %11 = vector.broadcast %10 : vector<1x512xf32> to vector<16x512xf32>
    %12 = arith.mulf %11, %9 : vector<16x512xf32>
    %13 = arith.mulf %12, %5 : vector<16x512xf32>
    %c0_12 = arith.constant 0 : index
    %c0_13 = arith.constant 0 : index
    %14 = vector.load %arg6[%c0_12, %c0_13] : memref<1x512xf32, #tpu.memory_space<vmem>>, vector<1x512xf32>
    %15 = vector.broadcast %14 : vector<1x512xf32> to vector<16x512xf32>
    %16 = arith.addf %13, %15 : vector<16x512xf32>
    %c0_14 = arith.constant 0 : index
    %c0_15 = arith.constant 0 : index
    %17 = vector.load %arg8[%c0_14, %c0_15] : memref<16x512xf32, #tpu.memory_space<vmem>>, vector<16x512xf32>
    tpu.vector_store %arg8[%c0_14, %c0_15], %16 {strides = array<i32>} : memref<16x512xf32, #tpu.memory_space<vmem>>, vector<16x512xf32>,
    return
  }
  func.func @transform_0(%arg0: i32) -> (i32, i32) {
    %c0_i32 = arith.constant 0 : i32
    %c0_i32_0 = arith.constant 0 : i32
    return %arg0, %c0_i32 : i32, i32
  }
  func.func @transform_1(%arg0: i32) -> (i32, i32) {
    %c0_i32 = arith.constant 0 : i32
    %c0_i32_0 = arith.constant 0 : i32
    return %arg0, %c0_i32 : i32, i32
  }
  func.func @transform_2(%arg0: i32) -> (i32, i32) {
    %c0_i32 = arith.constant 0 : i32
    %c0_i32_0 = arith.constant 0 : i32
    %c0_i32_1 = arith.constant 0 : i32
    return %c0_i32, %c0_i32_0 : i32, i32
  }
  func.func @transform_3(%arg0: i32) -> (i32, i32) {
    %c0_i32 = arith.constant 0 : i32
    %c0_i32_0 = arith.constant 0 : i32
    %c0_i32_1 = arith.constant 0 : i32
    return %c0_i32, %c0_i32_0 : i32, i32
  }
  func.func @transform_4(%arg0: i32) -> (i32, i32) {
    %c0_i32 = arith.constant 0 : i32
    %c0_i32_0 = arith.constant 0 : i32
    %c0_i32_1 = arith.constant 0 : i32
    return %c0_i32, %c0_i32_0 : i32, i32
  }
  func.func @transform_5(%arg0: i32) -> (i32, i32) {
    %c0_i32 = arith.constant 0 : i32
    %c0_i32_0 = arith.constant 0 : i32
    %c0_i32_1 = arith.constant 0 : i32
    return %c0_i32, %c0_i32_0 : i32, i32
  }
  func.func @transform_6(%arg0: i32) -> (i32, i32) {
    %c0_i32 = arith.constant 0 : i32
    %c0_i32_0 = arith.constant 0 : i32
    %c0_i32_1 = arith.constant 0 : i32
    return %c0_i32, %c0_i32_0 : i32, i32
  }
  func.func @transform_7(%arg0: i32) -> (i32, i32) {
    %c0_i32 = arith.constant 0 : i32
    %c0_i32_0 = arith.constant 0 : i32
    return %arg0, %c0_i32 : i32, i32
  }
}

module attributes {stable_mosaic.version = 11 : i64} {
  func.func @_pool_kernel(%arg0: i32, %arg1: memref<16x1024xf32, #tpu.memory_space<vmem>>, %arg2: memref<16x2xf32, #tpu.memory_space<vmem>>, %arg3: memref<2x16xf32, #tpu.memory_space<vmem>>, %arg4: memref<2x1024xf32, #tpu.memory_space<vmem>>, %arg5: memref<2x1024xf32, #tpu.memory_space<vmem>>) attributes {dimension_semantics = [#tpu.dimension_semantics<arbitrary>], iteration_bounds = array<i64: 1>, scalar_prefetch = 0 : i64, scratch_operands = 0 : i64, tpu.core_type = #tpu.core_type<tc>, window_params = [{transform_indices = @transform_0, window_bounds = array<i64: 16, 1024>}, {transform_indices = @transform_1, window_bounds = array<i64: 16, 2>}, {transform_indices = @transform_2, window_bounds = array<i64: 2, 16>}, {pipeline_mode = #tpu.pipeline_mode<synchronous>, transform_indices = @transform_3, window_bounds = array<i64: 2, 1024>}, {pipeline_mode = #tpu.pipeline_mode<synchronous>, transform_indices = @transform_4, window_bounds = array<i64: 2, 1024>}]} {
    %c0_i32 = arith.constant 0 : i32
    %0 = arith.cmpi eq, %arg0, %c0_i32 : i32
    %1 = arith.extui %0 : i1 to i32
    %c0_i32_0 = arith.constant 0 : i32
    %2 = arith.cmpi ne, %1, %c0_i32_0 : i32
    scf.if %2 {
      %cst_20 = arith.constant 0.000000e+00 : f32
      %32 = vector.broadcast %cst_20 : f32 to vector<2x1024xf32>
      %c0_21 = arith.constant 0 : index
      %c0_22 = arith.constant 0 : index
      %33 = vector.load %arg4[%c0_21, %c0_22] : memref<2x1024xf32, #tpu.memory_space<vmem>>, vector<2x1024xf32>
      tpu.vector_store %arg4[%c0_21, %c0_22], %32 {strides = array<i32>} : memref<2x1024xf32, #tpu.memory_space<vmem>>, vector<2x1024xf32>,
      %cst_23 = arith.constant 0xFF800000 : f32
      %34 = vector.broadcast %cst_23 : f32 to vector<2x1024xf32>
      %c0_24 = arith.constant 0 : index
      %c0_25 = arith.constant 0 : index
      %35 = vector.load %arg5[%c0_24, %c0_25] : memref<2x1024xf32, #tpu.memory_space<vmem>>, vector<2x1024xf32>
      tpu.vector_store %arg5[%c0_24, %c0_25], %34 {strides = array<i32>} : memref<2x1024xf32, #tpu.memory_space<vmem>>, vector<2x1024xf32>,
    } else {
    }
    %c0 = arith.constant 0 : index
    %c0_1 = arith.constant 0 : index
    %3 = vector.load %arg1[%c0, %c0_1] : memref<16x1024xf32, #tpu.memory_space<vmem>>, vector<16x1024xf32>
    %c0_2 = arith.constant 0 : index
    %c0_3 = arith.constant 0 : index
    %4 = vector.load %arg2[%c0_2, %c0_3] : memref<16x2xf32, #tpu.memory_space<vmem>>, vector<16x2xf32>
    %c0_4 = arith.constant 0 : index
    %c0_5 = arith.constant 0 : index
    %5 = vector.load %arg3[%c0_4, %c0_5] : memref<2x16xf32, #tpu.memory_space<vmem>>, vector<2x16xf32>
    %c0_6 = arith.constant 0 : index
    %c0_7 = arith.constant 0 : index
    %6 = vector.load %arg4[%c0_6, %c0_7] : memref<2x1024xf32, #tpu.memory_space<vmem>>, vector<2x1024xf32>
    %cst = arith.constant dense<0.000000e+00> : vector<2x1024xf32>
    %7 = tpu.matmul %5, %3, %cst {dimension_numbers = #tpu.dot_dimension_numbers<[1], [0], [0], [1], [0, 0, 1, 1], [], []>} : vector<2x16xf32>, vector<16x1024xf32>, vector<2x1024xf32> -> vector<2x1024xf32>
    %8 = arith.addf %6, %7 : vector<2x1024xf32>
    %c0_8 = arith.constant 0 : index
    %c0_9 = arith.constant 0 : index
    %9 = vector.load %arg4[%c0_8, %c0_9] : memref<2x1024xf32, #tpu.memory_space<vmem>>, vector<2x1024xf32>
    tpu.vector_store %arg4[%c0_8, %c0_9], %8 {strides = array<i32>} : memref<2x1024xf32, #tpu.memory_space<vmem>>, vector<2x1024xf32>,
    %10 = vector.extract_strided_slice %4 {offsets = [0, 0], sizes = [16, 1], strides = [1, 1]} : vector<16x2xf32> to vector<16x1xf32>
    %cst_10 = arith.constant 0.000000e+00 : f32
    %11 = vector.broadcast %cst_10 : f32 to vector<16x1xf32>
    %12 = arith.cmpf ogt, %10, %11 : vector<16x1xf32>
    %cst_11 = arith.constant 0xFF800000 : f32
    %13 = vector.shape_cast %12 : vector<16x1xi1> to vector<16x1xi1>
    %14 = vector.broadcast %13 : vector<16x1xi1> to vector<16x1024xi1>
    %15 = vector.broadcast %cst_11 : f32 to vector<16x1024xf32>
    %16 = arith.select %14, %3, %15 : vector<16x1024xi1>, vector<16x1024xf32>
    %cst_12 = arith.constant dense<0xFF800000> : vector<1024xf32>
    %17 = vector.multi_reduction <maximumf>, %16, %cst_12 [0] : vector<16x1024xf32> to vector<1024xf32>
    %18 = vector.shape_cast %17 : vector<1024xf32> to vector<1x1024xf32>
    %19 = vector.extract_strided_slice %4 {offsets = [0, 1], sizes = [16, 1], strides = [1, 1]} : vector<16x2xf32> to vector<16x1xf32>
    %cst_13 = arith.constant 0.000000e+00 : f32
    %20 = vector.broadcast %cst_13 : f32 to vector<16x1xf32>
    %21 = arith.cmpf ogt, %19, %20 : vector<16x1xf32>
    %cst_14 = arith.constant 0xFF800000 : f32
    %22 = vector.shape_cast %21 : vector<16x1xi1> to vector<16x1xi1>
    %23 = vector.broadcast %22 : vector<16x1xi1> to vector<16x1024xi1>
    %24 = vector.broadcast %cst_14 : f32 to vector<16x1024xf32>
    %25 = arith.select %23, %3, %24 : vector<16x1024xi1>, vector<16x1024xf32>
    %cst_15 = arith.constant dense<0xFF800000> : vector<1024xf32>
    %26 = vector.multi_reduction <maximumf>, %25, %cst_15 [0] : vector<16x1024xf32> to vector<1024xf32>
    %27 = vector.shape_cast %26 : vector<1024xf32> to vector<1x1024xf32>
    %c0_16 = arith.constant 0 : index
    %c0_17 = arith.constant 0 : index
    %28 = vector.load %arg5[%c0_16, %c0_17] : memref<2x1024xf32, #tpu.memory_space<vmem>>, vector<2x1024xf32>
    %29 = tpu.concatenate %18, %27 in 0 : vector<1x1024xf32>, vector<1x1024xf32> -> vector<2x1024xf32>
    %30 = arith.maximumf %28, %29 : vector<2x1024xf32>
    %c0_18 = arith.constant 0 : index
    %c0_19 = arith.constant 0 : index
    %31 = vector.load %arg5[%c0_18, %c0_19] : memref<2x1024xf32, #tpu.memory_space<vmem>>, vector<2x1024xf32>
    tpu.vector_store %arg5[%c0_18, %c0_19], %30 {strides = array<i32>} : memref<2x1024xf32, #tpu.memory_space<vmem>>, vector<2x1024xf32>,
    return
  }
  func.func @transform_0(%arg0: i32) -> (i32, i32) {
    %c0_i32 = arith.constant 0 : i32
    %c0_i32_0 = arith.constant 0 : i32
    return %arg0, %c0_i32 : i32, i32
  }
  func.func @transform_1(%arg0: i32) -> (i32, i32) {
    %c0_i32 = arith.constant 0 : i32
    %c0_i32_0 = arith.constant 0 : i32
    return %arg0, %c0_i32 : i32, i32
  }
  func.func @transform_2(%arg0: i32) -> (i32, i32) {
    %c0_i32 = arith.constant 0 : i32
    %c0_i32_0 = arith.constant 0 : i32
    return %c0_i32, %arg0 : i32, i32
  }
  func.func @transform_3(%arg0: i32) -> (i32, i32) {
    %c0_i32 = arith.constant 0 : i32
    %c0_i32_0 = arith.constant 0 : i32
    %c0_i32_1 = arith.constant 0 : i32
    return %c0_i32, %c0_i32_0 : i32, i32
  }
  func.func @transform_4(%arg0: i32) -> (i32, i32) {
    %c0_i32 = arith.constant 0 : i32
    %c0_i32_0 = arith.constant 0 : i32
    %c0_i32_1 = arith.constant 0 : i32
    return %c0_i32, %c0_i32_0 : i32, i32
  }
}

module attributes {stable_mosaic.version = 11 : i64} {
  func.func @_matmul_kernel(%arg0: i32, %arg1: i32, %arg2: i32, %arg3: memref<2x512xbf16, #tpu.memory_space<vmem>>, %arg4: memref<512x256xbf16, #tpu.memory_space<vmem>>, %arg5: memref<2x256xf32, #tpu.memory_space<vmem>>) attributes {dimension_semantics = [#tpu.dimension_semantics<parallel>, #tpu.dimension_semantics<parallel>, #tpu.dimension_semantics<arbitrary>], iteration_bounds = array<i64: 1, 2, 6>, scalar_prefetch = 0 : i64, scratch_operands = 0 : i64, tpu.core_type = #tpu.core_type<tc>, window_params = [{transform_indices = @transform_0, window_bounds = array<i64: 2, 512>}, {transform_indices = @transform_1, window_bounds = array<i64: 512, 256>}, {transform_indices = @transform_2, window_bounds = array<i64: 2, 256>}]} {
    %c0_i32 = arith.constant 0 : i32
    %0 = arith.cmpi eq, %arg2, %c0_i32 : i32
    %1 = arith.extui %0 : i1 to i32
    %c0_i32_0 = arith.constant 0 : i32
    %2 = arith.cmpi ne, %1, %c0_i32_0 : i32
    scf.if %2 {
      %cst_8 = arith.constant 0.000000e+00 : f32
      %9 = vector.broadcast %cst_8 : f32 to vector<2x256xf32>
      %c0_9 = arith.constant 0 : index
      %c0_10 = arith.constant 0 : index
      %10 = vector.load %arg5[%c0_9, %c0_10] : memref<2x256xf32, #tpu.memory_space<vmem>>, vector<2x256xf32>
      tpu.vector_store %arg5[%c0_9, %c0_10], %9 {strides = array<i32>} : memref<2x256xf32, #tpu.memory_space<vmem>>, vector<2x256xf32>,
    } else {
    }
    %c0 = arith.constant 0 : index
    %c0_1 = arith.constant 0 : index
    %3 = vector.load %arg5[%c0, %c0_1] : memref<2x256xf32, #tpu.memory_space<vmem>>, vector<2x256xf32>
    %c0_2 = arith.constant 0 : index
    %c0_3 = arith.constant 0 : index
    %4 = vector.load %arg3[%c0_2, %c0_3] : memref<2x512xbf16, #tpu.memory_space<vmem>>, vector<2x512xbf16>
    %c0_4 = arith.constant 0 : index
    %c0_5 = arith.constant 0 : index
    %5 = vector.load %arg4[%c0_4, %c0_5] : memref<512x256xbf16, #tpu.memory_space<vmem>>, vector<512x256xbf16>
    %cst = arith.constant dense<0.000000e+00> : vector<2x256xf32>
    %6 = tpu.matmul %4, %5, %cst {dimension_numbers = #tpu.dot_dimension_numbers<[1], [0], [0], [1], [0, 0, 1, 1], [], []>} : vector<2x512xbf16>, vector<512x256xbf16>, vector<2x256xf32> -> vector<2x256xf32>
    %7 = arith.addf %3, %6 : vector<2x256xf32>
    %c0_6 = arith.constant 0 : index
    %c0_7 = arith.constant 0 : index
    %8 = vector.load %arg5[%c0_6, %c0_7] : memref<2x256xf32, #tpu.memory_space<vmem>>, vector<2x256xf32>
    tpu.vector_store %arg5[%c0_6, %c0_7], %7 {strides = array<i32>} : memref<2x256xf32, #tpu.memory_space<vmem>>, vector<2x256xf32>,
    return
  }
  func.func @transform_0(%arg0: i32, %arg1: i32, %arg2: i32) -> (i32, i32) {
    %c0_i32 = arith.constant 0 : i32
    return %arg0, %arg2 : i32, i32
  }
  func.func @transform_1(%arg0: i32, %arg1: i32, %arg2: i32) -> (i32, i32) {
    %c0_i32 = arith.constant 0 : i32
    return %arg2, %arg1 : i32, i32
  }
  func.func @transform_2(%arg0: i32, %arg1: i32, %arg2: i32) -> (i32, i32) {
    %c0_i32 = arith.constant 0 : i32
    return %arg0, %arg1 : i32, i32
  }
}

module attributes {stable_mosaic.version = 11 : i64} {
  func.func @_matmul_kernel(%arg0: i32, %arg1: i32, %arg2: i32, %arg3: memref<2x512xbf16, #tpu.memory_space<vmem>>, %arg4: memref<512x256xbf16, #tpu.memory_space<vmem>>, %arg5: memref<2x256xf32, #tpu.memory_space<vmem>>) attributes {dimension_semantics = [#tpu.dimension_semantics<parallel>, #tpu.dimension_semantics<parallel>, #tpu.dimension_semantics<arbitrary>], iteration_bounds = array<i64: 1, 2, 12>, scalar_prefetch = 0 : i64, scratch_operands = 0 : i64, tpu.core_type = #tpu.core_type<tc>, window_params = [{transform_indices = @transform_0, window_bounds = array<i64: 2, 512>}, {transform_indices = @transform_1, window_bounds = array<i64: 512, 256>}, {transform_indices = @transform_2, window_bounds = array<i64: 2, 256>}]} {
    %c0_i32 = arith.constant 0 : i32
    %0 = arith.cmpi eq, %arg2, %c0_i32 : i32
    %1 = arith.extui %0 : i1 to i32
    %c0_i32_0 = arith.constant 0 : i32
    %2 = arith.cmpi ne, %1, %c0_i32_0 : i32
    scf.if %2 {
      %cst_8 = arith.constant 0.000000e+00 : f32
      %9 = vector.broadcast %cst_8 : f32 to vector<2x256xf32>
      %c0_9 = arith.constant 0 : index
      %c0_10 = arith.constant 0 : index
      %10 = vector.load %arg5[%c0_9, %c0_10] : memref<2x256xf32, #tpu.memory_space<vmem>>, vector<2x256xf32>
      tpu.vector_store %arg5[%c0_9, %c0_10], %9 {strides = array<i32>} : memref<2x256xf32, #tpu.memory_space<vmem>>, vector<2x256xf32>,
    } else {
    }
    %c0 = arith.constant 0 : index
    %c0_1 = arith.constant 0 : index
    %3 = vector.load %arg5[%c0, %c0_1] : memref<2x256xf32, #tpu.memory_space<vmem>>, vector<2x256xf32>
    %c0_2 = arith.constant 0 : index
    %c0_3 = arith.constant 0 : index
    %4 = vector.load %arg3[%c0_2, %c0_3] : memref<2x512xbf16, #tpu.memory_space<vmem>>, vector<2x512xbf16>
    %c0_4 = arith.constant 0 : index
    %c0_5 = arith.constant 0 : index
    %5 = vector.load %arg4[%c0_4, %c0_5] : memref<512x256xbf16, #tpu.memory_space<vmem>>, vector<512x256xbf16>
    %cst = arith.constant dense<0.000000e+00> : vector<2x256xf32>
    %6 = tpu.matmul %4, %5, %cst {dimension_numbers = #tpu.dot_dimension_numbers<[1], [0], [0], [1], [0, 0, 1, 1], [], []>} : vector<2x512xbf16>, vector<512x256xbf16>, vector<2x256xf32> -> vector<2x256xf32>
    %7 = arith.addf %3, %6 : vector<2x256xf32>
    %c0_6 = arith.constant 0 : index
    %c0_7 = arith.constant 0 : index
    %8 = vector.load %arg5[%c0_6, %c0_7] : memref<2x256xf32, #tpu.memory_space<vmem>>, vector<2x256xf32>
    tpu.vector_store %arg5[%c0_6, %c0_7], %7 {strides = array<i32>} : memref<2x256xf32, #tpu.memory_space<vmem>>, vector<2x256xf32>,
    return
  }
  func.func @transform_0(%arg0: i32, %arg1: i32, %arg2: i32) -> (i32, i32) {
    %c0_i32 = arith.constant 0 : i32
    return %arg0, %arg2 : i32, i32
  }
  func.func @transform_1(%arg0: i32, %arg1: i32, %arg2: i32) -> (i32, i32) {
    %c0_i32 = arith.constant 0 : i32
    return %arg2, %arg1 : i32, i32
  }
  func.func @transform_2(%arg0: i32, %arg1: i32, %arg2: i32) -> (i32, i32) {
    %c0_i32 = arith.constant 0 : i32
    return %arg0, %arg1 : i32, i32
  }
}

</mosaic_0001>

<bundles_post_ra>
// kernel: gnn_v5_forward.42
= control target key start
LH: loop header
LB: loop body
LE: loop exit
PB: predicated region body
PF: predicated region fallthrough
CT: control target
= control target key end

     0   :  { %vm16_vm0 = vcmask 523264   ;;  %v105_v0 = vmov 0.0   ;;  %vm106_vm1 = vmmov 0   ;;  %vm36_vm2 = vcmask 130048   ;;  %s150_s2 = inlined_call_operand.vmem [shape: f32[16,64], index: 2, kind: output, shape index: {}]   ;;  %s151_s1 = inlined_call_operand.vmem [shape: bf16[16,64], index: 1, kind: input, shape index: {}]   ;;  %s152_s0 = inlined_call_operand.vmem [shape: bf16[16,16], index: 0, kind: input, shape index: {}]  }
   0x1   :  { %17 = vst.msk [vmem:[%s150_s2] sm:$0xff] %vm16_vm0, %v105_v0  ;;  %18 = vst.msk [vmem:[%s150_s2 + $0x8] sm:$0xff] %vm16_vm0, %v105_v0  ;;  %95 = vmatprep.subr.bf16.mxu0 %v105_v0  ;;  %v103_v1 = vld [vmem:[%s151_s1] sm:$0xff]   ;;  %97 = vmatprep.mubr.msk.bf16.mxu0 %vm106_vm1, %v105_v0 }
   0x2   :  { %v104_v2 = vld [vmem:[%s152_s0] sm:$0xff]   ;;  %96 = vmatpush3.bf16.msra.mxu0 %v103_v1 }
   0x5   :  { %98 = vmatmul.mubr.msk.bf16.vlgmr.msra.gmra.mxu0 %vm36_vm2, %v104_v2 }
   0x8   :  { %v19_v3 = vld [vmem:[%s150_s2] sm:$0xff]  ;;  %v20_v7 = vld [vmem:[%s150_s2 + $0x8] sm:$0xff] }
  0xc5   :  { %v74_v4 = vpop.f32.mrf.mxu0 }
  0xc6   :  { %v81_v5 = vadd.f32 %v74_v4, %v19_v3 }
  0xc7   :  { %v99_v6 = vpop.f32.mrf.mxu0 }
  0xc8   :  { %84 = vst.msk [vmem:[%s150_s2] sm:$0xff] %vm16_vm0, %v81_v5 }
  0xc9   :  { %v77_v8 = vpop.f32.mrf.mxu0 }
  0xca   :  { %v82_v9 = vadd.f32 %v77_v8, %v20_v7 }
  0xcb   :  { %v100_v10 = vpop.f32.mrf.mxu0 }
  0xcc   :  { %85 = vst.msk [vmem:[%s150_s2 + $0x8] sm:$0xff] %vm16_vm0, %v82_v9 }

// kernel: gnn_v5_forward.30
= control target key start
LH: loop header
LB: loop body
LE: loop exit
PB: predicated region body
PF: predicated region fallthrough
CT: control target
= control target key end

     0   :  { %9 = vsyncpa [#allocation3], 0  ;;  %s244_s12 = smov [#allocation2]   ;;  %s298_s0 = inlined_call_operand.vmem [shape: f32[16,64], index: 0, kind: input, shape index: {}]   ;;  %s299_s1 = inlined_call_operand.hbm [shape: f32[2,16], index: 1, kind: input, shape index: {}]   ;;  %s300_s2 = inlined_call_operand.vmem [shape: f32[2,64], index: 2, kind: output, shape index: {0}]   ;;  %s301_s3 = inlined_call_operand.vmem [shape: f32[2,64], index: 3, kind: output, shape index: {1}]  }
   0x1   :  { %s18_s13 = sshll.u32 %s244_s12, 4  ;;  %s19_s13 = int_to_ptr.vmem [resolvable:$true] %s18_s13 }
   0x2   :  { %s230_s14 = scalar_lea.vmem %s19_s13, 32  ;;  %p235_p1 = scmp.lt.s32.totalorder %s19_s13, %s19_s13 }
   0x3   :  { %p231_p0 = scmp.ne.s32.totalorder %s19_s13, %s230_s14  ;;  %p236_p2 = scmp.lt.s32.totalorder %s230_s14, %s230_s14 }
   0x5   :  { %p237_p3 = por %p236_p2, %p235_p1 }
   0x7   :  { %p238_p4 = pnand %p237_p3, %p231_p0 }
   0x9   :  { %241 = shalt.err (!%p238_p4)
}
   0xa   :  { %21 = dma.hbm_to_vmem [thread:$0]  %s299_s1, 32, %s19_s13, [#allocation3]  }
   0xb   :  { %242 = dma.done.wait [#allocation3], 32  }
   0xc   :  { %243 = vsyncadd [#allocation3], 4294967264  ;;  %vm29_vm0 = vcmask 517120   ;;  %v245_v0 = vmov 0.0   ;;  %vm246_vm1 = vmmov 0   ;;  %v33_v1 = vld [vmem:[%s298_s0 + $0x8] sm:$0xff] }
   0xd   :  { %205 = vmatprep.subr.mxu0 %v245_v0  ;;  %212 = vmatprep.subr.mxu1 %v245_v0  ;;  %30 = vst.msk [vmem:[%s300_s2] sm:$0x3] %vm29_vm0, %v245_v0  ;;  %31 = vst.msk [vmem:[%s301_s3] sm:$0x3] %vm29_vm0, %v245_v0  ;;  %v32_v2 = vld [vmem:[%s298_s0] sm:$0xff]  ;;  %v115_v4 = vmul.f32 %v33_v1, %v33_v1  ;;  %vm36_vm2 = vcmask 130048  }
   0xe   :  { %209 = vmatprep.mubr.msk.f32.mxu0 %vm246_vm1, %v245_v0  ;;  %216 = vmatprep.mubr.msk.f32.mxu1 %vm246_vm1, %v245_v0  ;;  %v114_v3 = vmul.f32 %v32_v2, %v32_v2  ;;  %v34_v5 = vld [vmem:[#allocation2] sm:$0x3] }
   0xf   :  { %206 = vmatpush3.msra.mxu0 %v33_v1  ;;  %213 = vmatpush3.msra.mxu1 %v115_v4 }
  0x10   :  { %207 = vmatprep.subr.mxu0 %v245_v0  ;;  %214 = vmatprep.subr.mxu1 %v245_v0 }
  0x11   :  { %208 = vmatpush3.msra.mxu0 %v32_v2  ;;  %215 = vmatpush3.msra.mxu1 %v114_v3 }
  0x12   :  { %210 = vmatmul.mubr.msk.f32.vlgmr.msra.gmra.mxu0 %vm36_vm2, %v34_v5  ;;  %217 = vmatmul.mubr.msk.f32.vlgmr.msra.gmra.mxu1 %vm36_vm2, %v34_v5 }
  0x14   :  { %v35_v6 = vld [vmem:[%s300_s2] sm:$0x3] }
  0x15   :  { %v113_v8 = vld [vmem:[%s301_s3] sm:$0x3] }
  0xd2   :  { %v106_v7 = vpop.f32.mrf.mxu0  ;;  %v182_v11 = vpop.f32.mrf.mxu1 }
  0xd3   :  { %v110_v9 = vadd.f32 %v106_v7, %v35_v6  ;;  %v186_v12 = vadd.f32 %v182_v11, %v113_v8 }
  0xd4   :  { %v211_v10 = vpop.f32.mrf.mxu0  ;;  %v218_v13 = vpop.f32.mrf.mxu1 }
  0xd5   :  { %112 = vst.msk [vmem:[%s300_s2] sm:$0x3] %vm29_vm0, %v110_v9  ;;  %187 = vst.msk [vmem:[%s301_s3] sm:$0x3] %vm29_vm0, %v186_v12 }
  0xd6   :  { %196 = vsyncpa [#allocation3], 1 }

// kernel: gnn_v5_forward.29
= control target key start
LH: loop header
LB: loop body
LE: loop exit
PB: predicated region body
PF: predicated region fallthrough
CT: control target
= control target key end

     0   :  { %10 = vsyncpa [#allocation6], 0  ;;  %s1344_s0 = inlined_call_operand.vmem [shape: f32[16,64], index: 0, kind: input, shape index: {}]   ;;  %s1345_s1 = inlined_call_operand.vmem [shape: f32[16,64], index: 1, kind: input, shape index: {}]   ;;  %s1346_s2 = inlined_call_operand.hbm [shape: f32[1,64], index: 2, kind: input, shape index: {}]   ;;  %s1347_s3 = inlined_call_operand.vmem [shape: f32[16,16], index: 3, kind: input, shape index: {}]   ;;  %s1348_s4 = inlined_call_operand.hbm [shape: f32[1,64], index: 4, kind: input, shape index: {}]   ;;  %s1349_s5 = inlined_call_operand.vmem [shape: f32[16,64], index: 5, kind: output, shape index: {}]  }
   0x1   :  { %11 = vsyncpa [#allocation8], 0  ;;  %s1015_s18 = smov [#allocation5]   ;;  %s1016_s20 = smov [#allocation7]  }
   0x2   :  { %s22_s19 = sshll.u32 %s1015_s18, 4  ;;  %s34_s21 = sshll.u32 %s1016_s20, 4  ;;  %s23_s19 = int_to_ptr.vmem [resolvable:$true] %s22_s19  ;;  %s35_s21 = int_to_ptr.vmem [resolvable:$true] %s34_s21 }
   0x3   :  { %s979_s22 = scalar_lea.vmem %s23_s19, 16  ;;  %s983_s23 = scalar_lea.vmem %s23_s19, 32 }
   0x4   :  { %p980_p0 = scmp.ne.s32.totalorder %s23_s19, %s979_s22  ;;  %p984_p1 = scmp.lt.s32.totalorder %s23_s19, %s23_s19 }
   0x5   :  { %p985_p2 = scmp.lt.s32.totalorder %s983_s23, %s979_s22 }
   0x7   :  { %p986_p3 = por %p985_p2, %p984_p1 }
   0x9   :  { %p987_p4 = pnand %p986_p3, %p980_p0 }
   0xb   :  { %990 = shalt.err (!%p987_p4)
}
   0xc   :  { %25 = dma.hbm_to_vmem [thread:$0]  %s1346_s2, 16, %s23_s19, [#allocation6]  }
   0xd   :  { %s999_s26 = scalar_lea.vmem %s35_s21, 16  ;;  %s1003_s27 = scalar_lea.vmem %s35_s21, 32 }
   0xe   :  { %p1000_p5 = scmp.ne.s32.totalorder %s35_s21, %s999_s26  ;;  %p1004_p6 = scmp.lt.s32.totalorder %s35_s21, %s35_s21 }
   0xf   :  { %p1005_p7 = scmp.lt.s32.totalorder %s1003_s27, %s999_s26 }
  0x11   :  { %p1006_p8 = por %p1005_p7, %p1004_p6 }
  0x13   :  { %p1007_p9 = pnand %p1006_p8, %p1000_p5 }
  0x15   :  { %1010 = shalt.err (!%p1007_p9)
}
  0x16   :  { %37 = dma.hbm_to_vmem [thread:$0]  %s1348_s4, 16, %s35_s21, [#allocation8]  }
  0x17   :  { %1011 = dma.done.wait [#allocation6], 16  }
  0x18   :  { %1012 = vsyncadd [#allocation6], 4294967280 }
  0x19   :  { %1013 = dma.done.wait [#allocation8], 16  }
  0x1a   :  { %1014 = vsyncadd [#allocation8], 4294967280  ;;  %v69_v0 = vlaneseq  ;;  %v1017_v1 = vmov 1966171168   ;;  %v1066_v10 = vld [vmem:[%s1344_s0 + $0x8] sm:$0xff]  ;;  %v58_v15 = vld [vmem:[%s1345_s1] sm:$0xff] }
  0x1b   :  { %v67_v2 = vunpack.c.l.s4 %v1017_v1  ;;  %v59_v11 = vld [vmem:[%s1345_s1 + $0x8] sm:$0xff]  ;;  %942 = vmatprep.subr.mxu0 %v1066_v10  ;;  %v1081_v16 = vld [vmem:[%s1344_s0] sm:$0xff]  ;;  %v65_v17 = vcombine.high %v58_v15, %v58_v15  ;;  %vm53_vm0 = vcmask 523264   ;;  %v1114_v36 = vld [vmem:[#allocation5] ss:$0 sm:$0xff] }
  0x1c   :  { %v70_v3 = vshrl.u32 %v69_v0, 7  ;;  %v573_v4 = vand.u32 127, %v69_v0  ;;  %v114_v12 = vcombine.high %v59_v11, %v59_v11  ;;  %943 = vmatpush3.msra.mxu0 %v1066_v10 }
  0x1d   :  { %v68_v5 = vunpack.c.0.s8 %v67_v2  ;;  %944 = vmatprep.subr.mxu0 %v1081_v16 }
  0x1e   :  { %v1057_v6 = vsub.s32 %v573_v4, %v70_v3  ;;  %v578_v7 = vadd.s32 4294967288, %v573_v4  ;;  %v1072_v14 = vsub.s32 0, %v70_v3  ;;  %945 = vmatpush3.msra.mxu0 %v1081_v16 }
  0x1f   :  { %v1059_v8 = vsub.s32 %v68_v5, %v70_v3 }
  0x20   :  { %v1061_v9 = vsub.s32 %v578_v7, %v70_v3 }
  0x21   :  { %v121_v13 = vrot.slane %v59_v11, %v1059_v8  ;;  %v72_v18 = vrot.slane %v58_v15, %v1059_v8  ;;  %v1089_v23 = vrot.slane %v65_v17, %v1059_v8  ;;  %v1097_v27 = vrot.slane %v114_v12, %v1059_v8 }
  0x23   :  { %v137_v19 = vrot.slane %v121_v13, %v1059_v8  ;;  %v129_v20 = vcombine.high %v121_v13, %v121_v13  ;;  %v88_v21 = vrot.slane %v72_v18, %v1059_v8  ;;  %v80_v22 = vcombine.high %v72_v18, %v72_v18 }
  0x24   :  { %v1105_v31 = vrot.slane %v1089_v23, %v1059_v8 }
  0x25   :  { %v198_v24 = vrot.slane %v137_v19, %v1072_v14  ;;  %v1094_v25 = vrot.slane %v129_v20, %v1059_v8  ;;  %v159_v26 = vcombine.high %v137_v19, %v137_v19  ;;  %v166_v28 = vrot.slane %v88_v21, %v1072_v14 }
  0x26   :  { %v1101_v29 = vrot.slane %v80_v22, %v1059_v8  ;;  %v110_v30 = vcombine.high %v88_v21, %v88_v21 }
  0x27   :  { %v260_v32 = vadd.f32 %v198_v24, %v1066_v10  ;;  %v259_v33 = vadd.f32 %v198_v24, %v1081_v16  ;;  %v202_v34 = vrot.slane %v1094_v25, %v1072_v14  ;;  %v1112_v35 = vrot.slane %v159_v26, %v1072_v14 }
  0x28   :  { %v243_v37 = vadd.f32 %v166_v28, %v1081_v16  ;;  %v170_v38 = vrot.slane %v1101_v29, %v1072_v14  ;;  %v244_v39 = vadd.f32 %v166_v28, %v1066_v10  ;;  %v174_v40 = vrot.slane %v110_v30, %v1072_v14 }
  0x29   :  { %vm292_vm1 = vcmp.gt.f32.partialorder %v260_v32, 0.0  ;;  %v324_v41 = vmul.f32 0.2, %v260_v32  ;;  %vm291_vm2 = vcmp.gt.f32.partialorder %v259_v33, 0.0  ;;  %v323_v42 = vmul.f32 0.2, %v259_v33 }
  0x2a   :  { %vm275_vm3 = vcmp.gt.f32.partialorder %v243_v37, 0.0  ;;  %v307_v43 = vmul.f32 0.2, %v243_v37  ;;  %v245_v44 = vadd.f32 %v170_v38, %v1081_v16  ;;  %vm276_vm4 = vcmp.gt.f32.partialorder %v244_v39, 0.0 }
  0x2b   :  { %v356_v45 = vsel %vm292_vm1, %v260_v32, %v324_v41  ;;  %v308_v46 = vmul.f32 0.2, %v244_v39  ;;  %v246_v47 = vadd.f32 %v170_v38, %v1066_v10  ;;  %v355_v48 = vsel %vm291_vm2, %v259_v33, %v323_v42 }
  0x2c   :  { %v394_v49 = vmul.f32 %v1114_v36, %v356_v45  ;;  %v339_v50 = vsel %vm275_vm3, %v243_v37, %v307_v43  ;;  %vm277_vm5 = vcmp.gt.f32.partialorder %v245_v44, 0.0  ;;  %v309_v51 = vmul.f32 0.2, %v245_v44 }
  0x2d   :  { %v377_v52 = vmul.f32 %v1114_v36, %v339_v50  ;;  %v340_v53 = vsel %vm276_vm4, %v244_v39, %v308_v46  ;;  %vm278_vm6 = vcmp.gt.f32.partialorder %v246_v47, 0.0  ;;  %v310_v54 = vmul.f32 0.2, %v246_v47 }
  0x2e   :  { %v461_v55 = vsel %vm53_vm0, %v394_v49, 0.0  ;;  %v341_v56 = vsel %vm277_vm5, %v245_v44, %v309_v51  ;;  %v378_v57 = vmul.f32 %v1114_v36, %v340_v53  ;;  %v393_v58 = vmul.f32 %v1114_v36, %v355_v48 }
  0x2f   :  { %462 = vadd.xlane.f32.xlu1 %v461_v55  ;;  %v410_v59 = vsel %vm53_vm0, %v377_v52, 0.0  ;;  %v379_v60 = vmul.f32 %v1114_v36, %v341_v56  ;;  %v342_v61 = vsel %vm278_vm6, %v246_v47, %v310_v54  ;;  %v248_v62 = vadd.f32 %v174_v40, %v1066_v10 }
  0x30   :  { %411 = vadd.xlane.f32.xlu0 %v410_v59  ;;  %v413_v63 = vsel %vm53_vm0, %v378_v57, 0.0  ;;  %v380_v0 = vmul.f32 %v1114_v36, %v342_v61  ;;  %v458_v1 = vsel %vm53_vm0, %v393_v58, 0.0  ;;  %v247_v2 = vadd.f32 %v174_v40, %v1081_v16 }
  0x31   :  { %v416_v3 = vsel %vm53_vm0, %v379_v60, 0.0  ;;  %vm280_vm7 = vcmp.gt.f32.partialorder %v248_v62, 0.0  ;;  %v312_v4 = vmul.f32 0.2, %v248_v62  ;;  %v262_v5 = vadd.f32 %v202_v34, %v1066_v10 }
  0x32   :  { %v419_v7 = vsel %vm53_vm0, %v380_v0, 0.0  ;;  %vm279_vm8 = vcmp.gt.f32.partialorder %v247_v2, 0.0  ;;  %v311_v11 = vmul.f32 0.2, %v247_v2  ;;  %v261_v12 = vadd.f32 %v202_v34, %v1081_v16 }
  0x33   :  { %417 = vadd.xlane.f32.xlu1 %v416_v3  ;;  %v344_v13 = vsel %vm280_vm7, %v248_v62, %v312_v4  ;;  %vm294_vm9 = vcmp.gt.f32.partialorder %v262_v5, 0.0  ;;  %v326_v15 = vmul.f32 0.2, %v262_v5  ;;  %v264_v17 = vadd.f32 %v1112_v35, %v1066_v10 }
  0x34   :  { %414 = vadd.xlane.f32.xlu0 %v413_v63  ;;  %v382_v18 = vmul.f32 %v1114_v36, %v344_v13  ;;  %v343_v19 = vsel %vm279_vm8, %v247_v2, %v311_v11  ;;  %vm293_vm10 = vcmp.gt.f32.partialorder %v261_v12, 0.0  ;;  %v325_v20 = vmul.f32 0.2, %v261_v12 }
  0x35   :  { %v381_v21 = vmul.f32 %v1114_v36, %v343_v19  ;;  %v358_v22 = vsel %vm294_vm9, %v262_v5, %v326_v15  ;;  %vm296_vm11 = vcmp.gt.f32.partialorder %v264_v17, 0.0  ;;  %v328_v24 = vmul.f32 0.2, %v264_v17 }
  0x36   :  { %v396_v26 = vmul.f32 %v1114_v36, %v358_v22  ;;  %v357_v28 = vsel %vm293_vm10, %v261_v12, %v325_v20  ;;  %v263_v30 = vadd.f32 %v1112_v35, %v1081_v16  ;;  %v112_v34 = vcombine.high %v1101_v29, %v1101_v29 }
  0x37   :  { %420 = vadd.xlane.f32.xlu1 %v419_v7  ;;  %v395_v32 = vmul.f32 %v1114_v36, %v357_v28  ;;  %v360_v33 = vsel %vm296_vm11, %v264_v17, %v328_v24  ;;  %v425_v37 = vsel %vm53_vm0, %v382_v18, 0.0  ;;  %v1152_v39 = vrot.slane %v1097_v27, %v1059_v8 }
  0x38   :  { %459 = vadd.xlane.f32.xlu0 %v458_v1  ;;  %vm295_vm12 = vcmp.gt.f32.partialorder %v263_v30, 0.0  ;;  %v327_v38 = vmul.f32 0.2, %v263_v30  ;;  %v422_v40 = vsel %vm53_vm0, %v381_v21, 0.0  ;;  %v178_v35 = vrot.slane %v112_v34, %v1072_v14 }
  0x39   :  { %v182_v41 = vrot.slane %v1105_v31, %v1072_v14  ;;  %v161_v42 = vcombine.high %v1094_v25, %v1094_v25  ;;  %v467_v29 = vsel %vm53_vm0, %v396_v26, 0.0  ;;  %v398_v43 = vmul.f32 %v1114_v36, %v360_v33 }
  0x3a   :  { %v359_v44 = vsel %vm295_vm12, %v263_v30, %v327_v38  ;;  %v81_v45 = vcombine.high %v1089_v23, %v1089_v23  ;;  %v464_v46 = vsel %vm53_vm0, %v395_v32, 0.0  ;;  %v250_v47 = vadd.f32 %v178_v35, %v1066_v10 }
  0x3b   :  { %426 = vadd.xlane.f32.xlu1 %v425_v37  ;;  %v249_v48 = vadd.f32 %v178_v35, %v1081_v16  ;;  %v252_v49 = vadd.f32 %v182_v41, %v1066_v10  ;;  %v251_v25 = vadd.f32 %v182_v41, %v1081_v16  ;;  %v210_v50 = vrot.slane %v161_v42, %v1072_v14 }
  0x3c   :  { %423 = vadd.xlane.f32.xlu0 %v422_v40  ;;  %v1171_v51 = vrot.slane %v81_v45, %v1059_v8  ;;  %v214_v23 = vrot.slane %v1152_v39, %v1072_v14  ;;  %v397_v52 = vmul.f32 %v1114_v36, %v359_v44  ;;  %vm282_vm13 = vcmp.gt.f32.partialorder %v250_v47, 0.0 }
  0x3d   :  { %v314_v53 = vmul.f32 0.2, %v250_v47  ;;  %vm281_vm14 = vcmp.gt.f32.partialorder %v249_v48, 0.0  ;;  %v313_v54 = vmul.f32 0.2, %v249_v48  ;;  %vm284_vm15 = vcmp.gt.f32.partialorder %v252_v49, 0.0 }
  0x3e   :  { %v316_v55 = vmul.f32 0.2, %v252_v49  ;;  %vm283_vm1 = vcmp.gt.f32.partialorder %v251_v25, 0.0  ;;  %v315_v57 = vmul.f32 0.2, %v251_v25  ;;  %v266_v58 = vadd.f32 %v210_v50, %v1066_v10 }
  0x3f   :  { %468 = vadd.xlane.f32.xlu1 %v467_v29  ;;  %v346_v56 = vsel %vm282_vm13, %v250_v47, %v314_v53  ;;  %v265_v59 = vadd.f32 %v210_v50, %v1081_v16  ;;  %v473_v60 = vsel %vm53_vm0, %v398_v43, 0.0  ;;  %v345_v62 = vsel %vm281_vm14, %v249_v48, %v313_v54 }
  0x40   :  { %465 = vadd.xlane.f32.xlu0 %v464_v46  ;;  %v384_v61 = vmul.f32 %v1114_v36, %v346_v56  ;;  %v186_v63 = vrot.slane %v1171_v51, %v1072_v14  ;;  %v470_v0 = vsel %vm53_vm0, %v397_v52, 0.0  ;;  %v383_v1 = vmul.f32 %v1114_v36, %v345_v62 }
  0x41   :  { %v348_v2 = vsel %vm284_vm15, %v252_v49, %v316_v55  ;;  %vm298_vm2 = vcmp.gt.f32.partialorder %v266_v58, 0.0  ;;  %v347_v3 = vsel %vm283_vm1, %v251_v25, %v315_v57  ;;  %v330_v4 = vmul.f32 0.2, %v266_v58 }
  0x42   :  { %vm297_vm3 = vcmp.gt.f32.partialorder %v265_v59, 0.0  ;;  %v329_v5 = vmul.f32 0.2, %v265_v59  ;;  %v254_v7 = vadd.f32 %v186_v63, %v1066_v10  ;;  %v268_v11 = vadd.f32 %v214_v23, %v1066_v10 }
  0x43   :  { %474 = vadd.xlane.f32.xlu1 %v473_v60  ;;  %v431_v12 = vsel %vm53_vm0, %v384_v61, 0.0  ;;  %v386_v13 = vmul.f32 %v1114_v36, %v348_v2  ;;  %v362_v15 = vsel %vm298_vm2, %v266_v58, %v330_v4  ;;  %v253_v17 = vadd.f32 %v186_v63, %v1081_v16 }
  0x44   :  { %471 = vadd.xlane.f32.xlu0 %v470_v0  ;;  %v428_v18 = vsel %vm53_vm0, %v383_v1, 0.0  ;;  %v385_v19 = vmul.f32 %v1114_v36, %v347_v3  ;;  %vm286_vm4 = vcmp.gt.f32.partialorder %v254_v7, 0.0  ;;  %v318_v20 = vmul.f32 0.2, %v254_v7 }
  0x45   :  { %v361_v21 = vsel %vm297_vm3, %v265_v59, %v329_v5  ;;  %vm285_vm5 = vcmp.gt.f32.partialorder %v253_v17, 0.0  ;;  %v317_v22 = vmul.f32 0.2, %v253_v17  ;;  %v400_v24 = vmul.f32 %v1114_v36, %v362_v15 }
  0x46   :  { %v332_v26 = vmul.f32 0.2, %v268_v11  ;;  %v267_v28 = vadd.f32 %v214_v23, %v1081_v16  ;;  %v111_v30 = vcombine.high %v1105_v31, %v1105_v31  ;;  %v437_v32 = vsel %vm53_vm0, %v386_v13, 0.0 }
  0x47   :  { %432 = vadd.xlane.f32.xlu1 %v431_v12  ;;  %v350_v33 = vsel %vm286_vm4, %v254_v7, %v318_v20  ;;  %v349_v34 = vsel %vm285_vm5, %v253_v17, %v317_v22  ;;  %vm300_vm6 = vcmp.gt.f32.partialorder %v268_v11, 0.0  ;;  %v434_v37 = vsel %vm53_vm0, %v385_v19, 0.0 }
  0x48   :  { %429 = vadd.xlane.f32.xlu0 %v428_v18  ;;  %v399_v38 = vmul.f32 %v1114_v36, %v361_v21  ;;  %v331_v40 = vmul.f32 0.2, %v267_v28  ;;  %vm299_vm7 = vcmp.gt.f32.partialorder %v267_v28, 0.0  ;;  %v190_v35 = vrot.slane %v111_v30, %v1072_v14 }
  0x49   :  { %v130_v41 = vcombine.high %v1097_v27, %v1097_v27  ;;  %v113_v31 = vcombine.high %v1171_v51, %v1171_v51  ;;  %v479_v42 = vsel %vm53_vm0, %v400_v24, 0.0  ;;  %v388_v29 = vmul.f32 %v1114_v36, %v350_v33 }
  0x4a   :  { %v387_v43 = vmul.f32 %v1114_v36, %v349_v34  ;;  %v364_v44 = vsel %vm300_vm6, %v268_v11, %v332_v26  ;;  %v256_v45 = vadd.f32 %v190_v35, %v1066_v10  ;;  %v255_v46 = vadd.f32 %v190_v35, %v1081_v16 }
  0x4b   :  { %438 = vadd.xlane.f32.xlu1 %v437_v32  ;;  %v158_v47 = vrot.slane %v130_v41, %v1059_v8  ;;  %v160_v27 = vcombine.high %v1152_v39, %v1152_v39  ;;  %v476_v48 = vsel %vm53_vm0, %v399_v38, 0.0  ;;  %v363_v49 = vsel %vm299_vm7, %v267_v28, %v331_v40 }
  0x4c   :  { %435 = vadd.xlane.f32.xlu0 %v434_v37  ;;  %v194_v25 = vrot.slane %v113_v31, %v1072_v14  ;;  %vm288_vm8 = vcmp.gt.f32.partialorder %v256_v45, 0.0  ;;  %v320_v50 = vmul.f32 0.2, %v256_v45  ;;  %vm287_vm9 = vcmp.gt.f32.partialorder %v255_v46, 0.0 }
  0x4d   :  { %v443_v51 = vsel %vm53_vm0, %v388_v29, 0.0  ;;  %v402_v23 = vmul.f32 %v1114_v36, %v364_v44  ;;  %v319_v52 = vmul.f32 0.2, %v255_v46  ;;  %v218_v53 = vrot.slane %v158_v47, %v1072_v14 }
  0x4e   :  { %v440_v8 = vsel %vm53_vm0, %v387_v43, 0.0  ;;  %v401_v39 = vmul.f32 %v1114_v36, %v363_v49  ;;  %v258_v54 = vadd.f32 %v194_v25, %v1066_v10  ;;  %v222_v55 = vrot.slane %v160_v27, %v1072_v14 }
  0x4f   :  { %480 = vadd.xlane.f32.xlu1 %v479_v42  ;;  %v352_v56 = vsel %vm288_vm8, %v256_v45, %v320_v50  ;;  %v351_v57 = vsel %vm287_vm9, %v255_v46, %v319_v52  ;;  %v270_v58 = vadd.f32 %v218_v53, %v1066_v10  ;;  %v269_v59 = vadd.f32 %v218_v53, %v1081_v16 }
  0x50   :  { %477 = vadd.xlane.f32.xlu0 %v476_v48  ;;  %v257_v60 = vadd.f32 %v194_v25, %v1081_v16  ;;  %v485_v61 = vsel %vm53_vm0, %v402_v23, 0.0  ;;  %v390_v63 = vmul.f32 %v1114_v36, %v352_v56  ;;  %v389_v0 = vmul.f32 %v1114_v36, %v351_v57 }
  0x51   :  { %vm302_vm10 = vcmp.gt.f32.partialorder %v270_v58, 0.0  ;;  %v334_v62 = vmul.f32 0.2, %v270_v58  ;;  %vm301_vm11 = vcmp.gt.f32.partialorder %v269_v59, 0.0  ;;  %v333_v1 = vmul.f32 0.2, %v269_v59 }
  0x52   :  { %v162_v2 = vcombine.high %v158_v47, %v158_v47  ;;  %v482_v3 = vsel %vm53_vm0, %v401_v39, 0.0  ;;  %v322_v5 = vmul.f32 0.2, %v258_v54  ;;  %v272_v7 = vadd.f32 %v222_v55, %v1066_v10 }
  0x53   :  { %444 = vadd.xlane.f32.xlu1 %v443_v51  ;;  %v366_v4 = vsel %vm302_vm10, %v270_v58, %v334_v62  ;;  %v365_v11 = vsel %vm301_vm11, %v269_v59, %v333_v1  ;;  %vm290_vm12 = vcmp.gt.f32.partialorder %v258_v54, 0.0  ;;  %v321_v12 = vmul.f32 0.2, %v257_v60 }
  0x54   :  { %441 = vadd.xlane.f32.xlu0 %v440_v8  ;;  %v271_v13 = vadd.f32 %v222_v55, %v1081_v16  ;;  %vm289_vm13 = vcmp.gt.f32.partialorder %v257_v60, 0.0  ;;  %v449_v15 = vsel %vm53_vm0, %v390_v63, 0.0  ;;  %v446_v17 = vsel %vm53_vm0, %v389_v0, 0.0 }
  0x55   :  { %v404_v18 = vmul.f32 %v1114_v36, %v366_v4  ;;  %v226_v19 = vrot.slane %v162_v2, %v1072_v14  ;;  %v403_v20 = vmul.f32 %v1114_v36, %v365_v11  ;;  %v354_v21 = vsel %vm290_vm12, %v258_v54, %v322_v5 }
  0x56   :  { %vm304_vm14 = vcmp.gt.f32.partialorder %v272_v7, 0.0  ;;  %v336_v22 = vmul.f32 0.2, %v272_v7  ;;  %v353_v24 = vsel %vm289_vm13, %v257_v60, %v321_v12  ;;  %v335_v26 = vmul.f32 0.2, %v271_v13 }
  0x57   :  { %486 = vadd.xlane.f32.xlu1 %v485_v61  ;;  %v274_v28 = vadd.f32 %v226_v19, %v1066_v10  ;;  %v273_v30 = vadd.f32 %v226_v19, %v1081_v16  ;;  %vm303_vm15 = vcmp.gt.f32.partialorder %v271_v13, 0.0  ;;  %v491_v32 = vsel %vm53_vm0, %v404_v18, 0.0 }
  0x58   :  { %483 = vadd.xlane.f32.xlu0 %v482_v3  ;;  %v392_v33 = vmul.f32 %v1114_v36, %v354_v21  ;;  %v488_v14 = vsel %vm53_vm0, %v403_v20, 0.0  ;;  %v391_v34 = vmul.f32 %v1114_v36, %v353_v24  ;;  %v368_v37 = vsel %vm304_vm14, %v272_v7, %v336_v22 }
  0x59   :  { %v338_v38 = vmul.f32 0.2, %v274_v28  ;;  %v367_v40 = vsel %vm303_vm15, %v271_v13, %v335_v26  ;;  %vm306_vm1 = vcmp.gt.f32.partialorder %v274_v28, 0.0  ;;  %v337_v35 = vmul.f32 0.2, %v273_v30 }
  0x5a   :  { %vm305_vm2 = vcmp.gt.f32.partialorder %v273_v30, 0.0  ;;  %v455_v10 = vsel %vm53_vm0, %v392_v33, 0.0  ;;  %v406_v16 = vmul.f32 %v1114_v36, %v368_v37  ;;  %v452_v41 = vsel %vm53_vm0, %v391_v34, 0.0 }
  0x5b   :  { %450 = vadd.xlane.f32.xlu1 %v449_v15  ;;  %v405_v31 = vmul.f32 %v1114_v36, %v367_v40  ;;  %v370_v42 = vsel %vm306_vm1, %v274_v28, %v338_v38  ;;  %v369_v29 = vsel %vm305_vm2, %v273_v30, %v337_v35  ;;  %vm48_vm3 = vcmask 7168  }
  0x5c   :  { %447 = vadd.xlane.f32.xlu0 %v446_v17  ;;  %v497_v43 = vsel %vm53_vm0, %v406_v16, 0.0  ;;  %v408_v44 = vmul.f32 %v1114_v36, %v370_v42  ;;  %v407_v46 = vmul.f32 %v1114_v36, %v369_v29  ;;  %v1018_v48 = vmov -inf  }
  0x5d   :  { %v494_v45 = vsel %vm53_vm0, %v405_v31, 0.0  ;;  %49 = vst.msk [vmem:[#allocation2] sm:$0xff] %vm48_vm3, %v1018_v48  ;;  %50 = vst.msk [vmem:[#allocation2 + $0x8] sm:$0xff] %vm48_vm3, %v1018_v48  ;;  %vm583_vm4 = vcmask 130112   ;;  %vm720_vm5 = vcmask 1041409   ;;  %vm722_vm6 = vcmask 1042434  }
  0x5e   :  { %v503_v47 = vsel %vm53_vm0, %v408_v44, 0.0  ;;  %v500_v27 = vsel %vm53_vm0, %v407_v46, 0.0  ;;  %vm724_vm7 = vcmask 1043459   ;;  %vm726_vm8 = vcmask 1044484  }
  0x5f   :  { %492 = vadd.xlane.f32.xlu1 %v491_v32  ;;  %vm728_vm9 = vcmask 1045509   ;;  %vm730_vm10 = vcmask 1046534   ;;  %vm732_vm11 = vcmask 1047559   ;;  %vm747_vm13 = vcmask 130048  }
  0x60   :  { %489 = vadd.xlane.f32.xlu0 %v488_v14 }
  0x63   :  { %456 = vadd.xlane.f32.xlu1 %v455_v10 }
  0x64   :  { %453 = vadd.xlane.f32.xlu0 %v452_v41 }
  0x67   :  { %498 = vadd.xlane.f32.xlu1 %v497_v43 }
  0x68   :  { %495 = vadd.xlane.f32.xlu0 %v494_v45 }
  0x6b   :  { %504 = vadd.xlane.f32.xlu1 %v503_v47 }
  0x6c   :  { %501 = vadd.xlane.f32.xlu0 %v500_v27 }
  0xb8   :  { %v463_v49 = vpop.xlane.xlu1 %462 }
  0xb9   :  { %v412_v25 = vpop.xlane.xlu0 %411  ;;  %v655_v55 = vrot.slane %v463_v49, %v1061_v9 }
  0xba   :  { %v577_v36 = vrot.slane %v412_v25, %v1057_v6 }
  0xbc   :  { %v418_v50 = vpop.xlane.xlu1 %417 }
  0xbd   :  { %v415_v51 = vpop.xlane.xlu0 %414  ;;  %v588_v8 = vrot.slane %v418_v50, %v1057_v6 }
  0xbe   :  { %v582_v23 = vrot.slane %v415_v51, %v1061_v9 }
  0xc0   :  { %v584_v52 = vsel %vm583_vm4, %v582_v23, %v577_v36  ;;  %v421_v53 = vpop.xlane.xlu1 %420 }
  0xc1   :  { %v592_v39 = vrot.slane %v421_v53, %v1061_v9  ;;  %v460_v54 = vpop.xlane.xlu0 %459 }
  0xc2   :  { %v651_v56 = vrot.slane %v460_v54, %v1057_v6 }
  0xc3   :  { %v593_v57 = vsel %vm583_vm4, %v592_v39, %v588_v8 }
  0xc4   :  { %v721_v58 = vsel %vm720_vm5, %v593_v57, %v584_v52  ;;  %v656_v59 = vsel %vm583_vm4, %v655_v55, %v651_v56  ;;  %v427_v60 = vpop.xlane.xlu1 %426 }
  0xc5   :  { %v601_v61 = vrot.slane %v427_v60, %v1061_v9  ;;  %v424_v62 = vpop.xlane.xlu0 %423 }
  0xc6   :  { %v597_v63 = vrot.slane %v424_v62, %v1057_v6 }
  0xc8   :  { %v602_v0 = vsel %vm583_vm4, %v601_v61, %v597_v63  ;;  %v469_v1 = vpop.xlane.xlu1 %468 }
  0xc9   :  { %v723_v2 = vsel %vm722_vm6, %v602_v0, %v721_v58  ;;  %v664_v3 = vrot.slane %v469_v1, %v1061_v9  ;;  %v466_v4 = vpop.xlane.xlu0 %465  ;;  %v61_v58 = vld [vmem:[%s1347_s3] sm:$0xff] }
  0xca   :  { %v660_v5 = vrot.slane %v466_v4, %v1057_v6  ;;  %vm538_vm12 = vcmp.gt.f32.partialorder %v61_v58, 0.0 }
  0xcc   :  { %v665_v7 = vsel %vm583_vm4, %v664_v3, %v660_v5  ;;  %v475_v11 = vpop.xlane.xlu1 %474 }
  0xcd   :  { %v734_v12 = vsel %vm720_vm5, %v665_v7, %v656_v59  ;;  %v673_v13 = vrot.slane %v475_v11, %v1061_v9  ;;  %v472_v15 = vpop.xlane.xlu0 %471 }
  0xce   :  { %v669_v17 = vrot.slane %v472_v15, %v1057_v6 }
  0xd0   :  { %v674_v18 = vsel %vm583_vm4, %v673_v13, %v669_v17  ;;  %v433_v19 = vpop.xlane.xlu1 %432  ;;  %v62_v13 = vld [vmem:[%s1347_s3 + $0x8] sm:$0xff] }
  0xd1   :  { %v735_v20 = vsel %vm722_vm6, %v674_v18, %v734_v12  ;;  %v610_v21 = vrot.slane %v433_v19, %v1061_v9  ;;  %v430_v22 = vpop.xlane.xlu0 %429  ;;  %vm539_vm14 = vcmp.gt.f32.partialorder %v62_v13, 0.0 }
  0xd2   :  { %v606_v24 = vrot.slane %v430_v22, %v1057_v6 }
  0xd4   :  { %v611_v26 = vsel %vm583_vm4, %v610_v21, %v606_v24  ;;  %v439_v28 = vpop.xlane.xlu1 %438 }
  0xd5   :  { %v725_v30 = vsel %vm724_vm7, %v611_v26, %v723_v2  ;;  %v619_v32 = vrot.slane %v439_v28, %v1061_v9  ;;  %v436_v33 = vpop.xlane.xlu0 %435  ;;  %v1019_v26 = vmov 0   ;;  %v1020_v28 = vmov 0.0  }
  0xd6   :  { %v615_v14 = vrot.slane %v436_v33, %v1057_v6  ;;  %955 = vset.pattern.permute.xlu0 %v1019_v26  ;;  %956 = vset.pattern.permute.xlu1 %v1019_v26  ;;  %51 = vst.msk [vmem:[#allocation3] sm:$0xff] %vm48_vm3, %v1020_v28  ;;  %52 = vst.msk [vmem:[#allocation3 + $0x8] sm:$0xff] %vm48_vm3, %v1020_v28  ;;  %v746_v33 = vld [vmem:[#allocation2 + $0x8] sm:$0xff] }
  0xd7   :  { %54 = vst.msk [vmem:[#allocation4] sm:$0xff] %vm53_vm0, %v1020_v28  ;;  %55 = vst.msk [vmem:[#allocation4 + $0x8] sm:$0xff] %vm53_vm0, %v1020_v28 }
  0xd8   :  { %v620_v34 = vsel %vm583_vm4, %v619_v32, %v615_v14  ;;  %v481_v37 = vpop.xlane.xlu1 %480 }
  0xd9   :  { %v727_v38 = vsel %vm726_vm8, %v620_v34, %v725_v30  ;;  %v682_v40 = vrot.slane %v481_v37, %v1061_v9  ;;  %v478_v35 = vpop.xlane.xlu0 %477 }
  0xda   :  { %v678_v10 = vrot.slane %v478_v35, %v1057_v6 }
  0xdc   :  { %v683_v16 = vsel %vm583_vm4, %v682_v40, %v678_v10  ;;  %v445_v41 = vpop.xlane.xlu1 %444 }
  0xdd   :  { %v736_v31 = vsel %vm724_vm7, %v683_v16, %v735_v20  ;;  %v628_v42 = vrot.slane %v445_v41, %v1061_v9  ;;  %v442_v29 = vpop.xlane.xlu0 %441 }
  0xde   :  { %v624_v43 = vrot.slane %v442_v29, %v1057_v6 }
  0xe0   :  { %v629_v44 = vsel %vm583_vm4, %v628_v42, %v624_v43  ;;  %v487_v45 = vpop.xlane.xlu1 %486 }
  0xe1   :  { %v691_v46 = vrot.slane %v487_v45, %v1061_v9  ;;  %v484_v47 = vpop.xlane.xlu0 %483  ;;  %v729_v27 = vsel %vm728_vm9, %v629_v44, %v727_v38 }
  0xe2   :  { %v687_v48 = vrot.slane %v484_v47, %v1057_v6 }
  0xe4   :  { %v692_v49 = vsel %vm583_vm4, %v691_v46, %v687_v48  ;;  %v451_v25 = vpop.xlane.xlu1 %450 }
  0xe5   :  { %v737_v50 = vsel %vm726_vm8, %v692_v49, %v736_v31  ;;  %v637_v51 = vrot.slane %v451_v25, %v1061_v9  ;;  %v448_v36 = vpop.xlane.xlu0 %447  ;;  %v780_v49 = vld [vmem:[#allocation3] sm:$0xff] }
  0xe6   :  { %v633_v23 = vrot.slane %v448_v36, %v1057_v6  ;;  %v781_v36 = vld [vmem:[#allocation3 + $0x8] sm:$0xff] }
  0xe8   :  { %v638_v52 = vsel %vm583_vm4, %v637_v51, %v633_v23  ;;  %v493_v53 = vpop.xlane.xlu1 %492 }
  0xe9   :  { %v700_v8 = vrot.slane %v493_v53, %v1061_v9  ;;  %v490_v39 = vpop.xlane.xlu0 %489  ;;  %v731_v54 = vsel %vm730_vm10, %v638_v52, %v729_v27 }
  0xea   :  { %v696_v55 = vrot.slane %v490_v39, %v1057_v6 }
  0xec   :  { %v701_v56 = vsel %vm583_vm4, %v700_v8, %v696_v55  ;;  %v457_v57 = vpop.xlane.xlu1 %456 }
  0xed   :  { %v646_v59 = vrot.slane %v457_v57, %v1061_v9  ;;  %v454_v60 = vpop.xlane.xlu0 %453  ;;  %v738_v61 = vsel %vm728_vm9, %v701_v56, %v737_v50  ;;  %v796_v57 = vld [vmem:[#allocation4 + $0x8] sm:$0xff] }
  0xee   :  { %v642_v62 = vrot.slane %v454_v60, %v1057_v6 }
  0xf0   :  { %v499_v63 = vpop.xlane.xlu1 %498  ;;  %v647_v0 = vsel %vm583_vm4, %v646_v59, %v642_v62  ;;  %v795_v59 = vld [vmem:[#allocation4] sm:$0xff] }
  0xf1   :  { %v709_v1 = vrot.slane %v499_v63, %v1061_v9  ;;  %v496_v2 = vpop.xlane.xlu0 %495  ;;  %v733_v3 = vsel %vm732_vm11, %v647_v0, %v731_v54 }
  0xf2   :  { %v705_v4 = vrot.slane %v496_v2, %v1057_v6  ;;  %v743_v5 = vsel %vm538_vm12, %v733_v3, -1e+30  ;;  %v937_v3 = vld [vmem:[#allocation7] ss:$0 sm:$0xff] }
  0xf3   :  { %v748_v7 = vsel %vm747_vm13, %v743_v5, -inf }
  0xf4   :  { %v710_v11 = vsel %vm583_vm4, %v709_v1, %v705_v4  ;;  %749 = vmax.xlane.f32.xlu0 %v748_v7  ;;  %v505_v12 = vpop.xlane.xlu1 %504 }
  0xf5   :  { %v718_v15 = vrot.slane %v505_v12, %v1061_v9  ;;  %v502_v17 = vpop.xlane.xlu0 %501  ;;  %v739_v18 = vsel %vm730_vm10, %v710_v11, %v738_v61 }
  0xf6   :  { %v714_v19 = vrot.slane %v502_v17, %v1057_v6  ;;  %v745_v6 = vld [vmem:[#allocation2] sm:$0xff] }
  0xf8   :  { %v719_v20 = vsel %vm583_vm4, %v718_v15, %v714_v19 }
  0xf9   :  { %v740_v21 = vsel %vm732_vm11, %v719_v20, %v739_v18 }
  0xfa   :  { %v744_v22 = vsel %vm539_vm14, %v740_v21, -1e+30 }
  0xfb   :  { %v751_v24 = vsel %vm747_vm13, %v744_v22, -inf }
  0xfc   :  { %752 = vmax.xlane.f32.xlu1 %v751_v24 }
 0x17d   :  { %v750_v9 = vpop.xlane.xlu0 %749 }
 0x17e   :  { %v754_v30 = vmax.f32 %v745_v6, %v750_v9 }
 0x180   :  { %v756_v32 = vsub.f32 %v745_v6, %v754_v30  ;;  %894 = vst.msk [vmem:[#allocation2] sm:$0xff] %vm48_vm3, %v754_v30  ;;  %764 = vperm.xlu0 %955, %v754_v30  }
 0x182   :  { %v758_v29 = vmul.f32 1.442695, %v756_v32 }
 0x185   :  { %v753_v14 = vpop.xlane.xlu1 %752 }
 0x186   :  { %v755_v34 = vmax.f32 %v746_v33, %v753_v14 }
 0x188   :  { %v757_v37 = vsub.f32 %v746_v33, %v755_v34  ;;  %895 = vst.msk [vmem:[#allocation2 + $0x8] sm:$0xff] %vm48_vm3, %v755_v34  ;;  %769 = vperm.xlu1 %956, %v755_v34  }
 0x18a   :  { %v760_v44 = vmul.f32 1.442695, %v757_v37 }
 0x1fb   :  { %v765_v38 = vpop.permute.xlu0 %764 }
 0x1fc   :  { %v772_v40 = vsub.f32 %v743_v5, %v765_v38 }
 0x1fe   :  { %v774_v35 = vmul.f32 1.442695, %v772_v40 }
 0x200   :  { %959 = vpow2.f32 %v774_v35 }
 0x203   :  { %v770_v10 = vpop.permute.xlu1 %769 }
 0x204   :  { %v773_v16 = vsub.f32 %v744_v22, %v770_v10 }
 0x206   :  { %v776_v41 = vmul.f32 1.442695, %v773_v16 }
 0x208   :  { %961 = vpow2.f32 %v776_v41 }
 0x209   :  { %963 = vpow2.f32 %v758_v29 }
 0x20a   :  { %965 = vpow2.f32 %v760_v44 }
 0x20d   :  { %v960_v31 = vpop.eup %959 }
 0x20e   :  { %v778_v42 = vmul.f32 %v960_v31, %v61_v58 }
 0x210   :  { %946 = vmatprep.mubr.msk.f32.mxu0 %vm747_vm13, %v778_v42  ;;  %v784_v43 = vsel %vm747_vm13, %v778_v42, 0.0 }
 0x211   :  { %785 = vadd.xlane.f32.xlu1 %v784_v43 }
 0x215   :  { %v962_v45 = vpop.eup %961 }
 0x216   :  { %v779_v46 = vmul.f32 %v962_v45, %v62_v13  ;;  %v964_v27 = vpop.eup %963 }
 0x217   :  { %v966_v48 = vpop.eup %965  ;;  %v782_v25 = vmul.f32 %v964_v27, %v780_v49 }
 0x218   :  { %947 = vmatmul.mubr.msk.f32.vlgmr.msra.gmra.mxu0 %vm747_vm13, %v779_v46  ;;  %v787_v47 = vsel %vm747_vm13, %v779_v46, 0.0  ;;  %v783_v23 = vmul.f32 %v966_v48, %v781_v36 }
 0x219   :  { %788 = vadd.xlane.f32.xlu0 %v787_v47 }
 0x222   :  { %799 = vperm.xlu1 %956, %v964_v27  }
 0x226   :  { %804 = vperm.xlu1 %956, %v966_v48  }
 0x29a   :  { %v786_v50 = vpop.xlane.xlu1 %785 }
 0x29b   :  { %v790_v51 = vadd.f32 %v786_v50, %v782_v25 }
 0x29d   :  { %793 = vst.msk [vmem:[#allocation3] sm:$0xff] %vm48_vm3, %v790_v51 }
 0x29e   :  { %v800_v56 = vpop.permute.xlu1 %799 }
 0x29f   :  { %v807_v62 = vmul.f32 %v800_v56, %v795_v59 }
 0x2a2   :  { %v789_v52 = vpop.xlane.xlu0 %788  ;;  %v805_v58 = vpop.permute.xlu1 %804 }
 0x2a3   :  { %v791_v53 = vadd.f32 %v789_v52, %v783_v23  ;;  %v808_v60 = vmul.f32 %v805_v58, %v796_v57 }
 0x2a4   :  { %v899_v8 = vld [vmem:[#allocation3] sm:$0xff] }
 0x2a5   :  { %794 = vst.msk [vmem:[#allocation3 + $0x8] sm:$0xff] %vm48_vm3, %v791_v53  ;;  %967 = vrcp.f32 %v899_v8 }
 0x2ac   :  { %v900_v39 = vld [vmem:[#allocation3 + $0x8] sm:$0xff] }
 0x2ad   :  { %969 = vrcp.f32 %v900_v39 }
 0x2b2   :  { %v968_v54 = vpop.eup %967 }
 0x2b3   :  { %907 = vperm.xlu1 %956, %v968_v54  }
 0x2ba   :  { %v970_v55 = vpop.eup %969 }
 0x2bb   :  { %912 = vperm.xlu0 %955, %v970_v55  }
 0x2d8   :  { %v948_v61 = vpop.f32.mrf.mxu0 }
 0x2d9   :  { %v891_v63 = vadd.f32 %v948_v61, %v808_v60 }
 0x2da   :  { %v881_v0 = vpop.f32.mrf.mxu0 }
 0x2db   :  { %893 = vst.msk [vmem:[#allocation4 + $0x8] sm:$0xff] %vm53_vm0, %v891_v63  ;;  %v890_v1 = vadd.f32 %v881_v0, %v807_v62 }
 0x2dd   :  { %892 = vst.msk [vmem:[#allocation4] sm:$0xff] %vm53_vm0, %v890_v1 }
 0x2e2   :  { %v904_v12 = vld [vmem:[#allocation4 + $0x8] sm:$0xff] }
 0x2e4   :  { %v903_v2 = vld [vmem:[#allocation4] sm:$0xff] }
 0x32e   :  { %v908_v4 = vpop.permute.xlu1 %907 }
 0x32f   :  { %v915_v5 = vmul.f32 %v908_v4, %v903_v2 }
 0x331   :  { %v924_v7 = vadd.f32 %v937_v3, %v915_v5 }
 0x333   :  { %926 = vst.msk [vmem:[%s1349_s5] sm:$0xff] %vm53_vm0, %v924_v7 }
 0x336   :  { %v913_v11 = vpop.permute.xlu0 %912 }
 0x337   :  { %v916_v13 = vmul.f32 %v913_v11, %v904_v12 }
 0x339   :  { %v925_v15 = vadd.f32 %v937_v3, %v916_v13 }
 0x33b   :  { %927 = vst.msk [vmem:[%s1349_s5 + $0x8] sm:$0xff] %vm53_vm0, %v925_v15 }
 0x33c   :  { %932 = vsyncpa [#allocation6], 1 }
 0x33d   :  { %933 = vsyncpa [#allocation8], 1 }

// kernel: gnn_v5_forward.44
= control target key start
LH: loop header
LB: loop body
LE: loop exit
PB: predicated region body
PF: predicated region fallthrough
CT: control target
= control target key end

     0   :  { %12 = vsyncpa [#allocation3], 0  ;;  %s439_s0 = inlined_call_operand.vmem [shape: f32[16,64], index: 0, kind: input, shape index: {}]   ;;  %s440_s1 = inlined_call_operand.vmem [shape: f32[16,2], index: 1, kind: input, shape index: {}]   ;;  %s441_s2 = inlined_call_operand.vmem [shape: f32[2,64], index: 2, kind: input, shape index: {}]   ;;  %s442_s3 = inlined_call_operand.vmem [shape: f32[2,64], index: 3, kind: input, shape index: {}]   ;;  %s443_s4 = inlined_call_operand.hbm [shape: f32[1,64], index: 4, kind: input, shape index: {}]   ;;  %s444_s5 = inlined_call_operand.hbm [shape: f32[1,64], index: 5, kind: input, shape index: {}]   ;;  %s445_s6 = inlined_call_operand.hbm [shape: f32[1,64], index: 6, kind: input, shape index: {}]   ;;  %s446_s7 = inlined_call_operand.vmem [shape: f32[16,64], index: 7, kind: output, shape index: {}]  }
   0x1   :  { %13 = vsyncpa [#allocation5], 0  ;;  %s363_s24 = smov [#allocation4]   ;;  %s364_s26 = smov [#allocation2]  }
   0x2   :  { %s38_s25 = sshll.u32 %s363_s24, 4  ;;  %s28_s27 = sshll.u32 %s364_s26, 4  ;;  %s39_s25 = int_to_ptr.vmem [resolvable:$true] %s38_s25  ;;  %s29_s27 = int_to_ptr.vmem [resolvable:$true] %s28_s27 }
   0x3   :  { %s307_s28 = scalar_lea.vmem %s39_s25, 16  ;;  %s311_s29 = scalar_lea.vmem %s39_s25, 32 }
   0x4   :  { %p308_p0 = scmp.ne.s32.totalorder %s39_s25, %s307_s28  ;;  %p312_p1 = scmp.lt.s32.totalorder %s39_s25, %s39_s25 }
   0x5   :  { %p313_p2 = scmp.lt.s32.totalorder %s311_s29, %s307_s28 }
   0x7   :  { %p314_p3 = por %p313_p2, %p312_p1 }
   0x9   :  { %p315_p4 = pnand %p314_p3, %p308_p0 }
   0xb   :  { %318 = shalt.err (!%p315_p4)
}
   0xc   :  { %41 = dma.hbm_to_vmem [thread:$0]  %s444_s5, 16, %s39_s25, [#allocation5]  }
   0xd   :  { %s327_s9 = scalar_lea.vmem %s29_s27, 16  ;;  %s331_s10 = scalar_lea.vmem %s29_s27, 32 }
   0xe   :  { %p328_p5 = scmp.ne.s32.totalorder %s29_s27, %s327_s9  ;;  %p332_p6 = scmp.lt.s32.totalorder %s29_s27, %s29_s27 }
   0xf   :  { %p333_p7 = scmp.lt.s32.totalorder %s331_s10, %s327_s9 }
  0x11   :  { %p334_p8 = por %p333_p7, %p332_p6 }
  0x13   :  { %p335_p9 = pnand %p334_p8, %p328_p5 }
  0x15   :  { %338 = shalt.err (!%p335_p9)
}
  0x16   :  { %31 = dma.hbm_to_vmem [thread:$0]  %s443_s4, 16, %s29_s27, [#allocation3]  }
  0x17   :  { %s365_s13 = smov [#allocation6]  }
  0x18   :  { %s48_s14 = sshll.u32 %s365_s13, 4  ;;  %s49_s14 = int_to_ptr.vmem [resolvable:$true] %s48_s14 }
  0x19   :  { %s347_s15 = scalar_lea.vmem %s49_s14, 16  ;;  %s351_s16 = scalar_lea.vmem %s49_s14, 32 }
  0x1a   :  { %p348_p10 = scmp.ne.s32.totalorder %s49_s14, %s347_s15  ;;  %p352_p11 = scmp.lt.s32.totalorder %s49_s14, %s49_s14 }
  0x1b   :  { %p353_p12 = scmp.lt.s32.totalorder %s351_s16, %s347_s15 }
  0x1d   :  { %p354_p13 = por %p353_p12, %p352_p11 }
  0x1f   :  { %p355_p0 = pnand %p354_p13, %p348_p10 }
  0x21   :  { %358 = shalt.err (!%p355_p0)
}
  0x22   :  { %51 = dma.hbm_to_vmem [thread:$0]  %s445_s6, 16, %s49_s14, [#allocation5]  }
  0x23   :  { %359 = dma.done.wait [#allocation3], 16  }
  0x24   :  { %360 = vsyncadd [#allocation3], 4294967280 }
  0x25   :  { %361 = dma.done.wait [#allocation5], 32  }
  0x26   :  { %362 = vsyncadd [#allocation5], 4294967264  ;;  %vm73_vm0 = vcmask 1041408   ;;  %vm66_vm1 = vcmask 15360   ;;  %v65_v0 = vld [vmem:[%s441_s2] sm:$0x3] }
  0x27   :  { %v63_v1 = vld [vmem:[%s440_s1] sm:$0xff]  ;;  %v64_v2 = vld [vmem:[%s440_s1 + $0x8] sm:$0xff]  ;;  %286 = vmatprep.subr.msk.mxu0 %vm73_vm0, %v65_v0  ;;  %vm262_vm2 = vcmask 523264  }
  0x28   :  { %288 = vmatprep.mubr.msk.f32.mxu0 %vm66_vm1, %v63_v1  ;;  %v152_v3 = vld [vmem:[%s442_s3] sm:$0x3]  ;;  %287 = vmatpush3.msk.msra.mxu0 %vm73_vm0, %v65_v0  ;;  %v277_v4 = vld [vmem:[#allocation6] ss:$0 sm:$0xff]  ;;  %v62_v5 = vld [vmem:[%s439_s0 + $0x8] sm:$0xff] }
  0x29   :  { %291 = vmatprep.subr.msk.mxu1 %vm73_vm0, %v152_v3  ;;  %289 = vmatmul.mubr.msk.f32.vlgmr.msra.gmra.mxu0 %vm66_vm1, %v64_v2  ;;  %v61_v8 = vld [vmem:[%s439_s0] sm:$0xff] }
  0x2a   :  { %292 = vmatpush3.msk.msra.mxu1 %vm73_vm0, %v152_v3  ;;  %293 = vmatprep.mubr.msk.f32.mxu1 %vm66_vm1, %v63_v1  ;;  %v278_v10 = vld [vmem:[#allocation2] ss:$0 sm:$0xff]  ;;  %v279_v16 = vld [vmem:[#allocation4] ss:$0 sm:$0xff] }
  0x2b   :  { %294 = vmatmul.mubr.msk.f32.vlgmr.msra.gmra.mxu1 %vm66_vm1, %v64_v2 }
  0xe9   :  { %v290_v6 = vpop.f32.mrf.mxu0 }
  0xea   :  { %v239_v7 = vmul.f32 %v290_v6, %v277_v4 }
  0xeb   :  { %v143_v9 = vpop.f32.mrf.mxu0  ;;  %v295_v13 = vpop.f32.mrf.mxu1 }
  0xec   :  { %v241_v11 = vsub.f32 %v62_v5, %v239_v7  ;;  %v238_v12 = vmul.f32 %v277_v4, %v143_v9 }
  0xed   :  { %v222_v19 = vpop.f32.mrf.mxu1 }
  0xee   :  { %v240_v14 = vsub.f32 %v61_v8, %v238_v12  ;;  %v250_v15 = vmul.f32 %v278_v10, %v241_v11 }
  0xf0   :  { %v252_v17 = vmul.f32 %v295_v13, %v250_v15  ;;  %v249_v18 = vmul.f32 %v278_v10, %v240_v14 }
  0xf2   :  { %v261_v20 = vadd.f32 %v279_v16, %v252_v17  ;;  %v251_v21 = vmul.f32 %v249_v18, %v222_v19 }
  0xf4   :  { %264 = vst.msk [vmem:[%s446_s7 + $0x8] sm:$0xff] %vm262_vm2, %v261_v20  ;;  %v260_v22 = vadd.f32 %v279_v16, %v251_v21 }
  0xf6   :  { %263 = vst.msk [vmem:[%s446_s7] sm:$0xff] %vm262_vm2, %v260_v22 }
  0xf7   :  { %269 = vsyncpa [#allocation3], 1 }
  0xf8   :  { %270 = vsyncpa [#allocation5], 1 }

// kernel: gnn_v5_forward.47
= control target key start
LH: loop header
LB: loop body
LE: loop exit
PB: predicated region body
PF: predicated region fallthrough
CT: control target
= control target key end

     0   :  { %v142_v0 = vmov 0.0   ;;  %vm143_vm0 = vmmov 0   ;;  %vm59_vm1 = vcmask 523264   ;;  %s180_s1 = inlined_call_operand.vmem [shape: bf16[64,128], index: 1, kind: input, shape index: {}]   ;;  %s181_s0 = inlined_call_operand.vmem [shape: bf16[16,64], index: 0, kind: input, shape index: {}]   ;;  %s182_s2 = inlined_call_operand.vmem [shape: f32[16,128], index: 2, kind: output, shape index: {}]  }
   0x1   :  { %123 = vmatprep.subr.bf16.mxu0 %v142_v0  ;;  %v137_v1 = vld [vmem:[%s180_s1 + $0x18] sm:$0xff]   ;;  %131 = vmatprep.mubr.msk.bf16.mxu0 %vm143_vm0, %v142_v0  ;;  %v138_v2 = vld [vmem:[%s180_s1 + $0x10] sm:$0xff]   ;;  %v139_v3 = vld [vmem:[%s180_s1 + $0x8] sm:$0xff]  }
   0x2   :  { %124 = vmatpush3.bf16.msra.mxu0 %v137_v1  ;;  %v140_v4 = vld [vmem:[%s180_s1] sm:$0xff]  }
   0x3   :  { %125 = vmatprep.subr.bf16.mxu0 %v142_v0  ;;  %v141_v5 = vld [vmem:[%s181_s0] sm:$0xff]  }
   0x6   :  { %126 = vmatpush3.bf16.msra.mxu0 %v138_v2 }
   0x7   :  { %127 = vmatprep.subr.bf16.mxu0 %v142_v0 }
   0xa   :  { %128 = vmatpush3.bf16.msra.mxu0 %v139_v3 }
   0xb   :  { %129 = vmatprep.subr.bf16.mxu0 %v142_v0 }
   0xe   :  { %130 = vmatpush3.bf16.msra.mxu0 %v140_v4 }
  0x11   :  { %132 = vmatmul.mubr.msk.bf16.vlgmr.msra.gmra.mxu0 %vm59_vm1, %v141_v5 }
  0xd1   :  { %v97_v6 = vpop.f32.mrf.mxu0 }
  0xd2   :  { %106 = vst [vmem:[%s182_s2] sm:$0xff] %v97_v6 }
  0xd3   :  { %v133_v7 = vpop.f32.mrf.mxu0 }
  0xd5   :  { %v100_v8 = vpop.f32.mrf.mxu0 }
  0xd6   :  { %107 = vst [vmem:[%s182_s2 + $0x8] sm:$0xff] %v100_v8 }
  0xd7   :  { %v134_v9 = vpop.f32.mrf.mxu0 }

// kernel: gnn_v5_forward.35
= control target key start
LH: loop header
LB: loop body
LE: loop exit
PB: predicated region body
PF: predicated region fallthrough
CT: control target
= control target key end

     0   :  { %9 = vsyncpa [#allocation3], 0  ;;  %s242_s12 = smov [#allocation2]   ;;  %s292_s0 = inlined_call_operand.vmem [shape: f32[16,128], index: 0, kind: input, shape index: {}]   ;;  %s293_s1 = inlined_call_operand.hbm [shape: f32[2,16], index: 1, kind: input, shape index: {}]   ;;  %s294_s2 = inlined_call_operand.vmem [shape: f32[2,128], index: 2, kind: output, shape index: {0}]   ;;  %s295_s3 = inlined_call_operand.vmem [shape: f32[2,128], index: 3, kind: output, shape index: {1}]  }
   0x1   :  { %s18_s13 = sshll.u32 %s242_s12, 4  ;;  %s19_s13 = int_to_ptr.vmem [resolvable:$true] %s18_s13 }
   0x2   :  { %s228_s14 = scalar_lea.vmem %s19_s13, 32  ;;  %p233_p1 = scmp.lt.s32.totalorder %s19_s13, %s19_s13 }
   0x3   :  { %p229_p0 = scmp.ne.s32.totalorder %s19_s13, %s228_s14  ;;  %p234_p2 = scmp.lt.s32.totalorder %s228_s14, %s228_s14 }
   0x5   :  { %p235_p3 = por %p234_p2, %p233_p1 }
   0x7   :  { %p236_p4 = pnand %p235_p3, %p229_p0 }
   0x9   :  { %239 = shalt.err (!%p236_p4)
}
   0xa   :  { %21 = dma.hbm_to_vmem [thread:$0]  %s293_s1, 32, %s19_s13, [#allocation3]  }
   0xb   :  { %240 = dma.done.wait [#allocation3], 32  }
   0xc   :  { %241 = vsyncadd [#allocation3], 4294967264  ;;  %v243_v0 = vmov 0.0   ;;  %vm244_vm0 = vmmov 0   ;;  %v32_v1 = vld [vmem:[%s292_s0 + $0x8] sm:$0xff]  ;;  %v31_v2 = vld [vmem:[%s292_s0] sm:$0xff] }
   0xd   :  { %203 = vmatprep.subr.mxu0 %v243_v0  ;;  %29 = vst [vmem:[%s294_s2] sm:$0x3] %v243_v0  ;;  %30 = vst [vmem:[%s295_s3] sm:$0x3] %v243_v0  ;;  %210 = vmatprep.subr.mxu1 %v243_v0  ;;  %v112_v3 = vmul.f32 %v31_v2, %v31_v2  ;;  %v113_v4 = vmul.f32 %v32_v1, %v32_v1  ;;  %v33_v5 = vld [vmem:[#allocation2] sm:$0x3]  ;;  %vm35_vm1 = vcmask 130048  }
   0xe   :  { %207 = vmatprep.mubr.msk.f32.mxu0 %vm244_vm0, %v243_v0  ;;  %214 = vmatprep.mubr.msk.f32.mxu1 %vm244_vm0, %v243_v0 }
   0xf   :  { %204 = vmatpush3.msra.mxu0 %v32_v1  ;;  %211 = vmatpush3.msra.mxu1 %v113_v4 }
  0x10   :  { %205 = vmatprep.subr.mxu0 %v243_v0  ;;  %212 = vmatprep.subr.mxu1 %v243_v0 }
  0x11   :  { %206 = vmatpush3.msra.mxu0 %v31_v2  ;;  %213 = vmatpush3.msra.mxu1 %v112_v3 }
  0x12   :  { %208 = vmatmul.mubr.msk.f32.vlgmr.msra.gmra.mxu0 %vm35_vm1, %v33_v5  ;;  %215 = vmatmul.mubr.msk.f32.vlgmr.msra.gmra.mxu1 %vm35_vm1, %v33_v5 }
  0x14   :  { %v34_v6 = vld [vmem:[%s294_s2] sm:$0x3] }
  0x15   :  { %v111_v8 = vld [vmem:[%s295_s3] sm:$0x3] }
  0xd2   :  { %v105_v7 = vpop.f32.mrf.mxu0  ;;  %v180_v11 = vpop.f32.mrf.mxu1 }
  0xd3   :  { %v109_v9 = vadd.f32 %v105_v7, %v34_v6  ;;  %v184_v12 = vadd.f32 %v180_v11, %v111_v8 }
  0xd4   :  { %v209_v10 = vpop.f32.mrf.mxu0  ;;  %v216_v13 = vpop.f32.mrf.mxu1 }
  0xd5   :  { %110 = vst [vmem:[%s294_s2] sm:$0x3] %v109_v9  ;;  %185 = vst [vmem:[%s295_s3] sm:$0x3] %v184_v12 }
  0xd6   :  { %194 = vsyncpa [#allocation3], 1 }

// kernel: gnn_v5_forward.46
= control target key start
LH: loop header
LB: loop body
LE: loop exit
PB: predicated region body
PF: predicated region fallthrough
CT: control target
= control target key end

     0   :  { %v103_v0 = vmov 0.0   ;;  %vm104_vm0 = vmmov 0   ;;  %vm35_vm1 = vcmask 130048   ;;  %s132_s1 = inlined_call_operand.vmem [shape: bf16[16,128], index: 1, kind: input, shape index: {}]   ;;  %s133_s0 = inlined_call_operand.vmem [shape: bf16[16,16], index: 0, kind: input, shape index: {}]   ;;  %s134_s2 = inlined_call_operand.vmem [shape: f32[16,128], index: 2, kind: output, shape index: {}]  }
   0x1   :  { %93 = vmatprep.subr.bf16.mxu0 %v103_v0  ;;  %v101_v1 = vld [vmem:[%s132_s1] sm:$0xff]   ;;  %95 = vmatprep.mubr.msk.bf16.mxu0 %vm104_vm0, %v103_v0 }
   0x2   :  { %v102_v2 = vld [vmem:[%s133_s0] sm:$0xff]   ;;  %94 = vmatpush3.bf16.msra.mxu0 %v101_v1 }
   0x5   :  { %96 = vmatmul.mubr.msk.bf16.vlgmr.msra.gmra.mxu0 %vm35_vm1, %v102_v2 }
  0xc5   :  { %v73_v3 = vpop.f32.mrf.mxu0 }
  0xc6   :  { %82 = vst [vmem:[%s134_s2] sm:$0xff] %v73_v3 }
  0xc7   :  { %v97_v4 = vpop.f32.mrf.mxu0 }
  0xc9   :  { %v76_v5 = vpop.f32.mrf.mxu0 }
  0xca   :  { %83 = vst [vmem:[%s134_s2 + $0x8] sm:$0xff] %v76_v5 }
  0xcb   :  { %v98_v6 = vpop.f32.mrf.mxu0 }

// kernel: gnn_v5_forward.49
= control target key start
LH: loop header
LB: loop body
LE: loop exit
PB: predicated region body
PF: predicated region fallthrough
CT: control target
= control target key end

     0   :  { %12 = vsyncpa [#allocation3], 0  ;;  %s438_s0 = inlined_call_operand.vmem [shape: f32[16,128], index: 0, kind: input, shape index: {}]   ;;  %s439_s1 = inlined_call_operand.vmem [shape: f32[16,2], index: 1, kind: input, shape index: {}]   ;;  %s440_s2 = inlined_call_operand.vmem [shape: f32[2,128], index: 2, kind: input, shape index: {}]   ;;  %s441_s3 = inlined_call_operand.vmem [shape: f32[2,128], index: 3, kind: input, shape index: {}]   ;;  %s442_s4 = inlined_call_operand.hbm [shape: f32[1,128], index: 4, kind: input, shape index: {}]   ;;  %s443_s5 = inlined_call_operand.hbm [shape: f32[1,128], index: 5, kind: input, shape index: {}]   ;;  %s444_s6 = inlined_call_operand.hbm [shape: f32[1,128], index: 6, kind: input, shape index: {}]   ;;  %s445_s7 = inlined_call_operand.vmem [shape: f32[16,128], index: 7, kind: output, shape index: {}]  }
   0x1   :  { %13 = vsyncpa [#allocation5], 0  ;;  %s362_s24 = smov [#allocation4]   ;;  %s363_s26 = smov [#allocation2]  }
   0x2   :  { %s38_s25 = sshll.u32 %s362_s24, 4  ;;  %s28_s27 = sshll.u32 %s363_s26, 4  ;;  %s39_s25 = int_to_ptr.vmem [resolvable:$true] %s38_s25  ;;  %s29_s27 = int_to_ptr.vmem [resolvable:$true] %s28_s27 }
   0x3   :  { %s306_s28 = scalar_lea.vmem %s39_s25, 16  ;;  %s310_s29 = scalar_lea.vmem %s39_s25, 32 }
   0x4   :  { %p307_p0 = scmp.ne.s32.totalorder %s39_s25, %s306_s28  ;;  %p311_p1 = scmp.lt.s32.totalorder %s39_s25, %s39_s25 }
   0x5   :  { %p312_p2 = scmp.lt.s32.totalorder %s310_s29, %s306_s28 }
   0x7   :  { %p313_p3 = por %p312_p2, %p311_p1 }
   0x9   :  { %p314_p4 = pnand %p313_p3, %p307_p0 }
   0xb   :  { %317 = shalt.err (!%p314_p4)
}
   0xc   :  { %41 = dma.hbm_to_vmem [thread:$0]  %s443_s5, 16, %s39_s25, [#allocation5]  }
   0xd   :  { %s326_s9 = scalar_lea.vmem %s29_s27, 16  ;;  %s330_s10 = scalar_lea.vmem %s29_s27, 32 }
   0xe   :  { %p327_p5 = scmp.ne.s32.totalorder %s29_s27, %s326_s9  ;;  %p331_p6 = scmp.lt.s32.totalorder %s29_s27, %s29_s27 }
   0xf   :  { %p332_p7 = scmp.lt.s32.totalorder %s330_s10, %s326_s9 }
  0x11   :  { %p333_p8 = por %p332_p7, %p331_p6 }
  0x13   :  { %p334_p9 = pnand %p333_p8, %p327_p5 }
  0x15   :  { %337 = shalt.err (!%p334_p9)
}
  0x16   :  { %31 = dma.hbm_to_vmem [thread:$0]  %s442_s4, 16, %s29_s27, [#allocation3]  }
  0x17   :  { %s364_s13 = smov [#allocation6]  }
  0x18   :  { %s48_s14 = sshll.u32 %s364_s13, 4  ;;  %s49_s14 = int_to_ptr.vmem [resolvable:$true] %s48_s14 }
  0x19   :  { %s346_s15 = scalar_lea.vmem %s49_s14, 16  ;;  %s350_s16 = scalar_lea.vmem %s49_s14, 32 }
  0x1a   :  { %p347_p10 = scmp.ne.s32.totalorder %s49_s14, %s346_s15  ;;  %p351_p11 = scmp.lt.s32.totalorder %s49_s14, %s49_s14 }
  0x1b   :  { %p352_p12 = scmp.lt.s32.totalorder %s350_s16, %s346_s15 }
  0x1d   :  { %p353_p13 = por %p352_p12, %p351_p11 }
  0x1f   :  { %p354_p0 = pnand %p353_p13, %p347_p10 }
  0x21   :  { %357 = shalt.err (!%p354_p0)
}
  0x22   :  { %51 = dma.hbm_to_vmem [thread:$0]  %s444_s6, 16, %s49_s14, [#allocation5]  }
  0x23   :  { %358 = dma.done.wait [#allocation3], 16  }
  0x24   :  { %359 = vsyncadd [#allocation3], 4294967280 }
  0x25   :  { %360 = dma.done.wait [#allocation5], 32  }
  0x26   :  { %361 = vsyncadd [#allocation5], 4294967264  ;;  %vm73_vm0 = vcmask 1041408   ;;  %vm66_vm1 = vcmask 15360   ;;  %v65_v0 = vld [vmem:[%s440_s2] sm:$0x3] }
  0x27   :  { %v63_v1 = vld [vmem:[%s439_s1] sm:$0xff]  ;;  %v64_v2 = vld [vmem:[%s439_s1 + $0x8] sm:$0xff]  ;;  %285 = vmatprep.subr.msk.mxu0 %vm73_vm0, %v65_v0 }
  0x28   :  { %287 = vmatprep.mubr.msk.f32.mxu0 %vm66_vm1, %v63_v1  ;;  %v152_v3 = vld [vmem:[%s441_s3] sm:$0x3]  ;;  %286 = vmatpush3.msk.msra.mxu0 %vm73_vm0, %v65_v0  ;;  %v276_v4 = vld [vmem:[#allocation6] ss:$0 sm:$0xff]  ;;  %v62_v5 = vld [vmem:[%s438_s0 + $0x8] sm:$0xff] }
  0x29   :  { %290 = vmatprep.subr.msk.mxu1 %vm73_vm0, %v152_v3  ;;  %288 = vmatmul.mubr.msk.f32.vlgmr.msra.gmra.mxu0 %vm66_vm1, %v64_v2  ;;  %v61_v8 = vld [vmem:[%s438_s0] sm:$0xff] }
  0x2a   :  { %291 = vmatpush3.msk.msra.mxu1 %vm73_vm0, %v152_v3  ;;  %292 = vmatprep.mubr.msk.f32.mxu1 %vm66_vm1, %v63_v1  ;;  %v277_v10 = vld [vmem:[#allocation2] ss:$0 sm:$0xff]  ;;  %v278_v16 = vld [vmem:[#allocation4] ss:$0 sm:$0xff] }
  0x2b   :  { %293 = vmatmul.mubr.msk.f32.vlgmr.msra.gmra.mxu1 %vm66_vm1, %v64_v2 }
  0xe9   :  { %v289_v6 = vpop.f32.mrf.mxu0 }
  0xea   :  { %v239_v7 = vmul.f32 %v289_v6, %v276_v4 }
  0xeb   :  { %v143_v9 = vpop.f32.mrf.mxu0  ;;  %v294_v13 = vpop.f32.mrf.mxu1 }
  0xec   :  { %v241_v11 = vsub.f32 %v62_v5, %v239_v7  ;;  %v238_v12 = vmul.f32 %v276_v4, %v143_v9 }
  0xed   :  { %v222_v19 = vpop.f32.mrf.mxu1 }
  0xee   :  { %v240_v14 = vsub.f32 %v61_v8, %v238_v12  ;;  %v250_v15 = vmul.f32 %v277_v10, %v241_v11 }
  0xf0   :  { %v252_v17 = vmul.f32 %v294_v13, %v250_v15  ;;  %v249_v18 = vmul.f32 %v277_v10, %v240_v14 }
  0xf2   :  { %v261_v20 = vadd.f32 %v278_v16, %v252_v17  ;;  %v251_v21 = vmul.f32 %v249_v18, %v222_v19 }
  0xf4   :  { %263 = vst [vmem:[%s445_s7 + $0x8] sm:$0xff] %v261_v20  ;;  %v260_v22 = vadd.f32 %v278_v16, %v251_v21 }
  0xf6   :  { %262 = vst [vmem:[%s445_s7] sm:$0xff] %v260_v22 }
  0xf7   :  { %268 = vsyncpa [#allocation3], 1 }
  0xf8   :  { %269 = vsyncpa [#allocation5], 1 }

// kernel: gnn_v5_forward.34
= control target key start
LH: loop header
LB: loop body
LE: loop exit
PB: predicated region body
PF: predicated region fallthrough
CT: control target
= control target key end

     0   :  { %10 = vsyncpa [#allocation6], 0  ;;  %s1784_s0 = inlined_call_operand.vmem [shape: f32[16,128], index: 0, kind: input, shape index: {}]   ;;  %s1785_s1 = inlined_call_operand.vmem [shape: f32[16,128], index: 1, kind: input, shape index: {}]   ;;  %s1786_s2 = inlined_call_operand.hbm [shape: f32[1,128], index: 2, kind: input, shape index: {}]   ;;  %s1787_s3 = inlined_call_operand.vmem [shape: f32[16,16], index: 3, kind: input, shape index: {}]   ;;  %s1788_s4 = inlined_call_operand.hbm [shape: f32[1,128], index: 4, kind: input, shape index: {}]   ;;  %s1789_s5 = inlined_call_operand.vmem [shape: f32[16,128], index: 5, kind: output, shape index: {}]  }
   0x1   :  { %11 = vsyncpa [#allocation8], 0  ;;  %s1271_s18 = smov [#allocation5]   ;;  %s1272_s20 = smov [#allocation7]  }
   0x2   :  { %s22_s19 = sshll.u32 %s1271_s18, 4  ;;  %s34_s21 = sshll.u32 %s1272_s20, 4  ;;  %s23_s19 = int_to_ptr.vmem [resolvable:$true] %s22_s19  ;;  %s35_s21 = int_to_ptr.vmem [resolvable:$true] %s34_s21 }
   0x3   :  { %s1235_s22 = scalar_lea.vmem %s23_s19, 16  ;;  %s1239_s23 = scalar_lea.vmem %s23_s19, 32 }
   0x4   :  { %p1236_p0 = scmp.ne.s32.totalorder %s23_s19, %s1235_s22  ;;  %p1240_p1 = scmp.lt.s32.totalorder %s23_s19, %s23_s19 }
   0x5   :  { %p1241_p2 = scmp.lt.s32.totalorder %s1239_s23, %s1235_s22 }
   0x7   :  { %p1242_p3 = por %p1241_p2, %p1240_p1 }
   0x9   :  { %p1243_p4 = pnand %p1242_p3, %p1236_p0 }
   0xb   :  { %1246 = shalt.err (!%p1243_p4)
}
   0xc   :  { %25 = dma.hbm_to_vmem [thread:$0]  %s1786_s2, 16, %s23_s19, [#allocation6]  }
   0xd   :  { %s1255_s26 = scalar_lea.vmem %s35_s21, 16  ;;  %s1259_s27 = scalar_lea.vmem %s35_s21, 32 }
   0xe   :  { %p1256_p5 = scmp.ne.s32.totalorder %s35_s21, %s1255_s26  ;;  %p1260_p6 = scmp.lt.s32.totalorder %s35_s21, %s35_s21 }
   0xf   :  { %p1261_p7 = scmp.lt.s32.totalorder %s1259_s27, %s1255_s26 }
  0x11   :  { %p1262_p8 = por %p1261_p7, %p1260_p6 }
  0x13   :  { %p1263_p9 = pnand %p1262_p8, %p1256_p5 }
  0x15   :  { %1266 = shalt.err (!%p1263_p9)
}
  0x16   :  { %37 = dma.hbm_to_vmem [thread:$0]  %s1788_s4, 16, %s35_s21, [#allocation8]  }
  0x17   :  { %1267 = dma.done.wait [#allocation6], 16  }
  0x18   :  { %1268 = vsyncadd [#allocation6], 4294967280 }
  0x19   :  { %1269 = dma.done.wait [#allocation8], 16  }
  0x1a   :  { %1270 = vsyncadd [#allocation8], 4294967280  ;;  %v68_v0 = vlaneseq  ;;  %v1273_v1 = vmov 1966171168   ;;  %v1323_v10 = vld [vmem:[%s1784_s0 + $0x8] sm:$0xff]  ;;  %v57_v14 = vld [vmem:[%s1785_s1] sm:$0xff] }
  0x1b   :  { %v66_v2 = vunpack.c.l.s4 %v1273_v1  ;;  %v1328_v11 = vld [vmem:[%s1785_s1 + $0x8] sm:$0xff]  ;;  %1197 = vmatprep.subr.mxu0 %v1323_v10  ;;  %v1341_v15 = vld [vmem:[%s1784_s0] sm:$0xff]  ;;  %v64_v19 = vcombine.high %v57_v14, %v57_v14  ;;  %s1274_s0 = smov 64  }
  0x1c   :  { %v69_v3 = vshrl.u32 %v68_v0, 7  ;;  %v828_v4 = vand.u32 127, %v68_v0  ;;  %1198 = vmatpush3.msra.mxu0 %v1323_v10  ;;  %v1368_v35 = vld [vmem:[#allocation5] ss:$0 sm:$0xff] }
  0x1d   :  { %v67_v5 = vunpack.c.0.s8 %v66_v2  ;;  %1199 = vmatprep.subr.mxu0 %v1341_v15 }
  0x1e   :  { %v1314_v6 = vsub.s32 %v828_v4, %v69_v3  ;;  %v833_v7 = vadd.s32 4294967288, %v828_v4  ;;  %v1332_v13 = vsub.s32 0, %v69_v3  ;;  %1200 = vmatpush3.msra.mxu0 %v1341_v15 }
  0x1f   :  { %v1316_v8 = vsub.s32 %v67_v5, %v69_v3 }
  0x20   :  { %v1318_v9 = vsub.s32 %v833_v7, %v69_v3 }
  0x21   :  { %v120_v12 = vrot.slane %v1328_v11, %v1316_v8  ;;  %v71_v16 = vrot.slane %v57_v14, %v1316_v8  ;;  %v1360_v30 = vrot.slane %v64_v19, %v1316_v8 }
  0x23   :  { %v128_v17 = vcombine.high %v120_v12, %v120_v12  ;;  %v136_v18 = vrot.slane %v120_v12, %v1316_v8  ;;  %v79_v20 = vcombine.high %v71_v16, %v71_v16  ;;  %v87_v21 = vrot.slane %v71_v16, %v1316_v8 }
  0x24   :  { %v1402_v1 = vrot.slane %v1360_v30, %v1316_v8  ;;  %v113_v12 = vcombine.high %v1328_v11, %v1328_v11 }
  0x25   :  { %v197_v22 = vrot.slane %v136_v18, %v1332_v13  ;;  %v1351_v23 = vrot.slane %v128_v17, %v1316_v8  ;;  %v109_v24 = vcombine.high %v87_v21, %v87_v21  ;;  %v165_v25 = vrot.slane %v87_v21, %v1332_v13 }
  0x26   :  { %v1355_v26 = vrot.slane %v79_v20, %v1316_v8  ;;  %v158_v27 = vcombine.high %v136_v18, %v136_v18  ;;  %v181_v18 = vrot.slane %v1402_v1, %v1332_v13 }
  0x27   :  { %v259_v28 = vadd.f32 %v197_v22, %v1323_v10  ;;  %v258_v29 = vadd.f32 %v197_v22, %v1341_v15  ;;  %v242_v31 = vadd.f32 %v165_v25, %v1341_v15  ;;  %v243_v33 = vadd.f32 %v165_v25, %v1323_v10 }
  0x28   :  { %v169_v32 = vrot.slane %v1355_v26, %v1332_v13  ;;  %v201_v34 = vrot.slane %v1351_v23, %v1332_v13  ;;  %v173_v37 = vrot.slane %v109_v24, %v1332_v13  ;;  %v205_v53 = vrot.slane %v158_v27, %v1332_v13 }
  0x29   :  { %vm291_vm0 = vcmp.gt.f32.partialorder %v259_v28, 0.0  ;;  %v323_v36 = vmul.f32 0.2, %v259_v28  ;;  %vm290_vm1 = vcmp.gt.f32.partialorder %v258_v29, 0.0  ;;  %vm274_vm2 = vcmp.gt.f32.partialorder %v242_v31, 0.0 }
  0x2a   :  { %v306_v38 = vmul.f32 0.2, %v242_v31  ;;  %v244_v39 = vadd.f32 %v169_v32, %v1341_v15  ;;  %vm275_vm3 = vcmp.gt.f32.partialorder %v243_v33, 0.0  ;;  %v307_v41 = vmul.f32 0.2, %v243_v33 }
  0x2b   :  { %v355_v40 = vsel %vm291_vm0, %v259_v28, %v323_v36  ;;  %v245_v42 = vadd.f32 %v169_v32, %v1323_v10  ;;  %v322_v43 = vmul.f32 0.2, %v258_v29  ;;  %v247_v52 = vadd.f32 %v173_v37, %v1323_v10 }
  0x2c   :  { %v1374_v44 = vmul.f32 %v1368_v35, %v355_v40  ;;  %v338_v45 = vsel %vm274_vm2, %v242_v31, %v306_v38  ;;  %vm276_vm4 = vcmp.gt.f32.partialorder %v244_v39, 0.0  ;;  %v308_v46 = vmul.f32 0.2, %v244_v39 }
  0x2d   :  { %v1377_v47 = vmul.f32 %v1368_v35, %v338_v45  ;;  %v339_v48 = vsel %vm275_vm3, %v243_v33, %v307_v41  ;;  %vm277_vm5 = vcmp.gt.f32.partialorder %v245_v42, 0.0  ;;  %v309_v49 = vmul.f32 0.2, %v245_v42 }
  0x2e   :  { %603 = vrot.lane.b32.xlu1 %v1374_v44, %s1274_s0  ;;  %v340_v50 = vsel %vm276_vm4, %v244_v39, %v308_v46  ;;  %v1382_v51 = vmul.f32 %v1368_v35, %v339_v48  ;;  %v246_v56 = vadd.f32 %v173_v37, %v1341_v15  ;;  %v261_v57 = vadd.f32 %v201_v34, %v1323_v10 }
  0x2f   :  { %569 = vrot.lane.b32.xlu0 %v1377_v47, %s1274_s0  ;;  %v1389_v54 = vmul.f32 %v1368_v35, %v340_v50  ;;  %v341_v55 = vsel %vm277_vm5, %v245_v42, %v309_v49  ;;  %v354_v58 = vsel %vm290_vm1, %v258_v29, %v322_v43  ;;  %vm279_vm6 = vcmp.gt.f32.partialorder %v247_v52, 0.0 }
  0x30   :  { %v311_v59 = vmul.f32 0.2, %v247_v52  ;;  %v260_v60 = vadd.f32 %v201_v34, %v1341_v15  ;;  %vm278_vm7 = vcmp.gt.f32.partialorder %v246_v56, 0.0  ;;  %v310_v61 = vmul.f32 0.2, %v246_v56 }
  0x31   :  { %v1398_v62 = vmul.f32 %v1368_v35, %v341_v55  ;;  %v325_v0 = vmul.f32 0.2, %v261_v57  ;;  %v1407_v2 = vmul.f32 %v1368_v35, %v354_v58  ;;  %vm293_vm8 = vcmp.gt.f32.partialorder %v261_v57, 0.0 }
  0x32   :  { %573 = vrot.lane.b32.xlu1 %v1389_v54, %s1274_s0  ;;  %v343_v63 = vsel %vm279_vm6, %v247_v52, %v311_v59  ;;  %v263_v3 = vadd.f32 %v205_v53, %v1323_v10  ;;  %v262_v4 = vadd.f32 %v205_v53, %v1341_v15  ;;  %v342_v5 = vsel %vm278_vm7, %v246_v56, %v310_v61 }
  0x33   :  { %571 = vrot.lane.b32.xlu0 %v1382_v51, %s1274_s0  ;;  %v324_v7 = vmul.f32 0.2, %v260_v60  ;;  %v1414_v14 = vmul.f32 %v1368_v35, %v343_v63  ;;  %vm292_vm9 = vcmp.gt.f32.partialorder %v260_v60, 0.0  ;;  %v357_v16 = vsel %vm293_vm8, %v261_v57, %v325_v0 }
  0x34   :  { %v111_v17 = vcombine.high %v1355_v26, %v1355_v26  ;;  %v160_v19 = vcombine.high %v1351_v23, %v1351_v23  ;;  %v1427_v11 = vmul.f32 %v1368_v35, %v342_v5  ;;  %v327_v20 = vmul.f32 0.2, %v263_v3 }
  0x35   :  { %v326_v21 = vmul.f32 0.2, %v262_v4  ;;  %v80_v22 = vcombine.high %v1360_v30, %v1360_v30  ;;  %v356_v24 = vsel %vm292_vm9, %v260_v60, %v324_v7  ;;  %vm295_vm10 = vcmp.gt.f32.partialorder %v263_v3, 0.0 }
  0x36   :  { %575 = vrot.lane.b32.xlu1 %v1398_v62, %s1274_s0  ;;  %vm294_vm11 = vcmp.gt.f32.partialorder %v262_v4, 0.0  ;;  %v177_v25 = vrot.slane %v111_v17, %v1332_v13  ;;  %v251_v26 = vadd.f32 %v181_v18, %v1323_v10  ;;  %v250_v23 = vadd.f32 %v181_v18, %v1341_v15 }
  0x37   :  { %601 = vrot.lane.b32.xlu0 %v1407_v2, %s1274_s0  ;;  %v127_v27 = vrot.slane %v113_v12, %v1316_v8  ;;  %v1438_v28 = vmul.f32 %v1368_v35, %v357_v16  ;;  %v209_v31 = vrot.slane %v160_v19, %v1332_v13  ;;  %v1446_v32 = vmul.f32 %v1368_v35, %v356_v24 }
  0x38   :  { %v249_v29 = vadd.f32 %v177_v25, %v1323_v10  ;;  %v248_v30 = vadd.f32 %v177_v25, %v1341_v15  ;;  %v359_v33 = vsel %vm295_vm10, %v263_v3, %v327_v20  ;;  %v358_v34 = vsel %vm294_vm11, %v262_v4, %v326_v21 }
  0x39   :  { %v1449_v36 = vrot.slane %v80_v22, %v1316_v8  ;;  %v315_v39 = vmul.f32 0.2, %v251_v26  ;;  %v314_v40 = vmul.f32 0.2, %v250_v23  ;;  %v1452_v41 = vrot.slane %v127_v27, %v1316_v8 }
  0x3a   :  { %579 = vrot.lane.b32.xlu1 %v1414_v14, %s1274_s0  ;;  %vm281_vm12 = vcmp.gt.f32.partialorder %v249_v29, 0.0  ;;  %v313_v37 = vmul.f32 0.2, %v249_v29  ;;  %vm280_vm13 = vcmp.gt.f32.partialorder %v248_v30, 0.0  ;;  %v312_v38 = vmul.f32 0.2, %v248_v30 }
  0x3b   :  { %577 = vrot.lane.b32.xlu0 %v1427_v11, %s1274_s0  ;;  %v1457_v42 = vmul.f32 %v1368_v35, %v359_v33  ;;  %vm283_vm14 = vcmp.gt.f32.partialorder %v251_v26, 0.0  ;;  %vm282_vm15 = vcmp.gt.f32.partialorder %v250_v23, 0.0  ;;  %v265_v43 = vadd.f32 %v209_v31, %v1323_v10 }
  0x3c   :  { %v1463_v45 = vmul.f32 %v1368_v35, %v358_v34  ;;  %v345_v46 = vsel %vm281_vm12, %v249_v29, %v313_v37  ;;  %v344_v48 = vsel %vm280_vm13, %v248_v30, %v312_v38  ;;  %v264_v49 = vadd.f32 %v209_v31, %v1341_v15 }
  0x3d   :  { %v185_v50 = vrot.slane %v1449_v36, %v1332_v13  ;;  %v347_v52 = vsel %vm283_vm14, %v251_v26, %v315_v39  ;;  %v346_v53 = vsel %vm282_vm15, %v250_v23, %v314_v40  ;;  %v213_v55 = vrot.slane %v1452_v41, %v1332_v13 }
  0x3e   :  { %607 = vrot.lane.b32.xlu1 %v1438_v28, %s1274_s0  ;;  %v110_v56 = vcombine.high %v1402_v1, %v1402_v1  ;;  %v1475_v57 = vmul.f32 %v1368_v35, %v345_v46  ;;  %v1478_v58 = vmul.f32 %v1368_v35, %v344_v48  ;;  %vm297_vm0 = vcmp.gt.f32.partialorder %v265_v43, 0.0 }
  0x3f   :  { %605 = vrot.lane.b32.xlu0 %v1446_v32, %s1274_s0  ;;  %v329_v59 = vmul.f32 0.2, %v265_v43  ;;  %v328_v60 = vmul.f32 0.2, %v264_v49  ;;  %v253_v61 = vadd.f32 %v185_v50, %v1323_v10  ;;  %v252_v63 = vadd.f32 %v185_v50, %v1341_v15 }
  0x40   :  { %v129_v0 = vcombine.high %v127_v27, %v127_v27  ;;  %vm296_vm1 = vcmp.gt.f32.partialorder %v264_v49, 0.0  ;;  %v267_v1 = vadd.f32 %v213_v55, %v1323_v10  ;;  %v266_v3 = vadd.f32 %v213_v55, %v1341_v15 }
  0x41   :  { %v1489_v4 = vmul.f32 %v1368_v35, %v347_v52  ;;  %v1492_v5 = vmul.f32 %v1368_v35, %v346_v53  ;;  %v361_v7 = vsel %vm297_vm0, %v265_v43, %v329_v59  ;;  %v189_v12 = vrot.slane %v110_v56, %v1332_v13 }
  0x42   :  { %611 = vrot.lane.b32.xlu1 %v1457_v42, %s1274_s0  ;;  %v360_v16 = vsel %vm296_vm1, %v264_v49, %v328_v60  ;;  %v317_v17 = vmul.f32 0.2, %v253_v61  ;;  %v316_v18 = vmul.f32 0.2, %v252_v63  ;;  %v157_v19 = vrot.slane %v129_v0, %v1316_v8 }
  0x43   :  { %609 = vrot.lane.b32.xlu0 %v1463_v45, %s1274_s0  ;;  %vm285_vm2 = vcmp.gt.f32.partialorder %v253_v61, 0.0  ;;  %vm284_vm3 = vcmp.gt.f32.partialorder %v252_v63, 0.0  ;;  %v1499_v20 = vmul.f32 %v1368_v35, %v361_v7  ;;  %vm299_vm4 = vcmp.gt.f32.partialorder %v267_v1, 0.0 }
  0x44   :  { %v331_v21 = vmul.f32 0.2, %v267_v1  ;;  %v330_v22 = vmul.f32 0.2, %v266_v3  ;;  %v1504_v24 = vmul.f32 %v1368_v35, %v360_v16  ;;  %vm298_vm5 = vcmp.gt.f32.partialorder %v266_v3, 0.0 }
  0x45   :  { %v255_v25 = vadd.f32 %v189_v12, %v1323_v10  ;;  %v112_v8 = vcombine.high %v1449_v36, %v1449_v36  ;;  %v349_v26 = vsel %vm285_vm2, %v253_v61, %v317_v17  ;;  %v348_v23 = vsel %vm284_vm3, %v252_v63, %v316_v18 }
  0x46   :  { %583 = vrot.lane.b32.xlu1 %v1475_v57, %s1274_s0  ;;  %v254_v27 = vadd.f32 %v189_v12, %v1341_v15  ;;  %v217_v29 = vrot.slane %v157_v19, %v1332_v13  ;;  %v363_v30 = vsel %vm299_vm4, %v267_v1, %v331_v21  ;;  %v362_v31 = vsel %vm298_vm5, %v266_v3, %v330_v22 }
  0x47   :  { %581 = vrot.lane.b32.xlu0 %v1478_v58, %s1274_s0  ;;  %v1516_v33 = vmul.f32 %v1368_v35, %v349_v26  ;;  %v1519_v34 = vmul.f32 %v1368_v35, %v348_v23  ;;  %vm287_vm6 = vcmp.gt.f32.partialorder %v255_v25, 0.0  ;;  %v319_v36 = vmul.f32 0.2, %v255_v25 }
  0x48   :  { %v318_v37 = vmul.f32 0.2, %v254_v27  ;;  %v269_v38 = vadd.f32 %v217_v29, %v1323_v10  ;;  %v193_v39 = vrot.slane %v112_v8, %v1332_v13  ;;  %v159_v40 = vcombine.high %v1452_v41, %v1452_v41 }
  0x49   :  { %vm286_vm7 = vcmp.gt.f32.partialorder %v254_v27, 0.0  ;;  %v268_v43 = vadd.f32 %v217_v29, %v1341_v15  ;;  %v1531_v46 = vmul.f32 %v1368_v35, %v363_v30  ;;  %v1534_v48 = vmul.f32 %v1368_v35, %v362_v31 }
  0x4a   :  { %587 = vrot.lane.b32.xlu1 %v1489_v4, %s1274_s0  ;;  %v351_v49 = vsel %vm287_vm6, %v255_v25, %v319_v36  ;;  %v161_v50 = vcombine.high %v157_v19, %v157_v19  ;;  %v350_v52 = vsel %vm286_vm7, %v254_v27, %v318_v37  ;;  %v333_v53 = vmul.f32 0.2, %v269_v38 }
  0x4b   :  { %585 = vrot.lane.b32.xlu0 %v1492_v5, %s1274_s0  ;;  %v257_v41 = vadd.f32 %v193_v39, %v1323_v10  ;;  %v221_v55 = vrot.slane %v159_v40, %v1332_v13  ;;  %vm301_vm8 = vcmp.gt.f32.partialorder %v269_v38, 0.0  ;;  %v332_v56 = vmul.f32 0.2, %v268_v43 }
  0x4c   :  { %v256_v59 = vadd.f32 %v193_v39, %v1341_v15  ;;  %vm300_vm9 = vcmp.gt.f32.partialorder %v268_v43, 0.0  ;;  %v1544_v60 = vmul.f32 %v1368_v35, %v351_v49  ;;  %v1547_v61 = vmul.f32 %v1368_v35, %v350_v52 }
  0x4d   :  { %v365_v63 = vsel %vm301_vm8, %v269_v38, %v333_v53  ;;  %v321_v0 = vmul.f32 0.2, %v257_v41  ;;  %v271_v1 = vadd.f32 %v221_v55, %v1323_v10  ;;  %v225_v3 = vrot.slane %v161_v50, %v1332_v13 }
  0x4e   :  { %615 = vrot.lane.b32.xlu1 %v1499_v20, %s1274_s0  ;;  %v364_v7 = vsel %vm300_vm9, %v268_v43, %v332_v56  ;;  %vm289_vm10 = vcmp.gt.f32.partialorder %v257_v41, 0.0  ;;  %v320_v12 = vmul.f32 0.2, %v256_v59  ;;  %v270_v16 = vadd.f32 %v221_v55, %v1341_v15 }
  0x4f   :  { %613 = vrot.lane.b32.xlu0 %v1504_v24, %s1274_s0  ;;  %vm288_vm11 = vcmp.gt.f32.partialorder %v256_v59, 0.0  ;;  %v1557_v17 = vmul.f32 %v1368_v35, %v365_v63  ;;  %v1562_v18 = vmul.f32 %v1368_v35, %v364_v7  ;;  %v353_v19 = vsel %vm289_vm10, %v257_v41, %v321_v0 }
  0x50   :  { %v335_v13 = vmul.f32 0.2, %v271_v1  ;;  %v273_v21 = vadd.f32 %v225_v3, %v1323_v10  ;;  %v352_v22 = vsel %vm288_vm11, %v256_v59, %v320_v12  ;;  %vm303_vm12 = vcmp.gt.f32.partialorder %v271_v1, 0.0 }
  0x51   :  { %v334_v25 = vmul.f32 0.2, %v270_v16  ;;  %v272_v8 = vadd.f32 %v225_v3, %v1341_v15  ;;  %vm302_vm13 = vcmp.gt.f32.partialorder %v270_v16, 0.0  ;;  %v1569_v26 = vmul.f32 %v1368_v35, %v353_v19 }
  0x52   :  { %591 = vrot.lane.b32.xlu1 %v1516_v33, %s1274_s0  ;;  %v1574_v23 = vmul.f32 %v1368_v35, %v352_v22  ;;  %v367_v27 = vsel %vm303_vm12, %v271_v1, %v335_v13  ;;  %v337_v10 = vmul.f32 0.2, %v273_v21  ;;  %vm305_vm14 = vcmp.gt.f32.partialorder %v273_v21, 0.0 }
  0x53   :  { %589 = vrot.lane.b32.xlu0 %v1519_v34, %s1274_s0  ;;  %v366_v29 = vsel %vm302_vm13, %v270_v16, %v334_v25  ;;  %v336_v30 = vmul.f32 0.2, %v272_v8  ;;  %vm304_vm15 = vcmp.gt.f32.partialorder %v272_v8, 0.0  ;;  %v1579_v15 = vmul.f32 %v1368_v35, %v367_v27 }
  0x54   :  { %v1584_v31 = vmul.f32 %v1368_v35, %v366_v29  ;;  %v369_v36 = vsel %vm305_vm14, %v273_v21, %v337_v10  ;;  %vm408_vm0 = vcmask 523264   ;;  %vm48_vm1 = vcmask 7168  }
  0x55   :  { %v368_v37 = vsel %vm304_vm15, %v272_v8, %v336_v30  ;;  %v1589_v38 = vmul.f32 %v1368_v35, %v369_v36  ;;  %v409_v40 = vsel %vm408_vm0, %v1377_v47, 0.0  ;;  %v415_v43 = vsel %vm408_vm0, %v1389_v54, 0.0 }
  0x56   :  { %619 = vrot.lane.b32.xlu1 %v1531_v46, %s1274_s0  ;;  %v1594_v39 = vmul.f32 %v1368_v35, %v368_v37  ;;  %v412_v49 = vsel %vm408_vm0, %v1382_v51, 0.0  ;;  %v418_v35 = vsel %vm408_vm0, %v1398_v62, 0.0  ;;  %v421_v50 = vsel %vm408_vm0, %v1427_v11, 0.0 }
  0x57   :  { %617 = vrot.lane.b32.xlu0 %v1534_v48, %s1274_s0  ;;  %v424_v47 = vsel %vm408_vm0, %v1414_v14, 0.0  ;;  %v457_v52 = vsel %vm408_vm0, %v1407_v2, 0.0  ;;  %v460_v51 = vsel %vm408_vm0, %v1374_v44, 0.0  ;;  %v463_v54 = vsel %vm408_vm0, %v1446_v32, 0.0 }
  0x58   :  { %v466_v62 = vsel %vm408_vm0, %v1438_v28, 0.0  ;;  %v427_v11 = vsel %vm408_vm0, %v1478_v58, 0.0  ;;  %v430_v2 = vsel %vm408_vm0, %v1475_v57, 0.0  ;;  %v469_v14 = vsel %vm408_vm0, %v1463_v45, 0.0 }
  0x59   :  { %v472_v32 = vsel %vm408_vm0, %v1457_v42, 0.0  ;;  %v433_v30 = vsel %vm408_vm0, %v1492_v5, 0.0  ;;  %v436_v37 = vsel %vm408_vm0, %v1489_v4, 0.0  ;;  %vm838_vm2 = vcmask 130112  }
  0x5a   :  { %595 = vrot.lane.b32.xlu1 %v1544_v60, %s1274_s0  ;;  %vm975_vm3 = vcmask 1041409   ;;  %vm977_vm4 = vcmask 1042434   ;;  %vm979_vm5 = vcmask 1043459   ;;  %vm981_vm6 = vcmask 1044484  }
  0x5b   :  { %593 = vrot.lane.b32.xlu0 %v1547_v61, %s1274_s0  ;;  %vm983_vm7 = vcmask 1045509   ;;  %vm985_vm8 = vcmask 1046534   ;;  %vm987_vm9 = vcmask 1047559   ;;  %vm1002_vm11 = vcmask 130048  }
  0x5e   :  { %623 = vrot.lane.b32.xlu1 %v1557_v17, %s1274_s0 }
  0x5f   :  { %621 = vrot.lane.b32.xlu0 %v1562_v18, %s1274_s0 }
  0x62   :  { %599 = vrot.lane.b32.xlu1 %v1569_v26, %s1274_s0 }
  0x63   :  { %597 = vrot.lane.b32.xlu0 %v1574_v23, %s1274_s0 }
  0x66   :  { %627 = vrot.lane.b32.xlu1 %v1579_v15, %s1274_s0 }
  0x67   :  { %625 = vrot.lane.b32.xlu0 %v1584_v31, %s1274_s0 }
  0x6a   :  { %631 = vrot.lane.b32.xlu1 %v1589_v38, %s1274_s0 }
  0x6b   :  { %629 = vrot.lane.b32.xlu0 %v1594_v39, %s1274_s0 }
  0x8a   :  { %410 = vadd.xlane.f32.xlu0 %v409_v40  ;;  %v475_v40 = vsel %vm408_vm0, %v1504_v24, 0.0  ;;  %v439_v24 = vsel %vm408_vm0, %v1519_v34, 0.0 }
  0x8e   :  { %416 = vadd.xlane.f32.xlu0 %v415_v43  ;;  %413 = vadd.xlane.f32.xlu1 %v412_v49  ;;  %v478_v49 = vsel %vm408_vm0, %v1499_v20, 0.0  ;;  %v442_v20 = vsel %vm408_vm0, %v1516_v33, 0.0 }
  0x92   :  { %419 = vadd.xlane.f32.xlu0 %v418_v35  ;;  %422 = vadd.xlane.f32.xlu1 %v421_v50 }
  0x96   :  { %425 = vadd.xlane.f32.xlu0 %v424_v47  ;;  %458 = vadd.xlane.f32.xlu1 %v457_v52 }
  0x9a   :  { %461 = vadd.xlane.f32.xlu0 %v460_v51  ;;  %464 = vadd.xlane.f32.xlu1 %v463_v54  ;;  %v481_v54 = vsel %vm408_vm0, %v1534_v48, 0.0  ;;  %v445_v48 = vsel %vm408_vm0, %v1547_v61, 0.0 }
  0x9e   :  { %467 = vadd.xlane.f32.xlu0 %v466_v62  ;;  %428 = vadd.xlane.f32.xlu1 %v427_v11  ;;  %v484_v11 = vsel %vm408_vm0, %v1531_v46, 0.0  ;;  %v448_v46 = vsel %vm408_vm0, %v1544_v60, 0.0 }
  0xa0   :  { %v604_v44 = vpop.permute.xlu1 %603 }
  0xa1   :  { %v570_v53 = vpop.permute.xlu0 %569  ;;  %v716_v0 = vsel %vm408_vm0, %v604_v44, 0.0 }
  0xa2   :  { %431 = vadd.xlane.f32.xlu0 %v430_v2  ;;  %470 = vadd.xlane.f32.xlu1 %v469_v14  ;;  %v665_v55 = vsel %vm408_vm0, %v570_v53, 0.0 }
  0xa4   :  { %v574_v41 = vpop.permute.xlu1 %573 }
  0xa5   :  { %v572_v28 = vpop.permute.xlu0 %571  ;;  %v671_v42 = vsel %vm408_vm0, %v574_v41, 0.0  ;;  %v487_v41 = vsel %vm408_vm0, %v1562_v18, 0.0  ;;  %v451_v18 = vsel %vm408_vm0, %v1574_v23, 0.0 }
  0xa6   :  { %473 = vadd.xlane.f32.xlu0 %v472_v32  ;;  %666 = vadd.xlane.f32.xlu1 %v665_v55  ;;  %v668_v57 = vsel %vm408_vm0, %v572_v28, 0.0  ;;  %v490_v55 = vsel %vm408_vm0, %v1557_v17, 0.0  ;;  %v454_v17 = vsel %vm408_vm0, %v1569_v26, 0.0 }
  0xa8   :  { %v576_v58 = vpop.permute.xlu1 %575 }
  0xa9   :  { %v602_v56 = vpop.permute.xlu0 %601  ;;  %v674_v7 = vsel %vm408_vm0, %v576_v58, 0.0 }
  0xaa   :  { %669 = vadd.xlane.f32.xlu0 %v668_v57  ;;  %v713_v45 = vsel %vm408_vm0, %v602_v56, 0.0 }
  0xab   :  { %714 = vadd.xlane.f32.xlu1 %v713_v45 }
  0xac   :  { %v580_v59 = vpop.permute.xlu1 %579 }
  0xad   :  { %v578_v63 = vpop.permute.xlu0 %577  ;;  %v680_v13 = vsel %vm408_vm0, %v580_v59, 0.0 }
  0xae   :  { %717 = vadd.xlane.f32.xlu0 %v716_v0  ;;  %v677_v12 = vsel %vm408_vm0, %v578_v63, 0.0  ;;  %v493_v63 = vsel %vm408_vm0, %v1584_v31, 0.0  ;;  %v499_v31 = vsel %vm408_vm0, %v1594_v39, 0.0 }
  0xaf   :  { %672 = vadd.xlane.f32.xlu1 %v671_v42  ;;  %v496_v42 = vsel %vm408_vm0, %v1579_v15, 0.0 }
  0xb0   :  { %v608_v1 = vpop.permute.xlu1 %607 }
  0xb1   :  { %v606_v3 = vpop.permute.xlu0 %605  ;;  %v722_v8 = vsel %vm408_vm0, %v608_v1, 0.0 }
  0xb2   :  { %675 = vadd.xlane.f32.xlu0 %v674_v7  ;;  %v719_v21 = vsel %vm408_vm0, %v606_v3, 0.0 }
  0xb3   :  { %678 = vadd.xlane.f32.xlu1 %v677_v12 }
  0xb4   :  { %v612_v16 = vpop.permute.xlu1 %611 }
  0xb5   :  { %v610_v19 = vpop.permute.xlu0 %609  ;;  %v728_v36 = vsel %vm408_vm0, %v612_v16, 0.0 }
  0xb6   :  { %681 = vadd.xlane.f32.xlu0 %v680_v13  ;;  %v725_v29 = vsel %vm408_vm0, %v610_v19, 0.0  ;;  %v502_v19 = vsel %vm408_vm0, %v1589_v38, 0.0 }
  0xb7   :  { %720 = vadd.xlane.f32.xlu1 %v719_v21 }
  0xb8   :  { %v584_v22 = vpop.permute.xlu1 %583 }
  0xb9   :  { %v582_v25 = vpop.permute.xlu0 %581  ;;  %v686_v10 = vsel %vm408_vm0, %v584_v22, 0.0 }
  0xba   :  { %723 = vadd.xlane.f32.xlu0 %v722_v8  ;;  %v683_v27 = vsel %vm408_vm0, %v582_v25, 0.0 }
  0xbb   :  { %684 = vadd.xlane.f32.xlu1 %v683_v27 }
  0xbc   :  { %v588_v35 = vpop.permute.xlu1 %587 }
  0xbd   :  { %v586_v43 = vpop.permute.xlu0 %585  ;;  %v692_v47 = vsel %vm408_vm0, %v588_v35, 0.0 }
  0xbe   :  { %687 = vadd.xlane.f32.xlu0 %v686_v10  ;;  %v689_v5 = vsel %vm408_vm0, %v586_v43, 0.0 }
  0xbf   :  { %726 = vadd.xlane.f32.xlu1 %v725_v29  ;;  %v1275_v29 = vmov -inf  }
  0xc0   :  { %v616_v52 = vpop.permute.xlu1 %615  ;;  %49 = vst.msk [vmem:[#allocation2] sm:$0xff] %vm48_vm1, %v1275_v29  ;;  %50 = vst.msk [vmem:[#allocation2 + $0x8] sm:$0xff] %vm48_vm1, %v1275_v29 }
  0xc1   :  { %v614_v50 = vpop.permute.xlu0 %613  ;;  %v734_v51 = vsel %vm408_vm0, %v616_v52, 0.0 }
  0xc2   :  { %729 = vadd.xlane.f32.xlu0 %v728_v36  ;;  %v731_v4 = vsel %vm408_vm0, %v614_v50, 0.0 }
  0xc3   :  { %434 = vadd.xlane.f32.xlu1 %v433_v30 }
  0xc4   :  { %v592_v2 = vpop.permute.xlu1 %591 }
  0xc5   :  { %v590_v62 = vpop.permute.xlu0 %589  ;;  %v698_v44 = vsel %vm408_vm0, %v592_v2, 0.0 }
  0xc6   :  { %437 = vadd.xlane.f32.xlu0 %v436_v37  ;;  %v695_v34 = vsel %vm408_vm0, %v590_v62, 0.0 }
  0xc7   :  { %476 = vadd.xlane.f32.xlu1 %v475_v40 }
  0xc8   :  { %v620_v53 = vpop.permute.xlu1 %619 }
  0xc9   :  { %v618_v14 = vpop.permute.xlu0 %617  ;;  %v740_v32 = vsel %vm408_vm0, %v620_v53, 0.0 }
  0xca   :  { %479 = vadd.xlane.f32.xlu0 %v478_v49  ;;  %v737_v33 = vsel %vm408_vm0, %v618_v14, 0.0 }
  0xcb   :  { %690 = vadd.xlane.f32.xlu1 %v689_v5 }
  0xcc   :  { %v596_v58 = vpop.permute.xlu1 %595 }
  0xcd   :  { %v594_v28 = vpop.permute.xlu0 %593  ;;  %v704_v57 = vsel %vm408_vm0, %v596_v58, 0.0 }
  0xce   :  { %693 = vadd.xlane.f32.xlu0 %v692_v47  ;;  %v701_v61 = vsel %vm408_vm0, %v594_v28, 0.0 }
  0xcf   :  { %732 = vadd.xlane.f32.xlu1 %v731_v4 }
  0xd0   :  { %v624_v45 = vpop.permute.xlu1 %623 }
  0xd1   :  { %v622_v56 = vpop.permute.xlu0 %621  ;;  %v746_v59 = vsel %vm408_vm0, %v624_v45, 0.0 }
  0xd2   :  { %735 = vadd.xlane.f32.xlu0 %v734_v51  ;;  %v743_v60 = vsel %vm408_vm0, %v622_v56, 0.0 }
  0xd3   :  { %440 = vadd.xlane.f32.xlu1 %v439_v24 }
  0xd4   :  { %v600_v1 = vpop.permute.xlu1 %599 }
  0xd5   :  { %v598_v0 = vpop.permute.xlu0 %597  ;;  %v710_v7 = vsel %vm408_vm0, %v600_v1, 0.0 }
  0xd6   :  { %443 = vadd.xlane.f32.xlu0 %v442_v20  ;;  %v707_v23 = vsel %vm408_vm0, %v598_v0, 0.0 }
  0xd7   :  { %482 = vadd.xlane.f32.xlu1 %v481_v54 }
  0xd8   :  { %v628_v12 = vpop.permute.xlu1 %627 }
  0xd9   :  { %v626_v3 = vpop.permute.xlu0 %625  ;;  %v752_v16 = vsel %vm408_vm0, %v628_v12, 0.0 }
  0xda   :  { %485 = vadd.xlane.f32.xlu0 %v484_v11  ;;  %v749_v26 = vsel %vm408_vm0, %v626_v3, 0.0 }
  0xdb   :  { %696 = vadd.xlane.f32.xlu1 %v695_v34 }
  0xdc   :  { %v632_v13 = vpop.permute.xlu1 %631 }
  0xdd   :  { %v630_v15 = vpop.permute.xlu0 %629  ;;  %v758_v22 = vsel %vm408_vm0, %v632_v13, 0.0 }
  0xde   :  { %699 = vadd.xlane.f32.xlu0 %v698_v44  ;;  %v755_v21 = vsel %vm408_vm0, %v630_v15, 0.0 }
  0xdf   :  { %738 = vadd.xlane.f32.xlu1 %v737_v33 }
  0xe2   :  { %741 = vadd.xlane.f32.xlu0 %v740_v32 }
  0xe3   :  { %446 = vadd.xlane.f32.xlu1 %v445_v48 }
  0xe6   :  { %449 = vadd.xlane.f32.xlu0 %v448_v46 }
  0xe7   :  { %488 = vadd.xlane.f32.xlu1 %v487_v41 }
  0xea   :  { %491 = vadd.xlane.f32.xlu0 %v490_v55 }
  0xeb   :  { %702 = vadd.xlane.f32.xlu1 %v701_v61 }
  0xee   :  { %705 = vadd.xlane.f32.xlu0 %v704_v57 }
  0xef   :  { %744 = vadd.xlane.f32.xlu1 %v743_v60 }
  0xf2   :  { %747 = vadd.xlane.f32.xlu0 %v746_v59 }
  0xf3   :  { %452 = vadd.xlane.f32.xlu1 %v451_v18 }
  0xf6   :  { %455 = vadd.xlane.f32.xlu0 %v454_v17 }
  0xf7   :  { %494 = vadd.xlane.f32.xlu1 %v493_v63 }
  0xfa   :  { %497 = vadd.xlane.f32.xlu0 %v496_v42 }
  0xfb   :  { %708 = vadd.xlane.f32.xlu1 %v707_v23 }
  0xfe   :  { %711 = vadd.xlane.f32.xlu0 %v710_v7 }
  0xff   :  { %750 = vadd.xlane.f32.xlu1 %v749_v26 }
 0x102   :  { %753 = vadd.xlane.f32.xlu0 %v752_v16 }
 0x103   :  { %500 = vadd.xlane.f32.xlu1 %v499_v31 }
 0x106   :  { %503 = vadd.xlane.f32.xlu0 %v502_v19 }
 0x107   :  { %756 = vadd.xlane.f32.xlu1 %v755_v21 }
 0x10a   :  { %759 = vadd.xlane.f32.xlu0 %v758_v22 }
 0x113   :  { %v411_v25 = vpop.xlane.xlu0 %410 }
 0x117   :  { %v417_v8 = vpop.xlane.xlu0 %416  ;;  %v414_v27 = vpop.xlane.xlu1 %413 }
 0x11b   :  { %v420_v39 = vpop.xlane.xlu0 %419  ;;  %v423_v10 = vpop.xlane.xlu1 %422 }
 0x11f   :  { %v426_v38 = vpop.xlane.xlu0 %425  ;;  %v459_v30 = vpop.xlane.xlu1 %458 }
 0x123   :  { %v462_v36 = vpop.xlane.xlu0 %461  ;;  %v465_v37 = vpop.xlane.xlu1 %464 }
 0x127   :  { %v468_v40 = vpop.xlane.xlu0 %467  ;;  %v429_v43 = vpop.xlane.xlu1 %428 }
 0x12b   :  { %v432_v49 = vpop.xlane.xlu0 %431  ;;  %v471_v35 = vpop.xlane.xlu1 %470 }
 0x12f   :  { %v474_v5 = vpop.xlane.xlu0 %473  ;;  %v667_v50 = vpop.xlane.xlu1 %666 }
 0x130   :  { %v761_v47 = vadd.f32 %v667_v50, %v411_v25 }
 0x132   :  { %v832_v52 = vrot.slane %v761_v47, %v1314_v6 }
 0x133   :  { %v670_v4 = vpop.xlane.xlu0 %669 }
 0x134   :  { %v762_v24 = vadd.f32 %v670_v4, %v414_v27  ;;  %v715_v51 = vpop.xlane.xlu1 %714 }
 0x135   :  { %v777_v20 = vadd.f32 %v715_v51, %v459_v30 }
 0x136   :  { %v837_v54 = vrot.slane %v762_v24, %v1318_v9 }
 0x137   :  { %v906_v62 = vrot.slane %v777_v20, %v1314_v6  ;;  %v718_v11 = vpop.xlane.xlu0 %717 }
 0x138   :  { %v839_v2 = vsel %vm838_vm2, %v837_v54, %v832_v52  ;;  %v778_v34 = vadd.f32 %v718_v11, %v462_v36  ;;  %v673_v14 = vpop.xlane.xlu1 %672 }
 0x139   :  { %v763_v44 = vadd.f32 %v673_v14, %v417_v8 }
 0x13a   :  { %v910_v53 = vrot.slane %v778_v34, %v1318_v9 }
 0x13b   :  { %v843_v33 = vrot.slane %v763_v44, %v1314_v6  ;;  %v676_v48 = vpop.xlane.xlu0 %675 }
 0x13c   :  { %v911_v32 = vsel %vm838_vm2, %v910_v53, %v906_v62  ;;  %v764_v46 = vadd.f32 %v676_v48, %v420_v39  ;;  %v679_v41 = vpop.xlane.xlu1 %678 }
 0x13d   :  { %v765_v28 = vadd.f32 %v679_v41, %v423_v10 }
 0x13e   :  { %v847_v55 = vrot.slane %v764_v46, %v1318_v9 }
 0x13f   :  { %v852_v58 = vrot.slane %v765_v28, %v1314_v6  ;;  %v682_v61 = vpop.xlane.xlu0 %681 }
 0x140   :  { %v848_v56 = vsel %vm838_vm2, %v847_v55, %v843_v33  ;;  %v766_v57 = vadd.f32 %v682_v61, %v426_v38  ;;  %v721_v45 = vpop.xlane.xlu1 %720 }
 0x141   :  { %v976_v60 = vsel %vm975_vm3, %v848_v56, %v839_v2  ;;  %v779_v18 = vadd.f32 %v721_v45, %v465_v37 }
 0x142   :  { %v856_v59 = vrot.slane %v766_v57, %v1318_v9 }
 0x143   :  { %v915_v17 = vrot.slane %v779_v18, %v1314_v6  ;;  %v724_v63 = vpop.xlane.xlu0 %723 }
 0x144   :  { %v857_v0 = vsel %vm838_vm2, %v856_v59, %v852_v58  ;;  %v780_v42 = vadd.f32 %v724_v63, %v468_v40  ;;  %v685_v1 = vpop.xlane.xlu1 %684 }
 0x145   :  { %v978_v23 = vsel %vm977_vm4, %v857_v0, %v976_v60  ;;  %v767_v3 = vadd.f32 %v685_v1, %v429_v43 }
 0x146   :  { %v919_v7 = vrot.slane %v780_v42, %v1318_v9 }
 0x147   :  { %v861_v12 = vrot.slane %v767_v3, %v1314_v6  ;;  %v688_v26 = vpop.xlane.xlu0 %687 }
 0x148   :  { %v920_v31 = vsel %vm838_vm2, %v919_v7, %v915_v17  ;;  %v768_v16 = vadd.f32 %v688_v26, %v432_v49  ;;  %v727_v15 = vpop.xlane.xlu1 %726 }
 0x149   :  { %v989_v19 = vsel %vm975_vm3, %v920_v31, %v911_v32  ;;  %v781_v13 = vadd.f32 %v727_v15, %v471_v35 }
 0x14a   :  { %v865_v21 = vrot.slane %v768_v16, %v1318_v9 }
 0x14b   :  { %v924_v22 = vrot.slane %v781_v13, %v1314_v6  ;;  %v730_v25 = vpop.xlane.xlu0 %729 }
 0x14c   :  { %v866_v8 = vsel %vm838_vm2, %v865_v21, %v861_v12  ;;  %v782_v27 = vadd.f32 %v730_v25, %v474_v5  ;;  %v435_v39 = vpop.xlane.xlu1 %434 }
 0x14d   :  { %v980_v10 = vsel %vm979_vm5, %v866_v8, %v978_v23 }
 0x14e   :  { %v928_v29 = vrot.slane %v782_v27, %v1318_v9 }
 0x14f   :  { %v438_v38 = vpop.xlane.xlu0 %437 }
 0x150   :  { %v929_v30 = vsel %vm838_vm2, %v928_v29, %v924_v22  ;;  %v477_v36 = vpop.xlane.xlu1 %476 }
 0x151   :  { %v990_v37 = vsel %vm977_vm4, %v929_v30, %v989_v19 }
 0x153   :  { %v480_v40 = vpop.xlane.xlu0 %479 }
 0x154   :  { %v691_v43 = vpop.xlane.xlu1 %690 }
 0x155   :  { %v769_v49 = vadd.f32 %v691_v43, %v435_v39 }
 0x157   :  { %v694_v35 = vpop.xlane.xlu0 %693  ;;  %v870_v52 = vrot.slane %v769_v49, %v1314_v6 }
 0x158   :  { %v770_v50 = vadd.f32 %v694_v35, %v438_v38  ;;  %v733_v47 = vpop.xlane.xlu1 %732 }
 0x159   :  { %v783_v4 = vadd.f32 %v733_v47, %v477_v36 }
 0x15a   :  { %v874_v5 = vrot.slane %v770_v50, %v1318_v9  ;;  %v60_v50 = vld [vmem:[%s1787_s3] sm:$0xff] }
 0x15b   :  { %v736_v24 = vpop.xlane.xlu0 %735  ;;  %v933_v11 = vrot.slane %v783_v4, %v1314_v6  ;;  %vm793_vm10 = vcmp.gt.f32.partialorder %v60_v50, 0.0 }
 0x15c   :  { %v875_v51 = vsel %vm838_vm2, %v874_v5, %v870_v52  ;;  %v784_v20 = vadd.f32 %v736_v24, %v480_v40  ;;  %v441_v54 = vpop.xlane.xlu1 %440 }
 0x15d   :  { %v982_v62 = vsel %vm981_vm6, %v875_v51, %v980_v10 }
 0x15e   :  { %v937_v2 = vrot.slane %v784_v20, %v1318_v9 }
 0x15f   :  { %v444_v34 = vpop.xlane.xlu0 %443 }
 0x160   :  { %v938_v14 = vsel %vm838_vm2, %v937_v2, %v933_v11  ;;  %v483_v44 = vpop.xlane.xlu1 %482 }
 0x161   :  { %v991_v53 = vsel %vm979_vm5, %v938_v14, %v990_v37 }
 0x163   :  { %v486_v33 = vpop.xlane.xlu0 %485 }
 0x164   :  { %v697_v48 = vpop.xlane.xlu1 %696 }
 0x165   :  { %v771_v32 = vadd.f32 %v697_v48, %v441_v54 }
 0x167   :  { %v700_v46 = vpop.xlane.xlu0 %699  ;;  %v879_v55 = vrot.slane %v771_v32, %v1314_v6 }
 0x168   :  { %v772_v41 = vadd.f32 %v700_v46, %v444_v34  ;;  %v739_v28 = vpop.xlane.xlu1 %738 }
 0x169   :  { %v785_v61 = vadd.f32 %v739_v28, %v483_v44 }
 0x16a   :  { %v883_v58 = vrot.slane %v772_v41, %v1318_v9  ;;  %v61_v41 = vld [vmem:[%s1787_s3 + $0x8] sm:$0xff] }
 0x16b   :  { %v742_v56 = vpop.xlane.xlu0 %741  ;;  %v942_v59 = vrot.slane %v785_v61, %v1314_v6  ;;  %vm794_vm12 = vcmp.gt.f32.partialorder %v61_v41, 0.0 }
 0x16c   :  { %v884_v57 = vsel %vm838_vm2, %v883_v58, %v879_v55  ;;  %v786_v45 = vadd.f32 %v742_v56, %v486_v33  ;;  %v447_v60 = vpop.xlane.xlu1 %446 }
 0x16d   :  { %v984_v18 = vsel %vm983_vm7, %v884_v57, %v982_v62 }
 0x16e   :  { %v946_v17 = vrot.slane %v786_v45, %v1318_v9  ;;  %v1276_v45 = vmov 0  }
 0x16f   :  { %v450_v63 = vpop.xlane.xlu0 %449  ;;  %1211 = vset.pattern.permute.xlu1 %v1276_v45  ;;  %1212 = vset.pattern.permute.xlu0 %v1276_v45 }
 0x170   :  { %v947_v0 = vsel %vm838_vm2, %v946_v17, %v942_v59  ;;  %v489_v42 = vpop.xlane.xlu1 %488  ;;  %v1001_v17 = vld [vmem:[#allocation2 + $0x8] sm:$0xff] }
 0x171   :  { %v992_v1 = vsel %vm981_vm6, %v947_v0, %v991_v53 }
 0x173   :  { %v492_v23 = vpop.xlane.xlu0 %491 }
 0x174   :  { %v703_v3 = vpop.xlane.xlu1 %702 }
 0x175   :  { %v773_v7 = vadd.f32 %v703_v3, %v447_v60  ;;  %v1277_v60 = vmov 0.0  }
 0x176   :  { %51 = vst.msk [vmem:[#allocation3] sm:$0xff] %vm48_vm1, %v1277_v60  ;;  %52 = vst.msk [vmem:[#allocation3 + $0x8] sm:$0xff] %vm48_vm1, %v1277_v60 }
 0x177   :  { %v706_v12 = vpop.xlane.xlu0 %705  ;;  %v888_v16 = vrot.slane %v773_v7, %v1314_v6 }
 0x178   :  { %v774_v26 = vadd.f32 %v706_v12, %v450_v63  ;;  %v745_v31 = vpop.xlane.xlu1 %744 }
 0x179   :  { %v787_v19 = vadd.f32 %v745_v31, %v489_v42 }
 0x17a   :  { %v892_v15 = vrot.slane %v774_v26, %v1318_v9 }
 0x17b   :  { %v748_v13 = vpop.xlane.xlu0 %747  ;;  %v951_v27 = vrot.slane %v787_v19, %v1314_v6 }
 0x17c   :  { %v788_v21 = vadd.f32 %v748_v13, %v492_v23  ;;  %v453_v22 = vpop.xlane.xlu1 %452  ;;  %v893_v25 = vsel %vm838_vm2, %v892_v15, %v888_v16 }
 0x17d   :  { %v986_v8 = vsel %vm985_vm8, %v893_v25, %v984_v18 }
 0x17e   :  { %v955_v39 = vrot.slane %v788_v21, %v1318_v9 }
 0x17f   :  { %v456_v10 = vpop.xlane.xlu0 %455 }
 0x180   :  { %v956_v29 = vsel %vm838_vm2, %v955_v39, %v951_v27  ;;  %v495_v38 = vpop.xlane.xlu1 %494  ;;  %v1035_v39 = vld [vmem:[#allocation3] sm:$0xff] }
 0x181   :  { %v993_v30 = vsel %vm983_vm7, %v956_v29, %v992_v1 }
 0x183   :  { %v498_v36 = vpop.xlane.xlu0 %497 }
 0x184   :  { %v709_v37 = vpop.xlane.xlu1 %708 }
 0x185   :  { %v775_v40 = vadd.f32 %v709_v37, %v453_v22 }
 0x187   :  { %v712_v43 = vpop.xlane.xlu0 %711  ;;  %v897_v47 = vrot.slane %v775_v40, %v1314_v6 }
 0x188   :  { %v776_v49 = vadd.f32 %v712_v43, %v456_v10  ;;  %v751_v35 = vpop.xlane.xlu1 %750 }
 0x189   :  { %v789_v5 = vadd.f32 %v751_v35, %v495_v38 }
 0x18a   :  { %v901_v52 = vrot.slane %v776_v49, %v1318_v9 }
 0x18b   :  { %v754_v4 = vpop.xlane.xlu0 %753  ;;  %v960_v62 = vrot.slane %v789_v5, %v1314_v6 }
 0x18c   :  { %v790_v24 = vadd.f32 %v754_v4, %v498_v36  ;;  %v501_v51 = vpop.xlane.xlu1 %500  ;;  %v902_v20 = vsel %vm838_vm2, %v901_v52, %v897_v47 }
 0x18d   :  { %v988_v54 = vsel %vm987_vm9, %v902_v20, %v986_v8  ;;  %v1192_v20 = vld [vmem:[#allocation7] ss:$0 sm:$0xff] }
 0x18e   :  { %v964_v11 = vrot.slane %v790_v24, %v1318_v9  ;;  %v998_v2 = vsel %vm793_vm10, %v988_v54, -1e+30 }
 0x18f   :  { %v504_v34 = vpop.xlane.xlu0 %503  ;;  %v1003_v14 = vsel %vm1002_vm11, %v998_v2, -inf }
 0x190   :  { %v965_v44 = vsel %vm838_vm2, %v964_v11, %v960_v62  ;;  %v757_v53 = vpop.xlane.xlu1 %756  ;;  %1004 = vmax.xlane.f32.xlu1 %v1003_v14 }
 0x191   :  { %v994_v33 = vsel %vm985_vm8, %v965_v44, %v993_v30  ;;  %v791_v48 = vadd.f32 %v757_v53, %v501_v51  ;;  %v1036_v30 = vld [vmem:[#allocation3 + $0x8] sm:$0xff] }
 0x193   :  { %v760_v32 = vpop.xlane.xlu0 %759  ;;  %v969_v28 = vrot.slane %v791_v48, %v1314_v6  ;;  %v1000_v6 = vld [vmem:[#allocation2] sm:$0xff] }
 0x194   :  { %v792_v46 = vadd.f32 %v760_v32, %v504_v34 }
 0x196   :  { %v973_v55 = vrot.slane %v792_v46, %v1318_v9 }
 0x198   :  { %v974_v58 = vsel %vm838_vm2, %v973_v55, %v969_v28 }
 0x199   :  { %v995_v61 = vsel %vm987_vm9, %v974_v58, %v994_v33 }
 0x19a   :  { %v999_v56 = vsel %vm794_vm12, %v995_v61, -1e+30 }
 0x19b   :  { %v1006_v57 = vsel %vm1002_vm11, %v999_v56, -inf }
 0x19c   :  { %1007 = vmax.xlane.f32.xlu0 %v1006_v57 }
 0x219   :  { %v1005_v18 = vpop.xlane.xlu1 %1004 }
 0x21a   :  { %v1009_v9 = vmax.f32 %v1000_v6, %v1005_v18 }
 0x21c   :  { %v1011_v59 = vsub.f32 %v1000_v6, %v1009_v9  ;;  %1149 = vst.msk [vmem:[#allocation2] sm:$0xff] %vm48_vm1, %v1009_v9  ;;  %1019 = vperm.xlu1 %1211, %v1009_v9  }
 0x21e   :  { %v1013_v15 = vmul.f32 1.442695, %v1011_v59 }
 0x225   :  { %v1008_v63 = vpop.xlane.xlu0 %1007 }
 0x226   :  { %v1010_v0 = vmax.f32 %v1001_v17, %v1008_v63 }
 0x228   :  { %v1012_v42 = vsub.f32 %v1001_v17, %v1010_v0  ;;  %1150 = vst.msk [vmem:[#allocation2 + $0x8] sm:$0xff] %vm48_vm1, %v1010_v0  ;;  %1024 = vperm.xlu0 %1212, %v1010_v0  }
 0x22a   :  { %v1015_v13 = vmul.f32 1.442695, %v1012_v42 }
 0x297   :  { %v1020_v1 = vpop.permute.xlu1 %1019 }
 0x298   :  { %v1027_v23 = vsub.f32 %v998_v2, %v1020_v1 }
 0x29a   :  { %v1029_v3 = vmul.f32 1.442695, %v1027_v23 }
 0x29c   :  { %1215 = vpow2.f32 %v1029_v3 }
 0x2a3   :  { %v1025_v7 = vpop.permute.xlu0 %1024 }
 0x2a4   :  { %v1028_v12 = vsub.f32 %v999_v56, %v1025_v7 }
 0x2a6   :  { %v1031_v26 = vmul.f32 1.442695, %v1028_v12 }
 0x2a8   :  { %1217 = vpow2.f32 %v1031_v26 }
 0x2a9   :  { %v1216_v31 = vpop.eup %1215  ;;  %1219 = vpow2.f32 %v1013_v15 }
 0x2aa   :  { %v1033_v16 = vmul.f32 %v1216_v31, %v60_v50  ;;  %1221 = vpow2.f32 %v1015_v13 }
 0x2ac   :  { %1201 = vmatprep.mubr.msk.f32.mxu0 %vm1002_vm11, %v1033_v16  ;;  %v1039_v19 = vsel %vm1002_vm11, %v1033_v16, 0.0 }
 0x2ad   :  { %1040 = vadd.xlane.f32.xlu1 %v1039_v19 }
 0x2b5   :  { %v1218_v21 = vpop.eup %1217 }
 0x2b6   :  { %v1034_v22 = vmul.f32 %v1218_v21, %v61_v41  ;;  %v1220_v8 = vpop.eup %1219 }
 0x2b7   :  { %v1222_v27 = vpop.eup %1221  ;;  %v1037_v10 = vmul.f32 %v1220_v8, %v1035_v39 }
 0x2b8   :  { %1202 = vmatmul.mubr.msk.f32.vlgmr.msra.gmra.mxu0 %vm1002_vm11, %v1034_v22  ;;  %v1042_v25 = vsel %vm1002_vm11, %v1034_v22, 0.0  ;;  %v1038_v37 = vmul.f32 %v1222_v27, %v1036_v30 }
 0x2b9   :  { %1043 = vadd.xlane.f32.xlu0 %v1042_v25 }
 0x2be   :  { %1054 = vperm.xlu1 %1211, %v1220_v8  }
 0x2c2   :  { %1059 = vperm.xlu1 %1211, %v1222_v27  }
 0x336   :  { %v1041_v29 = vpop.xlane.xlu1 %1040 }
 0x337   :  { %v1045_v38 = vadd.f32 %v1041_v29, %v1037_v10 }
 0x339   :  { %1048 = vst.msk [vmem:[#allocation3] sm:$0xff] %vm48_vm1, %v1045_v38 }
 0x33a   :  { %v1055_v47 = vpop.permute.xlu1 %1054 }
 0x33b   :  { %v1062_v24 = vmul.f32 0.0, %v1055_v47 }
 0x33e   :  { %v1060_v5 = vpop.permute.xlu1 %1059 }
 0x33f   :  { %v1063_v2 = vmul.f32 0.0, %v1060_v5 }
 0x340   :  { %v1154_v36 = vld [vmem:[#allocation3] sm:$0xff] }
 0x341   :  { %1223 = vrcp.f32 %v1154_v36 }
 0x342   :  { %v1044_v40 = vpop.xlane.xlu0 %1043 }
 0x343   :  { %v1046_v43 = vadd.f32 %v1044_v40, %v1038_v37 }
 0x345   :  { %1049 = vst.msk [vmem:[#allocation3 + $0x8] sm:$0xff] %vm48_vm1, %v1046_v43 }
 0x34c   :  { %v1155_v49 = vld [vmem:[#allocation3 + $0x8] sm:$0xff] }
 0x34d   :  { %1225 = vrcp.f32 %v1155_v49 }
 0x34e   :  { %v1224_v35 = vpop.eup %1223 }
 0x34f   :  { %1162 = vperm.xlu1 %1211, %v1224_v35  }
 0x35a   :  { %v1226_v50 = vpop.eup %1225 }
 0x35b   :  { %1167 = vperm.xlu0 %1212, %v1226_v50  }
 0x378   :  { %v1203_v52 = vpop.f32.mrf.mxu0 }
 0x379   :  { %v1146_v34 = vadd.f32 %v1203_v52, %v1063_v2 }
 0x37a   :  { %v1136_v4 = vpop.f32.mrf.mxu0 }
 0x37b   :  { %v1145_v51 = vadd.f32 %v1136_v4, %v1062_v24 }
 0x3ca   :  { %v1163_v54 = vpop.permute.xlu1 %1162 }
 0x3cb   :  { %v1170_v62 = vmul.f32 %v1163_v54, %v1145_v51 }
 0x3cd   :  { %v1179_v11 = vadd.f32 %v1192_v20, %v1170_v62 }
 0x3cf   :  { %1181 = vst [vmem:[%s1789_s5] sm:$0xff] %v1179_v11 }
 0x3d6   :  { %v1168_v14 = vpop.permute.xlu0 %1167 }
 0x3d7   :  { %v1171_v44 = vmul.f32 %v1168_v14, %v1146_v34 }
 0x3d9   :  { %v1180_v53 = vadd.f32 %v1192_v20, %v1171_v44 }
 0x3db   :  { %1182 = vst [vmem:[%s1789_s5 + $0x8] sm:$0xff] %v1180_v53 }
 0x3dc   :  { %1187 = vsyncpa [#allocation6], 1 }
 0x3dd   :  { %1188 = vsyncpa [#allocation8], 1 }

// kernel: gnn_v5_forward.37
= control target key start
LH: loop header
LB: loop body
LE: loop exit
PB: predicated region body
PF: predicated region fallthrough
CT: control target
= control target key end

     0   :  { %s751_s9 = smov 0   ;;  %s753_s10 = smov 0   ;;  %s848_s0 = inlined_call_operand.vmem [shape: bf16[16,128], index: 0, kind: input, shape index: {}]   ;;  %s849_s1 = inlined_call_operand.vmem [shape: bf16[128,512], index: 1, kind: input, shape index: {}]   ;;  %s850_s2 = inlined_call_operand.vmem [shape: f32[16,512], index: 2, kind: output, shape index: {}]  }
   0x1   :  { %s755_s11 = smov 0   ;;  %s757_s12 = smov 0  }
   0x2   :  { %s759_s13 = smov 0  }
   0x3 LB: > { %s27_s14 = sadd.s32 1, %s729_s12  ;;  %s593_s15 = sadd.s32 4294967295, %s733_s13   ;;  %s733_s13 = sphi %s759_s13, %s12_s13   ;;  %s729_s12 = sphi %s757_s12, %s855_s12   ;;  %s725_s11 = sphi %s755_s11, %s854_s11   ;;  %s721_s10 = sphi %s753_s10, %s853_s10   ;;  %s717_s9 = sphi %s751_s9, %s852_s9  }
   0x4   : > { %p29_p0 = scmp.ge.s32.totalorder %s27_s14, 2  ;;  %p75_p1 = scmp.ne.s32.totalorder %s721_s10, %s717_s9 }
   0x5   : > { %p76_p2 = scmp.eq.s32.totalorder %s733_s13, 0  ;;  %p107_p4 = scmp.eq.s32.totalorder %s593_s15, 1 }
   0x6   : > { %s857_s14 = smov (%p29_p0, %s27_s14), 0  ;;  %s68_s17 = sadd.s32 1, %s721_s10 }
   0x7   : > { %p77_p3 = por %p76_p2, %p75_p1  ;;  %s64_s16 = ssub.s32 %s729_s12, %s857_s14 }
   0x8   : > { %p66_p5 = scmp.eq.s32.totalorder %s64_s16, 0  ;;  %p786_p6 = por %p107_p4, %p75_p1 }
   0x9   : > { %p597_p7 = scmp.ge.s32.totalorder %s733_s13, 2 }
   0xa   : > { %s791_s19 = scalar_select %p66_p5, %s721_s10, %s68_s17  }
   0xb   : > { %141 = sbr.rel (%p597_p7) target bundleno = 28 (0x1c), region = 20 }
  0x10   : > { %144 = sbr.rel (!%p77_p3) target bundleno = 28 (0x1c), region = 24  ;;  %s146_s20 = sand.u32 (%p77_p3), 1, %s721_s10  }
  0x11   : > { %s626_s21 = sshll.u32 (%p77_p3), %s729_s12, 3  ;;  %s598_s22 = sshll.u32 (%p77_p3), %s146_s20, 7 }
  0x12   : > { %s799_s25 = scalar_lea.vmem (%p77_p3), %s849_s1, %s626_s21  ;;  %s148_s26 = scalar_lea.vmem (%p77_p3), [#allocation2], %s598_s22 }
  0x13   : > { %v213_v0 = vld [vmem:[%s799_s25] sm:$0xff] (%p77_p3)  ;;  %v215_v1 = vld [vmem:[%s799_s25 + $0x10] sm:$0xff] (%p77_p3) }
  0x14   : > { %v217_v2 = vld [vmem:[%s799_s25 + $0x20] sm:$0xff] (%p77_p3)  ;;  %214 = vst [vmem:[%s148_s26] sm:$0xff] (%p77_p3), %v213_v0  ;;  %216 = vst [vmem:[%s148_s26 + $0x8] sm:$0xff] (%p77_p3), %v215_v1  ;;  %v219_v3 = vld [vmem:[%s799_s25 + $0x30] sm:$0xff] (%p77_p3) }
  0x15   : > { %218 = vst [vmem:[%s148_s26 + $0x10] sm:$0xff] %v217_v2  ;;  %v221_v4 = vld [vmem:[%s799_s25 + $0x40] sm:$0xff]  ;;  %v223_v5 = vld [vmem:[%s799_s25 + $0x50] sm:$0xff]  ;;  %220 = vst [vmem:[%s148_s26 + $0x18] sm:$0xff] %v219_v3 }
  0x16   : > { %222 = vst [vmem:[%s148_s26 + $0x20] sm:$0xff] %v221_v4  ;;  %224 = vst [vmem:[%s148_s26 + $0x28] sm:$0xff] %v223_v5  ;;  %v225_v6 = vld [vmem:[%s799_s25 + $0x60] sm:$0xff]  ;;  %v227_v7 = vld [vmem:[%s799_s25 + $0x70] sm:$0xff] }
  0x17   : > { %v229_v8 = vld [vmem:[%s799_s25 + $0x80] sm:$0xff]  ;;  %226 = vst [vmem:[%s148_s26 + $0x30] sm:$0xff] %v225_v6  ;;  %228 = vst [vmem:[%s148_s26 + $0x38] sm:$0xff] %v227_v7  ;;  %v231_v9 = vld [vmem:[%s799_s25 + $0x90] sm:$0xff] }
  0x18   : > { %230 = vst [vmem:[%s148_s26 + $0x40] sm:$0xff] %v229_v8  ;;  %v233_v10 = vld [vmem:[%s799_s25 + $0xa0] sm:$0xff]  ;;  %v235_v11 = vld [vmem:[%s799_s25 + $0xb0] sm:$0xff]  ;;  %232 = vst [vmem:[%s148_s26 + $0x48] sm:$0xff] %v231_v9 }
  0x19   : > { %234 = vst [vmem:[%s148_s26 + $0x50] sm:$0xff] %v233_v10  ;;  %236 = vst [vmem:[%s148_s26 + $0x58] sm:$0xff] %v235_v11  ;;  %v237_v12 = vld [vmem:[%s799_s25 + $0xc0] sm:$0xff]  ;;  %v239_v13 = vld [vmem:[%s799_s25 + $0xd0] sm:$0xff] }
  0x1a   : > { %v241_v14 = vld [vmem:[%s799_s25 + $0xe0] sm:$0xff]  ;;  %238 = vst [vmem:[%s148_s26 + $0x60] sm:$0xff] %v237_v12  ;;  %240 = vst [vmem:[%s148_s26 + $0x68] sm:$0xff] %v239_v13  ;;  %v243_v15 = vld [vmem:[%s799_s25 + $0xf0] sm:$0xff] }
  0x1b   : > { %242 = vst [vmem:[%s148_s26 + $0x70] sm:$0xff] %v241_v14  ;;  %244 = vst [vmem:[%s148_s26 + $0x78] sm:$0xff] %v243_v15 }
  0x1c PF: > { %p601_p8 = scmp.ge.s32.totalorder %s733_s13, 1  ;;  %p249_p9 = scmp.lt.s32.totalorder %s733_s13, 3 }
  0x1e   : > { %p250_p10 = pnand %p601_p8, %p249_p9 }
  0x1f   : > { %s256_s27 = sand.u32 (!%p250_p10), 1, %s717_s9  }
  0x20   : > { %253 = sbr.rel (%p250_p10) target bundleno = 278 (0x116), region = 62  ;;  %s602_s28 = sshll.u32 (!%p250_p10), %s256_s27, 7 }
  0x21   : > { %s258_s29 = scalar_lea.vmem (!%p250_p10), [#allocation2], %s602_s28  ;;  %s603_s4 = sshll.u32 (!%p250_p10), %s256_s27, 5 }
  0x22   : > { %s283_s5 = scalar_lea.vmem (!%p250_p10), [#allocation3], %s603_s4 }
  0x25   : > { %v735_v16 = vmov 0   ;;  %v670_v17 = vld [vmem:[%s258_s29 + $0x74] ss:$8 sps:$4 sm:$0xff]   ;;  %v672_v18 = vld [vmem:[%s258_s29 + $0x70] ss:$8 sps:$4 sm:$0xff]   ;;  %v694_v33 = vld [vmem:[%s848_s0] sm:$0xff]  }
  0x26   : > { %446 = vmatprep.mubr.bf16.mxu0 %v735_v16  ;;  %414 = vmatprep.subr.bf16.mxu0 %v670_v17  ;;  %v673_v19 = vld [vmem:[%s258_s29 + $0x64] ss:$8 sps:$4 sm:$0xff]   ;;  %v675_v20 = vld [vmem:[%s258_s29 + $0x60] ss:$8 sps:$4 sm:$0xff]   ;;  %v676_v21 = vld [vmem:[%s258_s29 + $0x54] ss:$8 sps:$4 sm:$0xff]  }
  0x27   : > { %415 = vmatpush1.bf16.msra.mxu0 %v672_v18  ;;  %v678_v22 = vld [vmem:[%s258_s29 + $0x50] ss:$8 sps:$4 sm:$0xff]   ;;  %v679_v23 = vld [vmem:[%s258_s29 + $0x44] ss:$8 sps:$4 sm:$0xff]   ;;  %v681_v24 = vld [vmem:[%s258_s29 + $0x40] ss:$8 sps:$4 sm:$0xff]  }
  0x28   : > { %416 = vmatprep.subr.bf16.mxu0 %v673_v19  ;;  %v682_v25 = vld [vmem:[%s258_s29 + $0x34] ss:$8 sps:$4 sm:$0xff]   ;;  %v684_v26 = vld [vmem:[%s258_s29 + $0x30] ss:$8 sps:$4 sm:$0xff]   ;;  %v685_v27 = vld [vmem:[%s258_s29 + $0x24] ss:$8 sps:$4 sm:$0xff]  }
  0x29   : > { %v687_v28 = vld [vmem:[%s258_s29 + $0x20] ss:$8 sps:$4 sm:$0xff]   ;;  %v688_v29 = vld [vmem:[%s258_s29 + $0x14] ss:$8 sps:$4 sm:$0xff]   ;;  %v690_v30 = vld [vmem:[%s258_s29 + $0x10] ss:$8 sps:$4 sm:$0xff]  }
  0x2a   : > { %v691_v31 = vld [vmem:[%s258_s29 + $0x4] ss:$8 sps:$4 sm:$0xff]   ;;  %v693_v32 = vld [vmem:[%s258_s29] ss:$8 sps:$4 sm:$0xff]   ;;  %s627_s6 = sshll.u32 (%p786_p6), %s725_s11, 4 }
  0x2b   : > { %417 = vmatpush1.bf16.msra.mxu0 %v675_v20  ;;  %s477_s9 = scalar_lea.vmem (%p786_p6), %s850_s2, %s627_s6 }
  0x2c   : > { %418 = vmatprep.subr.bf16.mxu0 %v676_v21 }
  0x2f   : > { %419 = vmatpush1.bf16.msra.mxu0 %v678_v22 }
  0x30   : > { %420 = vmatprep.subr.bf16.mxu0 %v679_v23 }
  0x33   : > { %421 = vmatpush1.bf16.msra.mxu0 %v681_v24 }
  0x34   : > { %422 = vmatprep.subr.bf16.mxu0 %v682_v25 }
  0x37   : > { %423 = vmatpush1.bf16.msra.mxu0 %v684_v26 }
  0x38   : > { %424 = vmatprep.subr.bf16.mxu0 %v685_v27 }
  0x3b   : > { %425 = vmatpush1.bf16.msra.mxu0 %v687_v28 }
  0x3c   : > { %426 = vmatprep.subr.bf16.mxu0 %v688_v29 }
  0x3f   : > { %427 = vmatpush1.bf16.msra.mxu0 %v690_v30 }
  0x40   : > { %428 = vmatprep.subr.bf16.mxu0 %v691_v31 }
  0x43   : > { %429 = vmatpush1.bf16.msra.mxu0 %v693_v32 }
  0x46   : > { %447 = vmatmul.mubr.bf16.vlgmr.msra.gmra.mxu0 %v694_v33 }
 0x106   : > { %v448_v34 = vpop.f32.mrf.mxu0 }
 0x107   : > { %461 = vst [vmem:[%s283_s5] sm:$0xff] %v448_v34 }
 0x108   : > { %v450_v35 = vpop.f32.mrf.mxu0 }
 0x109   : > { %462 = vst [vmem:[%s283_s5 + $0x8] sm:$0xff] %v450_v35  ;;  %471 = sbr.rel (!%p786_p6) target bundleno = 278 (0x116), region = 74 }
 0x10a   : > { %v452_v36 = vpop.f32.mrf.mxu0 }
 0x10b   : > { %463 = vst [vmem:[%s283_s5 + $0x10] sm:$0xff] %v452_v36 }
 0x10c   : > { %v454_v37 = vpop.f32.mrf.mxu0 }
 0x10d   : > { %464 = vst [vmem:[%s283_s5 + $0x18] sm:$0xff] %v454_v37 }
 0x10e   : > { %v490_v38 = vld [vmem:[%s283_s5] sm:$0xff] }
 0x10f   : > { %491 = vst [vmem:[%s477_s9] sm:$0xff] %v490_v38 }
 0x110   : > { %v492_v39 = vld [vmem:[%s283_s5 + $0x8] sm:$0xff] }
 0x111   : > { %493 = vst [vmem:[%s477_s9 + $0x8] sm:$0xff] %v492_v39 }
 0x112   : > { %v494_v40 = vld [vmem:[%s283_s5 + $0x10] sm:$0xff] }
 0x113   : > { %495 = vst [vmem:[%s477_s9 + $0x20] sm:$0xff] %v494_v40 }
 0x114   : > { %v496_v41 = vld [vmem:[%s283_s5 + $0x18] sm:$0xff] }
 0x115   : > { %497 = vst [vmem:[%s477_s9 + $0x28] sm:$0xff] %v496_v41 }
 0x116 PF: > { %s12_s13 = sadd.s32 1, %s733_s13   ;;  %s852_s9 = smov %s721_s10 }
 0x117   : > { %p9_p11 = scmp.ge.s32.totalorder %s12_s13, 4   ;;  %s853_s10 = smov %s791_s19 }
 0x118   : > { %s854_s11 = smov %s729_s12  ;;  %s855_s12 = smov %s857_s14 }
 0x119   :  { %11 = sbr.rel (!%p9_p11) target bundleno = 3 (0x3), region = 131 }

// kernel: gnn_v5_forward.40
= control target key start
LH: loop header
LB: loop body
LE: loop exit
PB: predicated region body
PF: predicated region fallthrough
CT: control target
= control target key end

     0   :  { %9 = vsyncpa [#allocation3], 0  ;;  %s424_s12 = smov [#allocation2]   ;;  %s484_s0 = inlined_call_operand.vmem [shape: f32[16,512], index: 0, kind: input, shape index: {}]   ;;  %s485_s1 = inlined_call_operand.hbm [shape: f32[2,16], index: 1, kind: input, shape index: {}]   ;;  %s486_s2 = inlined_call_operand.vmem [shape: f32[2,512], index: 2, kind: output, shape index: {0}]   ;;  %s487_s3 = inlined_call_operand.vmem [shape: f32[2,512], index: 3, kind: output, shape index: {1}]  }
   0x1   :  { %s18_s13 = sshll.u32 %s424_s12, 4  ;;  %s19_s13 = int_to_ptr.vmem [resolvable:$true] %s18_s13 }
   0x2   :  { %s410_s14 = scalar_lea.vmem %s19_s13, 32  ;;  %p415_p1 = scmp.lt.s32.totalorder %s19_s13, %s19_s13 }
   0x3   :  { %p411_p0 = scmp.ne.s32.totalorder %s19_s13, %s410_s14  ;;  %p416_p2 = scmp.lt.s32.totalorder %s410_s14, %s410_s14 }
   0x5   :  { %p417_p3 = por %p416_p2, %p415_p1 }
   0x7   :  { %p418_p4 = pnand %p417_p3, %p411_p0 }
   0x9   :  { %421 = shalt.err (!%p418_p4)
}
   0xa   :  { %21 = dma.hbm_to_vmem [thread:$0]  %s485_s1, 32, %s19_s13, [#allocation3]  }
   0xb   :  { %422 = dma.done.wait [#allocation3], 32  }
   0xc   :  { %423 = vsyncadd [#allocation3], 4294967264  ;;  %v425_v0 = vmov 0.0   ;;  %v36_v1 = vld [vmem:[%s484_s0 + $0x28] sm:$0xff]  ;;  %v38_v2 = vld [vmem:[%s484_s0 + $0x38] sm:$0xff]  ;;  %vm41_vm0 = vcmask 130048   ;;  %v196_v20 = vlaneseq }
   0xd   :  { %109 = vmatprep.mubr.f32.mxu0 %v425_v0  ;;  %180 = vmatprep.mubr.f32.mxu1 %v425_v0  ;;  %v35_v3 = vld [vmem:[%s484_s0 + $0x20] sm:$0xff]  ;;  %v37_v4 = vld [vmem:[%s484_s0 + $0x30] sm:$0xff]  ;;  %v32_v5 = vld [vmem:[%s484_s0 + $0x8] sm:$0xff]  ;;  %v217_v7 = vmul.f32 %v36_v1, %v36_v1  ;;  %v219_v8 = vmul.f32 %v38_v2, %v38_v2  ;;  %v426_v18 = vmov 1983009808  }
   0xe   :  { %73 = vmatprep.subr.mxu0 %v36_v1  ;;  %144 = vmatprep.subr.mxu1 %v38_v2  ;;  %v34_v6 = vld [vmem:[%s484_s0 + $0x18] sm:$0xff]  ;;  %v31_v9 = vld [vmem:[%s484_s0] sm:$0xff]  ;;  %v33_v10 = vld [vmem:[%s484_s0 + $0x10] sm:$0xff]  ;;  %v216_v12 = vmul.f32 %v35_v3, %v35_v3  ;;  %v218_v13 = vmul.f32 %v37_v4, %v37_v4  ;;  %v213_v14 = vmul.f32 %v32_v5, %v32_v5  ;;  %v194_v19 = vunpack.c.l.s4 %v426_v18 }
   0xf   :  { %74 = vmatpush1.msra.mxu0 %v35_v3  ;;  %145 = vmatpush1.msra.mxu1 %v37_v4  ;;  %v39_v11 = vld [vmem:[#allocation2] sm:$0x3]  ;;  %v215_v15 = vmul.f32 %v34_v6, %v34_v6  ;;  %v212_v16 = vmul.f32 %v31_v9, %v31_v9  ;;  %v214_v17 = vmul.f32 %v33_v10, %v33_v10  ;;  %v197_v22 = vshrl.u32 %v196_v20, 7 }
  0x10   :  { %75 = vmatprep.subr.mxu0 %v32_v5  ;;  %146 = vmatprep.subr.mxu1 %v34_v6  ;;  %v195_v21 = vunpack.c.0.s8 %v194_v19 }
  0x11   :  { %76 = vmatpush1.msra.mxu0 %v31_v9  ;;  %147 = vmatpush1.msra.mxu1 %v33_v10 }
  0x12   :  { %395 = vmatmul.mubr.msk.f32.vlgmr.msra.gmra.mxu0 %vm41_vm0, %v39_v11  ;;  %396 = vmatmul.mubr.msk.f32.vlgmr.msra.gmra.mxu1 %vm41_vm0, %v39_v11  ;;  %v198_v25 = vsub.s32 %v195_v21, %v197_v22 }
  0x13   :  { %248 = vmatprep.subr.mxu0 %v217_v7  ;;  %319 = vmatprep.subr.mxu1 %v219_v8 }
  0x14   :  { %249 = vmatpush1.msra.mxu0 %v216_v12  ;;  %320 = vmatpush1.msra.mxu1 %v218_v13 }
  0x15   :  { %250 = vmatprep.subr.mxu0 %v213_v14  ;;  %321 = vmatprep.subr.mxu1 %v215_v15 }
  0x16   :  { %251 = vmatpush1.msra.mxu0 %v212_v16  ;;  %284 = vmatprep.mubr.f32.mxu0 %v425_v0 }
  0x17   :  { %322 = vmatpush1.msra.mxu1 %v214_v17  ;;  %355 = vmatprep.mubr.f32.mxu1 %v425_v0 }
  0x18   :  { %397 = vmatmul.mubr.msk.f32.vlgmr.msra.gmra.mxu0 %vm41_vm0, %v39_v11  ;;  %398 = vmatmul.mubr.msk.f32.vlgmr.msra.gmra.mxu1 %vm41_vm0, %v39_v11 }
  0xd2   :  { %v111_v23 = vpop.f32.mrf.mxu0  ;;  %v182_v24 = vpop.f32.mrf.mxu1 }
  0xd4   :  { %v113_v26 = vpop.f32.mrf.mxu0  ;;  %v184_v27 = vpop.f32.mrf.mxu1 }
  0xd5   :  { %v191_v28 = vcombine.low %v111_v23, %v113_v26  ;;  %v192_v29 = vcombine.low %v182_v24, %v184_v27 }
  0xd7   :  { %v199_v30 = vrot.slane %v191_v28, %v198_v25  ;;  %v206_v31 = vrot.slane %v192_v29, %v198_v25 }
  0xd8   :  { %v286_v32 = vpop.f32.mrf.mxu0  ;;  %v357_v33 = vpop.f32.mrf.mxu1 }
  0xd9   :  { %v207_v34 = vcombine.low %v199_v30, %v206_v31 }
  0xda   :  { %v288_v35 = vpop.f32.mrf.mxu0  ;;  %v359_v36 = vpop.f32.mrf.mxu1 }
  0xdb   :  { %v366_v37 = vcombine.low %v286_v32, %v288_v35  ;;  %v367_v38 = vcombine.low %v357_v33, %v359_v36  ;;  %210 = vst [vmem:[%s486_s2] sm:$0xff] %v207_v34 }
  0xdd   :  { %v374_v39 = vrot.slane %v366_v37, %v198_v25  ;;  %v381_v40 = vrot.slane %v367_v38, %v198_v25 }
  0xdf   :  { %v382_v41 = vcombine.low %v374_v39, %v381_v40 }
  0xe1   :  { %385 = vst [vmem:[%s487_s3] sm:$0xff] %v382_v41 }
  0xe2   :  { %394 = vsyncpa [#allocation3], 1 }

// kernel: gnn_v5_forward.51
= control target key start
LH: loop header
LB: loop body
LE: loop exit
PB: predicated region body
PF: predicated region fallthrough
CT: control target
= control target key end

     0   :  { %s580_s9 = smov 0   ;;  %s582_s10 = smov 0   ;;  %s655_s0 = inlined_call_operand.vmem [shape: bf16[16,16], index: 0, kind: input, shape index: {}]   ;;  %s656_s1 = inlined_call_operand.vmem [shape: bf16[16,512], index: 1, kind: input, shape index: {}]   ;;  %s657_s2 = inlined_call_operand.vmem [shape: f32[16,512], index: 2, kind: output, shape index: {}]  }
   0x1   :  { %s584_s11 = smov 0   ;;  %s586_s12 = smov 0  }
   0x2   :  { %s588_s13 = smov 0  }
   0x3 LB: > { %s27_s14 = sadd.s32 1, %s558_s12  ;;  %s456_s15 = sadd.s32 4294967295, %s562_s13   ;;  %s562_s13 = sphi %s588_s13, %s12_s13   ;;  %s558_s12 = sphi %s586_s12, %s662_s12   ;;  %s554_s11 = sphi %s584_s11, %s661_s11   ;;  %s550_s10 = sphi %s582_s10, %s660_s10   ;;  %s546_s9 = sphi %s580_s9, %s659_s9  }
   0x4   : > { %p29_p0 = scmp.ge.s32.totalorder %s27_s14, 2  ;;  %p75_p1 = scmp.ne.s32.totalorder %s550_s10, %s546_s9 }
   0x5   : > { %p76_p2 = scmp.eq.s32.totalorder %s562_s13, 0  ;;  %p107_p4 = scmp.eq.s32.totalorder %s456_s15, 1 }
   0x6   : > { %s664_s14 = smov (%p29_p0, %s27_s14), 0  ;;  %s68_s17 = sadd.s32 1, %s550_s10 }
   0x7   : > { %p77_p3 = por %p76_p2, %p75_p1  ;;  %s64_s16 = ssub.s32 %s558_s12, %s664_s14 }
   0x8   : > { %p66_p5 = scmp.eq.s32.totalorder %s64_s16, 0  ;;  %p615_p6 = por %p107_p4, %p75_p1 }
   0x9   : > { %p460_p7 = scmp.ge.s32.totalorder %s562_s13, 2 }
   0xa   : > { %s620_s19 = scalar_select %p66_p5, %s550_s10, %s68_s17  }
   0xb   : > { %141 = sbr.rel (%p460_p7) target bundleno = 21 (0x15), region = 20 }
  0x10   : > { %144 = sbr.rel (!%p77_p3) target bundleno = 21 (0x15), region = 24  ;;  %s146_s20 = sand.u32 (%p77_p3), 1, %s550_s10  }
  0x11   : > { %s476_s21 = sshll.u32 (%p77_p3), %s558_s12, 3  ;;  %s461_s22 = sshll.u32 (%p77_p3), %s146_s20, 4 }
  0x12   : > { %s154_s25 = scalar_lea.vmem (%p77_p3), %s656_s1, %s476_s21  ;;  %s148_s26 = scalar_lea.vmem (%p77_p3), [#allocation2], %s461_s22 }
  0x13   : > { %v185_v0 = vld [vmem:[%s154_s25] sm:$0xff] (%p77_p3)  ;;  %v187_v1 = vld [vmem:[%s154_s25 + $0x10] sm:$0xff] (%p77_p3) }
  0x14   : > { %186 = vst [vmem:[%s148_s26] sm:$0xff] (%p77_p3), %v185_v0  ;;  %188 = vst [vmem:[%s148_s26 + $0x8] sm:$0xff] (%p77_p3), %v187_v1 }
  0x15 PF: > { %p464_p8 = scmp.ge.s32.totalorder %s562_s13, 1  ;;  %p193_p9 = scmp.lt.s32.totalorder %s562_s13, 3 }
  0x17   : > { %p194_p10 = pnand %p464_p8, %p193_p9 }
  0x18   : > { %s200_s27 = sand.u32 (!%p194_p10), 1, %s546_s9  }
  0x19   : > { %197 = sbr.rel (%p194_p10) target bundleno = 243 (0xf3), region = 62  ;;  %s465_s28 = sshll.u32 (!%p194_p10), %s200_s27, 4 }
  0x1a   : > { %s202_s29 = scalar_lea.vmem (!%p194_p10), [#allocation2], %s465_s28  ;;  %s466_s4 = sshll.u32 (!%p194_p10), %s200_s27, 5 }
  0x1b   : > { %s227_s5 = scalar_lea.vmem (!%p194_p10), [#allocation3], %s466_s4 }
  0x1e   : > { %v564_v2 = vmov 0   ;;  %v520_v3 = vld [vmem:[%s202_s29 + $0x4] ss:$8 sps:$4 sm:$0xff]   ;;  %v522_v4 = vld [vmem:[%s202_s29] ss:$8 sps:$4 sm:$0xff]   ;;  %vm273_vm0 = vcmask 130048  }
  0x1f   : > { %309 = vmatprep.mubr.bf16.mxu0 %v564_v2  ;;  %291 = vmatprep.subr.bf16.mxu0 %v520_v3  ;;  %v523_v5 = vld [vmem:[%s655_s0] sm:$0xff]   ;;  %s477_s6 = sshll.u32 (%p615_p6), %s554_s11, 4 }
  0x20   : > { %292 = vmatpush1.bf16.msra.mxu0 %v522_v4  ;;  %s340_s9 = scalar_lea.vmem (%p615_p6), %s657_s2, %s477_s6 }
  0x23   : > { %470 = vmatmul.mubr.msk.bf16.vlgmr.msra.gmra.mxu0 %vm273_vm0, %v523_v5 }
  0xe3   : > { %v311_v6 = vpop.f32.mrf.mxu0 }
  0xe4   : > { %324 = vst [vmem:[%s227_s5] sm:$0xff] %v311_v6 }
  0xe5   : > { %v313_v7 = vpop.f32.mrf.mxu0 }
  0xe6   : > { %325 = vst [vmem:[%s227_s5 + $0x8] sm:$0xff] %v313_v7  ;;  %334 = sbr.rel (!%p615_p6) target bundleno = 243 (0xf3), region = 74 }
  0xe7   : > { %v315_v8 = vpop.f32.mrf.mxu0 }
  0xe8   : > { %326 = vst [vmem:[%s227_s5 + $0x10] sm:$0xff] %v315_v8 }
  0xe9   : > { %v317_v9 = vpop.f32.mrf.mxu0 }
  0xea   : > { %327 = vst [vmem:[%s227_s5 + $0x18] sm:$0xff] %v317_v9 }
  0xeb   : > { %v353_v10 = vld [vmem:[%s227_s5] sm:$0xff] }
  0xec   : > { %354 = vst [vmem:[%s340_s9] sm:$0xff] %v353_v10 }
  0xed   : > { %v355_v11 = vld [vmem:[%s227_s5 + $0x8] sm:$0xff] }
  0xee   : > { %356 = vst [vmem:[%s340_s9 + $0x8] sm:$0xff] %v355_v11 }
  0xef   : > { %v357_v12 = vld [vmem:[%s227_s5 + $0x10] sm:$0xff] }
  0xf0   : > { %358 = vst [vmem:[%s340_s9 + $0x20] sm:$0xff] %v357_v12 }
  0xf1   : > { %v359_v13 = vld [vmem:[%s227_s5 + $0x18] sm:$0xff] }
  0xf2   : > { %360 = vst [vmem:[%s340_s9 + $0x28] sm:$0xff] %v359_v13 }
  0xf3 PF: > { %s12_s13 = sadd.s32 1, %s562_s13   ;;  %s659_s9 = smov %s550_s10 }
  0xf4   : > { %p9_p11 = scmp.ge.s32.totalorder %s12_s13, 4   ;;  %s660_s10 = smov %s620_s19 }
  0xf5   : > { %s661_s11 = smov %s558_s12  ;;  %s662_s12 = smov %s664_s14 }
  0xf6   :  { %11 = sbr.rel (!%p9_p11) target bundleno = 3 (0x3), region = 131 }

// kernel: gnn_v5_forward.54
= control target key start
LH: loop header
LB: loop body
LE: loop exit
PB: predicated region body
PF: predicated region fallthrough
CT: control target
= control target key end

     0   :  { %12 = vsyncpa [#allocation3], 0  ;;  %s778_s0 = inlined_call_operand.vmem [shape: f32[16,512], index: 0, kind: input, shape index: {}]   ;;  %s779_s1 = inlined_call_operand.vmem [shape: f32[16,2], index: 1, kind: input, shape index: {}]   ;;  %s780_s2 = inlined_call_operand.vmem [shape: f32[2,512], index: 2, kind: input, shape index: {}]   ;;  %s781_s3 = inlined_call_operand.vmem [shape: f32[2,512], index: 3, kind: input, shape index: {}]   ;;  %s782_s4 = inlined_call_operand.hbm [shape: f32[1,512], index: 4, kind: input, shape index: {}]   ;;  %s783_s5 = inlined_call_operand.hbm [shape: f32[1,512], index: 5, kind: input, shape index: {}]   ;;  %s784_s6 = inlined_call_operand.hbm [shape: f32[1,512], index: 6, kind: input, shape index: {}]   ;;  %s785_s7 = inlined_call_operand.vmem [shape: f32[16,512], index: 7, kind: output, shape index: {}]  }
   0x1   :  { %13 = vsyncpa [#allocation5], 0  ;;  %s648_s24 = smov [#allocation4]   ;;  %s649_s26 = smov [#allocation2]  }
   0x2   :  { %s38_s25 = sshll.u32 %s648_s24, 4  ;;  %s28_s27 = sshll.u32 %s649_s26, 4  ;;  %s39_s25 = int_to_ptr.vmem [resolvable:$true] %s38_s25  ;;  %s29_s27 = int_to_ptr.vmem [resolvable:$true] %s28_s27 }
   0x3   :  { %s592_s28 = scalar_lea.vmem %s39_s25, 64  ;;  %p597_p1 = scmp.lt.s32.totalorder %s39_s25, %s39_s25 }
   0x4   :  { %p593_p0 = scmp.ne.s32.totalorder %s39_s25, %s592_s28  ;;  %p598_p2 = scmp.lt.s32.totalorder %s592_s28, %s592_s28 }
   0x6   :  { %p599_p3 = por %p598_p2, %p597_p1 }
   0x8   :  { %p600_p4 = pnand %p599_p3, %p593_p0 }
   0xa   :  { %603 = shalt.err (!%p600_p4)
}
   0xb   :  { %41 = dma.hbm_to_vmem [thread:$0]  %s783_s5, 64, %s39_s25, [#allocation5]  }
   0xc   :  { %s612_s8 = scalar_lea.vmem %s29_s27, 64  ;;  %p617_p6 = scmp.lt.s32.totalorder %s29_s27, %s29_s27 }
   0xd   :  { %p613_p5 = scmp.ne.s32.totalorder %s29_s27, %s612_s8  ;;  %p618_p7 = scmp.lt.s32.totalorder %s612_s8, %s612_s8 }
   0xf   :  { %p619_p8 = por %p618_p7, %p617_p6 }
  0x11   :  { %p620_p9 = pnand %p619_p8, %p613_p5 }
  0x13   :  { %623 = shalt.err (!%p620_p9)
}
  0x14   :  { %31 = dma.hbm_to_vmem [thread:$0]  %s782_s4, 64, %s29_s27, [#allocation3]  }
  0x15   :  { %s650_s11 = smov [#allocation6]  }
  0x16   :  { %s48_s12 = sshll.u32 %s650_s11, 4  ;;  %s49_s12 = int_to_ptr.vmem [resolvable:$true] %s48_s12 }
  0x17   :  { %s632_s13 = scalar_lea.vmem %s49_s12, 64  ;;  %p637_p11 = scmp.lt.s32.totalorder %s49_s12, %s49_s12 }
  0x18   :  { %p633_p10 = scmp.ne.s32.totalorder %s49_s12, %s632_s13  ;;  %p638_p12 = scmp.lt.s32.totalorder %s632_s13, %s632_s13 }
  0x1a   :  { %p639_p13 = por %p638_p12, %p637_p11 }
  0x1c   :  { %p640_p0 = pnand %p639_p13, %p633_p10 }
  0x1e   :  { %643 = shalt.err (!%p640_p0)
}
  0x1f   :  { %51 = dma.hbm_to_vmem [thread:$0]  %s784_s6, 64, %s49_s12, [#allocation5]  }
  0x20   :  { %644 = dma.done.wait [#allocation3], 64  }
  0x21   :  { %645 = vsyncadd [#allocation3], 4294967232 }
  0x22   :  { %646 = dma.done.wait [#allocation5], 128  }
  0x23   :  { %647 = vsyncadd [#allocation5], 4294967168  ;;  %v77_v0 = vlaneseq  ;;  %v651_v1 = vmov 1983009808   ;;  %v652_v3 = vmov 0.0   ;;  %v71_v7 = vld [vmem:[%s780_s2] sm:$0xff] }
  0x24   :  { %v75_v2 = vunpack.c.l.s4 %v651_v1  ;;  %170 = vmatprep.mubr.f32.mxu0 %v652_v3  ;;  %247 = vmatprep.mubr.f32.mxu1 %v652_v3  ;;  %v260_v8 = vld [vmem:[%s781_s3] sm:$0xff]  ;;  %v73_v10 = vcombine.high %v71_v7, %v71_v7  ;;  %vm97_vm0 = vcmask 1041408   ;;  %vm90_vm1 = vcmask 15360   ;;  %v70_v20 = vld [vmem:[%s779_s1 + $0x8] sm:$0xff]  ;;  %v63_v36 = vld [vmem:[%s778_s0 + $0x10] sm:$0xff] }
  0x25   :  { %v78_v4 = vshrl.u32 %v77_v0, 7  ;;  %v262_v12 = vcombine.high %v260_v8, %v260_v8  ;;  %v69_v16 = vld [vmem:[%s779_s1] sm:$0xff]  ;;  %v441_v22 = vld [vmem:[#allocation6] sm:$0xf]  ;;  %v64_v45 = vld [vmem:[%s778_s0 + $0x18] sm:$0xff] }
  0x26   :  { %v76_v5 = vunpack.c.0.s8 %v75_v2  ;;  %v479_v29 = vld [vmem:[#allocation2] sm:$0xf]  ;;  %v62_v34 = vld [vmem:[%s778_s0 + $0x8] sm:$0xff]  ;;  %v517_v42 = vld [vmem:[#allocation4] sm:$0xf] }
  0x27   :  { %v445_v21 = vsub.s32 0, %v78_v4  ;;  %v449_v23 = vsub.s32 1, %v78_v4  ;;  %v453_v24 = vsub.s32 2, %v78_v4  ;;  %v457_v26 = vsub.s32 3, %v78_v4  ;;  %v61_v30 = vld [vmem:[%s778_s0] sm:$0xff]  ;;  %v66_v53 = vld [vmem:[%s778_s0 + $0x28] sm:$0xff] }
  0x28   :  { %v79_v6 = vsub.s32 %v76_v5, %v78_v4  ;;  %v65_v43 = vld [vmem:[%s778_s0 + $0x20] sm:$0xff]  ;;  %v67_v55 = vld [vmem:[%s778_s0 + $0x30] sm:$0xff]  ;;  %v68_v0 = vld [vmem:[%s778_s0 + $0x38] sm:$0xff] }
  0x29   :  { %v446_v25 = vrot.slane %v441_v22, %v445_v21  ;;  %v450_v27 = vrot.slane %v441_v22, %v449_v23  ;;  %v454_v28 = vrot.slane %v441_v22, %v453_v24  ;;  %v458_v33 = vrot.slane %v441_v22, %v457_v26 }
  0x2a   :  { %v80_v9 = vrot.slane %v71_v7, %v79_v6  ;;  %v269_v11 = vrot.slane %v260_v8, %v79_v6  ;;  %v87_v14 = vrot.slane %v73_v10, %v79_v6  ;;  %v276_v15 = vrot.slane %v262_v12, %v79_v6 }
  0x2b   :  { %v484_v38 = vrot.slane %v479_v29, %v445_v21  ;;  %v488_v47 = vrot.slane %v479_v29, %v449_v23  ;;  %v492_v48 = vrot.slane %v479_v29, %v453_v24  ;;  %v522_v58 = vrot.slane %v517_v42, %v445_v21 }
  0x2c   :  { %v88_v13 = vcombine.high %v80_v9, %v80_v9  ;;  %v277_v17 = vcombine.high %v269_v11, %v269_v11  ;;  %v89_v18 = vcombine.high %v87_v14, %v87_v14  ;;  %v278_v19 = vcombine.high %v276_v15, %v276_v15 }
  0x2d   :  { %v496_v59 = vrot.slane %v479_v29, %v457_v26  ;;  %v526_v4 = vrot.slane %v517_v42, %v449_v23  ;;  %v530_v6 = vrot.slane %v517_v42, %v453_v24 }
  0x2e   :  { %561 = vmatprep.subr.msk.mxu0 %vm97_vm0, %v88_v13  ;;  %565 = vmatprep.subr.msk.mxu1 %vm97_vm0, %v89_v18 }
  0x2f   :  { %562 = vmatpush1.msk.msra.mxu0 %vm97_vm0, %v80_v9  ;;  %566 = vmatpush1.msk.msra.mxu1 %vm97_vm0, %v87_v14 }
  0x30   :  { %563 = vmatmul.mubr.msk.f32.vlgmr.msra.gmra.mxu0 %vm90_vm1, %v69_v16  ;;  %569 = vmatprep.subr.msk.mxu0 %vm97_vm0, %v277_v17 }
  0x31   :  { %567 = vmatmul.mubr.msk.f32.vlgmr.msra.gmra.mxu1 %vm90_vm1, %v69_v16  ;;  %573 = vmatprep.subr.msk.mxu1 %vm97_vm0, %v278_v19 }
  0x32   :  { %176 = vmatprep.mubr.f32.mxu0 %v652_v3  ;;  %570 = vmatpush1.msk.msra.mxu0 %vm97_vm0, %v269_v11 }
  0x33   :  { %574 = vmatpush1.msk.msra.mxu1 %vm97_vm0, %v276_v15  ;;  %253 = vmatprep.mubr.f32.mxu1 %v652_v3  ;;  %v534_v15 = vrot.slane %v517_v42, %v457_v26 }
  0x34   :  { %564 = vmatmul.mubr.msk.f32.gmra.mxu0 %vm90_vm1, %v70_v20 }
  0x35   :  { %351 = vmatprep.mubr.f32.mxu0 %v652_v3  ;;  %568 = vmatmul.mubr.msk.f32.gmra.mxu1 %vm90_vm1, %v70_v20 }
  0x36   :  { %428 = vmatprep.mubr.f32.mxu1 %v652_v3 }
  0x38   :  { %571 = vmatmul.mubr.msk.f32.vlgmr.msra.gmra.mxu0 %vm90_vm1, %v69_v16 }
  0x39   :  { %357 = vmatprep.mubr.f32.mxu0 %v652_v3  ;;  %575 = vmatmul.mubr.msk.f32.vlgmr.msra.gmra.mxu1 %vm90_vm1, %v69_v16 }
  0x3a   :  { %434 = vmatprep.mubr.f32.mxu1 %v652_v3 }
  0x3c   :  { %572 = vmatmul.mubr.msk.f32.gmra.mxu0 %vm90_vm1, %v70_v20 }
  0x3d   :  { %576 = vmatmul.mubr.msk.f32.gmra.mxu1 %vm90_vm1, %v70_v20 }
  0xf0   :  { %v172_v31 = vpop.f32.mrf.mxu0 }
  0xf1   :  { %v463_v32 = vmul.f32 %v446_v25, %v172_v31  ;;  %v249_v37 = vpop.f32.mrf.mxu1 }
  0xf2   :  { %v174_v35 = vpop.f32.mrf.mxu0  ;;  %v465_v41 = vmul.f32 %v454_v28, %v249_v37 }
  0xf3   :  { %v471_v39 = vsub.f32 %v61_v30, %v463_v32  ;;  %v464_v40 = vmul.f32 %v450_v27, %v174_v35  ;;  %v251_v46 = vpop.f32.mrf.mxu1 }
  0xf4   :  { %v178_v44 = vpop.f32.mrf.mxu0  ;;  %v473_v50 = vsub.f32 %v63_v36, %v465_v41  ;;  %v466_v52 = vmul.f32 %v458_v33, %v251_v46 }
  0xf5   :  { %v472_v49 = vsub.f32 %v62_v34, %v464_v40  ;;  %v467_v51 = vmul.f32 %v446_v25, %v178_v44  ;;  %v255_v56 = vpop.f32.mrf.mxu1  ;;  %v501_v57 = vmul.f32 %v484_v38, %v471_v39 }
  0xf6   :  { %v180_v54 = vpop.f32.mrf.mxu0  ;;  %v474_v61 = vsub.f32 %v64_v45, %v466_v52  ;;  %v469_v63 = vmul.f32 %v454_v28, %v255_v56  ;;  %v503_v5 = vmul.f32 %v492_v48, %v473_v50 }
  0xf7   :  { %v475_v60 = vsub.f32 %v65_v43, %v467_v51  ;;  %v468_v62 = vmul.f32 %v450_v27, %v180_v54  ;;  %v257_v1 = vpop.f32.mrf.mxu1  ;;  %v502_v3 = vmul.f32 %v488_v47, %v472_v49 }
  0xf8   :  { %v353_v2 = vpop.f32.mrf.mxu0  ;;  %v477_v8 = vsub.f32 %v67_v55, %v469_v63  ;;  %v470_v9 = vmul.f32 %v458_v33, %v257_v1  ;;  %v504_v14 = vmul.f32 %v496_v59, %v474_v61 }
  0xf9   :  { %v476_v7 = vsub.f32 %v66_v53, %v468_v62  ;;  %v509_v10 = vmul.f32 %v501_v57, %v353_v2  ;;  %v430_v12 = vpop.f32.mrf.mxu1  ;;  %v505_v13 = vmul.f32 %v484_v38, %v475_v60 }
  0xfa   :  { %v355_v11 = vpop.f32.mrf.mxu0  ;;  %v478_v16 = vsub.f32 %v68_v0, %v470_v9  ;;  %v511_v19 = vmul.f32 %v503_v5, %v430_v12  ;;  %v507_v25 = vmul.f32 %v492_v48, %v477_v8 }
  0xfb   :  { %v539_v17 = vadd.f32 %v522_v58, %v509_v10  ;;  %v510_v18 = vmul.f32 %v502_v3, %v355_v11  ;;  %v432_v21 = vpop.f32.mrf.mxu1  ;;  %v506_v22 = vmul.f32 %v488_v47, %v476_v7 }
  0xfc   :  { %v359_v20 = vpop.f32.mrf.mxu0  ;;  %v541_v24 = vadd.f32 %v530_v6, %v511_v19  ;;  %v512_v28 = vmul.f32 %v504_v14, %v432_v21  ;;  %v508_v31 = vmul.f32 %v496_v59, %v478_v16 }
  0xfd   :  { %547 = vst [vmem:[%s785_s7] sm:$0xff] %v539_v17  ;;  %v540_v23 = vadd.f32 %v526_v4, %v510_v18  ;;  %v513_v27 = vmul.f32 %v505_v13, %v359_v20  ;;  %v436_v30 = vpop.f32.mrf.mxu1 }
  0xfe   :  { %v361_v29 = vpop.f32.mrf.mxu0  ;;  %549 = vst [vmem:[%s785_s7 + $0x10] sm:$0xff] %v541_v24  ;;  %v542_v32 = vadd.f32 %v534_v15, %v512_v28  ;;  %v515_v34 = vmul.f32 %v507_v25, %v436_v30 }
  0xff   :  { %548 = vst [vmem:[%s785_s7 + $0x8] sm:$0xff] %v540_v23  ;;  %v543_v26 = vadd.f32 %v522_v58, %v513_v27  ;;  %v514_v33 = vmul.f32 %v506_v22, %v361_v29  ;;  %v438_v35 = vpop.f32.mrf.mxu1 }
 0x100   :  { %550 = vst [vmem:[%s785_s7 + $0x18] sm:$0xff] %v542_v32  ;;  %v545_v37 = vadd.f32 %v530_v6, %v515_v34  ;;  %v516_v38 = vmul.f32 %v508_v31, %v438_v35 }
 0x101   :  { %551 = vst [vmem:[%s785_s7 + $0x20] sm:$0xff] %v543_v26  ;;  %v544_v36 = vadd.f32 %v526_v4, %v514_v33 }
 0x102   :  { %553 = vst [vmem:[%s785_s7 + $0x30] sm:$0xff] %v545_v37  ;;  %v546_v39 = vadd.f32 %v534_v15, %v516_v38 }
 0x103   :  { %552 = vst [vmem:[%s785_s7 + $0x28] sm:$0xff] %v544_v36 }
 0x104   :  { %554 = vst [vmem:[%s785_s7 + $0x38] sm:$0xff] %v546_v39 }
 0x105   :  { %559 = vsyncpa [#allocation3], 1 }
 0x106   :  { %560 = vsyncpa [#allocation5], 1 }

// kernel: gnn_v5_forward.55
= control target key start
LH: loop header
LB: loop body
LE: loop exit
PB: predicated region body
PF: predicated region fallthrough
CT: control target
= control target key end

     0   :  { %10 = vsyncpa [#allocation3], 0  ;;  %s660_s15 = smov [#allocation2]   ;;  %s895_s0 = inlined_call_operand.vmem [shape: f32[16,1024], index: 0, kind: input, shape index: {}]   ;;  %s896_s1 = inlined_call_operand.vmem [shape: f32[16,2], index: 1, kind: input, shape index: {}]   ;;  %s897_s2 = inlined_call_operand.hbm [shape: f32[2,16], index: 2, kind: input, shape index: {}]   ;;  %s898_s3 = inlined_call_operand.vmem [shape: f32[2,1024], index: 3, kind: output, shape index: {0}]   ;;  %s899_s4 = inlined_call_operand.vmem [shape: f32[2,1024], index: 4, kind: output, shape index: {1}]  }
   0x1   :  { %s21_s16 = sshll.u32 %s660_s15, 4  ;;  %s22_s16 = int_to_ptr.vmem [resolvable:$true] %s21_s16 }
   0x2   :  { %s646_s17 = scalar_lea.vmem %s22_s16, 32  ;;  %p651_p1 = scmp.lt.s32.totalorder %s22_s16, %s22_s16 }
   0x3   :  { %p647_p0 = scmp.ne.s32.totalorder %s22_s16, %s646_s17  ;;  %p652_p2 = scmp.lt.s32.totalorder %s646_s17, %s646_s17 }
   0x5   :  { %p653_p3 = por %p652_p2, %p651_p1 }
   0x7   :  { %p654_p4 = pnand %p653_p3, %p647_p0 }
   0x9   :  { %657 = shalt.err (!%p654_p4)
}
   0xa   :  { %24 = dma.hbm_to_vmem [thread:$0]  %s897_s2, 32, %s22_s16, [#allocation3]  }
   0xb   :  { %658 = dma.done.wait [#allocation3], 32  }
   0xc   :  { %659 = vsyncadd [#allocation3], 4294967264  ;;  %v661_v0 = vmov 0.0   ;;  %v662_v1 = vmov 1   ;;  %v663_v2 = vmov 0   ;;  %v696_v3 = vld [vmem:[%s895_s0 + $0x48] sm:$0xff]  ;;  %v358_v26 = vlaneseq }
   0xd   :  { %125 = vmatprep.mubr.f32.mxu0 %v661_v0  ;;  %196 = vmatprep.mubr.f32.mxu1 %v661_v0  ;;  %v701_v4 = vld [vmem:[%s895_s0 + $0x58] sm:$0xff]  ;;  %v706_v5 = vld [vmem:[%s895_s0 + $0x40] sm:$0xff]  ;;  %v713_v6 = vld [vmem:[%s895_s0 + $0x50] sm:$0xff]  ;;  %vm57_vm0 = vcmask 130048   ;;  %v664_v24 = vmov 1983009808  }
   0xe   :  { %636 = vset.pattern.permute.xlu1 %v662_v1  ;;  %635 = vset.pattern.permute.xlu0 %v663_v2  ;;  %v718_v7 = vld [vmem:[%s895_s0 + $0x8] sm:$0xff]  ;;  %v723_v8 = vld [vmem:[%s895_s0 + $0x18] sm:$0xff]  ;;  %v36_v9 = vld [vmem:[%s895_s0] sm:$0xff]  ;;  %v356_v25 = vunpack.c.l.s4 %v664_v24  ;;  %v359_v28 = vshrl.u32 %v358_v26, 7  ;;  %vm559_vm7 = vcmask 1040384  }
   0xf   :  { %89 = vmatprep.subr.mxu0 %v696_v3  ;;  %160 = vmatprep.subr.mxu1 %v701_v4  ;;  %v38_v10 = vld [vmem:[%s895_s0 + $0x10] sm:$0xff]  ;;  %v54_v11 = vld [vmem:[#allocation2] sm:$0x3]  ;;  %v738_v12 = vld [vmem:[%s895_s0 + $0x68] sm:$0xff] }
  0x10   :  { %90 = vmatpush1.msra.mxu0 %v706_v5  ;;  %161 = vmatpush1.msra.mxu1 %v713_v6  ;;  %v743_v13 = vld [vmem:[%s895_s0 + $0x78] sm:$0xff]  ;;  %v748_v14 = vld [vmem:[%s895_s0 + $0x60] sm:$0xff]  ;;  %v753_v15 = vld [vmem:[%s895_s0 + $0x70] sm:$0xff]  ;;  %v357_v27 = vunpack.c.0.s8 %v356_v25 }
  0x11   :  { %91 = vmatprep.subr.mxu0 %v718_v7  ;;  %162 = vmatprep.subr.mxu1 %v723_v8  ;;  %v41_v16 = vld [vmem:[%s895_s0 + $0x28] sm:$0xff]  ;;  %v43_v17 = vld [vmem:[%s895_s0 + $0x38] sm:$0xff]  ;;  %v52_v18 = vld [vmem:[%s896_s1] sm:$0xff] }
  0x12   :  { %92 = vmatpush1.msra.mxu0 %v36_v9  ;;  %163 = vmatpush1.msra.mxu1 %v38_v10  ;;  %v40_v19 = vld [vmem:[%s895_s0 + $0x20] sm:$0xff]  ;;  %vm393_vm1 = vcmp.gt.f32.partialorder %v52_v18, 0.0  ;;  %v42_v20 = vld [vmem:[%s895_s0 + $0x30] sm:$0xff]  ;;  %v53_v21 = vld [vmem:[%s896_s1 + $0x8] sm:$0xff]  ;;  %v781_v32 = vsub.s32 %v357_v27, %v359_v28 }
  0x13   :  { %625 = vmatmul.mubr.msk.f32.vlgmr.msra.gmra.mxu0 %vm57_vm0, %v54_v11  ;;  %626 = vmatmul.mubr.msk.f32.vlgmr.msra.gmra.mxu1 %vm57_vm0, %v54_v11  ;;  %v395_v22 = vsel %vm393_vm1, 1, %v663_v2  ;;  %vm394_vm2 = vcmp.gt.f32.partialorder %v53_v21, 0.0 }
  0x14   :  { %231 = vmatprep.subr.mxu0 %v738_v12  ;;  %302 = vmatprep.subr.mxu1 %v743_v13  ;;  %v396_v23 = vsel %vm394_vm2, 1, %v663_v2 }
  0x15   :  { %232 = vmatpush1.msra.mxu0 %v748_v14  ;;  %303 = vmatpush1.msra.mxu1 %v753_v15 }
  0x16   :  { %233 = vmatprep.subr.mxu0 %v41_v16  ;;  %304 = vmatprep.subr.mxu1 %v43_v17 }
  0x17   :  { %234 = vmatpush1.msra.mxu0 %v40_v19  ;;  %267 = vmatprep.mubr.f32.mxu0 %v661_v0 }
  0x18   :  { %305 = vmatpush1.msra.mxu1 %v42_v20  ;;  %338 = vmatprep.mubr.f32.mxu1 %v661_v0 }
  0x19   :  { %627 = vmatmul.mubr.msk.f32.vlgmr.msra.gmra.mxu0 %vm57_vm0, %v54_v11  ;;  %628 = vmatmul.mubr.msk.f32.vlgmr.msra.gmra.mxu1 %vm57_vm0, %v54_v11 }
  0x1a   :  { %478 = vperm.xlu1 %636, %v395_v22   ;;  %398 = vperm.xlu0 %635, %v395_v22  }
  0x1e   :  { %481 = vperm.xlu1 %636, %v396_v23   ;;  %401 = vperm.xlu0 %635, %v396_v23  }
  0x22   :  { %637 = vset.pattern.permute.xlu0 %v662_v1 }
  0x95   :  { %v479_v29 = vpop.permute.xlu1 %478  ;;  %v399_v30 = vpop.permute.xlu0 %398 }
  0x96   :  { %vm483_vm3 = vcmp.eq.s32.totalorder %v479_v29, 1  ;;  %vm403_vm4 = vcmp.eq.s32.totalorder %v399_v30, 1 }
  0x97   :  { %v485_v31 = vsel %vm483_vm3, %v36_v9, -inf  ;;  %v486_v33 = vsel %vm483_vm3, %v718_v7, -inf  ;;  %v487_v34 = vsel %vm483_vm3, %v38_v10, -inf  ;;  %v488_v35 = vsel %vm483_vm3, %v723_v8, -inf }
  0x98   :  { %v489_v36 = vsel %vm483_vm3, %v40_v19, -inf  ;;  %v490_v37 = vsel %vm483_vm3, %v41_v16, -inf  ;;  %v491_v38 = vsel %vm483_vm3, %v42_v20, -inf  ;;  %v492_v39 = vsel %vm483_vm3, %v43_v17, -inf }
  0x99   :  { %v786_v40 = vsel %vm403_vm4, %v36_v9, -inf  ;;  %v482_v41 = vpop.permute.xlu1 %481  ;;  %v790_v42 = vsel %vm403_vm4, %v718_v7, -inf  ;;  %v793_v43 = vsel %vm403_vm4, %v38_v10, -inf  ;;  %v797_v44 = vsel %vm403_vm4, %v723_v8, -inf  ;;  %v402_v61 = vpop.permute.xlu0 %401 }
  0x9a   :  { %v800_v45 = vsel %vm403_vm4, %v40_v19, -inf  ;;  %v803_v46 = vsel %vm403_vm4, %v41_v16, -inf  ;;  %v806_v47 = vsel %vm403_vm4, %v42_v20, -inf  ;;  %v809_v48 = vsel %vm403_vm4, %v43_v17, -inf }
  0x9b   :  { %vm484_vm5 = vcmp.eq.s32.totalorder %v482_v41, 1  ;;  %vm404_vm6 = vcmp.eq.s32.totalorder %v402_v61, 1 }
  0x9c   :  { %v493_v49 = vsel %vm484_vm5, %v706_v5, -inf  ;;  %v494_v50 = vsel %vm484_vm5, %v696_v3, -inf  ;;  %v495_v51 = vsel %vm484_vm5, %v713_v6, -inf  ;;  %v496_v52 = vsel %vm484_vm5, %v701_v4, -inf }
  0x9d   :  { %v497_v53 = vsel %vm484_vm5, %v748_v14, -inf  ;;  %v498_v54 = vsel %vm484_vm5, %v738_v12, -inf  ;;  %v499_v55 = vsel %vm484_vm5, %v753_v15, -inf  ;;  %v500_v56 = vsel %vm484_vm5, %v743_v13, -inf }
  0x9e   :  { %v501_v57 = vmax.f32 %v485_v31, %v493_v49  ;;  %v508_v58 = vmax.f32 %v486_v33, %v494_v50  ;;  %v515_v59 = vmax.f32 %v487_v34, %v495_v51  ;;  %v522_v60 = vmax.f32 %v488_v35, %v496_v52 }
  0x9f   :  { %v529_v62 = vmax.f32 %v489_v36, %v497_v53  ;;  %v536_v63 = vmax.f32 %v490_v37, %v498_v54  ;;  %v543_v0 = vmax.f32 %v491_v38, %v499_v55  ;;  %v550_v1 = vmax.f32 %v492_v39, %v500_v56 }
  0xa0   :  { %v502_v2 = vrot.slane %v501_v57, 4  ;;  %v509_v7 = vrot.slane %v508_v58, 4  ;;  %v516_v8 = vrot.slane %v515_v59, 4  ;;  %v523_v9 = vrot.slane %v522_v60, 4 }
  0xa1   :  { %v530_v10 = vrot.slane %v529_v62, 4  ;;  %v537_v11 = vrot.slane %v536_v63, 4  ;;  %v544_v16 = vrot.slane %v543_v0, 4  ;;  %v551_v17 = vrot.slane %v550_v1, 4 }
  0xa2   :  { %v503_v18 = vmax.f32 %v501_v57, %v502_v2  ;;  %v510_v19 = vmax.f32 %v508_v58, %v509_v7  ;;  %v517_v20 = vmax.f32 %v515_v59, %v516_v8  ;;  %v524_v21 = vmax.f32 %v522_v60, %v523_v9 }
  0xa3   :  { %v531_v22 = vmax.f32 %v529_v62, %v530_v10  ;;  %v538_v23 = vmax.f32 %v536_v63, %v537_v11  ;;  %v545_v24 = vmax.f32 %v543_v0, %v544_v16  ;;  %v552_v25 = vmax.f32 %v550_v1, %v551_v17 }
  0xa4   :  { %v504_v26 = vrot.slane %v503_v18, 2  ;;  %v511_v27 = vrot.slane %v510_v19, 2  ;;  %v518_v28 = vrot.slane %v517_v20, 2  ;;  %v525_v29 = vrot.slane %v524_v21, 2 }
  0xa5   :  { %v532_v30 = vrot.slane %v531_v22, 2  ;;  %v539_v31 = vrot.slane %v538_v23, 2  ;;  %v546_v33 = vrot.slane %v545_v24, 2  ;;  %v553_v34 = vrot.slane %v552_v25, 2 }
  0xa6   :  { %v505_v35 = vmax.f32 %v503_v18, %v504_v26  ;;  %v512_v36 = vmax.f32 %v510_v19, %v511_v27  ;;  %v519_v37 = vmax.f32 %v517_v20, %v518_v28  ;;  %v526_v38 = vmax.f32 %v524_v21, %v525_v29 }
  0xa7   :  { %v533_v39 = vmax.f32 %v531_v22, %v532_v30  ;;  %v540_v41 = vmax.f32 %v538_v23, %v539_v31  ;;  %v547_v49 = vmax.f32 %v545_v24, %v546_v33  ;;  %v554_v50 = vmax.f32 %v552_v25, %v553_v34 }
  0xa8   :  { %v506_v51 = vrot.slane %v505_v35, 1  ;;  %v513_v52 = vrot.slane %v512_v36, 1  ;;  %v520_v53 = vrot.slane %v519_v37, 1  ;;  %v527_v54 = vrot.slane %v526_v38, 1 }
  0xa9   :  { %v534_v55 = vrot.slane %v533_v39, 1  ;;  %v541_v56 = vrot.slane %v540_v41, 1  ;;  %v548_v57 = vrot.slane %v547_v49, 1  ;;  %v555_v58 = vrot.slane %v554_v50, 1 }
  0xaa   :  { %v819_v59 = vmax.f32 %v505_v35, %v506_v51  ;;  %v821_v60 = vmax.f32 %v512_v36, %v513_v52  ;;  %v823_v62 = vmax.f32 %v519_v37, %v520_v53  ;;  %v825_v63 = vmax.f32 %v526_v38, %v527_v54 }
  0xab   :  { %v827_v0 = vmax.f32 %v533_v39, %v534_v55  ;;  %v829_v1 = vmax.f32 %v540_v41, %v541_v56  ;;  %v831_v2 = vmax.f32 %v547_v49, %v548_v57  ;;  %v833_v7 = vmax.f32 %v554_v50, %v555_v58 }
  0xac   :  { %v413_v8 = vsel %vm404_vm6, %v706_v5, -inf  ;;  %v414_v9 = vsel %vm404_vm6, %v696_v3, -inf  ;;  %v415_v10 = vsel %vm404_vm6, %v713_v6, -inf  ;;  %v416_v11 = vsel %vm404_vm6, %v701_v4, -inf }
  0xad   :  { %v417_v16 = vsel %vm404_vm6, %v748_v14, -inf  ;;  %v418_v17 = vsel %vm404_vm6, %v738_v12, -inf  ;;  %v419_v18 = vsel %vm404_vm6, %v753_v15, -inf  ;;  %v420_v5 = vsel %vm404_vm6, %v743_v13, -inf }
  0xae   :  { %v421_v3 = vmax.f32 %v786_v40, %v413_v8  ;;  %v428_v19 = vmax.f32 %v790_v42, %v414_v9  ;;  %v435_v6 = vmax.f32 %v793_v43, %v415_v10  ;;  %v442_v4 = vmax.f32 %v797_v44, %v416_v11 }
  0xaf   :  { %v449_v20 = vmax.f32 %v800_v45, %v417_v16  ;;  %v456_v14 = vmax.f32 %v803_v46, %v418_v17  ;;  %v463_v12 = vmax.f32 %v806_v47, %v419_v18  ;;  %v470_v21 = vmax.f32 %v809_v48, %v420_v5 }
  0xb0   :  { %v422_v15 = vrot.slane %v421_v3, 4  ;;  %v429_v22 = vrot.slane %v428_v19, 4  ;;  %v436_v61 = vrot.slane %v435_v6, 4  ;;  %v443_v13 = vrot.slane %v442_v4, 4 }
  0xb1   :  { %v450_v40 = vrot.slane %v449_v20, 4  ;;  %v457_v23 = vrot.slane %v456_v14, 4  ;;  %v464_v42 = vrot.slane %v463_v12, 4  ;;  %v471_v24 = vrot.slane %v470_v21, 4 }
  0xb2   :  { %v423_v43 = vmax.f32 %v421_v3, %v422_v15  ;;  %v430_v25 = vmax.f32 %v428_v19, %v429_v22  ;;  %v437_v44 = vmax.f32 %v435_v6, %v436_v61  ;;  %v444_v26 = vmax.f32 %v442_v4, %v443_v13 }
  0xb3   :  { %v451_v45 = vmax.f32 %v449_v20, %v450_v40  ;;  %v458_v27 = vmax.f32 %v456_v14, %v457_v23  ;;  %v465_v46 = vmax.f32 %v463_v12, %v464_v42  ;;  %v472_v28 = vmax.f32 %v470_v21, %v471_v24 }
  0xb4   :  { %v424_v47 = vrot.slane %v423_v43, 2  ;;  %v431_v29 = vrot.slane %v430_v25, 2  ;;  %v438_v48 = vrot.slane %v437_v44, 2  ;;  %v445_v30 = vrot.slane %v444_v26, 2 }
  0xb5   :  { %v452_v31 = vrot.slane %v451_v45, 2  ;;  %v459_v33 = vrot.slane %v458_v27, 2  ;;  %v466_v34 = vrot.slane %v465_v46, 2  ;;  %v473_v35 = vrot.slane %v472_v28, 2 }
  0xb6   :  { %v425_v36 = vmax.f32 %v423_v43, %v424_v47  ;;  %v432_v37 = vmax.f32 %v430_v25, %v431_v29  ;;  %v439_v38 = vmax.f32 %v437_v44, %v438_v48  ;;  %v446_v39 = vmax.f32 %v444_v26, %v445_v30 }
  0xb7   :  { %v453_v41 = vmax.f32 %v451_v45, %v452_v31  ;;  %v460_v49 = vmax.f32 %v458_v27, %v459_v33  ;;  %v467_v50 = vmax.f32 %v465_v46, %v466_v34  ;;  %v474_v51 = vmax.f32 %v472_v28, %v473_v35 }
  0xb8   :  { %v426_v52 = vrot.slane %v425_v36, 1  ;;  %v433_v53 = vrot.slane %v432_v37, 1  ;;  %v440_v54 = vrot.slane %v439_v38, 1  ;;  %v447_v55 = vrot.slane %v446_v39, 1 }
  0xb9   :  { %v454_v56 = vrot.slane %v453_v41, 1  ;;  %v461_v57 = vrot.slane %v460_v49, 1  ;;  %v468_v58 = vrot.slane %v467_v50, 1  ;;  %v475_v8 = vrot.slane %v474_v51, 1 }
  0xba   :  { %v427_v9 = vmax.f32 %v425_v36, %v426_v52  ;;  %v434_v10 = vmax.f32 %v432_v37, %v433_v53  ;;  %v441_v11 = vmax.f32 %v439_v38, %v440_v54  ;;  %v448_v16 = vmax.f32 %v446_v39, %v447_v55 }
  0xbb   :  { %v455_v17 = vmax.f32 %v453_v41, %v454_v56  ;;  %v462_v18 = vmax.f32 %v460_v49, %v461_v57  ;;  %v469_v5 = vmax.f32 %v467_v50, %v468_v58  ;;  %v476_v3 = vmax.f32 %v474_v51, %v475_v8 }
  0xbc   :  { %v560_v19 = vsel %vm559_vm7, %v427_v9, %v819_v59  ;;  %v561_v6 = vsel %vm559_vm7, %v434_v10, %v821_v60  ;;  %v562_v4 = vsel %vm559_vm7, %v441_v11, %v823_v62  ;;  %v563_v20 = vsel %vm559_vm7, %v448_v16, %v825_v63 }
  0xbd   :  { %v564_v14 = vsel %vm559_vm7, %v455_v17, %v827_v0  ;;  %v565_v12 = vsel %vm559_vm7, %v462_v18, %v829_v1  ;;  %v566_v21 = vsel %vm559_vm7, %v469_v5, %v831_v2  ;;  %v567_v59 = vsel %vm559_vm7, %v476_v3, %v833_v7 }
  0xbe   :  { %v576_v15 = vcombine.low %v560_v19, %v561_v6  ;;  %v577_v60 = vcombine.low %v562_v4, %v563_v20  ;;  %v593_v22 = vcombine.low %v564_v14, %v565_v12  ;;  %v594_v61 = vcombine.low %v566_v21, %v567_v59 }
  0xc0   :  { %v584_v62 = vrot.slane %v576_v15, %v781_v32  ;;  %v591_v63 = vrot.slane %v577_v60, %v781_v32  ;;  %v601_v13 = vrot.slane %v593_v22, %v781_v32  ;;  %v608_v0 = vrot.slane %v594_v61, %v781_v32 }
  0xc2   :  { %v592_v40 = vcombine.low %v584_v62, %v591_v63  ;;  %v609_v1 = vcombine.low %v601_v13, %v608_v0 }
  0xc4   :  { %614 = vst [vmem:[%s899_s4] sm:$0xff] %v592_v40  ;;  %615 = vst [vmem:[%s899_s4 + $0x8] sm:$0xff] %v609_v1 }
  0xd3   :  { %v127_v2 = vpop.f32.mrf.mxu0  ;;  %v198_v7 = vpop.f32.mrf.mxu1 }
  0xd5   :  { %v129_v23 = vpop.f32.mrf.mxu0  ;;  %v200_v42 = vpop.f32.mrf.mxu1 }
  0xd6   :  { %v353_v24 = vcombine.low %v127_v2, %v129_v23  ;;  %v354_v43 = vcombine.low %v198_v7, %v200_v42 }
  0xd8   :  { %v361_v25 = vrot.slane %v353_v24, %v781_v32  ;;  %v368_v44 = vrot.slane %v354_v43, %v781_v32 }
  0xd9   :  { %v269_v26 = vpop.f32.mrf.mxu0  ;;  %v340_v45 = vpop.f32.mrf.mxu1 }
  0xda   :  { %v369_v27 = vcombine.low %v361_v25, %v368_v44 }
  0xdb   :  { %v271_v46 = vpop.f32.mrf.mxu0  ;;  %v342_v28 = vpop.f32.mrf.mxu1 }
  0xdc   :  { %v370_v47 = vcombine.low %v269_v26, %v271_v46  ;;  %v371_v29 = vcombine.low %v340_v45, %v342_v28  ;;  %391 = vst [vmem:[%s898_s3] sm:$0xff] %v369_v27 }
  0xde   :  { %v378_v48 = vrot.slane %v370_v47, %v781_v32  ;;  %v385_v30 = vrot.slane %v371_v29, %v781_v32 }
  0xe0   :  { %v386_v31 = vcombine.low %v378_v48, %v385_v30 }
  0xe2   :  { %392 = vst [vmem:[%s898_s3 + $0x8] sm:$0xff] %v386_v31 }
  0xe3   :  { %624 = vsyncpa [#allocation3], 1 }

// kernel: gnn_v5_forward.39
= control target key start
LH: loop header
LB: loop body
LE: loop exit
PB: predicated region body
PF: predicated region fallthrough
CT: control target
= control target key end

     0   :  { %10 = vsyncpa [#allocation6], 0  ;;  %s6362_s0 = inlined_call_operand.vmem [shape: f32[16,512], index: 0, kind: input, shape index: {}]   ;;  %s6363_s1 = inlined_call_operand.vmem [shape: f32[16,512], index: 1, kind: input, shape index: {}]   ;;  %s6364_s2 = inlined_call_operand.hbm [shape: f32[1,512], index: 2, kind: input, shape index: {}]   ;;  %s6365_s3 = inlined_call_operand.vmem [shape: f32[16,16], index: 3, kind: input, shape index: {}]   ;;  %s6366_s4 = inlined_call_operand.hbm [shape: f32[1,512], index: 4, kind: input, shape index: {}]   ;;  %s6367_s5 = inlined_call_operand.vmem [shape: f32[16,512], index: 5, kind: output, shape index: {}]  }
   0x1   :  { %11 = vsyncpa [#allocation8], 0  ;;  %s3742_s18 = smov [#allocation5]   ;;  %s3743_s20 = smov [#allocation7]  }
   0x2   :  { %s22_s19 = sshll.u32 %s3742_s18, 4  ;;  %s34_s21 = sshll.u32 %s3743_s20, 4  ;;  %s23_s19 = int_to_ptr.vmem [resolvable:$true] %s22_s19  ;;  %s35_s21 = int_to_ptr.vmem [resolvable:$true] %s34_s21 }
   0x3   :  { %s3706_s22 = scalar_lea.vmem %s23_s19, 64  ;;  %p3711_p1 = scmp.lt.s32.totalorder %s23_s19, %s23_s19 }
   0x4   :  { %p3707_p0 = scmp.ne.s32.totalorder %s23_s19, %s3706_s22  ;;  %p3712_p2 = scmp.lt.s32.totalorder %s3706_s22, %s3706_s22 }
   0x6   :  { %p3713_p3 = por %p3712_p2, %p3711_p1 }
   0x8   :  { %p3714_p4 = pnand %p3713_p3, %p3707_p0 }
   0xa   :  { %3717 = shalt.err (!%p3714_p4)
}
   0xb   :  { %25 = dma.hbm_to_vmem [thread:$0]  %s6364_s2, 64, %s23_s19, [#allocation6]  }
   0xc   :  { %s3726_s25 = scalar_lea.vmem %s35_s21, 64  ;;  %p3731_p6 = scmp.lt.s32.totalorder %s35_s21, %s35_s21 }
   0xd   :  { %p3727_p5 = scmp.ne.s32.totalorder %s35_s21, %s3726_s25  ;;  %p3732_p7 = scmp.lt.s32.totalorder %s3726_s25, %s3726_s25 }
   0xf   :  { %p3733_p8 = por %p3732_p7, %p3731_p6 }
  0x11   :  { %p3734_p9 = pnand %p3733_p8, %p3727_p5 }
  0x13   :  { %3737 = shalt.err (!%p3734_p9)
}
  0x14   :  { %37 = dma.hbm_to_vmem [thread:$0]  %s6366_s4, 64, %s35_s21, [#allocation8]  }
  0x15   :  { %3738 = dma.done.wait [#allocation6], 64  }
  0x16   :  { %3739 = vsyncadd [#allocation6], 4294967232 }
  0x17   :  { %3740 = dma.done.wait [#allocation8], 64  }
  0x18   :  { %3741 = vsyncadd [#allocation8], 4294967232  ;;  %v6368_v0 = vlaneseq  ;;  %v3744_v1 = vmov 1966171168   ;;  %v69_v6 = vld [vmem:[%s6363_s1] sm:$0xff]  ;;  %vm426_vm0 = vcmask 523264  }
  0x19   :  { %v84_v2 = vunpack.c.l.s4 %v3744_v1  ;;  %v82_v7 = vcombine.high %v69_v6, %v69_v6  ;;  %v3801_v10 = vld [vmem:[%s6363_s1 + $0x20] sm:$0xff]  ;;  %s3745_s9 = smov 64  }
  0x1a   :  { %v3786_v3 = vshrl.u32 %v6368_v0, 7  ;;  %v3807_v12 = vld [vmem:[#allocation5] sm:$0xf] }
  0x1b   :  { %v85_v4 = vunpack.c.0.s8 %v84_v2  ;;  %v3814_v16 = vld [vmem:[%s6362_s0] sm:$0xff] }
  0x1c   :  { %6403 = vst [vmem:[#allocation11_spill] sm:$0xff] %v3786_v3  ;;  %v3796_v9 = vsub.s32 0, %v3786_v3  ;;  %v3819_v17 = vld [vmem:[%s6362_s0 + $0x20] sm:$0xff] }
  0x1d   :  { %v3789_v5 = vsub.s32 %v85_v4, %v3786_v3 }
  0x1e   :  { %6404 = vst [vmem:[#allocation12_spill] sm:$0xff] %v3796_v9  ;;  %v3832_v23 = vrot.slane %v3807_v12, %v3796_v9 }
  0x1f   :  { %v89_v8 = vrot.slane %v69_v6, %v3789_v5  ;;  %v3805_v11 = vrot.slane %v3801_v10, %v3789_v5  ;;  %v96_v15 = vrot.slane %v82_v7, %v3789_v5 }
  0x21   :  { %v105_v13 = vrot.slane %v89_v8, %v3789_v5  ;;  %v97_v14 = vcombine.high %v89_v8, %v89_v8  ;;  %v3823_v18 = vrot.slane %v3805_v11, %v3789_v5  ;;  %v3828_v22 = vrot.slane %v96_v15, %v3789_v5 }
  0x22   :  { %v98_v24 = vcombine.high %v96_v15, %v96_v15  ;;  %v146_v25 = vcombine.high %v3805_v11, %v3805_v11 }
  0x23   :  { %v183_v19 = vrot.slane %v105_v13, %v3796_v9  ;;  %v119_v20 = vrot.slane %v97_v14, %v3789_v5  ;;  %v127_v21 = vcombine.high %v105_v13, %v105_v13  ;;  %v199_v30 = vrot.slane %v3828_v22, %v3796_v9 }
  0x24   :  { %v3843_v32 = vrot.slane %v98_v24, %v3789_v5  ;;  %v3847_v33 = vrot.slane %v3823_v18, %v3796_v9  ;;  %v128_v62 = vcombine.high %v3828_v22, %v3828_v22 }
  0x25   :  { %v260_v26 = vadd.f32 %v183_v19, %v3814_v16  ;;  %v187_v27 = vrot.slane %v119_v20, %v3796_v9  ;;  %v261_v28 = vadd.f32 %v183_v19, %v3819_v17  ;;  %v191_v29 = vrot.slane %v127_v21, %v3796_v9 }
  0x26   :  { %v129_v31 = vcombine.high %v119_v20, %v119_v20  ;;  %v268_v42 = vadd.f32 %v199_v30, %v3814_v16  ;;  %v269_v60 = vadd.f32 %v199_v30, %v3819_v17  ;;  %v203_v4 = vrot.slane %v3843_v32, %v3796_v9 }
  0x27   :  { %vm292_vm1 = vcmp.gt.f32.partialorder %v260_v26, 0.0  ;;  %v324_v34 = vmul.f32 0.2, %v260_v26  ;;  %v262_v35 = vadd.f32 %v187_v27, %v3814_v16  ;;  %vm293_vm2 = vcmp.gt.f32.partialorder %v261_v28, 0.0 }
  0x28   :  { %v325_v36 = vmul.f32 0.2, %v261_v28  ;;  %v263_v37 = vadd.f32 %v187_v27, %v3819_v17  ;;  %v264_v38 = vadd.f32 %v191_v29, %v3814_v16  ;;  %v265_v39 = vadd.f32 %v191_v29, %v3819_v17 }
  0x29   :  { %v356_v40 = vsel %vm292_vm1, %v260_v26, %v324_v34  ;;  %vm294_vm3 = vcmp.gt.f32.partialorder %v262_v35, 0.0  ;;  %v326_v41 = vmul.f32 0.2, %v262_v35  ;;  %vm300_vm7 = vcmp.gt.f32.partialorder %v268_v42, 0.0 }
  0x2a   :  { %v3855_v43 = vmul.f32 %v3832_v23, %v356_v40  ;;  %v357_v44 = vsel %vm293_vm2, %v261_v28, %v325_v36  ;;  %vm295_vm4 = vcmp.gt.f32.partialorder %v263_v37, 0.0  ;;  %v327_v45 = vmul.f32 0.2, %v263_v37 }
  0x2b   :  { %v358_v46 = vsel %vm294_vm3, %v262_v35, %v326_v41  ;;  %v3858_v47 = vmul.f32 %v3832_v23, %v357_v44  ;;  %vm296_vm5 = vcmp.gt.f32.partialorder %v264_v38, 0.0  ;;  %v328_v48 = vmul.f32 0.2, %v264_v38 }
  0x2c   :  { %v427_v49 = vsel %vm426_vm0, %v3855_v43, 0.0  ;;  %v3863_v50 = vmul.f32 %v3832_v23, %v358_v46  ;;  %v359_v51 = vsel %vm295_vm4, %v263_v37, %v327_v45  ;;  %vm297_vm6 = vcmp.gt.f32.partialorder %v265_v39, 0.0 }
  0x2d   :  { %428 = vadd.xlane.f32.xlu0 %v427_v49  ;;  %v430_v52 = vsel %vm426_vm0, %v3858_v47, 0.0  ;;  %v3868_v53 = vmul.f32 %v3832_v23, %v359_v51  ;;  %v360_v54 = vsel %vm296_vm5, %v264_v38, %v328_v48  ;;  %v329_v55 = vmul.f32 0.2, %v265_v39 }
  0x2e   :  { %v433_v56 = vsel %vm426_vm0, %v3863_v50, 0.0  ;;  %v3873_v57 = vmul.f32 %v3832_v23, %v360_v54  ;;  %v332_v58 = vmul.f32 0.2, %v268_v42  ;;  %v195_v61 = vrot.slane %v129_v31, %v3796_v9 }
  0x2f   :  { %434 = vadd.xlane.f32.xlu1 %v433_v56  ;;  %v361_v59 = vsel %vm297_vm6, %v265_v39, %v329_v55  ;;  %v436_v63 = vsel %vm426_vm0, %v3868_v53, 0.0  ;;  %vm301_vm8 = vcmp.gt.f32.partialorder %v269_v60, 0.0  ;;  %v333_v7 = vmul.f32 0.2, %v269_v60 }
  0x30   :  { %v3882_v1 = vmul.f32 %v3832_v23, %v361_v59  ;;  %v364_v2 = vsel %vm300_vm7, %v268_v42, %v332_v58  ;;  %v266_v8 = vadd.f32 %v195_v61, %v3814_v16  ;;  %v439_v13 = vsel %vm426_vm0, %v3873_v57, 0.0 }
  0x31   :  { %431 = vadd.xlane.f32.xlu0 %v430_v52  ;;  %v3887_v6 = vmul.f32 %v3832_v23, %v364_v2  ;;  %v267_v14 = vadd.f32 %v195_v61, %v3819_v17  ;;  %v270_v15 = vadd.f32 %v203_v4, %v3814_v16  ;;  %v271_v19 = vadd.f32 %v203_v4, %v3819_v17 }
  0x32   :  { %v442_v20 = vsel %vm426_vm0, %v3882_v1, 0.0  ;;  %v365_v21 = vsel %vm301_vm8, %v269_v60, %v333_v7  ;;  %vm298_vm9 = vcmp.gt.f32.partialorder %v266_v8, 0.0  ;;  %v330_v22 = vmul.f32 0.2, %v266_v8 }
  0x33   :  { %437 = vadd.xlane.f32.xlu1 %v436_v63  ;;  %v3898_v24 = vmul.f32 %v3832_v23, %v365_v21  ;;  %vm299_vm10 = vcmp.gt.f32.partialorder %v267_v14, 0.0  ;;  %v331_v26 = vmul.f32 0.2, %v267_v14  ;;  %vm302_vm11 = vcmp.gt.f32.partialorder %v270_v15, 0.0 }
  0x34   :  { %v451_v27 = vsel %vm426_vm0, %v3887_v6, 0.0  ;;  %v362_v28 = vsel %vm298_vm9, %v266_v8, %v330_v22  ;;  %v334_v29 = vmul.f32 0.2, %v270_v15  ;;  %v335_v30 = vmul.f32 0.2, %v271_v19 }
  0x35   :  { %440 = vadd.xlane.f32.xlu0 %v439_v13  ;;  %v3903_v31 = vmul.f32 %v3832_v23, %v362_v28  ;;  %v363_v34 = vsel %vm299_vm10, %v267_v14, %v331_v26  ;;  %vm303_vm12 = vcmp.gt.f32.partialorder %v271_v19, 0.0  ;;  %v207_v35 = vrot.slane %v128_v62, %v3796_v9 }
  0x36   :  { %v366_v36 = vsel %vm302_vm11, %v270_v15, %v334_v29  ;;  %v130_v37 = vcombine.high %v3843_v32, %v3843_v32  ;;  %v131_v38 = vcombine.high %v3801_v10, %v3801_v10  ;;  %v454_v39 = vsel %vm426_vm0, %v3898_v24, 0.0 }
  0x37   :  { %443 = vadd.xlane.f32.xlu1 %v442_v20  ;;  %v3913_v40 = vmul.f32 %v3832_v23, %v363_v34  ;;  %v272_v41 = vadd.f32 %v207_v35, %v3814_v16  ;;  %v168_v42 = vrot.slane %v146_v25, %v3789_v5  ;;  %v445_v32 = vsel %vm426_vm0, %v3903_v31, 0.0 }
  0x38   :  { %v367_v44 = vsel %vm303_vm12, %v271_v19, %v335_v30  ;;  %v273_v10 = vadd.f32 %v207_v35, %v3819_v17  ;;  %v211_v45 = vrot.slane %v130_v37, %v3796_v9  ;;  %v3925_v46 = vmul.f32 %v3832_v23, %v366_v36 }
  0x39   :  { %452 = vadd.xlane.f32.xlu0 %v451_v27  ;;  %vm304_vm13 = vcmp.gt.f32.partialorder %v272_v41, 0.0  ;;  %v336_v48 = vmul.f32 0.2, %v272_v41  ;;  %v276_v49 = vadd.f32 %v3847_v33, %v3814_v16  ;;  %v448_v52 = vsel %vm426_vm0, %v3913_v40, 0.0 }
  0x3a   :  { %vm305_vm14 = vcmp.gt.f32.partialorder %v273_v10, 0.0  ;;  %v337_v11 = vmul.f32 0.2, %v273_v10  ;;  %v274_v25 = vadd.f32 %v211_v45, %v3814_v16  ;;  %v275_v51 = vadd.f32 %v211_v45, %v3819_v17 }
  0x3b   :  { %455 = vadd.xlane.f32.xlu1 %v454_v39  ;;  %v3934_v54 = vmul.f32 %v3832_v23, %v367_v44  ;;  %v368_v55 = vsel %vm304_vm13, %v272_v41, %v336_v48  ;;  %v176_v56 = vcombine.high %v3823_v18, %v3823_v18  ;;  %v277_v60 = vadd.f32 %v3847_v33, %v3819_v17 }
  0x3c   :  { %v369_v58 = vsel %vm305_vm14, %v273_v10, %v337_v11  ;;  %vm306_vm15 = vcmp.gt.f32.partialorder %v274_v25, 0.0  ;;  %v338_v59 = vmul.f32 0.2, %v274_v25  ;;  %v457_v61 = vsel %vm426_vm0, %v3925_v46, 0.0 }
  0x3d   :  { %446 = vadd.xlane.f32.xlu0 %v445_v32  ;;  %v3943_v62 = vmul.f32 %v3832_v23, %v368_v55  ;;  %vm307_vm1 = vcmp.gt.f32.partialorder %v275_v51, 0.0  ;;  %v339_v63 = vmul.f32 0.2, %v275_v51  ;;  %v340_v4 = vmul.f32 0.2, %v276_v49 }
  0x3e   :  { %v370_v2 = vsel %vm306_vm15, %v274_v25, %v338_v59  ;;  %v3946_v18 = vrot.slane %v131_v38, %v3789_v5  ;;  %v460_v7 = vsel %vm426_vm0, %v3934_v54, 0.0  ;;  %v3951_v8 = vmul.f32 %v3832_v23, %v369_v58 }
  0x3f   :  { %449 = vadd.xlane.f32.xlu1 %v448_v52  ;;  %vm308_vm2 = vcmp.gt.f32.partialorder %v276_v49, 0.0  ;;  %v371_v33 = vsel %vm307_vm1, %v275_v51, %v339_v63  ;;  %v341_v13 = vmul.f32 0.2, %v277_v60  ;;  %v219_v14 = vrot.slane %v168_v42, %v3796_v9 }
  0x40   :  { %v223_v15 = vrot.slane %v176_v56, %v3796_v9  ;;  %v463_v19 = vsel %vm426_vm0, %v3943_v62, 0.0  ;;  %v3958_v20 = vmul.f32 %v3832_v23, %v370_v2  ;;  %vm309_vm3 = vcmp.gt.f32.partialorder %v277_v60, 0.0 }
  0x41   :  { %458 = vadd.xlane.f32.xlu0 %v457_v61  ;;  %v178_v21 = vcombine.high %v168_v42, %v168_v42  ;;  %v372_v22 = vsel %vm308_vm2, %v276_v49, %v340_v4  ;;  %v278_v26 = vadd.f32 %v219_v14, %v3814_v16  ;;  %v279_v27 = vadd.f32 %v219_v14, %v3819_v17 }
  0x42   :  { %v161_v28 = vrot.slane %v3946_v18, %v3789_v5  ;;  %v466_v29 = vsel %vm426_vm0, %v3951_v8, 0.0  ;;  %v3967_v30 = vmul.f32 %v3832_v23, %v371_v33  ;;  %v280_v34 = vadd.f32 %v223_v15, %v3814_v16 }
  0x43   :  { %461 = vadd.xlane.f32.xlu1 %v460_v7  ;;  %v227_v35 = vrot.slane %v178_v21, %v3796_v9  ;;  %v373_v36 = vsel %vm309_vm3, %v277_v60, %v341_v13  ;;  %vm310_vm4 = vcmp.gt.f32.partialorder %v278_v26, 0.0  ;;  %v342_v37 = vmul.f32 0.2, %v278_v26 }
  0x44   :  { %v281_v38 = vadd.f32 %v223_v15, %v3819_v17  ;;  %v469_v39 = vsel %vm426_vm0, %v3958_v20, 0.0  ;;  %v3975_v41 = vmul.f32 %v3832_v23, %v372_v22  ;;  %vm311_vm5 = vcmp.gt.f32.partialorder %v279_v27, 0.0 }
  0x45   :  { %464 = vadd.xlane.f32.xlu0 %v463_v19  ;;  %v343_v42 = vmul.f32 0.2, %v279_v27  ;;  %v374_v32 = vsel %vm310_vm4, %v278_v26, %v342_v37  ;;  %v344_v44 = vmul.f32 0.2, %v280_v34  ;;  %v282_v10 = vadd.f32 %v227_v35, %v3814_v16 }
  0x46   :  { %v231_v45 = vrot.slane %v161_v28, %v3796_v9  ;;  %v472_v48 = vsel %vm426_vm0, %v3967_v30, 0.0  ;;  %v3982_v49 = vmul.f32 %v3832_v23, %v373_v36  ;;  %vm312_vm6 = vcmp.gt.f32.partialorder %v280_v34, 0.0 }
  0x47   :  { %467 = vadd.xlane.f32.xlu1 %v466_v29  ;;  %v375_v11 = vsel %vm311_vm5, %v279_v27, %v343_v42  ;;  %v345_v25 = vmul.f32 0.2, %v281_v38  ;;  %v283_v51 = vadd.f32 %v227_v35, %v3819_v17  ;;  %v475_v52 = vsel %vm426_vm0, %v3975_v41, 0.0 }
  0x48   :  { %v3988_v55 = vmul.f32 %v3832_v23, %v374_v32  ;;  %vm313_vm7 = vcmp.gt.f32.partialorder %v281_v38, 0.0  ;;  %v376_v56 = vsel %vm312_vm6, %v280_v34, %v344_v44  ;;  %v346_v58 = vmul.f32 0.2, %v282_v10 }
  0x49   :  { %470 = vadd.xlane.f32.xlu0 %v469_v39  ;;  %v284_v59 = vadd.f32 %v231_v45, %v3814_v16  ;;  %v478_v60 = vsel %vm426_vm0, %v3982_v49, 0.0  ;;  %v3994_v61 = vmul.f32 %v3832_v23, %v375_v11  ;;  %vm314_vm8 = vcmp.gt.f32.partialorder %v282_v10, 0.0 }
  0x4a   :  { %v285_v63 = vadd.f32 %v231_v45, %v3819_v17  ;;  %v377_v2 = vsel %vm313_vm7, %v281_v38, %v345_v25  ;;  %v347_v4 = vmul.f32 0.2, %v283_v51  ;;  %v147_v7 = vcombine.high %v3946_v18, %v3946_v18 }
  0x4b   :  { %473 = vadd.xlane.f32.xlu1 %v472_v48  ;;  %v177_v33 = vcombine.high %v161_v28, %v161_v28  ;;  %v481_v13 = vsel %vm426_vm0, %v3988_v55, 0.0  ;;  %v4002_v14 = vmul.f32 %v3832_v23, %v376_v56  ;;  %vm315_vm9 = vcmp.gt.f32.partialorder %v283_v51, 0.0 }
  0x4c   :  { %v378_v15 = vsel %vm314_vm8, %v282_v10, %v346_v58  ;;  %v348_v19 = vmul.f32 0.2, %v284_v59  ;;  %v175_v21 = vrot.slane %v147_v7, %v3789_v5  ;;  %v484_v26 = vsel %vm426_vm0, %v3994_v61, 0.0 }
  0x4d   :  { %476 = vadd.xlane.f32.xlu0 %v475_v52  ;;  %v239_v22 = vrot.slane %v177_v33, %v3796_v9  ;;  %v4009_v18 = vmul.f32 %v3832_v23, %v377_v2  ;;  %vm316_vm10 = vcmp.gt.f32.partialorder %v284_v59, 0.0  ;;  %v349_v27 = vmul.f32 0.2, %v285_v63 }
  0x4e   :  { %v379_v28 = vsel %vm315_vm9, %v283_v51, %v347_v4  ;;  %vm317_vm11 = vcmp.gt.f32.partialorder %v285_v63, 0.0  ;;  %v235_v29 = vrot.slane %v175_v21, %v3796_v9  ;;  %v487_v34 = vsel %vm426_vm0, %v4002_v14, 0.0 }
  0x4f   :  { %479 = vadd.xlane.f32.xlu1 %v478_v60  ;;  %v4015_v35 = vmul.f32 %v3832_v23, %v378_v15  ;;  %v179_v36 = vcombine.high %v175_v21, %v175_v21  ;;  %v380_v37 = vsel %vm316_vm10, %v284_v59, %v348_v19  ;;  %v288_v42 = vadd.f32 %v239_v22, %v3814_v16 }
  0x50   :  { %v286_v38 = vadd.f32 %v235_v29, %v3814_v16  ;;  %v287_v39 = vadd.f32 %v235_v29, %v3819_v17  ;;  %v490_v32 = vsel %vm426_vm0, %v4009_v18, 0.0  ;;  %v4023_v44 = vmul.f32 %v3832_v23, %v379_v28 }
  0x51   :  { %482 = vadd.xlane.f32.xlu0 %v481_v13  ;;  %v381_v10 = vsel %vm317_vm11, %v285_v63, %v349_v27  ;;  %v243_v45 = vrot.slane %v179_v36, %v3796_v9  ;;  %v289_v25 = vadd.f32 %v239_v22, %v3819_v17  ;;  %v493_v51 = vsel %vm426_vm0, %v4015_v35, 0.0 }
  0x52   :  { %vm318_vm12 = vcmp.gt.f32.partialorder %v286_v38, 0.0  ;;  %v350_v48 = vmul.f32 0.2, %v286_v38  ;;  %v351_v11 = vmul.f32 0.2, %v287_v39  ;;  %v4030_v52 = vmul.f32 %v3832_v23, %v380_v37 }
  0x53   :  { %485 = vadd.xlane.f32.xlu1 %v484_v26  ;;  %vm319_vm13 = vcmp.gt.f32.partialorder %v287_v39, 0.0  ;;  %v352_v58 = vmul.f32 0.2, %v288_v42  ;;  %v290_v59 = vadd.f32 %v243_v45, %v3814_v16  ;;  %v496_v60 = vsel %vm426_vm0, %v4023_v44, 0.0 }
  0x54   :  { %v382_v56 = vsel %vm318_vm12, %v286_v38, %v350_v48  ;;  %v4036_v63 = vmul.f32 %v3832_v23, %v381_v10  ;;  %vm320_vm14 = vcmp.gt.f32.partialorder %v288_v42, 0.0  ;;  %v383_v2 = vsel %vm319_vm13, %v287_v39, %v351_v11 }
  0x55   :  { %488 = vadd.xlane.f32.xlu0 %v487_v34  ;;  %v353_v4 = vmul.f32 0.2, %v289_v25  ;;  %v291_v7 = vadd.f32 %v243_v45, %v3819_v17  ;;  %v499_v33 = vsel %vm426_vm0, %v4030_v52, 0.0  ;;  %v420_v13 = vmul.f32 %v3832_v23, %v382_v56 }
  0x56   :  { %vm321_vm15 = vcmp.gt.f32.partialorder %v289_v25, 0.0  ;;  %v384_v15 = vsel %vm320_vm14, %v288_v42, %v352_v58  ;;  %v354_v19 = vmul.f32 0.2, %v290_v59  ;;  %v502_v21 = vsel %vm426_vm0, %v4036_v63, 0.0 }
  0x57   :  { %491 = vadd.xlane.f32.xlu1 %v490_v32  ;;  %v421_v22 = vmul.f32 %v3832_v23, %v383_v2  ;;  %vm322_vm1 = vcmp.gt.f32.partialorder %v290_v59, 0.0  ;;  %v385_v26 = vsel %vm321_vm15, %v289_v25, %v353_v4  ;;  %v355_v27 = vmul.f32 0.2, %v291_v7 }
  0x58   :  { %v505_v28 = vsel %vm426_vm0, %v420_v13, 0.0  ;;  %v422_v29 = vmul.f32 %v3832_v23, %v384_v15  ;;  %vm323_vm2 = vcmp.gt.f32.partialorder %v291_v7, 0.0  ;;  %v386_v34 = vsel %vm322_vm1, %v290_v59, %v354_v19 }
  0x59   :  { %494 = vadd.xlane.f32.xlu0 %v493_v51  ;;  %v508_v36 = vsel %vm426_vm0, %v421_v22, 0.0  ;;  %v423_v37 = vmul.f32 %v3832_v23, %v385_v26  ;;  %v387_v38 = vsel %vm323_vm2, %v291_v7, %v355_v27  ;;  %v424_v42 = vmul.f32 %v3832_v23, %v386_v34 }
  0x5a   :  { %v511_v39 = vsel %vm426_vm0, %v422_v29, 0.0  ;;  %v425_v10 = vmul.f32 %v3832_v23, %v387_v38  ;;  %v4113_v23 = vld [vmem:[%s6362_s0 + $0x28] sm:$0xff] }
  0x5b   :  { %497 = vadd.xlane.f32.xlu1 %v496_v60  ;;  %v514_v32 = vsel %vm426_vm0, %v423_v37, 0.0  ;;  %v517_v45 = vsel %vm426_vm0, %v424_v42, 0.0  ;;  %3440 = vmatprep.subr.mxu0 %v4113_v23 }
  0x5c   :  { %v520_v48 = vsel %vm426_vm0, %v425_v10, 0.0  ;;  %3441 = vmatpush1.msra.mxu0 %v3819_v17 }
  0x5d   :  { %500 = vadd.xlane.f32.xlu0 %v499_v33 }
  0x5f   :  { %503 = vadd.xlane.f32.xlu1 %v502_v21 }
  0x61   :  { %506 = vadd.xlane.f32.xlu0 %v505_v28 }
  0x63   :  { %509 = vadd.xlane.f32.xlu1 %v508_v36 }
  0x65   :  { %512 = vadd.xlane.f32.xlu0 %v511_v39 }
  0x67   :  { %515 = vadd.xlane.f32.xlu1 %v514_v32 }
  0x69   :  { %518 = vadd.xlane.f32.xlu0 %v517_v45 }
  0x6b   :  { %521 = vadd.xlane.f32.xlu1 %v520_v48 }
  0x7c   :  { %589 = vrot.lane.b32.xlu1 %v3858_v47, %s3745_s9  ;;  %v4122_v47 = vld [vmem:[%s6362_s0 + $0x8] sm:$0xff] }
  0x7d   :  { %3442 = vmatprep.subr.mxu0 %v4122_v47 }
  0x7e   :  { %3443 = vmatpush1.msra.mxu0 %v3814_v16 }
  0x7f   :  { %587 = vrot.lane.b32.xlu0 %v3855_v43, %s3745_s9 }
  0x80   :  { %591 = vrot.lane.b32.xlu1 %v3863_v50, %s3745_s9 }
  0x83   :  { %595 = vrot.lane.b32.xlu0 %v3873_v57, %s3745_s9 }
  0x84   :  { %593 = vrot.lane.b32.xlu1 %v3868_v53, %s3745_s9 }
  0x87   :  { %599 = vrot.lane.b32.xlu0 %v3903_v31, %s3745_s9 }
  0x88   :  { %597 = vrot.lane.b32.xlu1 %v3882_v1, %s3745_s9 }
  0x8b   :  { %603 = vrot.lane.b32.xlu0 %v3887_v6, %s3745_s9 }
  0x8c   :  { %601 = vrot.lane.b32.xlu1 %v3913_v40, %s3745_s9 }
  0x8f   :  { %607 = vrot.lane.b32.xlu0 %v3925_v46, %s3745_s9 }
  0x90   :  { %605 = vrot.lane.b32.xlu1 %v3898_v24, %s3745_s9 }
  0x93   :  { %611 = vrot.lane.b32.xlu0 %v3943_v62, %s3745_s9 }
  0x94   :  { %609 = vrot.lane.b32.xlu1 %v3934_v54, %s3745_s9 }
  0x97   :  { %615 = vrot.lane.b32.xlu0 %v3958_v20, %s3745_s9 }
  0x98   :  { %613 = vrot.lane.b32.xlu1 %v3951_v8, %s3745_s9 }
  0x9b   :  { %619 = vrot.lane.b32.xlu0 %v3975_v41, %s3745_s9 }
  0x9c   :  { %617 = vrot.lane.b32.xlu1 %v3967_v30, %s3745_s9 }
  0x9f   :  { %623 = vrot.lane.b32.xlu0 %v3988_v55, %s3745_s9 }
  0xa0   :  { %621 = vrot.lane.b32.xlu1 %v3982_v49, %s3745_s9 }
  0xa3   :  { %627 = vrot.lane.b32.xlu0 %v4002_v14, %s3745_s9 }
  0xa4   :  { %625 = vrot.lane.b32.xlu1 %v3994_v61, %s3745_s9 }
  0xa7   :  { %631 = vrot.lane.b32.xlu0 %v4015_v35, %s3745_s9 }
  0xa8   :  { %629 = vrot.lane.b32.xlu1 %v4009_v18, %s3745_s9 }
  0xab   :  { %635 = vrot.lane.b32.xlu0 %v4030_v52, %s3745_s9 }
  0xac   :  { %633 = vrot.lane.b32.xlu1 %v4023_v44, %s3745_s9 }
  0xaf   :  { %639 = vrot.lane.b32.xlu0 %v420_v13, %s3745_s9 }
  0xb0   :  { %637 = vrot.lane.b32.xlu1 %v4036_v63, %s3745_s9 }
  0xb3   :  { %643 = vrot.lane.b32.xlu0 %v422_v29, %s3745_s9 }
  0xb4   :  { %641 = vrot.lane.b32.xlu1 %v421_v22, %s3745_s9 }
  0xb6   :  { %v4115_v43 = vpop.xlane.xlu0 %428 }
  0xb7   :  { %6405 = vst [vmem:[#allocation13_spill] sm:$0xff] %v4115_v43  ;;  %647 = vrot.lane.b32.xlu0 %v424_v42, %s3745_s9 }
  0xb8   :  { %v4125_v50 = vpop.xlane.xlu1 %434  ;;  %645 = vrot.lane.b32.xlu1 %v423_v37, %s3745_s9 }
  0xb9   :  { %6406 = vst [vmem:[#allocation14_spill] sm:$0xff] %v4125_v50 }
  0xba   :  { %v4130_v53 = vpop.xlane.xlu0 %431 }
  0xbb   :  { %6407 = vst [vmem:[#allocation15_spill] sm:$0xff] %v4130_v53 }
  0xbc   :  { %v4132_v57 = vpop.xlane.xlu1 %437  ;;  %649 = vrot.lane.b32.xlu1 %v425_v10, %s3745_s9 }
  0xbd   :  { %6408 = vst [vmem:[#allocation16_spill] sm:$0xff] %v4132_v57 }
  0xbe   :  { %v4135_v1 = vpop.xlane.xlu0 %440 }
  0xbf   :  { %6409 = vst [vmem:[#allocation17_spill] sm:$0xff] %v4135_v1 }
  0xc0   :  { %v4137_v6 = vpop.xlane.xlu1 %443 }
  0xc1   :  { %6410 = vst [vmem:[#allocation18_spill] sm:$0xff] %v4137_v6 }
  0xc2   :  { %v4139_v24 = vpop.xlane.xlu0 %452 }
  0xc3   :  { %6411 = vst [vmem:[#allocation19_spill] sm:$0xff] %v4139_v24 }
  0xc4   :  { %v4141_v17 = vpop.xlane.xlu1 %455 }
  0xc5   :  { %6412 = vst [vmem:[#allocation20_spill] sm:$0xff] %v4141_v17 }
  0xc6   :  { %v4143_v31 = vpop.xlane.xlu0 %446 }
  0xc7   :  { %6413 = vst [vmem:[#allocation21_spill] sm:$0xff] %v4143_v31 }
  0xc8   :  { %v4145_v40 = vpop.xlane.xlu1 %449 }
  0xc9   :  { %6414 = vst [vmem:[#allocation22_spill] sm:$0xff] %v4145_v40 }
  0xca   :  { %v4147_v46 = vpop.xlane.xlu0 %458 }
  0xcb   :  { %6415 = vst [vmem:[#allocation23_spill] sm:$0xff] %v4147_v46 }
  0xcc   :  { %v4149_v16 = vpop.xlane.xlu1 %461 }
  0xcd   :  { %6416 = vst [vmem:[#allocation24_spill] sm:$0xff] %v4149_v16 }
  0xce   :  { %v4151_v54 = vpop.xlane.xlu0 %464 }
  0xcf   :  { %6417 = vst [vmem:[#allocation25_spill] sm:$0xff] %v4151_v54 }
  0xd0   :  { %v4153_v62 = vpop.xlane.xlu1 %467 }
  0xd1   :  { %6418 = vst [vmem:[#allocation26_spill] sm:$0xff] %v4153_v62 }
  0xd2   :  { %v4155_v8 = vpop.xlane.xlu0 %470 }
  0xd3   :  { %6419 = vst [vmem:[#allocation27_spill] sm:$0xff] %v4155_v8 }
  0xd4   :  { %v4157_v20 = vpop.xlane.xlu1 %473 }
  0xd5   :  { %6420 = vst [vmem:[#allocation28_spill] sm:$0xff] %v4157_v20 }
  0xd6   :  { %v4159_v30 = vpop.xlane.xlu0 %476 }
  0xd7   :  { %6421 = vst [vmem:[#allocation29_spill] sm:$0xff] %v4159_v30 }
  0xd8   :  { %v4161_v41 = vpop.xlane.xlu1 %479 }
  0xd9   :  { %6422 = vst [vmem:[#allocation30_spill] sm:$0xff] %v4161_v41 }
  0xda   :  { %v4163_v49 = vpop.xlane.xlu0 %482 }
  0xdb   :  { %6423 = vst [vmem:[#allocation31_spill] sm:$0xff] %v4163_v49 }
  0xdc   :  { %v4165_v55 = vpop.xlane.xlu1 %485 }
  0xdd   :  { %6424 = vst [vmem:[#allocation32_spill] sm:$0xff] %v4165_v55 }
  0xde   :  { %v4167_v61 = vpop.xlane.xlu0 %488 }
  0xdf   :  { %6425 = vst [vmem:[#allocation33_spill] sm:$0xff] %v4167_v61 }
  0xe0   :  { %v4169_v14 = vpop.xlane.xlu1 %491 }
  0xe1   :  { %6426 = vst [vmem:[#allocation34_spill] sm:$0xff] %v4169_v14 }
  0xe2   :  { %v4171_v18 = vpop.xlane.xlu0 %494 }
  0xe3   :  { %6427 = vst [vmem:[#allocation35_spill] sm:$0xff] %v4171_v18 }
  0xe4   :  { %v4173_v35 = vpop.xlane.xlu1 %497 }
  0xe5   :  { %6428 = vst [vmem:[#allocation36_spill] sm:$0xff] %v4173_v35 }
  0xe6   :  { %v4175_v44 = vpop.xlane.xlu0 %500 }
  0xe7   :  { %6429 = vst [vmem:[#allocation37_spill] sm:$0xff] %v4175_v44 }
  0xe8   :  { %v4177_v11 = vpop.xlane.xlu1 %503 }
  0xe9   :  { %6430 = vst [vmem:[#allocation38_spill] sm:$0xff] %v4177_v11 }
  0xea   :  { %v4179_v25 = vpop.xlane.xlu0 %506 }
  0xeb   :  { %6431 = vst [vmem:[#allocation39_spill] sm:$0xff] %v4179_v25 }
  0xec   :  { %v4181_v51 = vpop.xlane.xlu1 %509 }
  0xed   :  { %6432 = vst [vmem:[#allocation40_spill] sm:$0xff] %v4181_v51 }
  0xee   :  { %v4183_v52 = vpop.xlane.xlu0 %512 }
  0xef   :  { %6433 = vst [vmem:[#allocation41_spill] sm:$0xff] %v4183_v52 }
  0xf0   :  { %v4185_v56 = vpop.xlane.xlu1 %515 }
  0xf1   :  { %6434 = vst [vmem:[#allocation42_spill] sm:$0xff] %v4185_v56 }
  0xf2   :  { %v4187_v58 = vpop.xlane.xlu0 %518 }
  0xf3   :  { %6435 = vst [vmem:[#allocation43_spill] sm:$0xff] %v4187_v58 }
  0xf4   :  { %v4189_v59 = vpop.xlane.xlu1 %521 }
  0xf5   :  { %6436 = vst [vmem:[#allocation44_spill] sm:$0xff] %v4189_v59 }
  0xf6   :  { %v588_v60 = vpop.permute.xlu0 %587 }
  0xf7   :  { %v683_v63 = vsel %vm426_vm0, %v588_v60, 0.0 }
  0xf8   :  { %v590_v2 = vpop.permute.xlu1 %589  ;;  %684 = vadd.xlane.f32.xlu0 %v683_v63 }
  0xf9   :  { %v686_v4 = vsel %vm426_vm0, %v590_v2, 0.0 }
  0xfa   :  { %687 = vadd.xlane.f32.xlu1 %v686_v4  ;;  %v596_v7 = vpop.permute.xlu0 %595 }
  0xfb   :  { %v695_v26 = vsel %vm426_vm0, %v596_v7, 0.0 }
  0xfc   :  { %v592_v33 = vpop.permute.xlu1 %591 }
  0xfd   :  { %v689_v13 = vsel %vm426_vm0, %v592_v33, 0.0 }
  0xfe   :  { %690 = vadd.xlane.f32.xlu0 %v689_v13  ;;  %v600_v15 = vpop.permute.xlu0 %599 }
  0xff   :  { %v701_v34 = vsel %vm426_vm0, %v600_v15, 0.0 }
 0x100   :  { %v594_v19 = vpop.permute.xlu1 %593 }
 0x101   :  { %v692_v21 = vsel %vm426_vm0, %v594_v19, 0.0 }
 0x102   :  { %693 = vadd.xlane.f32.xlu0 %v692_v21  ;;  %v604_v22 = vpop.permute.xlu0 %603 }
 0x103   :  { %v707_v39 = vsel %vm426_vm0, %v604_v22, 0.0 }
 0x104   :  { %v598_v27 = vpop.permute.xlu1 %597 }
 0x105   :  { %v698_v28 = vsel %vm426_vm0, %v598_v27, 0.0 }
 0x106   :  { %699 = vadd.xlane.f32.xlu1 %v698_v28  ;;  %696 = vadd.xlane.f32.xlu0 %v695_v26  ;;  %v608_v29 = vpop.permute.xlu0 %607  ;;  %v70_v26 = vld [vmem:[%s6363_s1 + $0x8] sm:$0xff] }
 0x107   :  { %v713_v45 = vsel %vm426_vm0, %v608_v29, 0.0 }
 0x108   :  { %v602_v36 = vpop.permute.xlu1 %601 }
 0x109   :  { %v704_v37 = vsel %vm426_vm0, %v602_v36, 0.0 }
 0x10a   :  { %705 = vadd.xlane.f32.xlu1 %v704_v37  ;;  %702 = vadd.xlane.f32.xlu0 %v701_v34  ;;  %v612_v38 = vpop.permute.xlu0 %611  ;;  %v820_v34 = vrot.slane %v70_v26, %v3789_v5 }
 0x10b   :  { %v719_v2 = vsel %vm426_vm0, %v612_v38, 0.0 }
 0x10c   :  { %v606_v42 = vpop.permute.xlu1 %605  ;;  %v828_v38 = vcombine.high %v820_v34, %v820_v34 }
 0x10d   :  { %v710_v32 = vsel %vm426_vm0, %v606_v42, 0.0 }
 0x10e   :  { %711 = vadd.xlane.f32.xlu1 %v710_v32  ;;  %708 = vadd.xlane.f32.xlu0 %v707_v39  ;;  %v616_v10 = vpop.permute.xlu0 %615  ;;  %v836_v32 = vrot.slane %v820_v34, %v3789_v5 }
 0x10f   :  { %v725_v13 = vsel %vm426_vm0, %v616_v10, 0.0 }
 0x110   :  { %v610_v48 = vpop.permute.xlu1 %609 }
 0x111   :  { %v716_v60 = vsel %vm426_vm0, %v610_v48, 0.0  ;;  %v850_v48 = vrot.slane %v828_v38, %v3789_v5 }
 0x112   :  { %717 = vadd.xlane.f32.xlu1 %v716_v60  ;;  %714 = vadd.xlane.f32.xlu0 %v713_v45  ;;  %v620_v63 = vpop.permute.xlu0 %619 }
 0x113   :  { %v731_v22 = vsel %vm426_vm0, %v620_v63, 0.0  ;;  %v914_v63 = vrot.slane %v836_v32, %v3796_v9  ;;  %v860_v38 = vcombine.high %v850_v48, %v850_v48 }
 0x114   :  { %v614_v4 = vpop.permute.xlu1 %613 }
 0x115   :  { %v722_v7 = vsel %vm426_vm0, %v614_v4, 0.0 }
 0x116   :  { %723 = vadd.xlane.f32.xlu1 %v722_v7  ;;  %720 = vadd.xlane.f32.xlu0 %v719_v2  ;;  %v624_v33 = vpop.permute.xlu0 %623 }
 0x117   :  { %v737_v36 = vsel %vm426_vm0, %v624_v33, 0.0  ;;  %v918_v33 = vrot.slane %v850_v48, %v3796_v9 }
 0x118   :  { %v618_v15 = vpop.permute.xlu1 %617 }
 0x119   :  { %v728_v19 = vsel %vm426_vm0, %v618_v15, 0.0  ;;  %v994_v34 = vadd.f32 %v918_v33, %v4113_v23 }
 0x11a   :  { %729 = vadd.xlane.f32.xlu1 %v728_v19  ;;  %726 = vadd.xlane.f32.xlu0 %v725_v13  ;;  %v628_v21 = vpop.permute.xlu0 %627  ;;  %v858_v13 = vcombine.high %v836_v32, %v836_v32  ;;  %v813_v19 = vcombine.high %v70_v26, %v70_v26  ;;  %v1119_v32 = vrot.slane %v3807_v12, 1  ;;  %v926_v12 = vrot.slane %v860_v38, %v3796_v9 }
 0x11b   :  { %v743_v10 = vsel %vm426_vm0, %v628_v21, 0.0  ;;  %v992_v21 = vadd.f32 %v914_v63, %v4113_v23  ;;  %vm1026_vm5 = vcmp.gt.f32.partialorder %v994_v34, 0.0 }
 0x11c   :  { %v622_v27 = vpop.permute.xlu1 %621 }
 0x11d   :  { %v734_v28 = vsel %vm426_vm0, %v622_v27, 0.0  ;;  %v991_v27 = vadd.f32 %v914_v63, %v4122_v47  ;;  %v1056_v26 = vmul.f32 0.2, %v992_v21  ;;  %vm1024_vm3 = vcmp.gt.f32.partialorder %v992_v21, 0.0 }
 0x11e   :  { %735 = vadd.xlane.f32.xlu1 %v734_v28  ;;  %732 = vadd.xlane.f32.xlu0 %v731_v22  ;;  %v632_v29 = vpop.permute.xlu0 %631  ;;  %v1058_v63 = vmul.f32 0.2, %v994_v34 }
 0x11f   :  { %v749_v2 = vsel %vm426_vm0, %v632_v29, 0.0  ;;  %v993_v29 = vadd.f32 %v918_v33, %v4122_v47  ;;  %vm1023_vm4 = vcmp.gt.f32.partialorder %v991_v27, 0.0 }
 0x120   :  { %v626_v37 = vpop.permute.xlu1 %625 }
 0x121   :  { %v740_v39 = vsel %vm426_vm0, %v626_v37, 0.0  ;;  %vm1025_vm6 = vcmp.gt.f32.partialorder %v993_v29, 0.0 }
 0x122   :  { %741 = vadd.xlane.f32.xlu1 %v740_v39  ;;  %738 = vadd.xlane.f32.xlu0 %v737_v36  ;;  %v636_v42 = vpop.permute.xlu0 %635  ;;  %v922_v36 = vrot.slane %v858_v13, %v3796_v9 }
 0x123   :  { %v755_v22 = vsel %vm426_vm0, %v636_v42, 0.0  ;;  %v827_v42 = vrot.slane %v813_v19, %v3789_v5  ;;  %v4240_v19 = vsel %vm1024_vm3, %v992_v21, %v1056_v26  ;;  %v998_v21 = vadd.f32 %v926_v12, %v4113_v23 }
 0x124   :  { %v630_v45 = vpop.permute.xlu1 %629  ;;  %v995_v33 = vadd.f32 %v922_v36, %v4122_v47  ;;  %v997_v26 = vadd.f32 %v926_v12, %v4122_v47 }
 0x125   :  { %v746_v60 = vsel %vm426_vm0, %v630_v45, 0.0  ;;  %v1055_v45 = vmul.f32 0.2, %v991_v27  ;;  %v829_v13 = vcombine.high %v827_v42, %v827_v42  ;;  %vm1030_vm9 = vcmp.gt.f32.partialorder %v998_v21, 0.0 }
 0x126   :  { %747 = vadd.xlane.f32.xlu1 %v746_v60  ;;  %744 = vadd.xlane.f32.xlu0 %v743_v10  ;;  %v640_v7 = vpop.permute.xlu0 %639  ;;  %vm1027_vm8 = vcmp.gt.f32.partialorder %v995_v33, 0.0  ;;  %vm1029_vm10 = vcmp.gt.f32.partialorder %v997_v26, 0.0 }
 0x127   :  { %v761_v10 = vsel %vm426_vm0, %v640_v7, 0.0  ;;  %v843_v7 = vrot.slane %v827_v42, %v3789_v5 }
 0x128   :  { %v634_v4 = vpop.permute.xlu1 %633 }
 0x129   :  { %v752_v15 = vsel %vm426_vm0, %v634_v4, 0.0  ;;  %v996_v4 = vadd.f32 %v922_v36, %v4113_v23  ;;  %v4249_v36 = vsel %vm1026_vm5, %v994_v34, %v1058_v63 }
 0x12a   :  { %753 = vadd.xlane.f32.xlu1 %v752_v15  ;;  %750 = vadd.xlane.f32.xlu0 %v749_v2  ;;  %v644_v39 = vpop.permute.xlu0 %643  ;;  %v1057_v2 = vmul.f32 0.2, %v993_v29 }
 0x12b   :  { %v767_v15 = vsel %vm426_vm0, %v644_v39, 0.0  ;;  %vm1028_vm7 = vcmp.gt.f32.partialorder %v996_v4, 0.0  ;;  %v1059_v39 = vmul.f32 0.2, %v995_v33 }
 0x12c   :  { %v638_v28 = vpop.permute.xlu1 %637  ;;  %v4251_v38 = vsel %vm1025_vm6, %v993_v29, %v1057_v2 }
 0x12d   :  { %v758_v37 = vsel %vm426_vm0, %v638_v28, 0.0 }
 0x12e   :  { %759 = vadd.xlane.f32.xlu1 %v758_v37  ;;  %756 = vadd.xlane.f32.xlu0 %v755_v22  ;;  %v4243_v22 = vrot.slane %v1119_v32, %v3796_v9  ;;  %v648_v37 = vpop.permute.xlu0 %647  ;;  %v857_v32 = vrot.slane %v829_v13, %v3789_v5  ;;  %v4270_v13 = vsel %vm1027_vm8, %v995_v33, %v1059_v39 }
 0x12f   :  { %v773_v34 = vsel %vm426_vm0, %v648_v37, 0.0  ;;  %v4275_v37 = vld [vmem:[%s6363_s1 + $0x28] sm:$0xff]  ;;  %v859_v39 = vcombine.high %v843_v7, %v843_v7 }
 0x130   :  { %v642_v60 = vpop.permute.xlu1 %641  ;;  %v1126_v29 = vmul.f32 %v4243_v22, %v4240_v19  ;;  %v1128_v2 = vmul.f32 %v4243_v22, %v4249_v36  ;;  %v861_v20 = vcombine.high %v857_v32, %v857_v32 }
 0x131   :  { %v764_v48 = vsel %vm426_vm0, %v642_v60, 0.0  ;;  %v4246_v60 = vsel %vm1023_vm4, %v991_v27, %v1055_v45  ;;  %v930_v27 = vrot.slane %v843_v7, %v3796_v9  ;;  %v938_v51 = vrot.slane %v859_v39, %v3796_v9 }
 0x132   :  { %765 = vadd.xlane.f32.xlu1 %v764_v48  ;;  %762 = vadd.xlane.f32.xlu0 %v761_v10  ;;  %v1060_v10 = vmul.f32 0.2, %v996_v4  ;;  %v1125_v45 = vmul.f32 %v4243_v22, %v4246_v60  ;;  %v1127_v48 = vmul.f32 %v4243_v22, %v4251_v38  ;;  %v942_v59 = vrot.slane %v861_v20, %v3796_v9 }
 0x133   :  { %v1000_v0 = vadd.f32 %v930_v27, %v4113_v23  ;;  %v999_v18 = vadd.f32 %v930_v27, %v4122_v47  ;;  %v1129_v27 = vmul.f32 %v4243_v22, %v4270_v13 }
 0x134   :  { %v646_v28 = vpop.permute.xlu1 %645  ;;  %v4267_v12 = vsel %vm1028_vm7, %v996_v4, %v1060_v10  ;;  %v934_v4 = vrot.slane %v857_v32, %v3796_v9  ;;  %v1160_v10 = vsel %vm426_vm0, %v1126_v29, 0.0  ;;  %v1157_v33 = vsel %vm426_vm0, %v1125_v45, 0.0 }
 0x135   :  { %v770_v42 = vsel %vm426_vm0, %v646_v28, 0.0  ;;  %v1062_v28 = vmul.f32 0.2, %v998_v21  ;;  %v1130_v8 = vmul.f32 %v4243_v22, %v4267_v12  ;;  %v1064_v45 = vmul.f32 0.2, %v1000_v0 }
 0x136   :  { %771 = vadd.xlane.f32.xlu1 %v770_v42  ;;  %768 = vadd.xlane.f32.xlu0 %v767_v15  ;;  %v1061_v42 = vmul.f32 0.2, %v997_v26  ;;  %v1063_v32 = vmul.f32 0.2, %v999_v18  ;;  %vm1032_vm11 = vcmp.gt.f32.partialorder %v1000_v0, 0.0  ;;  %vm1031_vm12 = vcmp.gt.f32.partialorder %v999_v18, 0.0 }
 0x137   :  { %v4291_v29 = vsel %vm1030_vm9, %v998_v21, %v1062_v28  ;;  %v1172_v21 = vsel %vm426_vm0, %v1130_v8, 0.0  ;;  %v1169_v28 = vsel %vm426_vm0, %v1129_v27, 0.0  ;;  %v1004_v8 = vadd.f32 %v938_v51, %v4113_v23 }
 0x138   :  { %v650_v63 = vpop.permute.xlu1 %649  ;;  %v4293_v7 = vsel %vm1029_vm10, %v997_v26, %v1061_v42  ;;  %v1132_v26 = vmul.f32 %v4243_v22, %v4291_v29  ;;  %v1003_v27 = vadd.f32 %v938_v51, %v4122_v47  ;;  %v1006_v58 = vadd.f32 %v942_v59, %v4113_v23 }
 0x139   :  { %v776_v15 = vsel %vm426_vm0, %v650_v63, 0.0  ;;  %v1166_v63 = vsel %vm426_vm0, %v1128_v2, 0.0  ;;  %v1002_v2 = vadd.f32 %v934_v4, %v4113_v23  ;;  %vm1036_vm15 = vcmp.gt.f32.partialorder %v1004_v8, 0.0 }
 0x13a   :  { %777 = vadd.xlane.f32.xlu1 %v776_v15  ;;  %774 = vadd.xlane.f32.xlu0 %v773_v34  ;;  %v869_v15 = vrot.slane %v4275_v37, %v3789_v5  ;;  %v1163_v34 = vsel %vm426_vm0, %v1127_v48, 0.0  ;;  %v1001_v48 = vadd.f32 %v934_v4, %v4122_v47  ;;  %v4306_v4 = vsel %vm1032_vm11, %v1000_v0, %v1064_v45 }
 0x13b   :  { %v1066_v20 = vmul.f32 0.2, %v1002_v2  ;;  %vm1034_vm13 = vcmp.gt.f32.partialorder %v1002_v2, 0.0  ;;  %v1134_v45 = vmul.f32 %v4243_v22, %v4306_v4  ;;  %vm1035_vm1 = vcmp.gt.f32.partialorder %v1003_v27, 0.0 }
 0x13c   :  { %v885_v25 = vrot.slane %v869_v15, %v3789_v5  ;;  %v877_v42 = vcombine.high %v869_v15, %v869_v15  ;;  %v1065_v39 = vmul.f32 0.2, %v1001_v48  ;;  %vm1033_vm14 = vcmp.gt.f32.partialorder %v1001_v48, 0.0 }
 0x13d   :  { %v1070_v52 = vmul.f32 0.2, %v1006_v58  ;;  %vm1038_vm2 = vcmp.gt.f32.partialorder %v1006_v58, 0.0 }
 0x13e   :  { %1161 = vadd.xlane.f32.xlu1 %v1160_v10  ;;  %1158 = vadd.xlane.f32.xlu0 %v1157_v33  ;;  %v1131_v10 = vmul.f32 %v4243_v22, %v4293_v7  ;;  %v4308_v33 = vsel %vm1031_vm12, %v999_v18, %v1063_v32  ;;  %v946_v15 = vrot.slane %v885_v25, %v3796_v9 }
 0x13f   :  { %v899_v0 = vrot.slane %v877_v42, %v3789_v5  ;;  %v1133_v51 = vmul.f32 %v4243_v22, %v4308_v33  ;;  %v4322_v32 = vsel %vm1034_vm13, %v1002_v2, %v1066_v20  ;;  %v4324_v56 = vsel %vm1033_vm14, %v1001_v48, %v1065_v39 }
 0x140   :  { %v1175_v18 = vsel %vm426_vm0, %v1131_v10, 0.0  ;;  %v1184_v2 = vsel %vm426_vm0, %v1134_v45, 0.0  ;;  %v1136_v48 = vmul.f32 %v4243_v22, %v4322_v32  ;;  %v907_v20 = vcombine.high %v885_v25, %v885_v25 }
 0x141   :  { %v950_v10 = vrot.slane %v899_v0, %v3796_v9  ;;  %v1181_v39 = vsel %vm426_vm0, %v1133_v51, 0.0  ;;  %v1135_v55 = vmul.f32 %v4243_v22, %v4324_v56 }
 0x142   :  { %1167 = vadd.xlane.f32.xlu1 %v1166_v63  ;;  %1164 = vadd.xlane.f32.xlu0 %v1163_v34  ;;  %v1005_v63 = vadd.f32 %v942_v59, %v4122_v47  ;;  %v1178_v34 = vsel %vm426_vm0, %v1132_v26, 0.0  ;;  %v1068_v59 = vmul.f32 0.2, %v1004_v8  ;;  %v1067_v26 = vmul.f32 0.2, %v1003_v27 }
 0x143   :  { %v1010_v51 = vadd.f32 %v950_v10, %v4113_v23  ;;  %v1009_v35 = vadd.f32 %v950_v10, %v4122_v47 }
 0x144   :  { %v1069_v42 = vmul.f32 0.2, %v1005_v63  ;;  %vm1037_vm3 = vcmp.gt.f32.partialorder %v1005_v63, 0.0  ;;  %v4336_v41 = vsel %vm1036_vm15, %v1004_v8, %v1068_v59  ;;  %v1190_v8 = vsel %vm426_vm0, %v1136_v48, 0.0 }
 0x145   :  { %vm1042_vm6 = vcmp.gt.f32.partialorder %v1010_v51, 0.0  ;;  %vm1041_vm7 = vcmp.gt.f32.partialorder %v1009_v35, 0.0 }
 0x146   :  { %1173 = vadd.xlane.f32.xlu1 %v1172_v21  ;;  %1170 = vadd.xlane.f32.xlu0 %v1169_v28  ;;  %v1008_v21 = vadd.f32 %v946_v15, %v4113_v23  ;;  %v1007_v28 = vadd.f32 %v946_v15, %v4122_v47  ;;  %v862_v15 = vcombine.high %v4275_v37, %v4275_v37 }
 0x147   :  { %v4345_v45 = vsel %vm1037_vm3, %v1005_v63, %v1069_v42  ;;  %v954_v37 = vrot.slane %v907_v20, %v3796_v9 }
 0x148   :  { %v1072_v16 = vmul.f32 0.2, %v1008_v21  ;;  %vm1040_vm4 = vcmp.gt.f32.partialorder %v1008_v21, 0.0  ;;  %v1071_v25 = vmul.f32 0.2, %v1007_v28  ;;  %vm1039_vm5 = vcmp.gt.f32.partialorder %v1007_v28, 0.0 }
 0x149   :  { %v876_v59 = vrot.slane %v862_v15, %v3789_v5  ;;  %v1139_v42 = vmul.f32 %v4243_v22, %v4345_v45  ;;  %v1012_v48 = vadd.f32 %v954_v37, %v4113_v23  ;;  %v1011_v20 = vadd.f32 %v954_v37, %v4122_v47 }
 0x14a   :  { %1179 = vadd.xlane.f32.xlu1 %v1178_v34  ;;  %1176 = vadd.xlane.f32.xlu0 %v1175_v18  ;;  %v4341_v34 = vsel %vm1035_vm1, %v1003_v27, %v1067_v26  ;;  %v4343_v18 = vsel %vm1038_vm2, %v1006_v58, %v1070_v52  ;;  %v909_v27 = vcombine.high %v899_v0, %v899_v0  ;;  %v1187_v52 = vsel %vm426_vm0, %v1135_v55, 0.0 }
 0x14b   :  { %v1138_v58 = vmul.f32 %v4243_v22, %v4336_v41  ;;  %v1137_v63 = vmul.f32 %v4243_v22, %v4341_v34  ;;  %v1140_v26 = vmul.f32 %v4243_v22, %v4343_v18  ;;  %v4362_v10 = vsel %vm1040_vm4, %v1008_v21, %v1072_v16 }
 0x14c   :  { %v4364_v0 = vsel %vm1039_vm5, %v1007_v28, %v1071_v25  ;;  %v1074_v55 = vmul.f32 0.2, %v1010_v51  ;;  %v892_v16 = vrot.slane %v876_v59, %v3789_v5  ;;  %v878_v21 = vcombine.high %v876_v59, %v876_v59 }
 0x14d   :  { %v1196_v15 = vsel %vm426_vm0, %v1138_v58, 0.0  ;;  %v1193_v46 = vsel %vm426_vm0, %v1137_v63, 0.0  ;;  %v1202_v28 = vsel %vm426_vm0, %v1140_v26, 0.0  ;;  %v1199_v25 = vsel %vm426_vm0, %v1139_v42, 0.0 }
 0x14e   :  { %1185 = vadd.xlane.f32.xlu1 %v1184_v2  ;;  %1182 = vadd.xlane.f32.xlu0 %v1181_v39  ;;  %v1073_v2 = vmul.f32 0.2, %v1009_v35  ;;  %v958_v39 = vrot.slane %v909_v27, %v3796_v9  ;;  %v4379_v37 = vsel %vm1042_vm6, %v1010_v51, %v1074_v55  ;;  %vm1044_vm8 = vcmp.gt.f32.partialorder %v1012_v48, 0.0 }
 0x14f   :  { %v1076_v58 = vmul.f32 0.2, %v1012_v48  ;;  %v1075_v63 = vmul.f32 0.2, %v1011_v20  ;;  %vm1043_vm9 = vcmp.gt.f32.partialorder %v1011_v20, 0.0  ;;  %v962_v42 = vrot.slane %v892_v16, %v3796_v9 }
 0x150   :  { %v4381_v27 = vsel %vm1041_vm7, %v1009_v35, %v1073_v2  ;;  %v1014_v59 = vadd.f32 %v958_v39, %v4113_v23  ;;  %v1013_v26 = vadd.f32 %v958_v39, %v4122_v47  ;;  %v906_v14 = vrot.slane %v878_v21, %v3789_v5 }
 0x151   :  { %v1144_v35 = vmul.f32 %v4243_v22, %v4379_v37  ;;  %v4393_v55 = vsel %vm1044_vm8, %v1012_v48, %v1076_v58  ;;  %v4395_v2 = vsel %vm1043_vm9, %v1011_v20, %v1075_v63  ;;  %v1016_v21 = vadd.f32 %v962_v42, %v4113_v23 }
 0x152   :  { %1191 = vadd.xlane.f32.xlu1 %v1190_v8  ;;  %1188 = vadd.xlane.f32.xlu0 %v1187_v52  ;;  %v1142_v8 = vmul.f32 %v4243_v22, %v4362_v10  ;;  %v1141_v52 = vmul.f32 %v4243_v22, %v4364_v0  ;;  %vm1046_vm10 = vcmp.gt.f32.partialorder %v1014_v59, 0.0  ;;  %v1078_v39 = vmul.f32 0.2, %v1014_v59 }
 0x153   :  { %vm1045_vm11 = vcmp.gt.f32.partialorder %v1013_v26, 0.0  ;;  %v1015_v11 = vadd.f32 %v962_v42, %v4122_v47  ;;  %v1214_v61 = vsel %vm426_vm0, %v1144_v35, 0.0  ;;  %v1146_v20 = vmul.f32 %v4243_v22, %v4393_v55 }
 0x154   :  { %v1208_v62 = vsel %vm426_vm0, %v1142_v8, 0.0  ;;  %v1205_v51 = vsel %vm426_vm0, %v1141_v52, 0.0  ;;  %v966_v8 = vrot.slane %v906_v14, %v3796_v9  ;;  %v908_v52 = vcombine.high %v892_v16, %v892_v16 }
 0x155   :  { %v1080_v16 = vmul.f32 0.2, %v1016_v21  ;;  %vm1048_vm12 = vcmp.gt.f32.partialorder %v1016_v21, 0.0  ;;  %v910_v35 = vcombine.high %v906_v14, %v906_v14  ;;  %vm1047_vm13 = vcmp.gt.f32.partialorder %v1015_v11, 0.0 }
 0x156   :  { %1197 = vadd.xlane.f32.xlu1 %v1196_v15  ;;  %1194 = vadd.xlane.f32.xlu0 %v1193_v46  ;;  %v1143_v46 = vmul.f32 %v4243_v22, %v4381_v27  ;;  %v1077_v15 = vmul.f32 0.2, %v1013_v26  ;;  %v1018_v63 = vadd.f32 %v966_v8, %v4113_v23  ;;  %v970_v42 = vrot.slane %v908_v52, %v3796_v9 }
 0x158   :  { %v1211_v48 = vsel %vm426_vm0, %v1143_v46, 0.0  ;;  %v4408_v58 = vsel %vm1045_vm11, %v1013_v26, %v1077_v15  ;;  %v1220_v46 = vsel %vm426_vm0, %v1146_v20, 0.0  ;;  %v4419_v15 = vsel %vm1048_vm12, %v1016_v21, %v1080_v16 }
 0x159   :  { %v1082_v52 = vmul.f32 0.2, %v1018_v63  ;;  %v1020_v54 = vadd.f32 %v970_v42, %v4113_v23  ;;  %v1019_v14 = vadd.f32 %v970_v42, %v4122_v47  ;;  %vm1050_vm14 = vcmp.gt.f32.partialorder %v1018_v63, 0.0 }
 0x15a   :  { %1203 = vadd.xlane.f32.xlu1 %v1202_v28  ;;  %1200 = vadd.xlane.f32.xlu0 %v1199_v25  ;;  %v1145_v28 = vmul.f32 %v4243_v22, %v4395_v2  ;;  %v4406_v25 = vsel %vm1046_vm10, %v1014_v59, %v1078_v39  ;;  %v1147_v39 = vmul.f32 %v4243_v22, %v4408_v58 }
 0x15b   :  { %v1148_v26 = vmul.f32 %v4243_v22, %v4406_v25  ;;  %v1150_v21 = vmul.f32 %v4243_v22, %v4419_v15  ;;  %v4432_v42 = vsel %vm1050_vm14, %v1018_v63, %v1082_v52  ;;  %v1083_v3 = vmul.f32 0.2, %v1019_v14 }
 0x15c   :  { %v1217_v59 = vsel %vm426_vm0, %v1145_v28, 0.0  ;;  %v1223_v28 = vsel %vm426_vm0, %v1147_v39, 0.0  ;;  %vm1052_vm1 = vcmp.gt.f32.partialorder %v1020_v54, 0.0  ;;  %vm1051_vm2 = vcmp.gt.f32.partialorder %v1019_v14, 0.0 }
 0x15d   :  { %v1226_v20 = vsel %vm426_vm0, %v1148_v26, 0.0  ;;  %v1152_v63 = vmul.f32 %v4243_v22, %v4432_v42  ;;  %v4446_v52 = vsel %vm1051_vm2, %v1019_v14, %v1083_v3 }
 0x15e   :  { %1209 = vadd.xlane.f32.xlu1 %v1208_v62  ;;  %1206 = vadd.xlane.f32.xlu0 %v1205_v51  ;;  %v1079_v62 = vmul.f32 0.2, %v1015_v11  ;;  %v1017_v51 = vadd.f32 %v966_v8, %v4122_v47 }
 0x160   :  { %v4423_v8 = vsel %vm1047_vm13, %v1015_v11, %v1079_v62  ;;  %vm1049_vm15 = vcmp.gt.f32.partialorder %v1017_v51, 0.0  ;;  %v1084_v11 = vmul.f32 0.2, %v1020_v54 }
 0x161   :  { %v1149_v16 = vmul.f32 %v4243_v22, %v4423_v8 }
 0x162   :  { %1215 = vadd.xlane.f32.xlu1 %v1214_v61  ;;  %1212 = vadd.xlane.f32.xlu0 %v1211_v48  ;;  %v1081_v61 = vmul.f32 0.2, %v1017_v51  ;;  %v974_v48 = vrot.slane %v910_v35, %v3796_v9  ;;  %v4444_v39 = vsel %vm1052_vm1, %v1020_v54, %v1084_v11 }
 0x163   :  { %v1229_v26 = vsel %vm426_vm0, %v1149_v16, 0.0 }
 0x164   :  { %v4434_v62 = vsel %vm1049_vm15, %v1017_v51, %v1081_v61  ;;  %v1022_v35 = vadd.f32 %v974_v48, %v4113_v23  ;;  %v1238_v61 = vsel %vm426_vm0, %v1152_v63, 0.0 }
 0x165   :  { %v1151_v51 = vmul.f32 %v4243_v22, %v4434_v62 }
 0x166   :  { %1221 = vadd.xlane.f32.xlu1 %v1220_v46  ;;  %1218 = vadd.xlane.f32.xlu0 %v1217_v59  ;;  %v1021_v46 = vadd.f32 %v974_v48, %v4122_v47  ;;  %v1232_v59 = vsel %vm426_vm0, %v1150_v21, 0.0  ;;  %v1086_v23 = vmul.f32 0.2, %v1022_v35  ;;  %vm1054_vm3 = vcmp.gt.f32.partialorder %v1022_v35, 0.0 }
 0x167   :  { %v1235_v48 = vsel %vm426_vm0, %v1151_v51, 0.0 }
 0x168   :  { %v1085_v47 = vmul.f32 0.2, %v1021_v46  ;;  %vm1053_vm4 = vcmp.gt.f32.partialorder %v1021_v46, 0.0  ;;  %v4454_v54 = vsel %vm1054_vm3, %v1022_v35, %v1086_v23  ;;  %v3694_v23 = vld [vmem:[#allocation5] sm:$0xf] }
 0x169   :  { %v1156_v16 = vmul.f32 %v4243_v22, %v4454_v54 }
 0x16a   :  { %1227 = vadd.xlane.f32.xlu1 %v1226_v20  ;;  %1224 = vadd.xlane.f32.xlu0 %v1223_v28  ;;  %v1154_v20 = vmul.f32 %v4243_v22, %v4444_v39  ;;  %v1153_v28 = vmul.f32 %v4243_v22, %v4446_v52  ;;  %v4456_v3 = vsel %vm1053_vm4, %v1021_v46, %v1085_v47 }
 0x16b   :  { %v1155_v11 = vmul.f32 %v4243_v22, %v4456_v3 }
 0x16c   :  { %v1244_v14 = vsel %vm426_vm0, %v1154_v20, 0.0  ;;  %v1241_v21 = vsel %vm426_vm0, %v1153_v28, 0.0 }
 0x16d   :  { %v1247_v35 = vsel %vm426_vm0, %v1155_v11, 0.0 }
 0x16e   :  { %1233 = vadd.xlane.f32.xlu1 %v1232_v59  ;;  %1230 = vadd.xlane.f32.xlu0 %v1229_v26  ;;  %v1250_v59 = vsel %vm426_vm0, %v1156_v16, 0.0 }
 0x172   :  { %1239 = vadd.xlane.f32.xlu1 %v1238_v61  ;;  %1236 = vadd.xlane.f32.xlu0 %v1235_v48 }
 0x176   :  { %1245 = vadd.xlane.f32.xlu1 %v1244_v14  ;;  %1242 = vadd.xlane.f32.xlu0 %v1241_v21 }
 0x17a   :  { %1251 = vadd.xlane.f32.xlu1 %v1250_v59  ;;  %1248 = vadd.xlane.f32.xlu0 %v1247_v35 }
 0x181   :  { %v4466_v46 = vpop.xlane.xlu0 %684 }
 0x182   :  { %6437 = vst [vmem:[#allocation45_spill] sm:$0xff] %v4466_v46 }
 0x187   :  { %v4468_v26 = vpop.xlane.xlu0 %690 }
 0x188   :  { %6438 = vst [vmem:[#allocation46_spill] sm:$0xff] %v4468_v26 }
 0x18b   :  { %v4470_v63 = vpop.xlane.xlu0 %693 }
 0x18c   :  { %6439 = vst [vmem:[#allocation47_spill] sm:$0xff] %v4470_v63 }
 0x18f   :  { %v4472_v51 = vpop.xlane.xlu0 %696 }
 0x190   :  { %6440 = vst [vmem:[#allocation48_spill] sm:$0xff] %v4472_v51  ;;  %1285 = vrot.lane.b32.xlu0 %v3694_v23, %s3745_s9 }
 0x193   :  { %v4475_v22 = vpop.xlane.xlu0 %702 }
 0x194   :  { %6441 = vst [vmem:[#allocation49_spill] sm:$0xff] %v4475_v22 }
 0x197   :  { %v4477_v47 = vpop.xlane.xlu0 %708 }
 0x198   :  { %6442 = vst [vmem:[#allocation50_spill] sm:$0xff] %v4477_v47 }
 0x19b   :  { %v4479_v61 = vpop.xlane.xlu0 %714 }
 0x19c   :  { %6443 = vst [vmem:[#allocation51_spill] sm:$0xff] %v4479_v61 }
 0x19f   :  { %v4481_v48 = vpop.xlane.xlu0 %720 }
 0x1a0   :  { %6444 = vst [vmem:[#allocation52_spill] sm:$0xff] %v4481_v48  ;;  %v4503_v48 = vpop.xlane.xlu1 %687 }
 0x1a1   :  { %6455 = vst [vmem:[#allocation63_spill] sm:$0xff] %v4503_v48 }
 0x1a3   :  { %v4483_v20 = vpop.xlane.xlu0 %726 }
 0x1a4   :  { %6445 = vst [vmem:[#allocation53_spill] sm:$0xff] %v4483_v20  ;;  %v4507_v44 = vpop.xlane.xlu1 %699 }
 0x1a5   :  { %6457 = vst [vmem:[#allocation65_spill] sm:$0xff] %v4507_v44 }
 0x1a7   :  { %v4485_v28 = vpop.xlane.xlu0 %732 }
 0x1a8   :  { %6446 = vst [vmem:[#allocation54_spill] sm:$0xff] %v4485_v28 }
 0x1ab   :  { %v4487_v14 = vpop.xlane.xlu0 %738 }
 0x1ac   :  { %6447 = vst [vmem:[#allocation55_spill] sm:$0xff] %v4487_v14 }
 0x1af   :  { %v4489_v21 = vpop.xlane.xlu0 %744 }
 0x1b0   :  { %6448 = vst [vmem:[#allocation56_spill] sm:$0xff] %v4489_v21  ;;  %v4511_v21 = vpop.xlane.xlu1 %705 }
 0x1b1   :  { %6459 = vst [vmem:[#allocation67_spill] sm:$0xff] %v4511_v21 }
 0x1b3   :  { %v4491_v16 = vpop.xlane.xlu0 %750 }
 0x1b4   :  { %6449 = vst [vmem:[#allocation57_spill] sm:$0xff] %v4491_v16 }
 0x1b7   :  { %v4493_v11 = vpop.xlane.xlu0 %756 }
 0x1b8   :  { %6450 = vst [vmem:[#allocation58_spill] sm:$0xff] %v4493_v11 }
 0x1bb   :  { %v4495_v59 = vpop.xlane.xlu0 %762 }
 0x1bc   :  { %6451 = vst [vmem:[#allocation59_spill] sm:$0xff] %v4495_v59  ;;  %v4517_v59 = vpop.xlane.xlu1 %711 }
 0x1bd   :  { %6462 = vst [vmem:[#allocation70_spill] sm:$0xff] %v4517_v59 }
 0x1bf   :  { %v4497_v35 = vpop.xlane.xlu0 %768 }
 0x1c0   :  { %6452 = vst [vmem:[#allocation60_spill] sm:$0xff] %v4497_v35 }
 0x1c3   :  { %v4499_v23 = vpop.xlane.xlu0 %774 }
 0x1c4   :  { %6453 = vst [vmem:[#allocation61_spill] sm:$0xff] %v4499_v23  ;;  %v4521_v23 = vpop.xlane.xlu1 %717 }
 0x1c5   :  { %6464 = vst [vmem:[#allocation72_spill] sm:$0xff] %v4521_v23 }
 0x1c7   :  { %v4501_v61 = vpop.xlane.xlu0 %1158 }
 0x1c8   :  { %6454 = vst [vmem:[#allocation62_spill] sm:$0xff] %v4501_v61  ;;  %v4527_v30 = vpop.xlane.xlu1 %723 }
 0x1c9   :  { %6467 = vst [vmem:[#allocation75_spill] sm:$0xff] %v4527_v30 }
 0x1cb   :  { %v4505_v20 = vpop.xlane.xlu0 %1164 }
 0x1cc   :  { %6456 = vst [vmem:[#allocation64_spill] sm:$0xff] %v4505_v20  ;;  %v4531_v47 = vpop.xlane.xlu1 %729 }
 0x1cd   :  { %6469 = vst [vmem:[#allocation77_spill] sm:$0xff] %v4531_v47 }
 0x1cf   :  { %v4509_v14 = vpop.xlane.xlu0 %1170 }
 0x1d0   :  { %6458 = vst [vmem:[#allocation66_spill] sm:$0xff] %v4509_v14 }
 0x1d3   :  { %v4513_v16 = vpop.xlane.xlu0 %1176 }
 0x1d4   :  { %6460 = vst [vmem:[#allocation68_spill] sm:$0xff] %v4513_v16 }
 0x1d7   :  { %v4515_v11 = vpop.xlane.xlu0 %1182 }
 0x1d8   :  { %6461 = vst [vmem:[#allocation69_spill] sm:$0xff] %v4515_v11  ;;  %v4537_v11 = vpop.xlane.xlu1 %735 }
 0x1d9   :  { %6472 = vst [vmem:[#allocation80_spill] sm:$0xff] %v4537_v11 }
 0x1db   :  { %v4519_v35 = vpop.xlane.xlu0 %1188 }
 0x1dc   :  { %6463 = vst [vmem:[#allocation71_spill] sm:$0xff] %v4519_v35  ;;  %v4541_v35 = vpop.xlane.xlu1 %741 }
 0x1dd   :  { %6474 = vst [vmem:[#allocation82_spill] sm:$0xff] %v4541_v35 }
 0x1df   :  { %v4523_v49 = vpop.xlane.xlu0 %1194 }
 0x1e0   :  { %6465 = vst [vmem:[#allocation73_spill] sm:$0xff] %v4523_v49 }
 0x1e3   :  { %v4525_v28 = vpop.xlane.xlu0 %1200 }
 0x1e4   :  { %6466 = vst [vmem:[#allocation74_spill] sm:$0xff] %v4525_v28  ;;  %v4547_v28 = vpop.xlane.xlu1 %747 }
 0x1e5   :  { %6477 = vst [vmem:[#allocation85_spill] sm:$0xff] %v4547_v28 }
 0x1e7   :  { %v4529_v17 = vpop.xlane.xlu0 %1206 }
 0x1e8   :  { %6468 = vst [vmem:[#allocation76_spill] sm:$0xff] %v4529_v17  ;;  %v4551_v17 = vpop.xlane.xlu1 %753 }
 0x1e9   :  { %6479 = vst [vmem:[#allocation87_spill] sm:$0xff] %v4551_v17 }
 0x1eb   :  { %v4533_v24 = vpop.xlane.xlu0 %1212 }
 0x1ec   :  { %6470 = vst [vmem:[#allocation78_spill] sm:$0xff] %v4533_v24 }
 0x1ef   :  { %v4535_v21 = vpop.xlane.xlu0 %1218 }
 0x1f0   :  { %6471 = vst [vmem:[#allocation79_spill] sm:$0xff] %v4535_v21  ;;  %v4557_v21 = vpop.xlane.xlu1 %759 }
 0x1f1   :  { %6481 = vst [vmem:[#allocation89_spill] sm:$0xff] %v4557_v21 }
 0x1f3   :  { %v4539_v59 = vpop.xlane.xlu0 %1224 }
 0x1f4   :  { %6473 = vst [vmem:[#allocation81_spill] sm:$0xff] %v4539_v59  ;;  %v4562_v11 = vpop.xlane.xlu1 %765 }
 0x1f5   :  { %6482 = vst [vmem:[#allocation90_spill] sm:$0xff] %v4562_v11 }
 0x1f7   :  { %v4543_v23 = vpop.xlane.xlu0 %1230 }
 0x1f8   :  { %6475 = vst [vmem:[#allocation83_spill] sm:$0xff] %v4543_v23 }
 0x1fb   :  { %v4545_v49 = vpop.xlane.xlu0 %1236 }
 0x1fc   :  { %6476 = vst [vmem:[#allocation84_spill] sm:$0xff] %v4545_v49  ;;  %v4564_v49 = vpop.xlane.xlu1 %771 }
 0x1fd   :  { %6483 = vst [vmem:[#allocation91_spill] sm:$0xff] %v4564_v49 }
 0x1ff   :  { %v4549_v30 = vpop.xlane.xlu0 %1242 }
 0x200   :  { %6478 = vst [vmem:[#allocation86_spill] sm:$0xff] %v4549_v30  ;;  %v4566_v28 = vpop.xlane.xlu1 %777 }
 0x201   :  { %6484 = vst [vmem:[#allocation92_spill] sm:$0xff] %v4566_v28 }
 0x203   :  { %v4553_v47 = vpop.xlane.xlu0 %1248 }
 0x204   :  { %6480 = vst [vmem:[#allocation88_spill] sm:$0xff] %v4553_v47  ;;  %v4568_v30 = vpop.xlane.xlu1 %1161 }
 0x205   :  { %6485 = vst [vmem:[#allocation93_spill] sm:$0xff] %v4568_v30 }
 0x207   :  { %v4555_v24 = vpop.permute.xlu0 %1285 }
 0x208   :  { %v1287_v59 = vrot.slane %v4555_v24, 1  ;;  %v4570_v17 = vpop.xlane.xlu1 %1167 }
 0x209   :  { %6486 = vst [vmem:[#allocation94_spill] sm:$0xff] %v4570_v17 }
 0x20a   :  { %v1291_v35 = vrot.slane %v1287_v59, %v3796_v9 }
 0x20c   :  { %1292 = vrot.lane.b32.xlu1 %v1291_v35, %s3745_s9  ;;  %v4572_v47 = vpop.xlane.xlu1 %1173 }
 0x20d   :  { %6487 = vst [vmem:[#allocation95_spill] sm:$0xff] %v4572_v47 }
 0x210   :  { %v4574_v23 = vpop.xlane.xlu1 %1179 }
 0x211   :  { %6488 = vst [vmem:[#allocation96_spill] sm:$0xff] %v4574_v23 }
 0x214   :  { %v4576_v21 = vpop.xlane.xlu1 %1185 }
 0x215   :  { %6489 = vst [vmem:[#allocation97_spill] sm:$0xff] %v4576_v21 }
 0x218   :  { %v4578_v40 = vpop.xlane.xlu1 %1191 }
 0x219   :  { %6490 = vst [vmem:[#allocation98_spill] sm:$0xff] %v4578_v40 }
 0x21c   :  { %v4580_v59 = vpop.xlane.xlu1 %1197 }
 0x21d   :  { %6491 = vst [vmem:[#allocation99_spill] sm:$0xff] %v4580_v59 }
 0x220   :  { %v4582_v35 = vpop.xlane.xlu1 %1203 }
 0x221   :  { %6492 = vst [vmem:[#allocation100_spill] sm:$0xff] %v4582_v35 }
 0x224   :  { %v4584_v11 = vpop.xlane.xlu1 %1209 }
 0x225   :  { %6493 = vst [vmem:[#allocation101_spill] sm:$0xff] %v4584_v11 }
 0x228   :  { %v4586_v49 = vpop.xlane.xlu1 %1215 }
 0x229   :  { %6494 = vst [vmem:[#allocation102_spill] sm:$0xff] %v4586_v49 }
 0x22c   :  { %v4588_v28 = vpop.xlane.xlu1 %1221 }
 0x22d   :  { %6495 = vst [vmem:[#allocation103_spill] sm:$0xff] %v4588_v28 }
 0x230   :  { %v4590_v16 = vpop.xlane.xlu1 %1227 }
 0x231   :  { %6496 = vst [vmem:[#allocation104_spill] sm:$0xff] %v4590_v16 }
 0x234   :  { %v4592_v22 = vpop.xlane.xlu1 %1233 }
 0x235   :  { %6497 = vst [vmem:[#allocation105_spill] sm:$0xff] %v4592_v22 }
 0x238   :  { %v4594_v31 = vpop.xlane.xlu1 %1239 }
 0x239   :  { %6498 = vst [vmem:[#allocation106_spill] sm:$0xff] %v4594_v31 }
 0x23c   :  { %v4596_v23 = vpop.xlane.xlu1 %1245 }
 0x23d   :  { %6499 = vst [vmem:[#allocation107_spill] sm:$0xff] %v4596_v23 }
 0x240   :  { %v4598_v21 = vpop.xlane.xlu1 %1251 }
 0x241   :  { %6500 = vst [vmem:[#allocation108_spill] sm:$0xff] %v4598_v21 }
 0x27e   :  { %v4600_v40 = vpop.permute.xlu1 %1292 }
 0x27f   :  { %v1297_v35 = vmul.f32 %v4600_v40, %v4251_v38  ;;  %v1295_v49 = vmul.f32 %v4600_v40, %v4246_v60  ;;  %v1299_v11 = vmul.f32 %v4600_v40, %v4270_v13  ;;  %v1296_v31 = vmul.f32 %v4600_v40, %v4240_v19 }
 0x280   :  { %v1301_v38 = vmul.f32 %v4600_v40, %v4293_v7  ;;  %v1298_v60 = vmul.f32 %v4600_v40, %v4249_v36  ;;  %v1300_v19 = vmul.f32 %v4600_v40, %v4267_v12  ;;  %v1302_v36 = vmul.f32 %v4600_v40, %v4291_v29 }
 0x281   :  { %1363 = vrot.lane.b32.xlu0 %v1297_v35, %s3745_s9  ;;  %1359 = vrot.lane.b32.xlu1 %v1295_v49, %s3745_s9  ;;  %v1303_v49 = vmul.f32 %v4600_v40, %v4308_v33  ;;  %v1307_v13 = vmul.f32 %v4600_v40, %v4341_v34  ;;  %v1304_v12 = vmul.f32 %v4600_v40, %v4306_v4 }
 0x282   :  { %v1306_v29 = vmul.f32 %v4600_v40, %v4322_v32  ;;  %v1311_v7 = vmul.f32 %v4600_v40, %v4364_v0  ;;  %v1308_v4 = vmul.f32 %v4600_v40, %v4336_v41  ;;  %v1313_v33 = vmul.f32 %v4600_v40, %v4381_v27 }
 0x283   :  { %v1310_v32 = vmul.f32 %v4600_v40, %v4343_v18  ;;  %v1315_v34 = vmul.f32 %v4600_v40, %v4395_v2  ;;  %v1312_v41 = vmul.f32 %v4600_v40, %v4362_v10  ;;  %v1314_v18 = vmul.f32 %v4600_v40, %v4379_v37 }
 0x284   :  { %v1319_v0 = vmul.f32 %v4600_v40, %v4423_v8  ;;  %v1316_v10 = vmul.f32 %v4600_v40, %v4393_v55  ;;  %v1321_v27 = vmul.f32 %v4600_v40, %v4434_v62  ;;  %v1318_v37 = vmul.f32 %v4600_v40, %v4406_v25 }
 0x285   :  { %1367 = vrot.lane.b32.xlu0 %v1299_v11, %s3745_s9  ;;  %1361 = vrot.lane.b32.xlu1 %v1296_v31, %s3745_s9  ;;  %v1305_v31 = vmul.f32 %v4600_v40, %v4324_v56  ;;  %v1309_v56 = vmul.f32 %v4600_v40, %v4345_v45  ;;  %v1317_v45 = vmul.f32 %v4600_v40, %v4408_v58 }
 0x286   :  { %v1323_v2 = vmul.f32 %v4600_v40, %v4446_v52  ;;  %v1320_v55 = vmul.f32 %v4600_v40, %v4419_v15  ;;  %v1325_v58 = vmul.f32 %v4600_v40, %v4456_v3  ;;  %v1322_v25 = vmul.f32 %v4600_v40, %v4432_v42 }
 0x287   :  { %v1324_v8 = vmul.f32 %v4600_v40, %v4444_v39  ;;  %v1326_v15 = vmul.f32 %v4600_v40, %v4454_v54 }
 0x289   :  { %1371 = vrot.lane.b32.xlu0 %v1301_v38, %s3745_s9  ;;  %1365 = vrot.lane.b32.xlu1 %v1298_v60, %s3745_s9 }
 0x28d   :  { %1375 = vrot.lane.b32.xlu0 %v1303_v49, %s3745_s9  ;;  %1369 = vrot.lane.b32.xlu1 %v1300_v19, %s3745_s9 }
 0x291   :  { %1379 = vrot.lane.b32.xlu0 %v1305_v31, %s3745_s9  ;;  %1373 = vrot.lane.b32.xlu1 %v1302_v36, %s3745_s9  ;;  %v2057_v36 = vrot.slane %v4555_v24, 2 }
 0x295   :  { %1383 = vrot.lane.b32.xlu0 %v1307_v13, %s3745_s9  ;;  %1377 = vrot.lane.b32.xlu1 %v1304_v12, %s3745_s9  ;;  %v2061_v13 = vrot.slane %v2057_v36, %v3796_v9  ;;  %v2827_v12 = vrot.slane %v4555_v24, 3  ;;  %v4729_v24 = vld [vmem:[%s6362_s0 + $0x10] sm:$0xff] }
 0x299   :  { %1387 = vrot.lane.b32.xlu0 %v1309_v56, %s3745_s9  ;;  %1381 = vrot.lane.b32.xlu1 %v1306_v29, %s3745_s9  ;;  %v4712_v56 = vld [vmem:[%s6362_s0 + $0x38] sm:$0xff]  ;;  %v4717_v29 = vld [vmem:[%s6362_s0 + $0x30] sm:$0xff] }
 0x29a   :  { %3517 = vmatprep.subr.mxu1 %v4712_v56 }
 0x29b   :  { %3518 = vmatpush1.msra.mxu1 %v4717_v29 }
 0x29d   :  { %1391 = vrot.lane.b32.xlu0 %v1311_v7, %s3745_s9  ;;  %1385 = vrot.lane.b32.xlu1 %v1308_v4, %s3745_s9  ;;  %v4723_v7 = vld [vmem:[%s6362_s0 + $0x18] sm:$0xff]  ;;  %v2831_v4 = vrot.slane %v2827_v12, %v3796_v9 }
 0x29e   :  { %3519 = vmatprep.subr.mxu1 %v4723_v7 }
 0x29f   :  { %3520 = vmatpush1.msra.mxu1 %v4729_v24 }
 0x2a1   :  { %1395 = vrot.lane.b32.xlu0 %v1313_v33, %s3745_s9  ;;  %1389 = vrot.lane.b32.xlu1 %v1310_v32, %s3745_s9 }
 0x2a5   :  { %1399 = vrot.lane.b32.xlu0 %v1315_v34, %s3745_s9  ;;  %1393 = vrot.lane.b32.xlu1 %v1312_v41, %s3745_s9 }
 0x2a9   :  { %1403 = vrot.lane.b32.xlu0 %v1317_v45, %s3745_s9  ;;  %1397 = vrot.lane.b32.xlu1 %v1314_v18, %s3745_s9 }
 0x2ad   :  { %1407 = vrot.lane.b32.xlu0 %v1319_v0, %s3745_s9  ;;  %1401 = vrot.lane.b32.xlu1 %v1316_v10, %s3745_s9 }
 0x2b1   :  { %1411 = vrot.lane.b32.xlu0 %v1321_v27, %s3745_s9  ;;  %1405 = vrot.lane.b32.xlu1 %v1318_v37, %s3745_s9 }
 0x2b5   :  { %1415 = vrot.lane.b32.xlu0 %v1323_v2, %s3745_s9  ;;  %1409 = vrot.lane.b32.xlu1 %v1320_v55, %s3745_s9 }
 0x2b9   :  { %1419 = vrot.lane.b32.xlu0 %v1325_v58, %s3745_s9  ;;  %1413 = vrot.lane.b32.xlu1 %v1322_v25, %s3745_s9 }
 0x2bd   :  { %1417 = vrot.lane.b32.xlu1 %v1324_v8, %s3745_s9 }
 0x2c1   :  { %1421 = vrot.lane.b32.xlu1 %v1326_v15, %s3745_s9 }
 0x2f3   :  { %v1360_v62 = vpop.permute.xlu1 %1359  ;;  %v1364_v3 = vpop.permute.xlu0 %1363 }
 0x2f4   :  { %v1455_v52 = vsel %vm426_vm0, %v1360_v62, 0.0  ;;  %v1461_v11 = vsel %vm426_vm0, %v1364_v3, 0.0 }
 0x2f5   :  { %1456 = vadd.xlane.f32.xlu0 %v1455_v52 }
 0x2f7   :  { %v1362_v42 = vpop.permute.xlu1 %1361  ;;  %v1368_v39 = vpop.permute.xlu0 %1367 }
 0x2f8   :  { %v1458_v35 = vsel %vm426_vm0, %v1362_v42, 0.0  ;;  %v1467_v54 = vsel %vm426_vm0, %v1368_v39, 0.0 }
 0x2f9   :  { %1462 = vadd.xlane.f32.xlu0 %v1461_v11  ;;  %1459 = vadd.xlane.f32.xlu1 %v1458_v35 }
 0x2fb   :  { %v1366_v38 = vpop.permute.xlu1 %1365  ;;  %v1372_v19 = vpop.permute.xlu0 %1371 }
 0x2fc   :  { %v1464_v60 = vsel %vm426_vm0, %v1366_v38, 0.0  ;;  %v1473_v31 = vsel %vm426_vm0, %v1372_v19, 0.0 }
 0x2fd   :  { %1465 = vadd.xlane.f32.xlu0 %v1464_v60 }
 0x2ff   :  { %v1370_v40 = vpop.permute.xlu1 %1369  ;;  %v1376_v32 = vpop.permute.xlu0 %1375 }
 0x300   :  { %v1470_v49 = vsel %vm426_vm0, %v1370_v40, 0.0  ;;  %v1479_v27 = vsel %vm426_vm0, %v1376_v32, 0.0  ;;  %v71_v32 = vld [vmem:[%s6363_s1 + $0x10] sm:$0xff] }
 0x301   :  { %1468 = vadd.xlane.f32.xlu0 %v1467_v54  ;;  %1471 = vadd.xlane.f32.xlu1 %v1470_v49 }
 0x303   :  { %v1374_v33 = vpop.permute.xlu1 %1373  ;;  %v1380_v41 = vpop.permute.xlu0 %1379 }
 0x304   :  { %v1476_v0 = vsel %vm426_vm0, %v1374_v33, 0.0  ;;  %v1485_v58 = vsel %vm426_vm0, %v1380_v41, 0.0  ;;  %v1592_v41 = vrot.slane %v71_v32, %v3789_v5 }
 0x305   :  { %1474 = vadd.xlane.f32.xlu0 %v1473_v31 }
 0x307   :  { %v1378_v34 = vpop.permute.xlu1 %1377  ;;  %v1384_v18 = vpop.permute.xlu0 %1383 }
 0x308   :  { %v1482_v37 = vsel %vm426_vm0, %v1378_v34, 0.0  ;;  %v1491_v15 = vsel %vm426_vm0, %v1384_v18, 0.0  ;;  %v1600_v18 = vcombine.high %v1592_v41, %v1592_v41 }
 0x30b   :  { %v1382_v45 = vpop.permute.xlu1 %1381  ;;  %v1388_v2 = vpop.permute.xlu0 %1387 }
 0x30c   :  { %v1488_v25 = vsel %vm426_vm0, %v1382_v45, 0.0  ;;  %v1497_v3 = vsel %vm426_vm0, %v1388_v2, 0.0 }
 0x30f   :  { %v1386_v10 = vpop.permute.xlu1 %1385  ;;  %v1392_v8 = vpop.permute.xlu0 %1391 }
 0x310   :  { %v1494_v62 = vsel %vm426_vm0, %v1386_v10, 0.0  ;;  %v1503_v39 = vsel %vm426_vm0, %v1392_v8, 0.0  ;;  %v1608_v10 = vrot.slane %v1592_v41, %v3789_v5 }
 0x312   :  { %2062 = vrot.lane.b32.xlu1 %v2061_v13, %s3745_s9  ;;  %v1686_v2 = vrot.slane %v1608_v10, %v3796_v9 }
 0x313   :  { %v1390_v55 = vpop.permute.xlu1 %1389  ;;  %v1396_v11 = vpop.permute.xlu0 %1395 }
 0x314   :  { %v1500_v42 = vsel %vm426_vm0, %v1390_v55, 0.0  ;;  %v1509_v40 = vsel %vm426_vm0, %v1396_v11, 0.0  ;;  %v1630_v55 = vcombine.high %v1608_v10, %v1608_v10 }
 0x317   :  { %v1394_v52 = vpop.permute.xlu1 %1393  ;;  %v1400_v60 = vpop.permute.xlu0 %1399 }
 0x318   :  { %v1506_v38 = vsel %vm426_vm0, %v1394_v52, 0.0  ;;  %v1515_v19 = vsel %vm426_vm0, %v1400_v60, 0.0  ;;  %v1694_v52 = vrot.slane %v1630_v55, %v3796_v9 }
 0x31a   :  { %v1767_v59 = vadd.f32 %v1694_v52, %v4729_v24 }
 0x31b   :  { %2832 = vrot.lane.b32.xlu0 %v2831_v4, %s3745_s9  ;;  %v1398_v35 = vpop.permute.xlu1 %1397  ;;  %v1404_v36 = vpop.permute.xlu0 %1403 }
 0x31c   :  { %v1512_v54 = vsel %vm426_vm0, %v1398_v35, 0.0  ;;  %v1521_v13 = vsel %vm426_vm0, %v1404_v36, 0.0  ;;  %vm1799_vm12 = vcmp.gt.f32.partialorder %v1767_v59, 0.0 }
 0x31f   :  { %v1402_v49 = vpop.permute.xlu1 %1401  ;;  %v4755_v33 = vpop.permute.xlu0 %1407 }
 0x320   :  { %v1518_v31 = vsel %vm426_vm0, %v1402_v49, 0.0 }
 0x323   :  { %v4751_v12 = vpop.permute.xlu1 %1405  ;;  %v4763_v45 = vpop.permute.xlu0 %1411 }
 0x324   :  { %6502 = vst [vmem:[#allocation110_spill] sm:$0xff] %v4763_v45 }
 0x327   :  { %v4753_v4 = vpop.permute.xlu1 %1409 }
 0x32b   :  { %v4760_v34 = vpop.permute.xlu1 %1413 }
 0x32c   :  { %6501 = vst [vmem:[#allocation109_spill] sm:$0xff] %v4760_v34 }
 0x336   :  { %1477 = vadd.xlane.f32.xlu1 %v1476_v0  ;;  %v4765_v0 = vpop.permute.xlu1 %1417 }
 0x337   :  { %6503 = vst [vmem:[#allocation111_spill] sm:$0xff] %v4765_v0 }
 0x33a   :  { %1480 = vadd.xlane.f32.xlu0 %v1479_v27  ;;  %1483 = vadd.xlane.f32.xlu1 %v1482_v37  ;;  %v1622_v27 = vrot.slane %v1600_v18, %v3789_v5  ;;  %v4769_v37 = vpop.permute.xlu0 %1415 }
 0x33b   :  { %6504 = vst [vmem:[#allocation112_spill] sm:$0xff] %v4769_v37 }
 0x33c   :  { %v1632_v8 = vcombine.high %v1622_v27, %v1622_v27 }
 0x33e   :  { %1486 = vadd.xlane.f32.xlu0 %v1485_v58  ;;  %1489 = vadd.xlane.f32.xlu1 %v1488_v25  ;;  %v1585_v58 = vcombine.high %v71_v32, %v71_v32  ;;  %v4772_v25 = vpop.permute.xlu1 %1421  ;;  %v4779_v11 = vpop.permute.xlu0 %1419 }
 0x33f   :  { %6505 = vst [vmem:[#allocation113_spill] sm:$0xff] %v4772_v25  ;;  %6506 = vst [vmem:[#allocation114_spill] sm:$0xff] %v4779_v11 }
 0x342   :  { %1492 = vadd.xlane.f32.xlu0 %v1491_v15  ;;  %1495 = vadd.xlane.f32.xlu1 %v1494_v62  ;;  %v1764_v15 = vadd.f32 %v1686_v2, %v4717_v29  ;;  %v1763_v62 = vadd.f32 %v1686_v2, %v4729_v24 }
 0x344   :  { %v1828_v60 = vmul.f32 0.2, %v1764_v15  ;;  %vm1796_vm5 = vcmp.gt.f32.partialorder %v1764_v15, 0.0  ;;  %vm1795_vm6 = vcmp.gt.f32.partialorder %v1763_v62, 0.0 }
 0x346   :  { %1498 = vadd.xlane.f32.xlu0 %v1497_v3  ;;  %1501 = vadd.xlane.f32.xlu1 %v1500_v42  ;;  %v1690_v3 = vrot.slane %v1622_v27, %v3796_v9  ;;  %v1599_v42 = vrot.slane %v1585_v58, %v3789_v5  ;;  %v4804_v27 = vsel %vm1796_vm5, %v1764_v15, %v1828_v60 }
 0x348   :  { %v1765_v49 = vadd.f32 %v1690_v3, %v4729_v24  ;;  %v1766_v10 = vadd.f32 %v1690_v3, %v4717_v29 }
 0x34a   :  { %1504 = vadd.xlane.f32.xlu0 %v1503_v39  ;;  %1507 = vadd.xlane.f32.xlu1 %v1506_v38  ;;  %v1698_v39 = vrot.slane %v1632_v8, %v3796_v9  ;;  %v4785_v38 = vrot.slane %v1599_v42, %v3789_v5  ;;  %v1829_v58 = vmul.f32 0.2, %v1765_v49  ;;  %vm1797_vm8 = vcmp.gt.f32.partialorder %v1765_v49, 0.0 }
 0x34b   :  { %v1830_v28 = vmul.f32 0.2, %v1766_v10  ;;  %vm1798_vm10 = vcmp.gt.f32.partialorder %v1766_v10, 0.0 }
 0x34c   :  { %v1770_v32 = vadd.f32 %v1698_v39, %v4717_v29  ;;  %v1702_v41 = vrot.slane %v4785_v38, %v3796_v9 }
 0x34e   :  { %1510 = vadd.xlane.f32.xlu0 %v1509_v40  ;;  %1513 = vadd.xlane.f32.xlu1 %v1512_v54  ;;  %v1827_v40 = vmul.f32 0.2, %v1763_v62  ;;  %v1768_v54 = vadd.f32 %v1694_v52, %v4717_v29  ;;  %v1834_v21 = vmul.f32 0.2, %v1770_v32  ;;  %v1772_v23 = vadd.f32 %v1702_v41, %v4717_v29 }
 0x34f   :  { %vm1802_vm9 = vcmp.gt.f32.partialorder %v1770_v32, 0.0 }
 0x350   :  { %v4806_v2 = vsel %vm1795_vm6, %v1763_v62, %v1827_v40  ;;  %v1832_v55 = vmul.f32 0.2, %v1768_v54  ;;  %vm1800_vm7 = vcmp.gt.f32.partialorder %v1768_v54, 0.0  ;;  %v4829_v22 = vsel %vm1802_vm9, %v1770_v32, %v1834_v21 }
 0x351   :  { %vm1804_vm11 = vcmp.gt.f32.partialorder %v1772_v23, 0.0  ;;  %v1831_v21 = vmul.f32 0.2, %v1767_v59  ;;  %v1769_v32 = vadd.f32 %v1698_v39, %v4729_v24 }
 0x352   :  { %1516 = vadd.xlane.f32.xlu0 %v1515_v19  ;;  %1519 = vadd.xlane.f32.xlu1 %v1518_v31  ;;  %v1601_v19 = vcombine.high %v1599_v42, %v1599_v42  ;;  %v4792_v31 = vld [vmem:[%s6363_s1 + $0x30] sm:$0xff]  ;;  %v4822_v40 = vsel %vm1800_vm7, %v1768_v54, %v1832_v55 }
 0x353   :  { %v1641_v18 = vrot.slane %v4792_v31, %v3789_v5  ;;  %vm1801_vm14 = vcmp.gt.f32.partialorder %v1769_v32, 0.0 }
 0x354   :  { %v4809_v8 = vrot.slane %v1601_v19, %v3789_v5  ;;  %v4824_v19 = vsel %vm1797_vm8, %v1765_v49, %v1829_v58  ;;  %v1836_v49 = vmul.f32 0.2, %v1772_v23  ;;  %v4842_v58 = vsel %vm1798_vm10, %v1766_v10, %v1830_v28 }
 0x355   :  { %v1649_v16 = vcombine.high %v1641_v18, %v1641_v18  ;;  %v4832_v14 = vrot.slane %v1641_v18, %v3789_v5  ;;  %v1771_v28 = vadd.f32 %v1702_v41, %v4729_v24  ;;  %v1833_v41 = vmul.f32 0.2, %v1769_v32 }
 0x356   :  { %1522 = vadd.xlane.f32.xlu0 %v1521_v13  ;;  %v1706_v62 = vrot.slane %v4809_v8, %v3796_v9 }
 0x357   :  { %v4835_v51 = vrot.slane %v1649_v16, %v3789_v5  ;;  %v1718_v18 = vrot.slane %v4832_v14, %v3796_v9  ;;  %v4852_v16 = vld [vmem:[%s6363_s1 + $0x18] sm:$0xff]  ;;  %vm1803_vm15 = vcmp.gt.f32.partialorder %v1771_v28, 0.0 }
 0x358   :  { %v1774_v55 = vadd.f32 %v1706_v62, %v4717_v29  ;;  %v2362_v10 = vrot.slane %v4852_v16, %v3789_v5 }
 0x359   :  { %v1722_v39 = vrot.slane %v4835_v51, %v3796_v9  ;;  %v1780_v47 = vadd.f32 %v1718_v18, %v4717_v29 }
 0x35a   :  { %v1838_v1 = vmul.f32 0.2, %v1774_v55  ;;  %vm1806_vm13 = vcmp.gt.f32.partialorder %v1774_v55, 0.0  ;;  %v4875_v6 = vrot.slane %v2362_v10, %v3789_v5 }
 0x35b   :  { %v1782_v44 = vadd.f32 %v1722_v39, %v4717_v29  ;;  %v1844_v20 = vmul.f32 0.2, %v1780_v47  ;;  %vm1812_vm1 = vcmp.gt.f32.partialorder %v1780_v47, 0.0  ;;  %v1781_v50 = vadd.f32 %v1722_v39, %v4729_v24 }
 0x35c   :  { %v2456_v26 = vrot.slane %v4875_v6, %v3796_v9 }
 0x35d   :  { %vm1814_vm2 = vcmp.gt.f32.partialorder %v1782_v44, 0.0  ;;  %vm1813_vm6 = vcmp.gt.f32.partialorder %v1781_v50, 0.0 }
 0x35e   :  { %v2533_v39 = vadd.f32 %v2456_v26, %v4723_v7 }
 0x360   :  { %vm2565_vm8 = vcmp.gt.f32.partialorder %v2533_v39, 0.0 }
 0x37e   :  { %v4794_v36 = vpop.xlane.xlu0 %1456 }
 0x37f   :  { %6508 = vst [vmem:[#allocation116_spill] sm:$0xff] %v4794_v36  ;;  %v1773_v36 = vadd.f32 %v1706_v62, %v4729_v24 }
 0x381   :  { %vm1805_vm3 = vcmp.gt.f32.partialorder %v1773_v36, 0.0 }
 0x382   :  { %v4781_v35 = vpop.xlane.xlu1 %1459  ;;  %v4820_v60 = vpop.xlane.xlu0 %1462 }
 0x383   :  { %6507 = vst [vmem:[#allocation115_spill] sm:$0xff] %v4781_v35  ;;  %6510 = vst [vmem:[#allocation118_spill] sm:$0xff] %v4820_v60  ;;  %v1835_v60 = vmul.f32 0.2, %v1771_v28 }
 0x38a   :  { %v4796_v13 = vpop.xlane.xlu1 %1471 }
 0x38b   :  { %6509 = vst [vmem:[#allocation117_spill] sm:$0xff] %v4796_v13  ;;  %v4868_v13 = vsel %vm1799_vm12, %v1767_v59, %v1831_v21  ;;  %v4881_v21 = vsel %vm1806_vm13, %v1774_v55, %v1838_v1  ;;  %v1846_v1 = vmul.f32 0.2, %v1782_v44 }
 0x38e   :  { %v4811_v42 = vpop.permute.xlu1 %2062 }
 0x38f   :  { %v2066_v3 = vmul.f32 %v4811_v42, %v4804_v27  ;;  %v2065_v15 = vmul.f32 %v4811_v42, %v4806_v2  ;;  %v2070_v54 = vmul.f32 %v4811_v42, %v4822_v40  ;;  %v2067_v52 = vmul.f32 %v4811_v42, %v4824_v19 }
 0x390   :  { %v2076_v62 = vmul.f32 %v4811_v42, %v4881_v21 }
 0x391   :  { %2131 = vrot.lane.b32.xlu0 %v2066_v3, %s3745_s9  ;;  %2129 = vrot.lane.b32.xlu1 %v2065_v15, %s3745_s9  ;;  %v4854_v3 = vpop.xlane.xlu0 %1465  ;;  %v2072_v15 = vmul.f32 %v4811_v42, %v4829_v22 }
 0x392   :  { %6511 = vst [vmem:[#allocation119_spill] sm:$0xff] %v4854_v3 }
 0x395   :  { %2139 = vrot.lane.b32.xlu0 %v2070_v54, %s3745_s9  ;;  %2133 = vrot.lane.b32.xlu1 %v2067_v52, %s3745_s9  ;;  %v2068_v54 = vmul.f32 %v4811_v42, %v4842_v58  ;;  %v4866_v52 = vsel %vm1804_vm11, %v1772_v23, %v1836_v49  ;;  %v2370_v23 = vcombine.high %v2362_v10, %v2362_v10 }
 0x396   :  { %v2074_v59 = vmul.f32 %v4811_v42, %v4866_v52  ;;  %v2069_v49 = vmul.f32 %v4811_v42, %v4868_v13  ;;  %v4892_v10 = vsel %vm1803_vm15, %v1771_v28, %v1835_v60  ;;  %v1837_v60 = vmul.f32 0.2, %v1773_v36 }
 0x397   :  { %v4895_v55 = vrot.slane %v2370_v23, %v3789_v5  ;;  %v2534_v28 = vadd.f32 %v2456_v26, %v4712_v56  ;;  %v2400_v26 = vcombine.high %v4875_v6, %v4875_v6 }
 0x399   :  { %2143 = vrot.lane.b32.xlu0 %v2072_v15, %s3745_s9  ;;  %2135 = vrot.lane.b32.xlu1 %v2068_v54, %s3745_s9  ;;  %v4883_v15 = vpop.xlane.xlu0 %1468  ;;  %v4885_v54 = vsel %vm1801_vm14, %v1769_v32, %v1833_v41  ;;  %v1631_v32 = vcombine.high %v4785_v38, %v4785_v38  ;;  %v2460_v23 = vrot.slane %v4895_v55, %v3796_v9  ;;  %v2598_v61 = vmul.f32 0.2, %v2534_v28 }
 0x39a   :  { %6512 = vst [vmem:[#allocation120_spill] sm:$0xff] %v4883_v15  ;;  %v2071_v41 = vmul.f32 %v4811_v42, %v4885_v54  ;;  %v4913_v15 = vsel %vm1814_vm2, %v1782_v44, %v1846_v1  ;;  %vm2566_vm5 = vcmp.gt.f32.partialorder %v2534_v28, 0.0  ;;  %v2402_v57 = vcombine.high %v4895_v55, %v4895_v55 }
 0x39b   :  { %v2536_v44 = vadd.f32 %v2460_v23, %v4712_v56  ;;  %v2084_v1 = vmul.f32 %v4811_v42, %v4913_v15  ;;  %v2535_v6 = vadd.f32 %v2460_v23, %v4723_v7  ;;  %v1634_v23 = vcombine.high %v4792_v31, %v4792_v31 }
 0x39d   :  { %2147 = vrot.lane.b32.xlu0 %v2074_v59, %s3745_s9  ;;  %2137 = vrot.lane.b32.xlu1 %v2069_v49, %s3745_s9  ;;  %v1779_v59 = vadd.f32 %v1718_v18, %v4729_v24  ;;  %v4904_v49 = vsel %vm1812_vm1, %v1780_v47, %v1844_v20  ;;  %v4911_v38 = vpop.xlane.xlu0 %1474  ;;  %v1679_v47 = vcombine.high %v4832_v14, %v4832_v14  ;;  %v1845_v14 = vmul.f32 0.2, %v1781_v50 }
 0x39e   :  { %6513 = vst [vmem:[#allocation121_spill] sm:$0xff] %v4911_v38  ;;  %v2082_v20 = vmul.f32 %v4811_v42, %v4904_v49  ;;  %v2073_v18 = vmul.f32 %v4811_v42, %v4892_v10  ;;  %vm2568_vm7 = vcmp.gt.f32.partialorder %v2536_v44, 0.0  ;;  %vm2567_vm10 = vcmp.gt.f32.partialorder %v2535_v6, 0.0 }
 0x39f   :  { %v1843_v3 = vmul.f32 0.2, %v1779_v59  ;;  %vm1811_vm4 = vcmp.gt.f32.partialorder %v1779_v59, 0.0  ;;  %v1726_v17 = vrot.slane %v1679_v47, %v3796_v9  ;;  %v4945_v46 = vsel %vm1813_vm6, %v1781_v50, %v1845_v14 }
 0x3a0   :  { %v2464_v14 = vrot.slane %v2400_v26, %v3796_v9 }
 0x3a1   :  { %2151 = vrot.lane.b32.xlu0 %v2076_v62, %s3745_s9  ;;  %2141 = vrot.lane.b32.xlu1 %v2071_v41, %s3745_s9  ;;  %v1710_v62 = vrot.slane %v1631_v32, %v3796_v9  ;;  %v4923_v41 = vsel %vm1805_vm3, %v1773_v36, %v1837_v60  ;;  %v4933_v32 = vsel %vm1811_vm4, %v1779_v59, %v1843_v3  ;;  %v4936_v38 = vpop.permute.xlu0 %2832  ;;  %v2597_v3 = vmul.f32 0.2, %v2533_v39 }
 0x3a2   :  { %v2075_v36 = vmul.f32 %v4811_v42, %v4923_v41  ;;  %v1633_v59 = vcombine.high %v4809_v8, %v4809_v8  ;;  %v1784_v50 = vadd.f32 %v1726_v17, %v4717_v29 }
 0x3a3   :  { %v1776_v60 = vadd.f32 %v1710_v62, %v4717_v29  ;;  %v4960_v8 = vsel %vm2565_vm8, %v2533_v39, %v2597_v3  ;;  %v2538_v39 = vadd.f32 %v2464_v14, %v4712_v56 }
 0x3a4   :  { %v1714_v43 = vrot.slane %v1633_v59, %v3796_v9  ;;  %v1848_v35 = vmul.f32 0.2, %v1784_v50  ;;  %vm1816_vm11 = vcmp.gt.f32.partialorder %v1784_v50, 0.0 }
 0x3a5   :  { %2163 = vrot.lane.b32.xlu0 %v2082_v20, %s3745_s9  ;;  %2145 = vrot.lane.b32.xlu1 %v2073_v18, %s3745_s9  ;;  %v4938_v20 = vsel %vm2566_vm5, %v2534_v28, %v2598_v61  ;;  %v2600_v18 = vmul.f32 0.2, %v2536_v44  ;;  %v2081_v28 = vmul.f32 %v4811_v42, %v4933_v32  ;;  %v1840_v47 = vmul.f32 0.2, %v1776_v60 }
 0x3a6   :  { %v2836_v61 = vmul.f32 %v4936_v38, %v4938_v20  ;;  %vm1808_vm9 = vcmp.gt.f32.partialorder %v1776_v60, 0.0  ;;  %v1778_v3 = vadd.f32 %v1714_v43, %v4717_v29  ;;  %vm2570_vm13 = vcmp.gt.f32.partialorder %v2538_v39, 0.0 }
 0x3a7   :  { %v4970_v26 = vsel %vm1808_vm9, %v1776_v60, %v1840_v47  ;;  %v1648_v60 = vrot.slane %v1634_v23, %v3789_v5  ;;  %v2355_v23 = vcombine.high %v4852_v16, %v4852_v16 }
 0x3a8   :  { %v2078_v59 = vmul.f32 %v4811_v42, %v4970_v26  ;;  %vm1810_vm14 = vcmp.gt.f32.partialorder %v1778_v3, 0.0 }
 0x3a9   :  { %2167 = vrot.lane.b32.xlu0 %v2084_v1, %s3745_s9  ;;  %2149 = vrot.lane.b32.xlu1 %v2075_v36, %s3745_s9  ;;  %v4954_v1 = vsel %vm2568_vm7, %v2536_v44, %v2600_v18  ;;  %v1775_v36 = vadd.f32 %v1710_v62, %v4729_v24  ;;  %v2083_v18 = vmul.f32 %v4811_v42, %v4945_v46 }
 0x3aa   :  { %v2838_v44 = vmul.f32 %v4936_v38, %v4954_v1  ;;  %v1681_v62 = vcombine.high %v4835_v51, %v4835_v51  ;;  %v1783_v51 = vadd.f32 %v1726_v17, %v4729_v24  ;;  %v1842_v17 = vmul.f32 0.2, %v1778_v3 }
 0x3ab   :  { %vm1807_vm12 = vcmp.gt.f32.partialorder %v1775_v36, 0.0  ;;  %v1839_v31 = vmul.f32 0.2, %v1775_v36  ;;  %v1650_v48 = vcombine.high %v1648_v60, %v1648_v60 }
 0x3ac   :  { %v1730_v63 = vrot.slane %v1681_v62, %v3796_v9  ;;  %vm1815_vm15 = vcmp.gt.f32.partialorder %v1783_v51, 0.0 }
 0x3ad   :  { %2901 = vrot.lane.b32.xlu0 %v2836_v61, %s3745_s9  ;;  %2161 = vrot.lane.b32.xlu1 %v2081_v28, %s3745_s9  ;;  %v2599_v61 = vmul.f32 0.2, %v2535_v6  ;;  %v2835_v28 = vmul.f32 %v4936_v38, %v4960_v8  ;;  %v5046_v11 = vrot.slane %v1650_v48, %v3789_v5 }
 0x3ae   :  { %v1786_v16 = vadd.f32 %v1730_v63, %v4717_v29 }
 0x3af   :  { %v4983_v47 = vsel %vm2567_vm10, %v2535_v6, %v2599_v61  ;;  %v4996_v6 = vsel %vm1807_vm12, %v1775_v36, %v1839_v31  ;;  %v1847_v61 = vmul.f32 0.2, %v1783_v51  ;;  %v2537_v36 = vadd.f32 %v2464_v14, %v4723_v7 }
 0x3b0   :  { %v2837_v55 = vmul.f32 %v4936_v38, %v4983_v47  ;;  %v2468_v31 = vrot.slane %v2402_v57, %v3796_v9  ;;  %v1850_v57 = vmul.f32 0.2, %v1786_v16  ;;  %vm1818_vm1 = vcmp.gt.f32.partialorder %v1786_v16, 0.0 }
 0x3b1   :  { %2905 = vrot.lane.b32.xlu0 %v2838_v44, %s3745_s9  ;;  %2165 = vrot.lane.b32.xlu1 %v2083_v18, %s3745_s9  ;;  %v4986_v44 = vsel %vm1816_vm11, %v1784_v50, %v1848_v35  ;;  %v2602_v18 = vmul.f32 0.2, %v2538_v39  ;;  %v4999_v35 = vrot.slane %v1648_v60, %v3789_v5  ;;  %v5022_v14 = vsel %vm1815_vm15, %v1783_v51, %v1847_v61 }
 0x3b2   :  { %6514 = vst [vmem:[#allocation122_spill] sm:$0xff] %v4986_v44  ;;  %v2086_v50 = vmul.f32 %v4811_v42, %v4986_v44  ;;  %vm2569_vm2 = vcmp.gt.f32.partialorder %v2537_v36, 0.0 }
 0x3b3   :  { %v5005_v62 = vsel %vm2570_vm13, %v2538_v39, %v2602_v18  ;;  %v2077_v39 = vmul.f32 %v4811_v42, %v4996_v6  ;;  %v5020_v18 = vsel %vm1810_vm14, %v1778_v3, %v1842_v17  ;;  %v2085_v17 = vmul.f32 %v4811_v42, %v5022_v14 }
 0x3b4   :  { %6515 = vst [vmem:[#allocation123_spill] sm:$0xff] %v5005_v62  ;;  %v2840_v30 = vmul.f32 %v4936_v38, %v5005_v62  ;;  %6516 = vst [vmem:[#allocation124_spill] sm:$0xff] %v5020_v18  ;;  %v2080_v51 = vmul.f32 %v4811_v42, %v5020_v18 }
 0x3b5   :  { %2155 = vrot.lane.b32.xlu0 %v2078_v59, %s3745_s9  ;;  %2899 = vrot.lane.b32.xlu1 %v2835_v28, %s3745_s9  ;;  %v1777_v59 = vadd.f32 %v1714_v43, %v4729_v24  ;;  %v1734_v28 = vrot.slane %v4999_v35, %v3796_v9  ;;  %v2369_v43 = vrot.slane %v2355_v23, %v3789_v5 }
 0x3b6   :  { %v5037_v23 = vsel %vm1818_vm1, %v1786_v16, %v1850_v57 }
 0x3b7   :  { %v1841_v53 = vmul.f32 0.2, %v1777_v59  ;;  %v1788_v25 = vadd.f32 %v1734_v28, %v4717_v29  ;;  %v5030_v3 = vrot.slane %v2369_v43, %v3789_v5  ;;  %vm1809_vm3 = vcmp.gt.f32.partialorder %v1777_v59, 0.0  ;;  %6517 = vst [vmem:[#allocation125_spill] sm:$0xff] %v5037_v23 }
 0x3b8   :  { %v2371_v16 = vcombine.high %v2369_v43, %v2369_v43  ;;  %v1787_v37 = vadd.f32 %v1734_v28, %v4729_v24 }
 0x3b9   :  { %2171 = vrot.lane.b32.xlu0 %v2086_v50, %s3745_s9  ;;  %2903 = vrot.lane.b32.xlu1 %v2837_v55, %s3745_s9  ;;  %v2601_v50 = vmul.f32 0.2, %v2537_v36  ;;  %v2540_v55 = vadd.f32 %v2468_v31, %v4712_v56  ;;  %v5048_v0 = vsel %vm1809_vm3, %v1777_v59, %v1841_v53  ;;  %vm1820_vm5 = vcmp.gt.f32.partialorder %v1788_v25, 0.0  ;;  %v5065_v59 = vld [vmem:[%s6363_s1 + $0x38] sm:$0xff] }
 0x3ba   :  { %6518 = vst [vmem:[#allocation126_spill] sm:$0xff] %v5048_v0  ;;  %v2539_v53 = vadd.f32 %v2468_v31, %v4723_v7  ;;  %vm1819_vm9 = vcmp.gt.f32.partialorder %v1787_v37, 0.0 }
 0x3bb   :  { %v5039_v61 = vsel %vm2569_vm2, %v2537_v36, %v2601_v50  ;;  %v2604_v60 = vmul.f32 0.2, %v2540_v55  ;;  %vm2572_vm4 = vcmp.gt.f32.partialorder %v2540_v55, 0.0  ;;  %v2088_v36 = vmul.f32 %v4811_v42, %v5037_v23 }
 0x3bc   :  { %v2839_v57 = vmul.f32 %v4936_v38, %v5039_v61  ;;  %vm2571_vm8 = vcmp.gt.f32.partialorder %v2539_v53, 0.0 }
 0x3bd   :  { %2909 = vrot.lane.b32.xlu0 %v2840_v30, %s3745_s9  ;;  %2153 = vrot.lane.b32.xlu1 %v2077_v39, %s3745_s9  ;;  %v1785_v30 = vadd.f32 %v1730_v63, %v4729_v24  ;;  %v2472_v39 = vrot.slane %v5030_v3, %v3796_v9  ;;  %v1852_v63 = vmul.f32 0.2, %v1788_v25 }
 0x3bf   :  { %v1849_v50 = vmul.f32 0.2, %v1785_v30  ;;  %vm1817_vm6 = vcmp.gt.f32.partialorder %v1785_v30, 0.0  ;;  %v2542_v48 = vadd.f32 %v2472_v39, %v4712_v56  ;;  %v5067_v43 = vsel %vm1820_vm5, %v1788_v25, %v1852_v63 }
 0x3c0   :  { %6520 = vst [vmem:[#allocation128_spill] sm:$0xff] %v5067_v43  ;;  %v2603_v63 = vmul.f32 0.2, %v2539_v53  ;;  %v2090_v34 = vmul.f32 %v4811_v42, %v5067_v43  ;;  %v2541_v62 = vadd.f32 %v2472_v39, %v4723_v7 }
 0x3c1   :  { %2159 = vrot.lane.b32.xlu0 %v2080_v51, %s3745_s9  ;;  %2169 = vrot.lane.b32.xlu1 %v2085_v17, %s3745_s9  ;;  %v1738_v51 = vrot.slane %v5046_v11, %v3796_v9  ;;  %v5056_v17 = vsel %vm2572_vm4, %v2540_v55, %v2604_v60  ;;  %v5071_v55 = vrot.slane %v2371_v16, %v3789_v5  ;;  %v2606_v25 = vmul.f32 0.2, %v2542_v48 }
 0x3c2   :  { %6519 = vst [vmem:[#allocation127_spill] sm:$0xff] %v5056_v17  ;;  %v2411_v60 = vrot.slane %v5065_v59, %v3789_v5  ;;  %v2842_v31 = vmul.f32 %v4936_v38, %v5056_v17  ;;  %vm2574_vm7 = vcmp.gt.f32.partialorder %v2542_v48, 0.0  ;;  %v1851_v17 = vmul.f32 0.2, %v1787_v37 }
 0x3c3   :  { %v1790_v23 = vadd.f32 %v1738_v51, %v4717_v29  ;;  %v2476_v28 = vrot.slane %v5071_v55, %v3796_v9  ;;  %vm2573_vm11 = vcmp.gt.f32.partialorder %v2541_v62, 0.0 }
 0x3c4   :  { %v5085_v16 = vrot.slane %v2411_v60, %v3789_v5 }
 0x3c5   :  { %2175 = vrot.lane.b32.xlu0 %v2088_v36, %s3745_s9  ;;  %2907 = vrot.lane.b32.xlu1 %v2839_v57, %s3745_s9  ;;  %v2079_v36 = vmul.f32 %v4811_v42, %v5048_v0  ;;  %v5079_v57 = vsel %vm1817_vm6, %v1785_v30, %v1849_v50  ;;  %v2419_v50 = vcombine.high %v2411_v60, %v2411_v60  ;;  %v1854_v45 = vmul.f32 0.2, %v1790_v23 }
 0x3c6   :  { %6521 = vst [vmem:[#allocation129_spill] sm:$0xff] %v5079_v57  ;;  %v2488_v30 = vrot.slane %v5085_v16, %v3796_v9  ;;  %v2087_v18 = vmul.f32 %v4811_v42, %v5079_v57  ;;  %vm1822_vm10 = vcmp.gt.f32.partialorder %v1790_v23, 0.0  ;;  %v2544_v0 = vadd.f32 %v2476_v28, %v4712_v56 }
 0x3c7   :  { %v5103_v60 = vsel %vm1819_vm9, %v1787_v37, %v1851_v17  ;;  %v1789_v57 = vadd.f32 %v1738_v51, %v4729_v24  ;;  %v5108_v44 = vrot.slane %v2419_v50, %v3789_v5  ;;  %v2543_v17 = vadd.f32 %v2476_v28, %v4723_v7  ;;  %v5137_v28 = vpop.xlane.xlu0 %1480 }
 0x3c8   :  { %v2550_v43 = vadd.f32 %v2488_v30, %v4712_v56  ;;  %vm2576_vm12 = vcmp.gt.f32.partialorder %v2544_v0, 0.0  ;;  %6527 = vst [vmem:[#allocation135_spill] sm:$0xff] %v5137_v28 }
 0x3c9   :  { %2913 = vrot.lane.b32.xlu0 %v2842_v31, %s3745_s9  ;;  %2157 = vrot.lane.b32.xlu1 %v2079_v36, %s3745_s9  ;;  %v5096_v31 = vsel %vm2574_vm7, %v2542_v48, %v2606_v25  ;;  %v5098_v36 = vsel %vm2571_vm8, %v2539_v53, %v2603_v63  ;;  %v5114_v53 = vsel %vm1822_vm10, %v1790_v23, %v1854_v45  ;;  %v2608_v25 = vmul.f32 0.2, %v2544_v0 }
 0x3ca   :  { %6522 = vst [vmem:[#allocation130_spill] sm:$0xff] %v5096_v31  ;;  %6523 = vst [vmem:[#allocation131_spill] sm:$0xff] %v5098_v36  ;;  %v2844_v39 = vmul.f32 %v4936_v38, %v5096_v31  ;;  %v2841_v48 = vmul.f32 %v4936_v38, %v5098_v36  ;;  %v2492_v37 = vrot.slane %v5108_v44, %v3796_v9  ;;  %vm1821_vm13 = vcmp.gt.f32.partialorder %v1789_v57, 0.0  ;;  %v5135_v36 = vpop.xlane.xlu1 %1477 }
 0x3cb   :  { %6524 = vst [vmem:[#allocation132_spill] sm:$0xff] %v5114_v53  ;;  %v1853_v51 = vmul.f32 0.2, %v1789_v57  ;;  %v2092_v45 = vmul.f32 %v4811_v42, %v5114_v53  ;;  %v2089_v23 = vmul.f32 %v4811_v42, %v5103_v60  ;;  %v2614_v50 = vmul.f32 0.2, %v2550_v43  ;;  %6526 = vst [vmem:[#allocation134_spill] sm:$0xff] %v5135_v36 }
 0x3cc   :  { %v5129_v31 = vsel %vm2576_vm12, %v2544_v0, %v2608_v25  ;;  %vm2582_vm14 = vcmp.gt.f32.partialorder %v2550_v43, 0.0  ;;  %v2607_v0 = vmul.f32 0.2, %v2543_v17  ;;  %vm2575_vm15 = vcmp.gt.f32.partialorder %v2543_v17, 0.0 }
 0x3cd   :  { %2179 = vrot.lane.b32.xlu0 %v2090_v34, %s3745_s9  ;;  %2173 = vrot.lane.b32.xlu1 %v2087_v18, %s3745_s9  ;;  %v2605_v34 = vmul.f32 0.2, %v2541_v62  ;;  %v1680_v18 = vcombine.high %v4999_v35, %v4999_v35  ;;  %6525 = vst [vmem:[#allocation133_spill] sm:$0xff] %v5129_v31  ;;  %v2552_v35 = vadd.f32 %v2492_v37, %v4712_v56 }
 0x3ce   :  { %v2846_v25 = vmul.f32 %v4936_v38, %v5129_v31  ;;  %v5161_v31 = vpop.xlane.xlu1 %1483 }
 0x3cf   :  { %v5127_v63 = vsel %vm2573_vm11, %v2541_v62, %v2605_v34  ;;  %v5142_v62 = vsel %vm1821_vm13, %v1789_v57, %v1853_v51  ;;  %v2449_v34 = vcombine.high %v5085_v16, %v5085_v16  ;;  %vm2584_vm1 = vcmp.gt.f32.partialorder %v2552_v35, 0.0  ;;  %6530 = vst [vmem:[#allocation138_spill] sm:$0xff] %v5161_v31 }
 0x3d0   :  { %6528 = vst [vmem:[#allocation136_spill] sm:$0xff] %v5142_v62  ;;  %v5157_v16 = vsel %vm2575_vm15, %v2543_v17, %v2607_v0  ;;  %v2551_v51 = vadd.f32 %v2492_v37, %v4723_v7  ;;  %v1682_v37 = vcombine.high %v5046_v11, %v5046_v11 }
 0x3d1   :  { %2917 = vrot.lane.b32.xlu0 %v2844_v39, %s3745_s9  ;;  %2911 = vrot.lane.b32.xlu1 %v2841_v48, %s3745_s9  ;;  %v1742_v39 = vrot.slane %v1680_v18, %v3796_v9  ;;  %v2401_v48 = vcombine.high %v5030_v3, %v5030_v3  ;;  %v2843_v3 = vmul.f32 %v4936_v38, %v5127_v63 }
 0x3d2   :  { %v2549_v18 = vadd.f32 %v2488_v30, %v4723_v7  ;;  %v2496_v36 = vrot.slane %v2449_v34, %v3796_v9  ;;  %vm2583_vm4 = vcmp.gt.f32.partialorder %v2551_v51, 0.0  ;;  %v2615_v34 = vmul.f32 0.2, %v2551_v51  ;;  %v5189_v53 = vpop.xlane.xlu1 %1489 }
 0x3d3   :  { %v1792_v28 = vadd.f32 %v1742_v39, %v4717_v29  ;;  %v2480_v57 = vrot.slane %v2401_v48, %v3796_v9  ;;  %v1791_v31 = vadd.f32 %v1742_v39, %v4729_v24  ;;  %6534 = vst [vmem:[#allocation142_spill] sm:$0xff] %v5189_v53  ;;  %v2451_v39 = vcombine.high %v5108_v44, %v5108_v44 }
 0x3d4   :  { %vm2581_vm2 = vcmp.gt.f32.partialorder %v2549_v18, 0.0  ;;  %v2613_v48 = vmul.f32 0.2, %v2549_v18  ;;  %v2553_v44 = vadd.f32 %v2496_v36, %v4723_v7 }
 0x3d5   :  { %2183 = vrot.lane.b32.xlu0 %v2092_v45, %s3745_s9  ;;  %2177 = vrot.lane.b32.xlu1 %v2089_v23, %s3745_s9  ;;  %v5151_v45 = vsel %vm2582_vm14, %v2550_v43, %v2614_v50  ;;  %v2616_v23 = vmul.f32 0.2, %v2552_v35  ;;  %v5163_v43 = vpop.xlane.xlu0 %1486  ;;  %v2091_v50 = vmul.f32 %v4811_v42, %v5142_v62  ;;  %v1856_v17 = vmul.f32 0.2, %v1792_v28 }
 0x3d6   :  { %6529 = vst [vmem:[#allocation137_spill] sm:$0xff] %v5151_v45  ;;  %6531 = vst [vmem:[#allocation139_spill] sm:$0xff] %v5163_v43  ;;  %v2852_v30 = vmul.f32 %v4936_v38, %v5151_v45  ;;  %v2546_v0 = vadd.f32 %v2480_v57, %v4712_v56  ;;  %vm1824_vm3 = vcmp.gt.f32.partialorder %v1792_v28, 0.0  ;;  %v2403_v45 = vcombine.high %v5071_v55, %v5071_v55 }
 0x3d7   :  { %v5184_v11 = vsel %vm1824_vm3, %v1792_v28, %v1856_v17  ;;  %v2404_v28 = vcombine.high %v5065_v59, %v5065_v59  ;;  %v1855_v17 = vmul.f32 0.2, %v1791_v31  ;;  %vm1823_vm7 = vcmp.gt.f32.partialorder %v1791_v31, 0.0 }
 0x3d8   :  { %6533 = vst [vmem:[#allocation141_spill] sm:$0xff] %v5184_v11  ;;  %vm2578_vm5 = vcmp.gt.f32.partialorder %v2546_v0, 0.0  ;;  %v2094_v55 = vmul.f32 %v4811_v42, %v5184_v11  ;;  %v2500_v59 = vrot.slane %v2451_v39, %v3796_v9  ;;  %vm2585_vm10 = vcmp.gt.f32.partialorder %v2553_v44, 0.0 }
 0x3d9   :  { %2921 = vrot.lane.b32.xlu0 %v2846_v25, %s3745_s9  ;;  %2915 = vrot.lane.b32.xlu1 %v2843_v3, %s3745_s9  ;;  %v5169_v25 = vsel %vm2584_vm1, %v2552_v35, %v2616_v23  ;;  %v2554_v3 = vadd.f32 %v2496_v36, %v4712_v56  ;;  %v2845_v35 = vmul.f32 %v4936_v38, %v5157_v16  ;;  %v5191_v62 = vpop.xlane.xlu0 %1492 }
 0x3da   :  { %6532 = vst [vmem:[#allocation140_spill] sm:$0xff] %v5169_v25  ;;  %v2854_v43 = vmul.f32 %v4936_v38, %v5169_v25  ;;  %v5181_v23 = vsel %vm2581_vm2, %v2549_v18, %v2613_v48  ;;  %6535 = vst [vmem:[#allocation143_spill] sm:$0xff] %v5191_v62  ;;  %v5196_v18 = vsel %vm2583_vm4, %v2551_v51, %v2615_v34  ;;  %v5216_v62 = vpop.xlane.xlu1 %1495 }
 0x3db   :  { %vm2586_vm6 = vcmp.gt.f32.partialorder %v2554_v3, 0.0  ;;  %v2851_v48 = vmul.f32 %v4936_v38, %v5181_v23  ;;  %v2545_v34 = vadd.f32 %v2480_v57, %v4723_v7  ;;  %v2418_v53 = vrot.slane %v2404_v28, %v3789_v5  ;;  %6537 = vst [vmem:[#allocation145_spill] sm:$0xff] %v5216_v62 }
 0x3dc   :  { %v2617_v28 = vmul.f32 0.2, %v2553_v44 }
 0x3dd   :  { %2933 = vrot.lane.b32.xlu0 %v2852_v30, %s3745_s9  ;;  %2181 = vrot.lane.b32.xlu1 %v2091_v50, %s3745_s9  ;;  %v2610_v30 = vmul.f32 0.2, %v2546_v0  ;;  %v1746_v50 = vrot.slane %v1682_v37, %v3796_v9  ;;  %vm2577_vm9 = vcmp.gt.f32.partialorder %v2545_v34, 0.0 }
 0x3de   :  { %v5244_v11 = vpop.xlane.xlu1 %1501 }
 0x3df   :  { %v5206_v37 = vsel %vm2578_vm5, %v2546_v0, %v2610_v30  ;;  %v1794_v51 = vadd.f32 %v1746_v50, %v4717_v29  ;;  %v5218_v0 = vpop.xlane.xlu0 %1498  ;;  %v5227_v30 = vsel %vm1823_vm7, %v1791_v31, %v1855_v17  ;;  %v1793_v17 = vadd.f32 %v1746_v50, %v4729_v24  ;;  %6541 = vst [vmem:[#allocation149_spill] sm:$0xff] %v5244_v11 }
 0x3e0   :  { %6536 = vst [vmem:[#allocation144_spill] sm:$0xff] %v5206_v37  ;;  %6538 = vst [vmem:[#allocation146_spill] sm:$0xff] %v5218_v0  ;;  %v2848_v29 = vmul.f32 %v4936_v38, %v5206_v37  ;;  %v2434_v0 = vrot.slane %v2418_v53, %v3789_v5 }
 0x3e1   :  { %2937 = vrot.lane.b32.xlu0 %v2854_v43, %s3745_s9  ;;  %2919 = vrot.lane.b32.xlu1 %v2845_v35, %s3745_s9  ;;  %v2618_v43 = vmul.f32 0.2, %v2554_v3  ;;  %v2484_v35 = vrot.slane %v2403_v45, %v3796_v9  ;;  %v2853_v45 = vmul.f32 %v4936_v38, %v5196_v18  ;;  %v1858_v36 = vmul.f32 0.2, %v1794_v51 }
 0x3e2   :  { %vm1826_vm8 = vcmp.gt.f32.partialorder %v1794_v51, 0.0  ;;  %v2504_v37 = vrot.slane %v2434_v0, %v3796_v9  ;;  %vm1825_vm13 = vcmp.gt.f32.partialorder %v1793_v17, 0.0 }
 0x3e3   :  { %v5225_v57 = vsel %vm2586_vm6, %v2554_v3, %v2618_v43  ;;  %v2548_v39 = vadd.f32 %v2484_v35, %v4712_v56  ;;  %v2420_v3 = vcombine.high %v2418_v53, %v2418_v53  ;;  %v2093_v43 = vmul.f32 %v4811_v42, %v5227_v30  ;;  %v5246_v25 = vpop.xlane.xlu0 %1504 }
 0x3e4   :  { %6539 = vst [vmem:[#allocation147_spill] sm:$0xff] %v5225_v57  ;;  %v2856_v31 = vmul.f32 %v4936_v38, %v5225_v57  ;;  %6542 = vst [vmem:[#allocation150_spill] sm:$0xff] %v5246_v25  ;;  %v5251_v53 = vsel %vm2585_vm10, %v2553_v44, %v2617_v28  ;;  %v2547_v50 = vadd.f32 %v2484_v35, %v4723_v7  ;;  %vm3305_vm10 = vcmask 1041409  }
 0x3e5   :  { %2187 = vrot.lane.b32.xlu0 %v2094_v55, %s3745_s9  ;;  %2931 = vrot.lane.b32.xlu1 %v2851_v48, %s3745_s9  ;;  %v2609_v55 = vmul.f32 0.2, %v2545_v34  ;;  %v2556_v48 = vadd.f32 %v2500_v59, %v4712_v56  ;;  %v2612_v62 = vmul.f32 0.2, %v2548_v39  ;;  %vm2580_vm11 = vcmp.gt.f32.partialorder %v2548_v39, 0.0 }
 0x3e6   :  { %v2450_v28 = vcombine.high %v2434_v0, %v2434_v0  ;;  %vm2579_vm14 = vcmp.gt.f32.partialorder %v2547_v50, 0.0  ;;  %v2555_v35 = vadd.f32 %v2500_v59, %v4723_v7 }
 0x3e7   :  { %vm2588_vm12 = vcmp.gt.f32.partialorder %v2556_v48, 0.0  ;;  %v2620_v24 = vmul.f32 0.2, %v2556_v48  ;;  %v5268_v11 = vpop.xlane.xlu0 %1510 }
 0x3e8   :  { %6545 = vst [vmem:[#allocation153_spill] sm:$0xff] %v5268_v11  ;;  %v2512_v59 = vrot.slane %v2450_v28, %v3796_v9  ;;  %vm2587_vm1 = vcmp.gt.f32.partialorder %v2555_v35, 0.0 }
 0x3e9   :  { %2925 = vrot.lane.b32.xlu0 %v2848_v29, %s3745_s9  ;;  %2935 = vrot.lane.b32.xlu1 %v2853_v45, %s3745_s9  ;;  %v5239_v29 = vsel %vm1826_vm8, %v1794_v51, %v1858_v36  ;;  %v5241_v45 = vsel %vm2577_vm9, %v2545_v34, %v2609_v55  ;;  %v2448_v51 = vrot.slane %v2420_v3, %v3789_v5  ;;  %v1857_v55 = vmul.f32 0.2, %v1793_v17  ;;  %v5266_v3 = vpop.xlane.xlu1 %1507 }
 0x3ea   :  { %6540 = vst [vmem:[#allocation148_spill] sm:$0xff] %v5239_v29  ;;  %v2096_v34 = vmul.f32 %v4811_v42, %v5239_v29  ;;  %v2847_v36 = vmul.f32 %v4936_v38, %v5241_v45  ;;  %v2611_v5 = vmul.f32 0.2, %v2547_v50  ;;  %6544 = vst [vmem:[#allocation152_spill] sm:$0xff] %v5266_v3  ;;  %v5275_v0 = vsel %vm2588_vm12, %v2556_v48, %v2620_v24 }
 0x3eb   :  { %v2508_v44 = vrot.slane %v2448_v51, %v3796_v9  ;;  %6546 = vst [vmem:[#allocation154_spill] sm:$0xff] %v5275_v0  ;;  %v2452_v3 = vcombine.high %v2448_v51, %v2448_v51  ;;  %v2858_v48 = vmul.f32 %v4936_v38, %v5275_v0  ;;  %v2557_v24 = vadd.f32 %v2504_v37, %v4723_v7 }
 0x3ec   :  { %v5285_v11 = vsel %vm2579_vm14, %v2547_v50, %v2611_v5  ;;  %v2562_v28 = vadd.f32 %v2512_v59, %v4712_v56  ;;  %v5298_v50 = vpop.xlane.xlu0 %1516  ;;  %vm3168_vm9 = vcmask 130112   ;;  %vm3309_vm12 = vcmask 1043459  }
 0x3ed   :  { %2941 = vrot.lane.b32.xlu0 %v2856_v31, %s3745_s9  ;;  %2185 = vrot.lane.b32.xlu1 %v2093_v43, %s3745_s9  ;;  %v5259_v31 = vsel %vm2580_vm11, %v2548_v39, %v2612_v62  ;;  %v2558_v43 = vadd.f32 %v2504_v37, %v4712_v56  ;;  %v2855_v39 = vmul.f32 %v4936_v38, %v5251_v53  ;;  %vm2589_vm3 = vcmp.gt.f32.partialorder %v2557_v24, 0.0 }
 0x3ee   :  { %6543 = vst [vmem:[#allocation151_spill] sm:$0xff] %v5259_v31  ;;  %v2850_v62 = vmul.f32 %v4936_v38, %v5259_v31  ;;  %v2560_v25 = vadd.f32 %v2508_v44, %v4712_v56  ;;  %6547 = vst [vmem:[#allocation155_spill] sm:$0xff] %v5285_v11  ;;  %v2619_v31 = vmul.f32 0.2, %v2555_v35  ;;  %v2849_v37 = vmul.f32 %v4936_v38, %v5285_v11 }
 0x3ef   :  { %vm2590_vm15 = vcmp.gt.f32.partialorder %v2558_v43, 0.0  ;;  %6550 = vst [vmem:[#allocation158_spill] sm:$0xff] %v5298_v50  ;;  %v2621_v56 = vmul.f32 0.2, %v2557_v24  ;;  %v2626_v5 = vmul.f32 0.2, %v2562_v28 }
 0x3f0   :  { %v2624_v51 = vmul.f32 0.2, %v2560_v25  ;;  %vm2592_vm2 = vcmp.gt.f32.partialorder %v2560_v25, 0.0  ;;  %vm2594_vm4 = vcmp.gt.f32.partialorder %v2562_v28, 0.0  ;;  %vm3307_vm11 = vcmask 1042434  }
 0x3f1   :  { %2191 = vrot.lane.b32.xlu0 %v2096_v34, %s3745_s9  ;;  %2923 = vrot.lane.b32.xlu1 %v2847_v36, %s3745_s9  ;;  %v5278_v34 = vsel %vm1825_vm13, %v1793_v17, %v1857_v55  ;;  %v2622_v36 = vmul.f32 0.2, %v2558_v43  ;;  %vm3311_vm13 = vcmask 1044484   ;;  %vm3313_vm14 = vcmask 1045509  }
 0x3f2   :  { %v2095_v17 = vmul.f32 %v4811_v42, %v5278_v34  ;;  %v5302_v42 = vsel %vm2587_vm1, %v2555_v35, %v2619_v31  ;;  %v3696_v31 = vld [vmem:[%s6362_s0 + $0x18] sm:$0xff]  ;;  %vm3317_vm1 = vcmask 1047559  }
 0x3f3   :  { %v5292_v55 = vsel %vm2590_vm15, %v2558_v43, %v2622_v36  ;;  %6551 = vst [vmem:[#allocation159_spill] sm:$0xff] %v5302_v42  ;;  %v5308_v43 = vsel %vm2592_vm2, %v2560_v25, %v2624_v51  ;;  %v2559_v35 = vadd.f32 %v3696_v31, %v2508_v44  ;;  %v5320_v25 = vpop.xlane.xlu0 %1522  ;;  %v2857_v51 = vmul.f32 %v4936_v38, %v5302_v42 }
 0x3f4   :  { %6548 = vst [vmem:[#allocation156_spill] sm:$0xff] %v5292_v55  ;;  %v2860_v7 = vmul.f32 %v4936_v38, %v5292_v55  ;;  %6552 = vst [vmem:[#allocation160_spill] sm:$0xff] %v5308_v43  ;;  %vm3315_vm15 = vcmask 1046534  }
 0x3f5   :  { %2929 = vrot.lane.b32.xlu0 %v2850_v62, %s3745_s9  ;;  %2939 = vrot.lane.b32.xlu1 %v2855_v39, %s3745_s9  ;;  %v2516_v62 = vrot.slane %v2452_v3, %v3796_v9  ;;  %v5296_v39 = vpop.xlane.xlu1 %1513  ;;  %v3695_v3 = vld [vmem:[%s6362_s0 + $0x38] sm:$0xff]  ;;  %6554 = vst [vmem:[#allocation162_spill] sm:$0xff] %v5320_v25  ;;  %v2623_v50 = vmul.f32 0.2, %v2559_v35  ;;  %vm2591_vm6 = vcmp.gt.f32.partialorder %v2559_v35, 0.0 }
 0x3f6   :  { %6549 = vst [vmem:[#allocation157_spill] sm:$0xff] %v5296_v39  ;;  %v5328_v39 = vsel %vm2594_vm4, %v2562_v28, %v2626_v5 }
 0x3f7   :  { %v2564_v36 = vadd.f32 %v3695_v3, %v2516_v62  ;;  %v5326_v3 = vsel %vm2589_vm3, %v2557_v24, %v2621_v56  ;;  %6556 = vst [vmem:[#allocation164_spill] sm:$0xff] %v5328_v39  ;;  %v5342_v56 = vsel %vm2591_vm6, %v2559_v35, %v2623_v50  ;;  %v2563_v5 = vadd.f32 %v3696_v31, %v2516_v62 }
 0x3f8   :  { %6555 = vst [vmem:[#allocation163_spill] sm:$0xff] %v5326_v3  ;;  %v2859_v24 = vmul.f32 %v4936_v38, %v5326_v3  ;;  %6558 = vst [vmem:[#allocation166_spill] sm:$0xff] %v5342_v56  ;;  %vm3332_vm3 = vcmask 130048  }
 0x3f9   :  { %2945 = vrot.lane.b32.xlu0 %v2858_v48, %s3745_s9  ;;  %2189 = vrot.lane.b32.xlu1 %v2095_v17, %s3745_s9  ;;  %v5318_v48 = vpop.xlane.xlu1 %1519  ;;  %v2862_v17 = vmul.f32 %v4936_v38, %v5308_v43  ;;  %v2628_v44 = vmul.f32 0.2, %v2564_v36  ;;  %vm2596_vm5 = vcmp.gt.f32.partialorder %v2564_v36, 0.0  ;;  %v2627_v50 = vmul.f32 0.2, %v2563_v5 }
 0x3fa   :  { %6553 = vst [vmem:[#allocation161_spill] sm:$0xff] %v5318_v48  ;;  %v2864_v48 = vmul.f32 %v4936_v38, %v5328_v39  ;;  %vm2595_vm8 = vcmp.gt.f32.partialorder %v2563_v5, 0.0 }
 0x3fb   :  { %v5340_v28 = vsel %vm2596_vm5, %v2564_v36, %v2628_v44  ;;  %v2861_v36 = vmul.f32 %v4936_v38, %v5342_v56 }
 0x3fc   :  { %6557 = vst [vmem:[#allocation165_spill] sm:$0xff] %v5340_v28  ;;  %v2866_v39 = vmul.f32 %v4936_v38, %v5340_v28 }
 0x3fd   :  { %2949 = vrot.lane.b32.xlu0 %v2860_v7, %s3745_s9  ;;  %2927 = vrot.lane.b32.xlu1 %v2849_v37, %s3745_s9  ;;  %v2561_v7 = vadd.f32 %v3696_v31, %v2512_v59 }
 0x3ff   :  { %v2625_v59 = vmul.f32 0.2, %v2561_v7  ;;  %vm2593_vm7 = vcmp.gt.f32.partialorder %v2561_v7, 0.0 }
 0x401   :  { %2953 = vrot.lane.b32.xlu0 %v2862_v17, %s3745_s9  ;;  %2943 = vrot.lane.b32.xlu1 %v2857_v51, %s3745_s9  ;;  %v5354_v44 = vsel %vm2593_vm7, %v2561_v7, %v2625_v59 }
 0x402   :  { %6559 = vst [vmem:[#allocation167_spill] sm:$0xff] %v5354_v44  ;;  %v2863_v35 = vmul.f32 %v4936_v38, %v5354_v44 }
 0x403   :  { %v5332_v37 = vpop.permute.xlu0 %2131  ;;  %v5334_v25 = vpop.permute.xlu1 %2129 }
 0x405   :  { %2957 = vrot.lane.b32.xlu0 %v2864_v48, %s3745_s9  ;;  %2947 = vrot.lane.b32.xlu1 %v2859_v24, %s3745_s9  ;;  %v5362_v48 = vsel %vm2595_vm8, %v2563_v5, %v2627_v50  ;;  %v5380_v5 = vld [vmem:[#allocation5] sm:$0xf] }
 0x406   :  { %6560 = vst [vmem:[#allocation168_spill] sm:$0xff] %v5362_v48  ;;  %v1891_v50 = vrot.slane %v5380_v5, 2 }
 0x407   :  { %v5346_v17 = vpop.permute.xlu0 %2139  ;;  %v5348_v51 = vpop.permute.xlu1 %2133 }
 0x408   :  { %v5386_v43 = vrot.slane %v1891_v50, %v3796_v9 }
 0x409   :  { %2961 = vrot.lane.b32.xlu0 %v2866_v39, %s3745_s9  ;;  %2951 = vrot.lane.b32.xlu1 %v2861_v36, %s3745_s9  ;;  %v2865_v39 = vmul.f32 %v4936_v38, %v5362_v48 }
 0x40a   :  { %v1899_v3 = vmul.f32 %v5386_v43, %v4824_v19  ;;  %v1900_v42 = vmul.f32 %v5386_v43, %v4842_v58  ;;  %v1902_v11 = vmul.f32 %v5386_v43, %v4822_v40  ;;  %v1904_v58 = vmul.f32 %v5386_v43, %v4829_v22 }
 0x40b   :  { %v5358_v62 = vpop.permute.xlu0 %2143  ;;  %v2136_v31 = vpop.permute.xlu1 %2135 }
 0x40c   :  { %v1935_v50 = vsel %vm426_vm0, %v1899_v3, 0.0  ;;  %v1944_v3 = vsel %vm426_vm0, %v1902_v11, 0.0  ;;  %v1903_v11 = vmul.f32 %v5386_v43, %v4885_v54  ;;  %v2225_v54 = vsel %vm426_vm0, %v5334_v25, 0.0 }
 0x40d   :  { %2955 = vrot.lane.b32.xlu1 %v2863_v35, %s3745_s9 }
 0x40e   :  { %v1947_v22 = vsel %vm426_vm0, %v1903_v11, 0.0 }
 0x40f   :  { %v5365_v24 = vpop.permute.xlu0 %2147  ;;  %v5367_v7 = vpop.permute.xlu1 %2137 }
 0x411   :  { %2959 = vrot.lane.b32.xlu1 %v2865_v39, %s3745_s9  ;;  %v1898_v39 = vmul.f32 %v5386_v43, %v4804_v27  ;;  %v1938_v27 = vsel %vm426_vm0, %v1900_v42, 0.0  ;;  %v1901_v42 = vmul.f32 %v5386_v43, %v4868_v13  ;;  %v2228_v13 = vsel %vm426_vm0, %v5332_v37, 0.0 }
 0x412   :  { %v1905_v37 = vmul.f32 %v5386_v43, %v4892_v10 }
 0x413   :  { %v5372_v59 = vpop.permute.xlu0 %2151  ;;  %v5374_v36 = vpop.permute.xlu1 %2141  ;;  %v1932_v55 = vsel %vm426_vm0, %v1898_v39, 0.0  ;;  %v1897_v39 = vmul.f32 %v5386_v43, %v4806_v2  ;;  %v1950_v2 = vsel %vm426_vm0, %v1904_v58, 0.0  ;;  %v1906_v58 = vmul.f32 %v5386_v43, %v4866_v52 }
 0x414   :  { %v2231_v52 = vsel %vm426_vm0, %v5348_v51, 0.0  ;;  %v1953_v25 = vsel %vm426_vm0, %v1905_v37, 0.0  ;;  %v1913_v51 = vmul.f32 %v5386_v43, %v4933_v32  ;;  %v1908_v37 = vmul.f32 %v5386_v43, %v4881_v21 }
 0x415   :  { %v1524_v32 = vsel %vm426_vm0, %v4751_v12, 0.0 }
 0x417   :  { %v5376_v28 = vpop.permute.xlu0 %2163  ;;  %v5378_v44 = vpop.permute.xlu1 %2145 }
 0x41b   :  { %v5383_v35 = vpop.permute.xlu0 %2167  ;;  %v5388_v38 = vpop.permute.xlu1 %2149 }
 0x41f   :  { %v5392_v48 = vpop.permute.xlu0 %2901  ;;  %v5394_v56 = vpop.permute.xlu1 %2161 }
 0x423   :  { %v5399_v0 = vpop.permute.xlu0 %2905  ;;  %v5404_v29 = vpop.permute.xlu1 %2165 }
 0x427   :  { %v5411_v19 = vpop.permute.xlu0 %2155 }
 0x428   :  { %1933 = vadd.xlane.f32.xlu0 %v1932_v55  ;;  %v5413_v55 = vpop.permute.xlu1 %2899 }
 0x42b   :  { %v5421_v40 = vpop.permute.xlu0 %2171 }
 0x42c   :  { %1936 = vadd.xlane.f32.xlu0 %v1935_v50  ;;  %v1929_v50 = vsel %vm426_vm0, %v1897_v39, 0.0  ;;  %v5424_v57 = vpop.permute.xlu1 %2903 }
 0x42f   :  { %v5430_v39 = vpop.permute.xlu0 %2909 }
 0x430   :  { %1939 = vadd.xlane.f32.xlu0 %v1938_v27  ;;  %v1941_v27 = vsel %vm426_vm0, %v1901_v42, 0.0 }
 0x433   :  { %v5441_v42 = vpop.permute.xlu0 %2159 }
 0x434   :  { %1945 = vadd.xlane.f32.xlu0 %v1944_v3  ;;  %v5434_v3 = vpop.permute.xlu1 %2153 }
 0x435   :  { %1930 = vadd.xlane.f32.xlu1 %v1929_v50  ;;  %v2234_v50 = vsel %vm426_vm0, %v2136_v31, 0.0  ;;  %v1907_v31 = vmul.f32 %v5386_v43, %v4923_v41  ;;  %v2237_v41 = vsel %vm426_vm0, %v5367_v7, 0.0 }
 0x437   :  { %v5453_v11 = vpop.permute.xlu0 %2175  ;;  %v1959_v10 = vsel %vm426_vm0, %v1907_v31, 0.0  ;;  %v1962_v31 = vsel %vm426_vm0, %v1908_v37, 0.0  ;;  %v2246_v37 = vsel %vm426_vm0, %v5358_v62, 0.0  ;;  %v1917_v62 = vmul.f32 %v5386_v43, %v5022_v14 }
 0x438   :  { %1951 = vadd.xlane.f32.xlu0 %v1950_v2  ;;  %v1956_v2 = vsel %vm426_vm0, %v1906_v58, 0.0 }
 0x439   :  { %1942 = vadd.xlane.f32.xlu1 %v1941_v27  ;;  %v5444_v27 = vpop.permute.xlu1 %2169 }
 0x43b   :  { %v5464_v58 = vpop.permute.xlu0 %2913 }
 0x43c   :  { %2229 = vadd.xlane.f32.xlu0 %v2228_v13 }
 0x43d   :  { %1948 = vadd.xlane.f32.xlu1 %v1947_v22  ;;  %v2240_v22 = vsel %vm426_vm0, %v5346_v17, 0.0  ;;  %v5457_v13 = vpop.permute.xlu1 %2907  ;;  %v1915_v17 = vmul.f32 %v5386_v43, %v4945_v46  ;;  %v1914_v46 = vmul.f32 %v5386_v43, %v4904_v49 }
 0x43f   :  { %v1983_v7 = vsel %vm426_vm0, %v1915_v17, 0.0  ;;  %v1980_v21 = vsel %vm426_vm0, %v1914_v46, 0.0 }
 0x440   :  { %2235 = vadd.xlane.f32.xlu0 %v2234_v50  ;;  %v1977_v50 = vsel %vm426_vm0, %v1913_v51, 0.0 }
 0x441   :  { %2226 = vadd.xlane.f32.xlu1 %v2225_v54  ;;  %v2661_v54 = vrot.slane %v5380_v5, 3  ;;  %v5483_v5 = vpop.permute.xlu0 %2179 }
 0x444   :  { %1957 = vadd.xlane.f32.xlu0 %v1956_v2  ;;  %v5470_v2 = vpop.permute.xlu1 %2157 }
 0x445   :  { %2232 = vadd.xlane.f32.xlu1 %v2231_v52  ;;  %v5478_v52 = vrot.slane %v2661_v54, %v3796_v9  ;;  %v5494_v51 = vpop.permute.xlu0 %2917  ;;  %v6589_v9 = vld [vmem:[#allocation47_spill] sm:$0xff] }
 0x447   :  { %v2667_v12 = vmul.f32 %v5478_v52, %v4960_v8  ;;  %v2671_v14 = vmul.f32 %v5478_v52, %v5039_v61  ;;  %v6562_v61 = vld [vmem:[#allocation126_spill] sm:$0xff] }
 0x448   :  { %2241 = vadd.xlane.f32.xlu0 %v2240_v22  ;;  %v1916_v22 = vmul.f32 %v5386_v43, %v4913_v15 }
 0x449   :  { %1954 = vadd.xlane.f32.xlu1 %v1953_v25  ;;  %v5485_v25 = vpop.permute.xlu1 %2173  ;;  %v2699_v49 = vsel %vm426_vm0, %v2667_v12, 0.0  ;;  %v5505_v17 = vpop.permute.xlu0 %2183 }
 0x44a   :  { %v1986_v8 = vsel %vm426_vm0, %v1916_v22, 0.0 }
 0x44c   :  { %1960 = vadd.xlane.f32.xlu0 %v1959_v10  ;;  %v2243_v10 = vsel %vm426_vm0, %v5374_v36, 0.0  ;;  %v2668_v36 = vmul.f32 %v5478_v52, %v4938_v20  ;;  %v1527_v20 = vsel %vm426_vm0, %v4755_v33, 0.0  ;;  %v1910_v33 = vmul.f32 %v5386_v43, %v4970_v26 }
 0x44d   :  { %2238 = vadd.xlane.f32.xlu1 %v2237_v41  ;;  %v2669_v41 = vmul.f32 %v5478_v52, %v4983_v47  ;;  %v1909_v47 = vmul.f32 %v5386_v43, %v4996_v6  ;;  %v2249_v26 = vsel %vm426_vm0, %v5378_v44, 0.0  ;;  %v6564_v44 = vld [vmem:[#allocation110_spill] sm:$0xff] }
 0x44f   :  { %v2705_v15 = vsel %vm426_vm0, %v2669_v41, 0.0  ;;  %v1965_v46 = vsel %vm426_vm0, %v1909_v47, 0.0  ;;  %v6561_v41 = vld [vmem:[#allocation122_spill] sm:$0xff]  ;;  %v1911_v47 = vmul.f32 %v5386_v43, %v6562_v61 }
 0x450   :  { %1978 = vadd.xlane.f32.xlu0 %v1977_v50  ;;  %v5499_v50 = vpop.permute.xlu1 %2911 }
 0x451   :  { %1525 = vadd.xlane.f32.xlu1 %v1524_v32  ;;  %v2702_v32 = vsel %vm426_vm0, %v2668_v36, 0.0  ;;  %v2711_v36 = vsel %vm426_vm0, %v2671_v14, 0.0 }
 0x454   :  { %1984 = vadd.xlane.f32.xlu0 %v1983_v7  ;;  %v5507_v54 = vpop.permute.xlu1 %2177  ;;  %v2670_v7 = vmul.f32 %v5478_v52, %v4954_v1  ;;  %v1989_v1 = vsel %vm426_vm0, %v1917_v62, 0.0 }
 0x455   :  { %1963 = vadd.xlane.f32.xlu1 %v1962_v31  ;;  %v5518_v31 = vpop.permute.xlu0 %2921 }
 0x456   :  { %v2708_v6 = vsel %vm426_vm0, %v2670_v7, 0.0 }
 0x458   :  { %2244 = vadd.xlane.f32.xlu0 %v2243_v10  ;;  %v5523_v12 = vpop.permute.xlu1 %2915  ;;  %v1530_v10 = vsel %vm426_vm0, %v4753_v4, 0.0 }
 0x459   :  { %1981 = vadd.xlane.f32.xlu1 %v1980_v21  ;;  %v5529_v21 = vpop.permute.xlu0 %2933 }
 0x45c   :  { %2700 = vadd.xlane.f32.xlu0 %v2699_v49  ;;  %v5531_v22 = vpop.permute.xlu1 %2181  ;;  %v1968_v49 = vsel %vm426_vm0, %v1910_v33, 0.0  ;;  %v6565_v33 = vld [vmem:[#allocation129_spill] sm:$0xff] }
 0x45d   :  { %1987 = vadd.xlane.f32.xlu1 %v1986_v8  ;;  %v1918_v8 = vmul.f32 %v5386_v43, %v6561_v41 }
 0x45f   :  { %v1992_v4 = vsel %vm426_vm0, %v1918_v8, 0.0 }
 0x460   :  { %2706 = vadd.xlane.f32.xlu0 %v2705_v15  ;;  %v5542_v15 = vpop.permute.xlu0 %2937 }
 0x461   :  { %2247 = vadd.xlane.f32.xlu1 %v2246_v37  ;;  %v5545_v37 = vpop.permute.xlu1 %2919 }
 0x464   :  { %1528 = vadd.xlane.f32.xlu0 %v1527_v20  ;;  %v5552_v20 = vpop.permute.xlu0 %2187 }
 0x465   :  { %2703 = vadd.xlane.f32.xlu1 %v2702_v32  ;;  %v6563_v32 = vld [vmem:[#allocation123_spill] sm:$0xff]  ;;  %v5556_v62 = vpop.permute.xlu1 %2931 }
 0x466   :  { %v2672_v7 = vmul.f32 %v5478_v52, %v6563_v32 }
 0x468   :  { %1966 = vadd.xlane.f32.xlu0 %v1965_v46  ;;  %v1533_v46 = vsel %vm426_vm0, %v6564_v44, 0.0  ;;  %v2714_v14 = vsel %vm426_vm0, %v2672_v7, 0.0  ;;  %v2255_v44 = vsel %vm426_vm0, %v5388_v38, 0.0  ;;  %v2279_v38 = vsel %vm426_vm0, %v5404_v29, 0.0 }
 0x469   :  { %2709 = vadd.xlane.f32.xlu1 %v2708_v6  ;;  %v2252_v6 = vsel %vm426_vm0, %v5365_v24, 0.0  ;;  %v5567_v8 = vpop.permute.xlu1 %2935  ;;  %v6567_v24 = vld [vmem:[#allocation109_spill] sm:$0xff]  ;;  %v2995_v29 = vsel %vm426_vm0, %v5413_v55, 0.0 }
 0x46c   :  { %1990 = vadd.xlane.f32.xlu0 %v1989_v1  ;;  %v1971_v1 = vsel %vm426_vm0, %v1911_v47, 0.0  ;;  %v6568_v47 = vld [vmem:[#allocation125_spill] sm:$0xff] }
 0x46d   :  { %1531 = vadd.xlane.f32.xlu1 %v1530_v10  ;;  %v1919_v10 = vmul.f32 %v5386_v43, %v6565_v33  ;;  %v1920_v32 = vmul.f32 %v5386_v43, %v6568_v47 }
 0x46f   :  { %v1995_v41 = vsel %vm426_vm0, %v1919_v10, 0.0  ;;  %v6569_v10 = vld [vmem:[#allocation131_spill] sm:$0xff] }
 0x470   :  { %2250 = vadd.xlane.f32.xlu0 %v2249_v26  ;;  %v6566_v26 = vld [vmem:[#allocation124_spill] sm:$0xff] }
 0x471   :  { %1969 = vadd.xlane.f32.xlu1 %v1968_v49  ;;  %v5564_v49 = vpop.permute.xlu0 %2925 }
 0x474   :  { %2712 = vadd.xlane.f32.xlu0 %v2711_v36  ;;  %v1912_v36 = vmul.f32 %v5386_v43, %v6566_v26  ;;  %v2258_v26 = vsel %vm426_vm0, %v5372_v59, 0.0  ;;  %v2282_v59 = vsel %vm426_vm0, %v5383_v35, 0.0 }
 0x475   :  { %1993 = vadd.xlane.f32.xlu1 %v1992_v4  ;;  %v1536_v4 = vsel %vm426_vm0, %v6567_v24, 0.0  ;;  %v5576_v7 = vpop.permute.xlu0 %2941 }
 0x476   :  { %v1974_v61 = vsel %vm426_vm0, %v1912_v36, 0.0 }
 0x478   :  { %1534 = vadd.xlane.f32.xlu0 %v1533_v46  ;;  %v5580_v46 = vpop.permute.xlu1 %2185 }
 0x479   :  { %2253 = vadd.xlane.f32.xlu1 %v2252_v6  ;;  %v1998_v6 = vsel %vm426_vm0, %v1920_v32, 0.0  ;;  %v5585_v33 = vpop.permute.xlu0 %2191 }
 0x47c   :  { %1972 = vadd.xlane.f32.xlu0 %v1971_v1  ;;  %v2273_v1 = vsel %vm426_vm0, %v5394_v56, 0.0 }
 0x47d   :  { %2715 = vadd.xlane.f32.xlu1 %v2714_v14  ;;  %v2673_v14 = vmul.f32 %v5478_v52, %v6569_v10  ;;  %v5596_v56 = vpop.permute.xlu0 %2929  ;;  %v6572_v10 = vld [vmem:[#allocation112_spill] sm:$0xff] }
 0x47e   :  { %v1539_v35 = vsel %vm426_vm0, %v6572_v10, 0.0  ;;  %v2264_v10 = vsel %vm426_vm0, %v5411_v19, 0.0 }
 0x47f   :  { %v2717_v36 = vsel %vm426_vm0, %v2673_v14, 0.0 }
 0x480   :  { %1996 = vadd.xlane.f32.xlu0 %v1995_v41  ;;  %v5589_v41 = vpop.permute.xlu1 %2923 }
 0x481   :  { %1537 = vadd.xlane.f32.xlu1 %v1536_v4  ;;  %v2276_v4 = vsel %vm426_vm0, %v5376_v28, 0.0  ;;  %v5608_v32 = vpop.permute.xlu0 %2945  ;;  %v3001_v28 = vsel %vm426_vm0, %v5424_v57, 0.0  ;;  %v3004_v57 = vsel %vm426_vm0, %v5399_v0, 0.0 }
 0x484   :  { %2256 = vadd.xlane.f32.xlu0 %v2255_v44  ;;  %v5598_v24 = vpop.permute.xlu1 %2939 }
 0x485   :  { %1975 = vadd.xlane.f32.xlu1 %v1974_v61  ;;  %v6570_v61 = vld [vmem:[#allocation127_spill] sm:$0xff]  ;;  %v5617_v55 = vpop.permute.xlu0 %2949 }
 0x486   :  { %v2674_v47 = vmul.f32 %v5478_v52, %v6570_v61  ;;  %6571 = vst [vmem:[#allocation122_spill] sm:$0xff] %v5617_v55 }
 0x488   :  { %2274 = vadd.xlane.f32.xlu0 %v2273_v1  ;;  %v5610_v44 = vpop.permute.xlu1 %2189  ;;  %v1921_v1 = vmul.f32 %v5386_v43, %v5103_v60 }
 0x489   :  { %1999 = vadd.xlane.f32.xlu1 %v1998_v6  ;;  %v2720_v6 = vsel %vm426_vm0, %v2674_v47, 0.0  ;;  %v2261_v47 = vsel %vm426_vm0, %v5434_v3, 0.0 }
 0x48c   :  { %2280 = vadd.xlane.f32.xlu0 %v2279_v38  ;;  %v5621_v14 = vpop.permute.xlu1 %2927  ;;  %v2998_v38 = vsel %vm426_vm0, %v5392_v48, 0.0  ;;  %v6575_v48 = vld [vmem:[#allocation111_spill] sm:$0xff] }
 0x48d   :  { %2259 = vadd.xlane.f32.xlu1 %v2258_v26  ;;  %v2001_v26 = vsel %vm426_vm0, %v1921_v1, 0.0 }
 0x490   :  { %2718 = vadd.xlane.f32.xlu0 %v2717_v36  ;;  %v5628_v36 = vpop.permute.xlu0 %2953  ;;  %v5630_v60 = vpop.permute.xlu1 %2943 }
 0x491   :  { %2277 = vadd.xlane.f32.xlu1 %v2276_v4  ;;  %6573 = vst [vmem:[#allocation126_spill] sm:$0xff] %v5628_v36  ;;  %v6574_v4 = vld [vmem:[#allocation128_spill] sm:$0xff]  ;;  %v6592_v36 = vld [vmem:[#allocation45_spill] sm:$0xff] }
 0x492   :  { %v1922_v61 = vmul.f32 %v5386_v43, %v6574_v4 }
 0x494   :  { %2996 = vadd.xlane.f32.xlu0 %v2995_v29  ;;  %v1542_v29 = vsel %vm426_vm0, %v6575_v48, 0.0  ;;  %v2004_v0 = vsel %vm426_vm0, %v1922_v61, 0.0  ;;  %v5645_v1 = vpop.permute.xlu1 %2947  ;;  %v6579_v61 = vld [vmem:[#allocation136_spill] sm:$0xff]  ;;  %v6580_v48 = vld [vmem:[#allocation114_spill] sm:$0xff] }
 0x495   :  { %2283 = vadd.xlane.f32.xlu1 %v2282_v59  ;;  %v2675_v59 = vmul.f32 %v5478_v52, %v5127_v63  ;;  %v1923_v19 = vmul.f32 %v5386_v43, %v6579_v61 }
 0x497   :  { %v2723_v3 = vsel %vm426_vm0, %v2675_v59, 0.0 }
 0x498   :  { %3002 = vadd.xlane.f32.xlu0 %v3001_v28  ;;  %v2285_v28 = vsel %vm426_vm0, %v5444_v27, 0.0  ;;  %v5652_v63 = vpop.permute.xlu1 %2951  ;;  %v3007_v27 = vsel %vm426_vm0, %v5457_v13, 0.0  ;;  %v2007_v13 = vsel %vm426_vm0, %v1923_v19, 0.0  ;;  %v2677_v19 = vmul.f32 %v5478_v52, %v5157_v16 }
 0x499   :  { %2721 = vadd.xlane.f32.xlu1 %v2720_v6  ;;  %v5641_v6 = vpop.permute.xlu0 %2957  ;;  %v2683_v16 = vmul.f32 %v5478_v52, %v5181_v23 }
 0x49a   :  { %6576 = vst [vmem:[#allocation123_spill] sm:$0xff] %v5641_v6  ;;  %v6591_v6 = vld [vmem:[#allocation13_spill] sm:$0xff] }
 0x49b   :  { %v2747_v23 = vsel %vm426_vm0, %v2683_v16, 0.0  ;;  %v2294_v16 = vsel %vm426_vm0, %v5453_v11, 0.0 }
 0x49c   :  { %1540 = vadd.xlane.f32.xlu0 %v1539_v35  ;;  %v5665_v59 = vpop.permute.xlu1 %2955 }
 0x49d   :  { %2999 = vadd.xlane.f32.xlu1 %v2998_v38  ;;  %v5650_v35 = vpop.permute.xlu0 %2961  ;;  %v6578_v38 = vld [vmem:[#allocation130_spill] sm:$0xff]  ;;  %6581 = vst [vmem:[#allocation129_spill] sm:$0xff] %v5665_v59 }
 0x49e   :  { %6577 = vst [vmem:[#allocation110_spill] sm:$0xff] %v5650_v35 }
 0x4a0   :  { %2002 = vadd.xlane.f32.xlu0 %v2001_v26  ;;  %v2676_v26 = vmul.f32 %v5478_v52, %v6578_v38 }
 0x4a1   :  { %3005 = vadd.xlane.f32.xlu1 %v3004_v57  ;;  %v2288_v57 = vsel %vm426_vm0, %v5421_v40, 0.0  ;;  %v3010_v40 = vsel %vm426_vm0, %v5430_v39, 0.0  ;;  %v6585_v39 = vld [vmem:[#allocation15_spill] sm:$0xff] }
 0x4a4   :  { %2262 = vadd.xlane.f32.xlu0 %v2261_v47  ;;  %v2726_v47 = vsel %vm426_vm0, %v2676_v26, 0.0  ;;  %v2267_v26 = vsel %vm426_vm0, %v5470_v2, 0.0 }
 0x4a5   :  { %1543 = vadd.xlane.f32.xlu1 %v1542_v29  ;;  %v1545_v29 = vsel %vm426_vm0, %v6580_v48, 0.0 }
 0x4a8   :  { %2286 = vadd.xlane.f32.xlu0 %v2285_v28 }
 0x4a9   :  { %2005 = vadd.xlane.f32.xlu1 %v2004_v0 }
 0x4ac   :  { %2724 = vadd.xlane.f32.xlu0 %v2723_v3  ;;  %v5670_v3 = vpop.permute.xlu1 %2959 }
 0x4ad   :  { %2265 = vadd.xlane.f32.xlu1 %v2264_v10  ;;  %6582 = vst [vmem:[#allocation124_spill] sm:$0xff] %v5670_v3  ;;  %v6583_v10 = vld [vmem:[#allocation132_spill] sm:$0xff]  ;;  %v6593_v3 = vld [vmem:[#allocation94_spill] sm:$0xff] }
 0x4ae   :  { %v1924_v38 = vmul.f32 %v5386_v43, %v6583_v10  ;;  %v6587_v10 = vld [vmem:[#allocation93_spill] sm:$0xff] }
 0x4b0   :  { %3008 = vadd.xlane.f32.xlu0 %v3007_v27  ;;  %v6584_v27 = vld [vmem:[#allocation113_spill] sm:$0xff] }
 0x4b1   :  { %v1934_v4 = vpop.xlane.xlu0 %1933  ;;  %2289 = vadd.xlane.f32.xlu1 %v2288_v57  ;;  %v1548_v57 = vsel %vm426_vm0, %v6584_v27, 0.0  ;;  %v2729_v27 = vsel %vm426_vm0, %v2677_v19, 0.0  ;;  %v6594_v19 = vld [vmem:[#allocation62_spill] sm:$0xff] }
 0x4b4   :  { %1546 = vadd.xlane.f32.xlu0 %v1545_v29 }
 0x4b5   :  { %v1937_v0 = vpop.xlane.xlu0 %1936  ;;  %2727 = vadd.xlane.f32.xlu1 %v2726_v47  ;;  %v6586_v47 = vld [vmem:[#allocation63_spill] sm:$0xff] }
 0x4b6   :  { %v780_v48 = vadd.f32 %v6586_v47, %v6585_v39  ;;  %v6590_v47 = vld [vmem:[#allocation115_spill] sm:$0xff] }
 0x4b8   :  { %2008 = vadd.xlane.f32.xlu0 %v2007_v13  ;;  %v2010_v13 = vsel %vm426_vm0, %v1924_v38, 0.0  ;;  %v1254_v2 = vadd.f32 %v6587_v10, %v780_v48 }
 0x4b9   :  { %v1940_v28 = vpop.xlane.xlu0 %1939  ;;  %3011 = vadd.xlane.f32.xlu1 %v3010_v40  ;;  %v2291_v40 = vsel %vm426_vm0, %v5485_v25, 0.0  ;;  %v779_v25 = vadd.f32 %v6592_v36, %v6591_v6  ;;  %v6596_v6 = vld [vmem:[#allocation133_spill] sm:$0xff] }
 0x4ba   :  { %v1552_v35 = vadd.f32 %v6590_v47, %v1254_v2  ;;  %v6595_v2 = vld [vmem:[#allocation119_spill] sm:$0xff] }
 0x4bb   :  { %v1253_v10 = vadd.f32 %v6594_v19, %v779_v25  ;;  %v6601_v19 = vld [vmem:[#allocation18_spill] sm:$0xff] }
 0x4bc   :  { %2268 = vadd.xlane.f32.xlu0 %v2267_v26 }
 0x4bd   :  { %v1946_v61 = vpop.xlane.xlu0 %1945  ;;  %1549 = vadd.xlane.f32.xlu1 %v1548_v57  ;;  %v6588_v57 = vld [vmem:[#allocation16_spill] sm:$0xff] }
 0x4be   :  { %v1931_v29 = vpop.xlane.xlu1 %1930  ;;  %v782_v39 = vadd.f32 %v6589_v9, %v6588_v57  ;;  %v2685_v9 = vmul.f32 %v5478_v52, %v5196_v18  ;;  %v6600_v18 = vld [vmem:[#allocation64_spill] sm:$0xff] }
 0x4c0   :  { %2292 = vadd.xlane.f32.xlu0 %v2291_v40  ;;  %v1256_v48 = vadd.f32 %v6593_v3, %v782_v39  ;;  %v2026_v40 = vadd.f32 %v1934_v4, %v1552_v35  ;;  %v2678_v35 = vmul.f32 %v5478_v52, %v6596_v6  ;;  %v6597_v4 = vld [vmem:[#allocation14_spill] sm:$0xff] }
 0x4c1   :  { %v5686_v26 = vpop.xlane.xlu0 %1951  ;;  %2011 = vadd.xlane.f32.xlu1 %v2010_v13  ;;  %v2270_v13 = vsel %vm426_vm0, %v5441_v42, 0.0  ;;  %v6598_v42 = vld [vmem:[#allocation46_spill] sm:$0xff] }
 0x4c2   :  { %v1943_v38 = vpop.xlane.xlu1 %1942  ;;  %v1554_v57 = vadd.f32 %v6595_v2, %v1256_v48  ;;  %v781_v3 = vadd.f32 %v6598_v42, %v6597_v4  ;;  %v6602_v2 = vld [vmem:[#allocation65_spill] sm:$0xff] }
 0x4c3   :  { %v784_v6 = vadd.f32 %v6602_v2, %v6601_v19  ;;  %v6609_v19 = vld [vmem:[#allocation48_spill] sm:$0xff] }
 0x4c4   :  { %2730 = vadd.xlane.f32.xlu0 %v2729_v27  ;;  %v6599_v27 = vld [vmem:[#allocation116_spill] sm:$0xff]  ;;  %v2028_v25 = vadd.f32 %v1940_v28, %v1554_v57  ;;  %v6603_v28 = vld [vmem:[#allocation137_spill] sm:$0xff]  ;;  %v6604_v57 = vld [vmem:[#allocation118_spill] sm:$0xff] }
 0x4c5   :  { %v2230_v59 = vpop.xlane.xlu0 %2229  ;;  %2271 = vadd.xlane.f32.xlu1 %v2270_v13  ;;  %v1551_v39 = vadd.f32 %v6599_v27, %v1253_v10  ;;  %v1255_v13 = vadd.f32 %v6600_v18, %v781_v3  ;;  %v2732_v10 = vsel %vm426_vm0, %v2678_v35, 0.0 }
 0x4c6   :  { %v5704_v47 = vadd.f32 %v2230_v59, %v2026_v40  ;;  %v5706_v36 = vpop.xlane.xlu1 %1948  ;;  %v2753_v40 = vsel %vm426_vm0, %v2685_v9, 0.0 }
 0x4c7   :  { %v2025_v48 = vadd.f32 %v1931_v29, %v1551_v39  ;;  %v1553_v11 = vadd.f32 %v6604_v57, %v1255_v13  ;;  %v6605_v29 = vld [vmem:[#allocation95_spill] sm:$0xff]  ;;  %v1925_v39 = vmul.f32 %v5386_v43, %v5227_v30 }
 0x4c8   :  { %2748 = vadd.xlane.f32.xlu0 %v2747_v23  ;;  %v2684_v23 = vmul.f32 %v5478_v52, %v6603_v28  ;;  %v1258_v3 = vadd.f32 %v6605_v29, %v784_v6  ;;  %v6611_v29 = vld [vmem:[#allocation120_spill] sm:$0xff] }
 0x4c9   :  { %v2236_v59 = vpop.xlane.xlu0 %2235  ;;  %2295 = vadd.xlane.f32.xlu1 %v2294_v16  ;;  %v2027_v27 = vadd.f32 %v1937_v0, %v1553_v11  ;;  %v3013_v0 = vsel %vm426_vm0, %v5499_v50, 0.0  ;;  %v2013_v28 = vsel %vm426_vm0, %v1925_v39, 0.0  ;;  %v2679_v50 = vmul.f32 %v5478_v52, %v5241_v45 }
 0x4ca   :  { %v5719_v55 = vadd.f32 %v2236_v59, %v2028_v25  ;;  %v2227_v4 = vpop.xlane.xlu1 %2226  ;;  %v6606_v25 = vld [vmem:[#allocation117_spill] sm:$0xff]  ;;  %v2750_v18 = vsel %vm426_vm0, %v2684_v23, 0.0  ;;  %v6607_v59 = vld [vmem:[#allocation140_spill] sm:$0xff]  ;;  %v2687_v45 = vmul.f32 %v5478_v52, %v5251_v53 }
 0x4cb   :  { %v5725_v42 = vadd.f32 %v2227_v4, %v2025_v48  ;;  %v1556_v16 = vadd.f32 %v6606_v25, %v1258_v3  ;;  %v2686_v13 = vmul.f32 %v5478_v52, %v6607_v59  ;;  %v6608_v48 = vld [vmem:[#allocation17_spill] sm:$0xff]  ;;  %v6610_v4 = vld [vmem:[#allocation66_spill] sm:$0xff]  ;;  %v3016_v59 = vsel %vm426_vm0, %v5464_v58, 0.0  ;;  %v6617_v53 = vld [vmem:[#allocation144_spill] sm:$0xff] }
 0x4cc   :  { %2754 = vadd.xlane.f32.xlu0 %v2753_v40  ;;  %v783_v2 = vadd.f32 %v6609_v19, %v6608_v48  ;;  %v6613_v48 = vld [vmem:[#allocation21_spill] sm:$0xff]  ;;  %v2759_v58 = vsel %vm426_vm0, %v2687_v45, 0.0  ;;  %v6619_v45 = vld [vmem:[#allocation22_spill] sm:$0xff] }
 0x4cd   :  { %v5728_v9 = vpop.xlane.xlu0 %1957  ;;  %2733 = vadd.xlane.f32.xlu1 %v2732_v10  ;;  %v2030_v40 = vadd.f32 %v1946_v61, %v1556_v16  ;;  %v2756_v11 = vsel %vm426_vm0, %v2686_v13, 0.0  ;;  %v6612_v16 = vld [vmem:[#allocation141_spill] sm:$0xff]  ;;  %v2735_v13 = vsel %vm426_vm0, %v2679_v50, 0.0 }
 0x4ce   :  { %v2233_v35 = vpop.xlane.xlu1 %2232  ;;  %v1257_v30 = vadd.f32 %v6610_v4, %v783_v2  ;;  %v1926_v39 = vmul.f32 %v5386_v43, %v6612_v16  ;;  %v6614_v19 = vld [vmem:[#allocation49_spill] sm:$0xff] }
 0x4cf   :  { %v5738_v6 = vadd.f32 %v2233_v35, %v2027_v27  ;;  %v785_v2 = vadd.f32 %v6614_v19, %v6613_v48  ;;  %v6621_v19 = vld [vmem:[#allocation96_spill] sm:$0xff] }
 0x4d0   :  { %3014 = vadd.xlane.f32.xlu0 %v3013_v0  ;;  %v1555_v3 = vadd.f32 %v6611_v29, %v1257_v30  ;;  %v2680_v29 = vmul.f32 %v5478_v52, %v6617_v53 }
 0x4d1   :  { %v2242_v10 = vpop.xlane.xlu0 %2241  ;;  %2751 = vadd.xlane.f32.xlu1 %v2750_v18  ;;  %v2297_v18 = vsel %vm426_vm0, %v5507_v54, 0.0  ;;  %v6615_v54 = vld [vmem:[#allocation68_spill] sm:$0xff] }
 0x4d2   :  { %v5744_v23 = vadd.f32 %v2242_v10, %v2030_v40  ;;  %v5746_v57 = vpop.xlane.xlu1 %1954  ;;  %v2029_v27 = vadd.f32 %v1943_v38, %v1555_v3  ;;  %v2016_v40 = vsel %vm426_vm0, %v1926_v39, 0.0  ;;  %v1259_v4 = vadd.f32 %v6615_v54, %v785_v2  ;;  %v6616_v10 = vld [vmem:[#allocation121_spill] sm:$0xff] }
 0x4d4   :  { %2014 = vadd.xlane.f32.xlu0 %v2013_v28  ;;  %v1557_v28 = vadd.f32 %v6616_v10, %v1259_v4  ;;  %v6622_v10 = vld [vmem:[#allocation134_spill] sm:$0xff] }
 0x4d5   :  { %v5750_v25 = vpop.xlane.xlu0 %1960  ;;  %2757 = vadd.xlane.f32.xlu1 %v2756_v11 }
 0x4d6   :  { %v2239_v61 = vpop.xlane.xlu1 %2238  ;;  %v2031_v3 = vadd.f32 %v5706_v36, %v1557_v28  ;;  %v6620_v36 = vld [vmem:[#allocation67_spill] sm:$0xff] }
 0x4d7   :  { %v5756_v35 = vadd.f32 %v2239_v61, %v2029_v27  ;;  %v2300_v27 = vsel %vm426_vm0, %v5483_v5, 0.0  ;;  %v1927_v61 = vmul.f32 %v5386_v43, %v5278_v34  ;;  %v786_v48 = vadd.f32 %v6620_v36, %v6619_v45 }
 0x4d8   :  { %2298 = vadd.xlane.f32.xlu0 %v2297_v18  ;;  %v2738_v18 = vsel %vm426_vm0, %v2680_v29, 0.0  ;;  %v3019_v5 = vsel %vm426_vm0, %v5523_v12, 0.0  ;;  %v6623_v29 = vld [vmem:[#allocation155_spill] sm:$0xff] }
 0x4d9   :  { %v5762_v38 = vpop.xlane.xlu0 %1978  ;;  %3017 = vadd.xlane.f32.xlu1 %v3016_v59  ;;  %v6618_v59 = vld [vmem:[#allocation147_spill] sm:$0xff]  ;;  %v1260_v2 = vadd.f32 %v6621_v19, %v786_v48  ;;  %v2019_v34 = vsel %vm426_vm0, %v1927_v61, 0.0 }
 0x4da   :  { %v5769_v0 = vpop.xlane.xlu1 %1525  ;;  %v6626_v19 = vld [vmem:[#allocation19_spill] sm:$0xff] }
 0x4db   :  { %v1558_v28 = vadd.f32 %v6622_v10, %v1260_v2  ;;  %v6627_v2 = vld [vmem:[#allocation50_spill] sm:$0xff] }
 0x4dc   :  { %2736 = vadd.xlane.f32.xlu0 %v2735_v13  ;;  %v2688_v13 = vmul.f32 %v5478_v52, %v6618_v59  ;;  %v2303_v59 = vsel %vm426_vm0, %v5531_v22, 0.0 }
 0x4dd   :  { %v5773_v30 = vpop.xlane.xlu0 %1984  ;;  %2017 = vadd.xlane.f32.xlu1 %v2016_v40  ;;  %v2032_v53 = vadd.f32 %v5686_v26, %v1558_v28  ;;  %v3022_v26 = vsel %vm426_vm0, %v5494_v51, 0.0 }
 0x4de   :  { %v5777_v11 = vpop.xlane.xlu1 %1963 }
 0x4e0   :  { %2760 = vadd.xlane.f32.xlu0 %v2759_v58  ;;  %v2762_v58 = vsel %vm426_vm0, %v2688_v13, 0.0 }
 0x4e1   :  { %v2245_v50 = vpop.xlane.xlu0 %2244  ;;  %2301 = vadd.xlane.f32.xlu1 %v2300_v27 }
 0x4e2   :  { %v5786_v16 = vadd.f32 %v2245_v50, %v2031_v3  ;;  %v5788_v39 = vpop.xlane.xlu1 %1981  ;;  %v2681_v3 = vmul.f32 %v5478_v52, %v6623_v29 }
 0x4e4   :  { %3020 = vadd.xlane.f32.xlu0 %v3019_v5  ;;  %v2741_v45 = vsel %vm426_vm0, %v2681_v3, 0.0  ;;  %v6630_v3 = vld [vmem:[#allocation135_spill] sm:$0xff] }
 0x4e5   :  { %v2701_v40 = vpop.xlane.xlu0 %2700  ;;  %2739 = vadd.xlane.f32.xlu1 %v2738_v18 }
 0x4e6   :  { %v5800_v54 = vadd.f32 %v2701_v40, %v5725_v42  ;;  %v5802_v4 = vpop.xlane.xlu1 %1987  ;;  %v6624_v42 = vld [vmem:[#allocation148_spill] sm:$0xff]  ;;  %v787_v40 = vadd.f32 %v6627_v2, %v6626_v19  ;;  %v3043_v2 = vsel %vm426_vm0, %v5556_v62, 0.0 }
 0x4e7   :  { %v1928_v61 = vmul.f32 %v5386_v43, %v6624_v42 }
 0x4e8   :  { %2020 = vadd.xlane.f32.xlu0 %v2019_v34 }
 0x4e9   :  { %v2707_v12 = vpop.xlane.xlu0 %2706  ;;  %2763 = vadd.xlane.f32.xlu1 %v2762_v58  ;;  %v2022_v43 = vsel %vm426_vm0, %v1928_v61, 0.0  ;;  %v6628_v58 = vld [vmem:[#allocation151_spill] sm:$0xff] }
 0x4ea   :  { %v5810_v27 = vadd.f32 %v2707_v12, %v5738_v6  ;;  %v2248_v50 = vpop.xlane.xlu1 %2247  ;;  %v6625_v6 = vld [vmem:[#allocation159_spill] sm:$0xff]  ;;  %v2682_v10 = vmul.f32 %v5478_v52, %v6628_v58 }
 0x4eb   :  { %v5814_v18 = vadd.f32 %v2248_v50, %v2032_v53  ;;  %v2689_v36 = vmul.f32 %v5478_v52, %v6625_v6  ;;  %v6629_v53 = vld [vmem:[#allocation69_spill] sm:$0xff] }
 0x4ec   :  { %2304 = vadd.xlane.f32.xlu0 %v2303_v59  ;;  %v1261_v12 = vadd.f32 %v6629_v53, %v787_v40  ;;  %v2744_v61 = vsel %vm426_vm0, %v2682_v10, 0.0  ;;  %v6631_v59 = vld [vmem:[#allocation154_spill] sm:$0xff]  ;;  %v6634_v40 = vld [vmem:[#allocation97_spill] sm:$0xff] }
 0x4ed   :  { %v5820_v13 = vpop.xlane.xlu0 %1528  ;;  %3023 = vadd.xlane.f32.xlu1 %v3022_v26  ;;  %v2765_v51 = vsel %vm426_vm0, %v2689_v36, 0.0  ;;  %v2690_v26 = vmul.f32 %v5478_v52, %v6631_v59  ;;  %v6635_v10 = vld [vmem:[#allocation138_spill] sm:$0xff] }
 0x4ee   :  { %v2704_v48 = vpop.xlane.xlu1 %2703  ;;  %v1559_v50 = vadd.f32 %v6630_v3, %v1261_v12  ;;  %v3049_v12 = vsel %vm426_vm0, %v5567_v8, 0.0  ;;  %v3046_v8 = vsel %vm426_vm0, %v5529_v21, 0.0 }
 0x4ef   :  { %v5827_v5 = vadd.f32 %v2704_v48, %v5704_v47  ;;  %v2306_v47 = vsel %vm426_vm0, %v5505_v17, 0.0  ;;  %v2768_v48 = vsel %vm426_vm0, %v2690_v26, 0.0  ;;  %v2309_v26 = vsel %vm426_vm0, %v5580_v46, 0.0  ;;  %v6637_v46 = vld [vmem:[#allocation29_spill] sm:$0xff] }
 0x4f0   :  { %2742 = vadd.xlane.f32.xlu0 %v2741_v45  ;;  %v2033_v45 = vadd.f32 %v5746_v57, %v1559_v50  ;;  %v6636_v50 = vld [vmem:[#allocation163_spill] sm:$0xff] }
 0x4f1   :  { %v5829_v22 = vpop.xlane.xlu0 %1966  ;;  %2023 = vadd.xlane.f32.xlu1 %v2022_v43  ;;  %v6632_v43 = vld [vmem:[#allocation20_spill] sm:$0xff] }
 0x4f2   :  { %v2710_v34 = vpop.xlane.xlu1 %2709 }
 0x4f3   :  { %v5837_v28 = vadd.f32 %v2710_v34, %v5719_v55  ;;  %v3025_v55 = vsel %vm426_vm0, %v5545_v37, 0.0 }
 0x4f4   :  { %2766 = vadd.xlane.f32.xlu0 %v2765_v51  ;;  %v6633_v51 = vld [vmem:[#allocation70_spill] sm:$0xff] }
 0x4f5   :  { %v5842_v29 = vpop.xlane.xlu0 %1990  ;;  %2307 = vadd.xlane.f32.xlu1 %v2306_v47  ;;  %v788_v19 = vadd.f32 %v6633_v51, %v6632_v43  ;;  %v3028_v47 = vsel %vm426_vm0, %v5518_v31, 0.0  ;;  %v6638_v43 = vld [vmem:[#allocation54_spill] sm:$0xff] }
 0x4f6   :  { %v5845_v42 = vpop.xlane.xlu1 %1531  ;;  %v795_v51 = vadd.f32 %v6638_v43, %v6637_v46 }
 0x4f7   :  { %v1262_v37 = vadd.f32 %v6634_v40, %v788_v19  ;;  %v6639_v19 = vld [vmem:[#allocation156_spill] sm:$0xff]  ;;  %v3031_v40 = vsel %vm426_vm0, %v5589_v41, 0.0  ;;  %v3055_v41 = vsel %vm426_vm0, %v5598_v24, 0.0 }
 0x4f8   :  { %3026 = vadd.xlane.f32.xlu0 %v3025_v55 }
 0x4f9   :  { %v2251_v6 = vpop.xlane.xlu0 %2250  ;;  %2745 = vadd.xlane.f32.xlu1 %v2744_v61  ;;  %v1560_v53 = vadd.f32 %v6635_v10, %v1262_v37  ;;  %v6641_v10 = vld [vmem:[#allocation31_spill] sm:$0xff] }
 0x4fa   :  { %v5853_v17 = vadd.f32 %v2251_v6, %v2033_v45  ;;  %v5855_v36 = vpop.xlane.xlu1 %1969  ;;  %v3052_v6 = vsel %vm426_vm0, %v5542_v15, 0.0  ;;  %v2312_v15 = vsel %vm426_vm0, %v5552_v20, 0.0 }
 0x4fb   :  { %v2034_v62 = vadd.f32 %v5728_v9, %v1560_v53  ;;  %v6642_v53 = vld [vmem:[#allocation55_spill] sm:$0xff] }
 0x4fc   :  { %3044 = vadd.xlane.f32.xlu0 %v3043_v2  ;;  %v2692_v2 = vmul.f32 %v5478_v52, %v6639_v19  ;;  %v2315_v19 = vsel %vm426_vm0, %v5610_v44, 0.0 }
 0x4fd   :  { %v2713_v34 = vpop.xlane.xlu0 %2712  ;;  %2769 = vadd.xlane.f32.xlu1 %v2768_v48 }
 0x4fe   :  { %v5864_v57 = vadd.f32 %v2713_v34, %v5756_v35  ;;  %v5866_v58 = vpop.xlane.xlu1 %1993  ;;  %v2691_v35 = vmul.f32 %v5478_v52, %v6636_v50 }
 0x500   :  { %3050 = vadd.xlane.f32.xlu0 %v3049_v12  ;;  %v2771_v31 = vsel %vm426_vm0, %v2691_v35, 0.0  ;;  %v797_v12 = vadd.f32 %v6642_v53, %v6641_v10  ;;  %v2774_v35 = vsel %vm426_vm0, %v2692_v2, 0.0 }
 0x501   :  { %v5874_v3 = vpop.xlane.xlu0 %1534  ;;  %3029 = vadd.xlane.f32.xlu1 %v3028_v47  ;;  %v6643_v47 = vld [vmem:[#allocation150_spill] sm:$0xff] }
 0x502   :  { %v2254_v61 = vpop.xlane.xlu1 %2253 }
 0x503   :  { %v5878_v59 = vadd.f32 %v2254_v61, %v2034_v62  ;;  %v6644_v61 = vld [vmem:[#allocation78_spill] sm:$0xff] }
 0x504   :  { %2310 = vadd.xlane.f32.xlu0 %v2309_v26  ;;  %v1271_v26 = vadd.f32 %v6644_v61, %v797_v12  ;;  %v3037_v12 = vsel %vm426_vm0, %v5621_v14, 0.0  ;;  %v3061_v14 = vsel %vm426_vm0, %v5630_v60, 0.0  ;;  %v6652_v60 = vld [vmem:[#allocation11_spill] sm:$0xff] }
 0x505   :  { %v5884_v55 = vpop.xlane.xlu0 %1972  ;;  %3047 = vadd.xlane.f32.xlu1 %v3046_v8 }
 0x506   :  { %v2716_v9 = vpop.xlane.xlu1 %2715 }
 0x507   :  { %v5888_v45 = vadd.f32 %v2716_v9, %v5744_v23  ;;  %v6640_v23 = vld [vmem:[#allocation76_spill] sm:$0xff] }
 0x508   :  { %2772 = vadd.xlane.f32.xlu0 %v2771_v31  ;;  %v1269_v37 = vadd.f32 %v6640_v23, %v795_v51  ;;  %v6645_v31 = vld [vmem:[#allocation166_spill] sm:$0xff] }
 0x509   :  { %v5892_v48 = vpop.xlane.xlu0 %1996  ;;  %3053 = vadd.xlane.f32.xlu1 %v3052_v6  ;;  %v2693_v9 = vmul.f32 %v5478_v52, %v6645_v31  ;;  %v6646_v6 = vld [vmem:[#allocation153_spill] sm:$0xff] }
 0x50a   :  { %v5896_v21 = vpop.xlane.xlu1 %1537  ;;  %v1567_v62 = vadd.f32 %v6643_v47, %v1269_v37  ;;  %v1569_v46 = vadd.f32 %v6646_v6, %v1271_v26  ;;  %v2318_v47 = vsel %vm426_vm0, %v5585_v33, 0.0  ;;  %v6649_v26 = vlaneseq }
 0x50c   :  { %3032 = vadd.xlane.f32.xlu0 %v3031_v40  ;;  %v2041_v8 = vadd.f32 %v5762_v38, %v1567_v62  ;;  %v2043_v24 = vadd.f32 %v5773_v30, %v1569_v46  ;;  %v3034_v38 = vsel %vm426_vm0, %v5564_v49, 0.0  ;;  %v2777_v40 = vsel %vm426_vm0, %v2693_v9, 0.0  ;;  %v6647_v49 = vld [vmem:[#allocation160_spill] sm:$0xff]  ;;  %v6650_v46 = vld [vmem:[#allocation37_spill] sm:$0xff] }
 0x50d   :  { %v5905_v34 = vpop.xlane.xlu0 %2256  ;;  %2313 = vadd.xlane.f32.xlu1 %v2312_v15  ;;  %v3058_v15 = vsel %vm426_vm0, %v5576_v7, 0.0  ;;  %v2694_v53 = vmul.f32 %v5478_v52, %v6647_v49  ;;  %v6648_v7 = vld [vmem:[#allocation167_spill] sm:$0xff]  ;;  %v6655_v49 = vld [vmem:[#allocation52_spill] sm:$0xff] }
 0x50e   :  { %v5910_v50 = vpop.xlane.xlu1 %1975 }
 0x50f   :  { %v2780_v61 = vsel %vm426_vm0, %v2694_v53, 0.0 }
 0x510   :  { %3056 = vadd.xlane.f32.xlu0 %v3055_v41 }
 0x511   :  { %v2275_v20 = vpop.xlane.xlu0 %2274  ;;  %2775 = vadd.xlane.f32.xlu1 %v2774_v35  ;;  %v2695_v35 = vmul.f32 %v5478_v52, %v6648_v7  ;;  %v6657_v7 = vld [vmem:[#allocation164_spill] sm:$0xff] }
 0x512   :  { %v5920_v43 = vadd.f32 %v2275_v20, %v2041_v8  ;;  %v5922_v51 = vpop.xlane.xlu1 %1999  ;;  %v3158_v8 = vand.u32 127, %v6649_v26  ;;  %v6658_v26 = vld [vmem:[#allocation73_spill] sm:$0xff] }
 0x513   :  { %v2783_v33 = vsel %vm426_vm0, %v2695_v35, 0.0 }
 0x514   :  { %2316 = vadd.xlane.f32.xlu0 %v2315_v19  ;;  %v3163_v31 = vadd.s32 4294967288, %v3158_v8  ;;  %v6651_v19 = vld [vmem:[#allocation58_spill] sm:$0xff] }
 0x515   :  { %v2281_v2 = vpop.xlane.xlu0 %2280  ;;  %3035 = vadd.xlane.f32.xlu1 %v3034_v38  ;;  %v3040_v38 = vsel %vm426_vm0, %v5596_v56, 0.0  ;;  %v2696_v56 = vmul.f32 %v5478_v52, %v6657_v7 }
 0x516   :  { %v5930_v23 = vadd.f32 %v2281_v2, %v2043_v24  ;;  %v5932_v37 = vpop.xlane.xlu1 %2259  ;;  %v803_v24 = vadd.f32 %v6651_v19, %v6650_v46  ;;  %v5966_v2 = vsub.s32 %v3158_v8, %v6652_v60  ;;  %v6659_v46 = vld [vmem:[#allocation33_spill] sm:$0xff]  ;;  %v6660_v19 = vld [vmem:[#allocation56_spill] sm:$0xff] }
 0x518   :  { %2778 = vadd.xlane.f32.xlu0 %v2777_v40 }
 0x519   :  { %v2719_v10 = vpop.xlane.xlu0 %2718  ;;  %3059 = vadd.xlane.f32.xlu1 %v3058_v15  ;;  %v5971_v15 = vsub.s32 %v3163_v31, %v6652_v60 }
 0x51a   :  { %v5937_v44 = vadd.f32 %v2719_v10, %v5786_v16  ;;  %v5939_v30 = vpop.xlane.xlu1 %2277  ;;  %v6654_v10 = vld [vmem:[#allocation25_spill] sm:$0xff] }
 0x51b   :  { %v791_v53 = vadd.f32 %v6655_v49, %v6654_v10  ;;  %v2786_v10 = vsel %vm426_vm0, %v2696_v56, 0.0  ;;  %v6662_v49 = vld [vmem:[#allocation79_spill] sm:$0xff]  ;;  %v6665_v56 = vld [vmem:[#allocation158_spill] sm:$0xff] }
 0x51c   :  { %3038 = vadd.xlane.f32.xlu0 %v3037_v12  ;;  %v6656_v12 = vld [vmem:[#allocation83_spill] sm:$0xff] }
 0x51d   :  { %v2997_v62 = vpop.xlane.xlu0 %2996  ;;  %2319 = vadd.xlane.f32.xlu1 %v2318_v47  ;;  %v1277_v47 = vadd.f32 %v6656_v12, %v803_v24  ;;  %v1265_v8 = vadd.f32 %v6658_v26, %v791_v53  ;;  %v6661_v24 = vld [vmem:[#allocation143_spill] sm:$0xff] }
 0x51e   :  { %v3091_v16 = vadd.f32 %v2997_v62, %v5800_v54  ;;  %v5950_v41 = vpop.xlane.xlu1 %2283 }
 0x520   :  { %3062 = vadd.xlane.f32.xlu0 %v3061_v14  ;;  %v1575_v14 = vadd.f32 %v5820_v13, %v1277_v47  ;;  %v6664_v47 = vld [vmem:[#allocation89_spill] sm:$0xff] }
 0x521   :  { %v3003_v20 = vpop.xlane.xlu0 %3002  ;;  %2781 = vadd.xlane.f32.xlu1 %v2780_v61  ;;  %v3067_v61 = vsel %vm426_vm0, %v5645_v1, 0.0  ;;  %v799_v1 = vadd.f32 %v6660_v19, %v6659_v46  ;;  %v3073_v46 = vsel %vm426_vm0, %v5652_v63, 0.0  ;;  %v6672_v63 = vld [vmem:[#allocation34_spill] sm:$0xff] }
 0x522   :  { %v3093_v9 = vadd.f32 %v3003_v20, %v5810_v27  ;;  %v2722_v6 = vpop.xlane.xlu1 %2721  ;;  %v6653_v27 = vld [vmem:[#allocation168_spill] sm:$0xff]  ;;  %v3064_v20 = vsel %vm426_vm0, %v5608_v32, 0.0 }
 0x523   :  { %v5959_v54 = vadd.f32 %v2722_v6, %v5814_v18  ;;  %v2697_v18 = vmul.f32 %v5478_v52, %v6653_v27  ;;  %v1273_v53 = vadd.f32 %v6662_v49, %v799_v1 }
 0x524   :  { %2784 = vadd.xlane.f32.xlu0 %v2783_v33  ;;  %v3162_v33 = vrot.slane %v3091_v16, %v5966_v2  ;;  %v3173_v7 = vrot.slane %v3093_v9, %v5966_v2 }
 0x525   :  { %v5968_v40 = vpop.xlane.xlu0 %1540  ;;  %3041 = vadd.xlane.f32.xlu1 %v3040_v38  ;;  %v1563_v38 = vadd.f32 %v6661_v24, %v1265_v8  ;;  %v1571_v26 = vadd.f32 %v6665_v56, %v1273_v53  ;;  %v6670_v24 = vld [vmem:[#allocation122_spill] sm:$0xff] }
 0x526   :  { %v3000_v62 = vpop.xlane.xlu1 %2999 }
 0x527   :  { %v3092_v35 = vadd.f32 %v3000_v62, %v5827_v5  ;;  %v2789_v5 = vsel %vm426_vm0, %v2697_v18, 0.0  ;;  %v2037_v12 = vadd.f32 %v5829_v22, %v1563_v38  ;;  %v6663_v18 = vld [vmem:[#allocation38_spill] sm:$0xff]  ;;  %v2045_v19 = vadd.f32 %v5842_v29, %v1571_v26 }
 0x528   :  { %3068 = vadd.xlane.f32.xlu0 %v3067_v61  ;;  %v804_v62 = vadd.f32 %v6664_v47, %v6663_v18  ;;  %v3070_v38 = vsel %vm426_vm0, %v6670_v24, 0.0  ;;  %v6673_v18 = vld [vmem:[#allocation85_spill] sm:$0xff] }
 0x529   :  { %v3167_v31 = vrot.slane %v3092_v35, %v5971_v15  ;;  %v2003_v6 = vpop.xlane.xlu0 %2002  ;;  %3065 = vadd.xlane.f32.xlu1 %v3064_v20  ;;  %v6667_v20 = vld [vmem:[#allocation26_spill] sm:$0xff]  ;;  %v800_v29 = vadd.f32 %v6673_v18, %v6672_v63  ;;  %v6674_v47 = vld [vmem:[#allocation145_spill] sm:$0xff] }
 0x52a   :  { %v5993_v27 = vadd.f32 %v2003_v6, %v1575_v14  ;;  %v3006_v13 = vpop.xlane.xlu1 %3005  ;;  %v6666_v14 = vld [vmem:[#allocation165_spill] sm:$0xff] }
 0x52b   :  { %v3169_v32 = vsel %vm3168_vm9, %v3167_v31, %v3162_v33  ;;  %v3094_v16 = vadd.f32 %v3006_v13, %v5837_v28  ;;  %v2698_v22 = vmul.f32 %v5478_v52, %v6666_v14  ;;  %v6668_v33 = vld [vmem:[#allocation75_spill] sm:$0xff]  ;;  %v6669_v6 = vld [vmem:[#allocation105_spill] sm:$0xff] }
 0x52c   :  { %2790 = vadd.xlane.f32.xlu0 %v2789_v5  ;;  %v792_v31 = vadd.f32 %v6668_v33, %v6667_v20  ;;  %v1278_v5 = vadd.f32 %v6669_v6, %v804_v62  ;;  %v6671_v13 = vld [vmem:[#allocation99_spill] sm:$0xff]  ;;  %v6677_v20 = vld [vmem:[#allocation161_spill] sm:$0xff]  ;;  %v6678_v6 = vld [vmem:[#allocation124_spill] sm:$0xff] }
 0x52d   :  { %v3177_v35 = vrot.slane %v3094_v16, %v5971_v15  ;;  %v2263_v61 = vpop.xlane.xlu0 %2262  ;;  %2787 = vadd.xlane.f32.xlu1 %v2786_v10 }
 0x52e   :  { %v6005_v8 = vadd.f32 %v2263_v61, %v2037_v12  ;;  %v6007_v28 = vpop.xlane.xlu1 %1543  ;;  %v1266_v52 = vadd.f32 %v6671_v13, %v792_v31  ;;  %v1576_v10 = vadd.f32 %v5845_v42, %v1278_v5  ;;  %v2792_v12 = vsel %vm426_vm0, %v2698_v22, 0.0  ;;  %v6676_v61 = vld [vmem:[#allocation103_spill] sm:$0xff] }
 0x52f   :  { %v3178_v9 = vsel %vm3168_vm9, %v3177_v35, %v3173_v7  ;;  %v6675_v7 = vld [vmem:[#allocation129_spill] sm:$0xff]  ;;  %v1274_v42 = vadd.f32 %v6676_v61, %v800_v29  ;;  %v3085_v5 = vsel %vm426_vm0, %v6678_v6, 0.0  ;;  %v6680_v13 = vld [vmem:[#allocation123_spill] sm:$0xff] }
 0x530   :  { %v3306_v1 = vsel %vm3305_vm10, %v3178_v9, %v3169_v32  ;;  %3074 = vadd.xlane.f32.xlu0 %v3073_v46  ;;  %v1564_v32 = vadd.f32 %v6674_v47, %v1266_v52  ;;  %v3079_v35 = vsel %vm426_vm0, %v6675_v7, 0.0  ;;  %v6679_v9 = vld [vmem:[#allocation126_spill] sm:$0xff]  ;;  %v3082_v52 = vsel %vm426_vm0, %v6680_v13, 0.0  ;;  %v6682_v29 = vld [vmem:[#allocation23_spill] sm:$0xff] }
 0x531   :  { %v2287_v16 = vpop.xlane.xlu0 %2286  ;;  %3071 = vadd.xlane.f32.xlu1 %v3070_v38  ;;  %v1572_v33 = vadd.f32 %v6677_v20, %v1274_v42  ;;  %v3076_v46 = vsel %vm426_vm0, %v6679_v9, 0.0  ;;  %v6683_v47 = vld [vmem:[#allocation51_spill] sm:$0xff]  ;;  %v6686_v9 = vld [vmem:[#allocation36_spill] sm:$0xff] }
 0x532   :  { %v6023_v49 = vadd.f32 %v2287_v16, %v2045_v19  ;;  %v2006_v53 = vpop.xlane.xlu1 %2005  ;;  %v2038_v56 = vadd.f32 %v5855_v36, %v1564_v32  ;;  %v789_v32 = vadd.f32 %v6683_v47, %v6682_v29  ;;  %v6692_v29 = vld [vmem:[#allocation30_spill] sm:$0xff]  ;;  %v6693_v47 = vld [vmem:[#allocation80_spill] sm:$0xff] }
 0x533   :  { %v6029_v62 = vadd.f32 %v2006_v53, %v1576_v10  ;;  %v2046_v19 = vadd.f32 %v5866_v58, %v1572_v33 }
 0x534   :  { %3080 = vadd.xlane.f32.xlu0 %v3079_v35 }
 0x535   :  { %v2725_v26 = vpop.xlane.xlu0 %2724  ;;  %2793 = vadd.xlane.f32.xlu1 %v2792_v12  ;;  %v6681_v12 = vld [vmem:[#allocation110_spill] sm:$0xff] }
 0x536   :  { %v6036_v14 = vadd.f32 %v2725_v26, %v5853_v17  ;;  %v2266_v22 = vpop.xlane.xlu1 %2265  ;;  %v3088_v58 = vsel %vm426_vm0, %v6681_v12, 0.0  ;;  %vm48_vm0 = vcmask 7168  }
 0x537   :  { %v6039_v31 = vadd.f32 %v2266_v22, %v2038_v56  ;;  %v6685_v22 = vld [vmem:[#allocation139_spill] sm:$0xff] }
 0x538   :  { %3086 = vadd.xlane.f32.xlu0 %v3085_v5 }
 0x539   :  { %v3009_v36 = vpop.xlane.xlu0 %3008  ;;  %3077 = vadd.xlane.f32.xlu1 %v3076_v46  ;;  %v6687_v46 = vld [vmem:[#allocation87_spill] sm:$0xff] }
 0x53a   :  { %v3095_v24 = vadd.f32 %v3009_v36, %v5864_v57  ;;  %v2290_v17 = vpop.xlane.xlu1 %2289 }
 0x53b   :  { %v6047_v38 = vadd.f32 %v2290_v17, %v2046_v19  ;;  %v802_v19 = vadd.f32 %v6687_v46, %v6686_v9  ;;  %v6689_v17 = vld [vmem:[#allocation72_spill] sm:$0xff] }
 0x53c   :  { %v3182_v7 = vrot.slane %v3095_v24, %v5966_v2  ;;  %v6688_v24 = vld [vmem:[#allocation24_spill] sm:$0xff] }
 0x53d   :  { %v6051_v10 = vpop.xlane.xlu0 %1546  ;;  %3083 = vadd.xlane.f32.xlu1 %v3082_v52  ;;  %v790_v13 = vadd.f32 %v6689_v17, %v6688_v24  ;;  %v6690_v52 = vld [vmem:[#allocation104_spill] sm:$0xff] }
 0x53e   :  { %v2728_v16 = vpop.xlane.xlu1 %2727  ;;  %v6696_v46 = vld [vmem:[#allocation32_spill] sm:$0xff] }
 0x53f   :  { %v6054_v53 = vadd.f32 %v2728_v16, %v5878_v59  ;;  %v6684_v59 = vld [vmem:[#allocation71_spill] sm:$0xff]  ;;  %v1276_v16 = vadd.f32 %v6690_v52, %v802_v19  ;;  %v6697_v19 = vld [vmem:[#allocation82_spill] sm:$0xff] }
 0x540   :  { %v1263_v42 = vadd.f32 %v6684_v59, %v789_v32  ;;  %v796_v32 = vadd.f32 %v6693_v47, %v6692_v29  ;;  %v6699_v52 = vld [vmem:[#allocation102_spill] sm:$0xff]  ;;  %v6702_v47 = vld [vmem:[#allocation157_spill] sm:$0xff] }
 0x541   :  { %v6058_v63 = vpop.xlane.xlu0 %2008  ;;  %3089 = vadd.xlane.f32.xlu1 %v3088_v58 }
 0x542   :  { %v3012_v57 = vpop.xlane.xlu1 %3011  ;;  %v1561_v20 = vadd.f32 %v6685_v22, %v1263_v42  ;;  %v6695_v42 = vld [vmem:[#allocation101_spill] sm:$0xff] }
 0x543   :  { %v3096_v18 = vadd.f32 %v3012_v57, %v5888_v45  ;;  %v6691_v57 = vld [vmem:[#allocation98_spill] sm:$0xff] }
 0x544   :  { %v2035_v6 = vadd.f32 %v5750_v25, %v1561_v20  ;;  %v1574_v25 = vadd.f32 %v5769_v0, %v1276_v16  ;;  %v3746_v0 = vmov -inf  }
 0x545   :  { %v3186_v35 = vrot.slane %v3096_v18, %v5971_v15  ;;  %v6065_v61 = vpop.xlane.xlu0 %2268  ;;  %v1264_v18 = vadd.f32 %v6691_v57, %v790_v13  ;;  %49 = vst.msk [vmem:[#allocation2] sm:$0xff] %vm48_vm0, %v3746_v0  ;;  %50 = vst.msk [vmem:[#allocation2 + $0x8] sm:$0xff] %vm48_vm0, %v3746_v0 }
 0x546   :  { %v6068_v56 = vpop.xlane.xlu1 %1549  ;;  %v2331_v36 = vadd.f32 %v5905_v34, %v2035_v6  ;;  %v2048_v34 = vadd.f32 %v5922_v51, %v1574_v25  ;;  %v798_v51 = vadd.f32 %v6697_v19, %v6696_v46  ;;  %v6701_v25 = vld [vmem:[#allocation60_spill] sm:$0xff] }
 0x547   :  { %v3187_v26 = vsel %vm3168_vm9, %v3186_v35, %v3182_v7  ;;  %v6694_v7 = vld [vmem:[#allocation142_spill] sm:$0xff] }
 0x548   :  { %v6073_v45 = vsel %vm3307_vm11, %v3187_v26, %v3306_v1  ;;  %v1562_v35 = vadd.f32 %v6694_v7, %v1264_v18  ;;  %v1270_v26 = vadd.f32 %v6695_v42, %v796_v32  ;;  %v1272_v16 = vadd.f32 %v6699_v52, %v798_v51  ;;  %v6700_v18 = vld [vmem:[#allocation41_spill] sm:$0xff]  ;;  %v6705_v51 = vld [vmem:[#allocation91_spill] sm:$0xff] }
 0x549   :  { %v6075_v33 = vpop.xlane.xlu0 %2292  ;;  %v807_v29 = vadd.f32 %v6701_v25, %v6700_v18 }
 0x54a   :  { %v6078_v5 = vpop.xlane.xlu1 %2011  ;;  %v2036_v6 = vadd.f32 %v5777_v11, %v1562_v35  ;;  %v1570_v32 = vadd.f32 %v6702_v47, %v1272_v16 }
 0x54c   :  { %v2332_v17 = vadd.f32 %v5932_v37, %v2036_v6  ;;  %v6703_v37 = vld [vmem:[#allocation86_spill] sm:$0xff]  ;;  %v2044_v42 = vadd.f32 %v5802_v4, %v1570_v32  ;;  %v6707_v32 = vld [vmem:[#allocation43_spill] sm:$0xff] }
 0x54d   :  { %v2731_v12 = vpop.xlane.xlu0 %2730 }
 0x54e   :  { %v6086_v58 = vadd.f32 %v2731_v12, %v2331_v36  ;;  %v6088_v1 = vpop.xlane.xlu1 %2271  ;;  %v6698_v36 = vld [vmem:[#allocation152_spill] sm:$0xff] }
 0x54f   :  { %v1568_v24 = vadd.f32 %v6698_v36, %v1270_v26 }
 0x551   :  { %v2749_v59 = vpop.xlane.xlu0 %2748  ;;  %v2042_v12 = vadd.f32 %v5788_v39, %v1568_v24 }
 0x552   :  { %v6098_v22 = vadd.f32 %v2749_v59, %v5920_v43  ;;  %v2296_v20 = vpop.xlane.xlu1 %2295 }
 0x553   :  { %v6101_v9 = vadd.f32 %v2296_v20, %v2048_v34  ;;  %v2338_v7 = vadd.f32 %v5939_v30, %v2042_v12  ;;  %v1281_v34 = vadd.f32 %v6703_v37, %v807_v29  ;;  %v2340_v20 = vadd.f32 %v5950_v41, %v2044_v42  ;;  %v6704_v30 = vld [vmem:[#allocation42_spill] sm:$0xff]  ;;  %v6711_v42 = vld [vmem:[#allocation88_spill] sm:$0xff] }
 0x554   :  { %v808_v36 = vadd.f32 %v6705_v51, %v6704_v30 }
 0x555   :  { %v2755_v43 = vpop.xlane.xlu0 %2754  ;;  %v1579_v39 = vadd.f32 %v5968_v40, %v1281_v34  ;;  %v6709_v34 = vld [vmem:[#allocation39_spill] sm:$0xff] }
 0x556   :  { %v6110_v13 = vadd.f32 %v2755_v43, %v5930_v23  ;;  %v2734_v11 = vpop.xlane.xlu1 %2733 }
 0x557   :  { %v6114_v57 = vadd.f32 %v2734_v11, %v2332_v17  ;;  %v6706_v17 = vld [vmem:[#allocation107_spill] sm:$0xff] }
 0x558   :  { %v1282_v43 = vadd.f32 %v6706_v17, %v808_v36  ;;  %v6714_v17 = vld [vmem:[#allocation92_spill] sm:$0xff] }
 0x559   :  { %v3015_v35 = vpop.xlane.xlu0 %3014 }
 0x55a   :  { %v3097_v23 = vadd.f32 %v3015_v35, %v5937_v44  ;;  %v2752_v59 = vpop.xlane.xlu1 %2751  ;;  %v1580_v41 = vadd.f32 %v6007_v28, %v1282_v43 }
 0x55b   :  { %v6123_v26 = vadd.f32 %v2752_v59, %v2338_v7  ;;  %v6708_v7 = vld [vmem:[#allocation61_spill] sm:$0xff] }
 0x55c   :  { %v3191_v11 = vrot.slane %v3097_v23, %v5966_v2  ;;  %v809_v35 = vadd.f32 %v6708_v7, %v6707_v32  ;;  %v6710_v23 = vld [vmem:[#allocation59_spill] sm:$0xff] }
 0x55d   :  { %v2015_v6 = vpop.xlane.xlu0 %2014  ;;  %v805_v59 = vadd.f32 %v6710_v23, %v6709_v34 }
 0x55e   :  { %v6127_v0 = vadd.f32 %v2015_v6, %v1579_v39  ;;  %v2758_v46 = vpop.xlane.xlu1 %2757  ;;  %v1283_v39 = vadd.f32 %v6711_v42, %v809_v35 }
 0x55f   :  { %v6129_v19 = vadd.f32 %v2758_v46, %v2340_v20 }
 0x561   :  { %v2299_v24 = vpop.xlane.xlu0 %2298 }
 0x562   :  { %v6134_v44 = vadd.f32 %v2299_v24, %v5993_v27  ;;  %v3018_v4 = vpop.xlane.xlu1 %3017 }
 0x563   :  { %v3098_v40 = vadd.f32 %v3018_v4, %v5959_v54  ;;  %v6713_v4 = vld [vmem:[#allocation44_spill] sm:$0xff] }
 0x564   :  { %v810_v43 = vadd.f32 %v6714_v17, %v6713_v4 }
 0x565   :  { %v3195_v52 = vrot.slane %v3098_v40, %v5971_v15  ;;  %v6141_v16 = vpop.xlane.xlu0 %2736 }
 0x566   :  { %v2018_v12 = vpop.xlane.xlu1 %2017 }
 0x567   :  { %v3196_v18 = vsel %vm3168_vm9, %v3195_v52, %v3191_v11  ;;  %v6144_v25 = vadd.f32 %v2018_v12, %v1580_v41  ;;  %v6715_v11 = vld [vmem:[#allocation40_spill] sm:$0xff]  ;;  %v6716_v52 = vld [vmem:[#allocation90_spill] sm:$0xff] }
 0x568   :  { %v3310_v27 = vsel %vm3309_vm12, %v3196_v18, %v6073_v45  ;;  %v6712_v45 = vld [vmem:[#allocation84_spill] sm:$0xff] }
 0x569   :  { %v2761_v29 = vpop.xlane.xlu0 %2760  ;;  %v1279_v6 = vadd.f32 %v6712_v45, %v805_v59  ;;  %v6717_v18 = vld [vmem:[#allocation108_spill] sm:$0xff] }
 0x56a   :  { %v6149_v54 = vadd.f32 %v2761_v29, %v6023_v49  ;;  %v2302_v28 = vpop.xlane.xlu1 %2301  ;;  %v1581_v49 = vadd.f32 %v6051_v10, %v1283_v39  ;;  %v806_v10 = vadd.f32 %v6716_v52, %v6715_v11  ;;  %v1284_v29 = vadd.f32 %v6717_v18, %v810_v43 }
 0x56b   :  { %v6152_v47 = vadd.f32 %v2302_v28, %v6029_v62  ;;  %v1577_v30 = vadd.f32 %v5874_v3, %v1279_v6 }
 0x56d   :  { %v3021_v37 = vpop.xlane.xlu0 %3020  ;;  %v2051_v24 = vadd.f32 %v6058_v63, %v1577_v30  ;;  %v1582_v63 = vadd.f32 %v6068_v56, %v1284_v29 }
 0x56e   :  { %v6159_v20 = vpop.xlane.xlu1 %2739  ;;  %v3099_v40 = vadd.f32 %v3021_v37, %v6036_v14 }
 0x570   :  { %v3200_v7 = vrot.slane %v3099_v40, %v5966_v2 }
 0x571   :  { %v2021_v46 = vpop.xlane.xlu0 %2020 }
 0x572   :  { %v6164_v62 = vadd.f32 %v2021_v46, %v1581_v49  ;;  %v2764_v51 = vpop.xlane.xlu1 %2763 }
 0x573   :  { %v6167_v36 = vadd.f32 %v2764_v51, %v6047_v38  ;;  %v6718_v38 = vld [vmem:[#allocation106_spill] sm:$0xff] }
 0x574   :  { %v1280_v32 = vadd.f32 %v6718_v38, %v806_v10 }
 0x575   :  { %v2305_v41 = vpop.xlane.xlu0 %2304 }
 0x576   :  { %v6175_v12 = vadd.f32 %v2305_v41, %v2051_v24  ;;  %v3024_v3 = vpop.xlane.xlu1 %3023  ;;  %v1578_v34 = vadd.f32 %v5896_v21, %v1280_v32 }
 0x577   :  { %v3100_v28 = vadd.f32 %v3024_v3, %v6054_v53 }
 0x578   :  { %v2052_v42 = vadd.f32 %v6078_v5, %v1578_v34 }
 0x579   :  { %v3204_v14 = vrot.slane %v3100_v28, %v5971_v15  ;;  %v6183_v35 = vpop.xlane.xlu0 %2742 }
 0x57a   :  { %v2024_v37 = vpop.xlane.xlu1 %2023 }
 0x57b   :  { %v3205_v23 = vsel %vm3168_vm9, %v3204_v14, %v3200_v7  ;;  %v6187_v59 = vadd.f32 %v2024_v37, %v1582_v63  ;;  %v2807_v37 = vadd.f32 %v6141_v16, %v6005_v8  ;;  %v6721_v16 = vld [vmem:[#allocation28_spill] sm:$0xff] }
 0x57c   :  { %v3312_v53 = vsel %vm3311_vm13, %v3205_v23, %v3310_v27 }
 0x57d   :  { %v6191_v39 = vpop.xlane.xlu0 %2766 }
 0x57e   :  { %v2308_v56 = vpop.xlane.xlu1 %2307 }
 0x57f   :  { %v6193_v45 = vadd.f32 %v2308_v56, %v2052_v42  ;;  %v6719_v56 = vld [vmem:[#allocation27_spill] sm:$0xff] }
 0x581   :  { %v3027_v6 = vpop.xlane.xlu0 %3026 }
 0x582   :  { %v6195_v49 = vpop.xlane.xlu1 %2745  ;;  %v3101_v21 = vadd.f32 %v3027_v6, %v6086_v58  ;;  %v6720_v6 = vld [vmem:[#allocation53_spill] sm:$0xff] }
 0x584   :  { %v3209_v27 = vrot.slane %v3101_v21, %v5966_v2 }
 0x585   :  { %v3045_v46 = vpop.xlane.xlu0 %3044 }
 0x586   :  { %v6197_v30 = vpop.xlane.xlu1 %2769  ;;  %v3107_v5 = vadd.f32 %v3045_v46, %v6098_v22  ;;  %v793_v46 = vadd.f32 %v6720_v6, %v6719_v56 }
 0x588   :  { %v3236_v52 = vrot.slane %v3107_v5, %v5966_v2 }
 0x589   :  { %v3051_v51 = vpop.xlane.xlu0 %3050 }
 0x58a   :  { %v3030_v24 = vpop.xlane.xlu1 %3029 }
 0x58b   :  { %v3102_v4 = vadd.f32 %v3030_v24, %v6114_v57  ;;  %v3109_v57 = vadd.f32 %v3051_v51, %v6110_v13 }
 0x58d   :  { %v3213_v17 = vrot.slane %v3102_v4, %v5971_v15  ;;  %v6204_v43 = vpop.xlane.xlu0 %2310  ;;  %v3245_v28 = vrot.slane %v3109_v57, %v5966_v2  ;;  %v6726_v57 = vld [vmem:[#allocation100_spill] sm:$0xff] }
 0x58e   :  { %v3048_v40 = vpop.xlane.xlu1 %3047 }
 0x58f   :  { %v3214_v41 = vsel %vm3168_vm9, %v3213_v17, %v3209_v27  ;;  %v3108_v11 = vadd.f32 %v3048_v40, %v6123_v26  ;;  %v6723_v27 = vld [vmem:[#allocation74_spill] sm:$0xff] }
 0x590   :  { %v3314_v58 = vsel %vm3313_vm14, %v3214_v41, %v3312_v53  ;;  %v1267_v5 = vadd.f32 %v6723_v27, %v793_v46  ;;  %v6724_v41 = vld [vmem:[#allocation35_spill] sm:$0xff] }
 0x591   :  { %v3240_v10 = vrot.slane %v3108_v11, %v5971_v15  ;;  %v6212_v3 = vpop.xlane.xlu0 %2772  ;;  %v6725_v11 = vld [vmem:[#allocation57_spill] sm:$0xff] }
 0x592   :  { %v3054_v22 = vpop.xlane.xlu1 %3053 }
 0x593   :  { %v3241_v18 = vsel %vm3168_vm9, %v3240_v10, %v3236_v52  ;;  %v3110_v29 = vadd.f32 %v3054_v22, %v6129_v19  ;;  %v2808_v19 = vadd.f32 %v6159_v20, %v6039_v31  ;;  %v6722_v31 = vld [vmem:[#allocation77_spill] sm:$0xff]  ;;  %v801_v52 = vadd.f32 %v6725_v11, %v6724_v41  ;;  %v6727_v22 = vld [vmem:[#allocation146_spill] sm:$0xff] }
 0x594   :  { %v794_v20 = vadd.f32 %v6722_v31, %v6721_v16 }
 0x595   :  { %v3249_v38 = vrot.slane %v3110_v29, %v5971_v15  ;;  %v3033_v26 = vpop.xlane.xlu0 %3032 }
 0x596   :  { %v6218_v32 = vpop.xlane.xlu1 %2313  ;;  %v3103_v34 = vadd.f32 %v3033_v26, %v2807_v37  ;;  %v1268_v10 = vadd.f32 %v6726_v57, %v794_v20  ;;  %v6729_v37 = vld [vmem:[#allocation149_spill] sm:$0xff] }
 0x597   :  { %v3250_v63 = vsel %vm3168_vm9, %v3249_v38, %v3245_v28 }
 0x598   :  { %v3319_v13 = vsel %vm3305_vm10, %v3250_v63, %v3241_v18  ;;  %v3218_v21 = vrot.slane %v3103_v34, %v5966_v2  ;;  %v1565_v18 = vadd.f32 %v6727_v22, %v1267_v5  ;;  %v6728_v63 = vld [vmem:[#allocation81_spill] sm:$0xff] }
 0x599   :  { %v3057_v7 = vpop.xlane.xlu0 %3056 }
 0x59a   :  { %v6222_v14 = vpop.xlane.xlu1 %2775  ;;  %v3111_v51 = vadd.f32 %v3057_v7, %v6149_v54  ;;  %v1275_v7 = vadd.f32 %v6728_v63, %v801_v52 }
 0x59c   :  { %v3254_v29 = vrot.slane %v3111_v51, %v5966_v2 }
 0x59d   :  { %v6228_v23 = vpop.xlane.xlu0 %2316 }
 0x59e   :  { %v3036_v53 = vpop.xlane.xlu1 %3035 }
 0x59f   :  { %v3104_v42 = vadd.f32 %v3036_v53, %v2808_v19  ;;  %v2039_v19 = vadd.f32 %v5884_v55, %v1565_v18  ;;  %v6730_v53 = vld [vmem:[#allocation162_spill] sm:$0xff] }
 0x5a1   :  { %v3222_v24 = vrot.slane %v3104_v42, %v5971_v15  ;;  %v6235_v4 = vpop.xlane.xlu0 %2778  ;;  %v1573_v42 = vadd.f32 %v6730_v53, %v1275_v7  ;;  %v2335_v6 = vadd.f32 %v6065_v61, %v2039_v19  ;;  %v6268_v61 = vld [vmem:[%s6365_s3] sm:$0xff] }
 0x5a2   :  { %v3060_v8 = vpop.xlane.xlu1 %3059  ;;  %vm3123_vm2 = vcmp.gt.f32.partialorder %v6268_v61, 0.0 }
 0x5a3   :  { %v3223_v17 = vsel %vm3168_vm9, %v3222_v24, %v3218_v21  ;;  %v3112_v40 = vadd.f32 %v3060_v8, %v6167_v36  ;;  %v1566_v36 = vadd.f32 %v6729_v37, %v1268_v10  ;;  %v2047_v51 = vadd.f32 %v5892_v48, %v1573_v42 }
 0x5a4   :  { %v3316_v54 = vsel %vm3315_vm15, %v3223_v17, %v3314_v58  ;;  %v2809_v8 = vadd.f32 %v6183_v35, %v2335_v6  ;;  %v2818_v48 = vadd.f32 %v6197_v30, %v6101_v9  ;;  %v2819_v10 = vadd.f32 %v6212_v3, %v6134_v44 }
 0x5a5   :  { %v3258_v28 = vrot.slane %v3112_v40, %v5971_v15  ;;  %v3039_v38 = vpop.xlane.xlu0 %3038  ;;  %v2040_v56 = vadd.f32 %v5910_v50, %v1566_v36  ;;  %v2343_v55 = vadd.f32 %v6075_v33, %v2047_v51  ;;  %v2821_v44 = vadd.f32 %v6235_v4, %v6175_v12 }
 0x5a6   :  { %v6249_v26 = vpop.xlane.xlu1 %2319  ;;  %v3105_v31 = vadd.f32 %v3039_v38, %v2809_v8  ;;  %v2350_v42 = vadd.f32 %v6218_v32, %v6144_v25  ;;  %v2351_v12 = vadd.f32 %v6228_v23, %v6164_v62 }
 0x5a7   :  { %v3259_v34 = vsel %vm3168_vm9, %v3258_v28, %v3254_v29  ;;  %v2336_v24 = vadd.f32 %v6088_v1, %v2040_v56  ;;  %v2817_v27 = vadd.f32 %v6191_v39, %v2343_v55  ;;  %v3747_v55 = vmov 0  }
 0x5a8   :  { %v3320_v58 = vsel %vm3307_vm11, %v3259_v34, %v3319_v13  ;;  %v3227_v1 = vrot.slane %v3105_v31, %v5966_v2  ;;  %3672 = vset.pattern.permute.xlu0 %v3747_v55  ;;  %3673 = vset.pattern.permute.xlu1 %v3747_v55 }
 0x5a9   :  { %v3063_v46 = vpop.xlane.xlu0 %3062  ;;  %v2810_v16 = vadd.f32 %v6195_v49, %v2336_v24 }
 0x5aa   :  { %v2782_v21 = vpop.xlane.xlu1 %2781  ;;  %v3113_v33 = vadd.f32 %v3063_v46, %v2817_v27 }
 0x5ac   :  { %v3263_v41 = vrot.slane %v3113_v33, %v5966_v2 }
 0x5ad   :  { %v2785_v13 = vpop.xlane.xlu0 %2784 }
 0x5ae   :  { %v3042_v20 = vpop.xlane.xlu1 %3041 }
 0x5af   :  { %v3106_v50 = vadd.f32 %v3042_v20, %v2810_v16  ;;  %v79_v20 = vld [vmem:[%s6365_s3 + $0x8] sm:$0xff] }
 0x5b0   :  { %vm3124_vm4 = vcmp.gt.f32.partialorder %v79_v20, 0.0 }
 0x5b1   :  { %v3231_v35 = vrot.slane %v3106_v50, %v5971_v15  ;;  %v3069_v49 = vpop.xlane.xlu0 %3068 }
 0x5b2   :  { %v3066_v5 = vpop.xlane.xlu1 %3065  ;;  %v3115_v29 = vadd.f32 %v3069_v49, %v2819_v10 }
 0x5b3   :  { %v3114_v39 = vadd.f32 %v3066_v5, %v2818_v48  ;;  %v3232_v17 = vsel %vm3168_vm9, %v3231_v35, %v3227_v1  ;;  %v3748_v5 = vmov 0.0  }
 0x5b4   :  { %v3318_v40 = vsel %vm3317_vm1, %v3232_v17, %v3316_v54  ;;  %v2820_v54 = vadd.f32 %v6222_v14, %v6152_v47  ;;  %v3272_v7 = vrot.slane %v3115_v29, %v5966_v2  ;;  %v2349_v47 = vadd.f32 %v6204_v43, %v6127_v0  ;;  %3476 = vmatprep.mubr.f32.mxu0 %v3748_v5 }
 0x5b5   :  { %v3267_v11 = vrot.slane %v3114_v39, %v5971_v15  ;;  %v2791_v9 = vpop.xlane.xlu0 %2790  ;;  %v6279_v30 = vsel %vm3123_vm2, %v3318_v40, -1e+30  ;;  %v2822_v14 = vadd.f32 %v2782_v21, %v6193_v45  ;;  %v2352_v0 = vadd.f32 %v6249_v26, %v6187_v59  ;;  %51 = vst.msk [vmem:[#allocation3] sm:$0xff] %vm48_vm0, %v3748_v5  ;;  %52 = vst.msk [vmem:[#allocation3 + $0x8] sm:$0xff] %vm48_vm0, %v3748_v5  ;;  %v3330_v39 = vld [vmem:[#allocation2] sm:$0xff]  ;;  %v3331_v40 = vld [vmem:[#allocation2 + $0x8] sm:$0xff] }
 0x5b6   :  { %v2788_v52 = vpop.xlane.xlu1 %2787  ;;  %v3333_v57 = vsel %vm3332_vm3, %v6279_v30, -inf  ;;  %v2823_v56 = vadd.f32 %v2785_v13, %v2349_v47  ;;  %v2825_v21 = vadd.f32 %v2791_v9, %v2351_v12  ;;  %3553 = vmatprep.mubr.f32.mxu1 %v3748_v5 }
 0x5b7   :  { %v3268_v22 = vsel %vm3168_vm9, %v3267_v11, %v3263_v41  ;;  %3334 = vmax.xlane.f32.xlu0 %v3333_v57  ;;  %v2824_v4 = vadd.f32 %v2788_v52, %v2350_v42 }
 0x5b8   :  { %v3321_v18 = vsel %vm3309_vm12, %v3268_v22, %v3320_v58 }
 0x5b9   :  { %v3075_v28 = vpop.xlane.xlu0 %3074 }
 0x5ba   :  { %v3072_v38 = vpop.xlane.xlu1 %3071  ;;  %v3117_v58 = vadd.f32 %v3075_v28, %v2821_v44 }
 0x5bb   :  { %v3116_v63 = vadd.f32 %v3072_v38, %v2820_v54 }
 0x5bc   :  { %v3281_v46 = vrot.slane %v3117_v58, %v5966_v2 }
 0x5bd   :  { %v3276_v37 = vrot.slane %v3116_v63, %v5971_v15  ;;  %v3081_v34 = vpop.xlane.xlu0 %3080 }
 0x5be   :  { %v2794_v36 = vpop.xlane.xlu1 %2793  ;;  %v3119_v51 = vadd.f32 %v3081_v34, %v2823_v56 }
 0x5bf   :  { %v3277_v3 = vsel %vm3168_vm9, %v3276_v37, %v3272_v7  ;;  %v2826_v23 = vadd.f32 %v2794_v36, %v2352_v0  ;;  %v3625_v0 = vsub.s32 1, %v6652_v60 }
 0x5c0   :  { %v3322_v19 = vsel %vm3311_vm13, %v3277_v3, %v3321_v18  ;;  %v3290_v62 = vrot.slane %v3119_v51, %v5966_v2  ;;  %v3365_v3 = vld [vmem:[#allocation3] sm:$0xff] }
 0x5c1   :  { %v3087_v45 = vpop.xlane.xlu0 %3086 }
 0x5c2   :  { %v3078_v53 = vpop.xlane.xlu1 %3077  ;;  %v3121_v16 = vadd.f32 %v3087_v45, %v2825_v21  ;;  %v3629_v45 = vsub.s32 2, %v6652_v60 }
 0x5c3   :  { %v3118_v6 = vadd.f32 %v3078_v53, %v2822_v14  ;;  %v3366_v53 = vld [vmem:[#allocation3 + $0x8] sm:$0xff] }
 0x5c4   :  { %v3299_v50 = vrot.slane %v3121_v16, %v5966_v2 }
 0x5c5   :  { %v3285_v24 = vrot.slane %v3118_v6, %v5971_v15 }
 0x5c6   :  { %v3084_v43 = vpop.xlane.xlu1 %3083 }
 0x5c7   :  { %v3286_v8 = vsel %vm3168_vm9, %v3285_v24, %v3281_v46  ;;  %v3120_v25 = vadd.f32 %v3084_v43, %v2824_v4  ;;  %v3633_v43 = vsub.s32 3, %v6652_v60 }
 0x5c8   :  { %v3323_v32 = vsel %vm3313_vm14, %v3286_v8, %v3322_v19  ;;  %v3617_v8 = vld [vmem:[#allocation7] sm:$0xf] }
 0x5c9   :  { %v3294_v31 = vrot.slane %v3120_v25, %v5971_v15  ;;  %v3626_v16 = vrot.slane %v3617_v8, %v3625_v0 }
 0x5ca   :  { %v3090_v13 = vpop.xlane.xlu1 %3089 }
 0x5cb   :  { %v3295_v59 = vsel %vm3168_vm9, %v3294_v31, %v3290_v62  ;;  %v3122_v26 = vadd.f32 %v3090_v13, %v2826_v23  ;;  %v6731_v62 = vld [vmem:[#allocation12_spill] sm:$0xff]  ;;  %v3630_v31 = vrot.slane %v3617_v8, %v3629_v45  ;;  %v3634_v13 = vrot.slane %v3617_v8, %v3633_v43 }
 0x5cc   :  { %v3324_v27 = vsel %vm3315_vm15, %v3295_v59, %v3323_v32  ;;  %v3622_v23 = vrot.slane %v3617_v8, %v6731_v62 }
 0x5cd   :  { %v3303_v48 = vrot.slane %v3122_v26, %v5971_v15 }
 0x5cf   :  { %v3304_v1 = vsel %vm3168_vm9, %v3303_v48, %v3299_v50 }
 0x5d0   :  { %v3325_v33 = vsel %vm3317_vm1, %v3304_v1, %v3324_v27 }
 0x5d1   :  { %v3329_v35 = vsel %vm3124_vm4, %v3325_v33, -1e+30 }
 0x5d2   :  { %v3336_v49 = vsel %vm3332_vm3, %v3329_v35, -inf }
 0x5d3   :  { %3337 = vmax.xlane.f32.xlu1 %v3336_v49 }
 0x640   :  { %v3335_v2 = vpop.xlane.xlu0 %3334 }
 0x641   :  { %v3339_v17 = vmax.f32 %v3330_v39, %v3335_v2 }
 0x643   :  { %v3341_v15 = vsub.f32 %v3330_v39, %v3339_v17  ;;  %3582 = vst.msk [vmem:[#allocation2] sm:$0xff] %vm48_vm0, %v3339_v17  ;;  %3349 = vperm.xlu0 %3672, %v3339_v17  }
 0x645   :  { %v3343_v54 = vmul.f32 1.442695, %v3341_v15 }
 0x65c   :  { %v3338_v41 = vpop.xlane.xlu1 %3337 }
 0x65d   :  { %v3340_v11 = vmax.f32 %v3331_v40, %v3338_v41 }
 0x65f   :  { %v3342_v9 = vsub.f32 %v3331_v40, %v3340_v11  ;;  %3583 = vst.msk [vmem:[#allocation2 + $0x8] sm:$0xff] %vm48_vm0, %v3340_v11  ;;  %3354 = vperm.xlu1 %3673, %v3340_v11  }
 0x661   :  { %v3345_v28 = vmul.f32 1.442695, %v3342_v9 }
 0x6be   :  { %v3350_v52 = vpop.permute.xlu0 %3349 }
 0x6bf   :  { %v3357_v57 = vsub.f32 %v6279_v30, %v3350_v52 }
 0x6c1   :  { %v3359_v10 = vmul.f32 1.442695, %v3357_v57 }
 0x6c3   :  { %3682 = vpow2.f32 %v3359_v10 }
 0x6c4   :  { %3684 = vpow2.f32 %v3343_v54 }
 0x6c5   :  { %3686 = vpow2.f32 %v3345_v28 }
 0x6d0   :  { %v3683_v22 = vpop.eup %3682 }
 0x6d1   :  { %v3363_v18 = vmul.f32 %v3683_v22, %v6268_v61  ;;  %v3685_v7 = vpop.eup %3684 }
 0x6d2   :  { %v3687_v61 = vpop.eup %3686  ;;  %v3367_v19 = vmul.f32 %v3685_v7, %v3365_v3 }
 0x6d3   :  { %3661 = vmatmul.mubr.msk.f32.vlgmr.msra.gmra.mxu0 %vm3332_vm3, %v3363_v18  ;;  %3663 = vmatmul.mubr.msk.f32.vlgmr.msra.gmra.mxu1 %vm3332_vm3, %v3363_v18  ;;  %v3369_v29 = vsel %vm3332_vm3, %v3363_v18, 0.0  ;;  %v3368_v42 = vmul.f32 %v3687_v61, %v3366_v53 }
 0x6d4   :  { %3370 = vadd.xlane.f32.xlu1 %v3369_v29  ;;  %3482 = vmatprep.mubr.f32.mxu0 %v3748_v5 }
 0x6d5   :  { %3559 = vmatprep.mubr.f32.mxu1 %v3748_v5 }
 0x6da   :  { %v3355_v38 = vpop.permute.xlu1 %3354 }
 0x6db   :  { %v3358_v30 = vsub.f32 %v3329_v35, %v3355_v38 }
 0x6dd   :  { %v3361_v63 = vmul.f32 1.442695, %v3358_v30 }
 0x6df   :  { %3688 = vpow2.f32 %v3361_v63 }
 0x6e5   :  { %3390 = vperm.xlu1 %3673, %v3685_v7  }
 0x6e9   :  { %3395 = vperm.xlu1 %3673, %v3687_v61  }
 0x6ec   :  { %v3689_v37 = vpop.eup %3688 }
 0x6ed   :  { %v3364_v36 = vmul.f32 %v3689_v37, %v79_v20 }
 0x6ef   :  { %3662 = vmatmul.mubr.msk.f32.gmra.mxu0 %vm3332_vm3, %v3364_v36  ;;  %3664 = vmatmul.mubr.msk.f32.gmra.mxu1 %vm3332_vm3, %v3364_v36  ;;  %v3372_v44 = vsel %vm3332_vm3, %v3364_v36, 0.0 }
 0x6f0   :  { %3373 = vadd.xlane.f32.xlu0 %v3372_v44 }
 0x75d   :  { %v3371_v34 = vpop.xlane.xlu1 %3370 }
 0x75e   :  { %v3375_v47 = vadd.f32 %v3371_v34, %v3367_v19 }
 0x760   :  { %3378 = vst.msk [vmem:[#allocation3] sm:$0xff] %vm48_vm0, %v3375_v47 }
 0x761   :  { %v3391_v46 = vpop.permute.xlu1 %3390 }
 0x762   :  { %v3398_v55 = vmul.f32 0.0, %v3391_v46 }
 0x765   :  { %v3396_v21 = vpop.permute.xlu1 %3395 }
 0x766   :  { %v3402_v41 = vmul.f32 0.0, %v3396_v21 }
 0x767   :  { %v3587_v14 = vld [vmem:[#allocation3] sm:$0xff] }
 0x768   :  { %3690 = vrcp.f32 %v3587_v14 }
 0x775   :  { %v3691_v58 = vpop.eup %3690 }
 0x776   :  { %3601 = vperm.xlu1 %3673, %v3691_v58  }
 0x779   :  { %v3374_v56 = vpop.xlane.xlu0 %3373 }
 0x77a   :  { %v3376_v6 = vadd.f32 %v3374_v56, %v3368_v42 }
 0x77c   :  { %3379 = vst.msk [vmem:[#allocation3 + $0x8] sm:$0xff] %vm48_vm0, %v3376_v6 }
 0x783   :  { %v3588_v12 = vld [vmem:[#allocation3 + $0x8] sm:$0xff] }
 0x784   :  { %3692 = vrcp.f32 %v3588_v12 }
 0x791   :  { %v3693_v4 = vpop.eup %3692 }
 0x792   :  { %3606 = vperm.xlu0 %3672, %v3693_v4  }
 0x793   :  { %v3478_v51 = vpop.f32.mrf.mxu0  ;;  %v3555_v24 = vpop.f32.mrf.mxu1 }
 0x794   :  { %v3566_v59 = vadd.f32 %v3478_v51, %v3398_v55  ;;  %v3568_v26 = vadd.f32 %v3555_v24, %v3398_v55 }
 0x795   :  { %v3480_v25 = vpop.f32.mrf.mxu0  ;;  %v3557_v32 = vpop.f32.mrf.mxu1 }
 0x796   :  { %v3567_v20 = vadd.f32 %v3480_v25, %v3398_v55  ;;  %v3569_v27 = vadd.f32 %v3557_v32, %v3398_v55 }
 0x7af   :  { %v3484_v2 = vpop.f32.mrf.mxu0  ;;  %v3561_v17 = vpop.f32.mrf.mxu1 }
 0x7b0   :  { %v3570_v11 = vadd.f32 %v3484_v2, %v3402_v41  ;;  %v3572_v9 = vadd.f32 %v3561_v17, %v3402_v41 }
 0x7b1   :  { %v3486_v15 = vpop.f32.mrf.mxu0  ;;  %v3563_v40 = vpop.f32.mrf.mxu1 }
 0x7b2   :  { %v3571_v52 = vadd.f32 %v3486_v15, %v3402_v41  ;;  %v3573_v57 = vadd.f32 %v3563_v40, %v3402_v41 }
 0x7f1   :  { %v3602_v50 = vpop.permute.xlu1 %3601 }
 0x7f2   :  { %v3609_v48 = vmul.f32 %v3602_v50, %v3566_v59  ;;  %v3610_v1 = vmul.f32 %v3602_v50, %v3567_v20  ;;  %v3611_v33 = vmul.f32 %v3602_v50, %v3568_v26  ;;  %v3612_v35 = vmul.f32 %v3602_v50, %v3569_v27 }
 0x7f4   :  { %v3639_v60 = vadd.f32 %v3622_v23, %v3609_v48  ;;  %v3640_v49 = vadd.f32 %v3626_v16, %v3610_v1  ;;  %v3641_v5 = vadd.f32 %v3630_v31, %v3611_v33  ;;  %v3642_v39 = vadd.f32 %v3634_v13, %v3612_v35 }
 0x7f6   :  { %3647 = vst [vmem:[%s6367_s5] sm:$0xff] %v3639_v60  ;;  %3648 = vst [vmem:[%s6367_s5 + $0x8] sm:$0xff] %v3640_v49 }
 0x7f7   :  { %3649 = vst [vmem:[%s6367_s5 + $0x10] sm:$0xff] %v3641_v5  ;;  %3650 = vst [vmem:[%s6367_s5 + $0x18] sm:$0xff] %v3642_v39 }
 0x80d   :  { %v3607_v10 = vpop.permute.xlu0 %3606 }
 0x80e   :  { %v3613_v22 = vmul.f32 %v3607_v10, %v3570_v11  ;;  %v3614_v18 = vmul.f32 %v3607_v10, %v3571_v52  ;;  %v3615_v54 = vmul.f32 %v3607_v10, %v3572_v9  ;;  %v3616_v29 = vmul.f32 %v3607_v10, %v3573_v57 }
 0x810   :  { %v3643_v28 = vadd.f32 %v3622_v23, %v3613_v22  ;;  %v3644_v38 = vadd.f32 %v3626_v16, %v3614_v18  ;;  %v3645_v30 = vadd.f32 %v3630_v31, %v3615_v54  ;;  %v3646_v63 = vadd.f32 %v3634_v13, %v3616_v29 }
 0x812   :  { %3651 = vst [vmem:[%s6367_s5 + $0x20] sm:$0xff] %v3643_v28  ;;  %3652 = vst [vmem:[%s6367_s5 + $0x28] sm:$0xff] %v3644_v38 }
 0x813   :  { %3653 = vst [vmem:[%s6367_s5 + $0x30] sm:$0xff] %v3645_v30  ;;  %3654 = vst [vmem:[%s6367_s5 + $0x38] sm:$0xff] %v3646_v63 }
 0x814   :  { %3659 = vsyncpa [#allocation6], 1 }
 0x815   :  { %3660 = vsyncpa [#allocation8], 1 }

// kernel: gnn_v5_forward.56
= control target key start
LH: loop header
LB: loop body
LE: loop exit
PB: predicated region body
PF: predicated region fallthrough
CT: control target
= control target key end

     0   :  { %s1440_s9 = smov 0   ;;  %s1442_s10 = smov 0   ;;  %s1748_s0 = inlined_call_operand.vmem [shape: bf16[2,3072], index: 0, kind: input, shape index: {}]   ;;  %s1749_s1 = inlined_call_operand.vmem [shape: bf16[3072,512], index: 1, kind: input, shape index: {}]   ;;  %s1750_s2 = inlined_call_operand.vmem [shape: f32[2,512], index: 2, kind: output, shape index: {}]  }
   0x1   :  { %s1444_s11 = smov 0   ;;  %s1446_s12 = smov 0  }
   0x2   :  { %s1448_s13 = smov 0   ;;  %s1450_s14 = smov 0  }
   0x3   :  { %s1452_s15 = smov 0  }
   0x4 LB: > { %s24_s16 = sadd.s32 1, %s1412_s13  ;;  %s27_s17 = sadd.s32 1, %s1416_s14  ;;  %s1420_s15 = sphi %s1452_s15, %s12_s15   ;;  %s1416_s14 = sphi %s1450_s14, %s1756_s14   ;;  %s1412_s13 = sphi %s1448_s13, %s1755_s13   ;;  %s1408_s12 = sphi %s1446_s12, %s1754_s12   ;;  %s1404_s11 = sphi %s1444_s11, %s1753_s11   ;;  %s1400_s10 = sphi %s1442_s10, %s1752_s10   ;;  %s1396_s9 = sphi %s1440_s9, %s1751_s9  }
   0x5   : > { %p25_p0 = scmp.ge.s32.totalorder %s24_s16, 6  ;;  %p75_p1 = scmp.ne.s32.totalorder %s1400_s10, %s1396_s9 }
   0x6   : > { %p76_p2 = scmp.eq.s32.totalorder %s1420_s15, 0  ;;  %s68_s21 = sadd.s32 1, %s1400_s10 }
   0x7   : > { %s1758_s16 = smov (%p25_p0, %s24_s16), 0  ;;  %s1760_s17 = smov (!%p25_p0, %s27_s17), %s1416_s14 }
   0x8   : > { %p77_p3 = por %p76_p2, %p75_p1  ;;  %p29_p4 = scmp.ge.s32.totalorder %s1760_s17, 2 }
   0x9   : > { %s63_s18 = ssub.s32 %s1412_s13, %s1758_s16  ;;  %p1131_p6 = scmp.ge.s32.totalorder %s1420_s15, 12 }
   0xa   : > { %s1762_s17 = smov (%p29_p4, %s1760_s17), 0 }
   0xb   : > { %s64_s19 = ssub.s32 %s1416_s14, %s1762_s17  ;;  %129 = sbr.rel (%p1131_p6) target bundleno = 55 (0x37), region = 16 }
   0xc   : > { %s65_s20 = sor.u32 %s64_s19, %s63_s18 }
   0xd   : > { %p66_p5 = scmp.eq.s32.totalorder %s65_s20, 0 }
   0xf   : > { %s1491_s22 = scalar_select %p66_p5, %s1400_s10, %s68_s21  }
  0x10   : > { %144 = sbr.rel (!%p77_p3) target bundleno = 55 (0x37), region = 24  ;;  %s146_s23 = sand.u32 (%p77_p3), 1, %s1400_s10  }
  0x11   : > { %s1134_s24 = sshll.u32 (%p77_p3), %s1416_s14, 1  ;;  %s1132_s25 = sshll.u32 (%p77_p3), %s146_s23, 9 }
  0x12   : > { %s1210_s26 = sshll.u32 (%p77_p3), %s1412_s13, 8  ;;  %s1505_s4 = scalar_lea.vmem (%p77_p3), [#allocation2], %s1132_s25 }
  0x13   : > { %s152_s27 = sadd.s32 (%p77_p3), %s1210_s26, %s1134_s24 }
  0x14   : > { %s1136_s28 = sshll.u32 (%p77_p3), %s152_s27, 2 }
  0x15   : > { %s1500_s3 = scalar_lea.vmem %s1749_s1, %s1136_s28 }
  0x16   : > { %v309_v0 = vld [vmem:[%s1500_s3] sm:$0xff]  ;;  %v311_v1 = vld [vmem:[%s1500_s3 + $0x10] sm:$0xff] }
  0x17   : > { %v313_v2 = vld [vmem:[%s1500_s3 + $0x20] sm:$0xff]  ;;  %310 = vst [vmem:[%s1505_s4] sm:$0xff] %v309_v0  ;;  %312 = vst [vmem:[%s1505_s4 + $0x8] sm:$0xff] %v311_v1  ;;  %v315_v3 = vld [vmem:[%s1500_s3 + $0x30] sm:$0xff] }
  0x18   : > { %314 = vst [vmem:[%s1505_s4 + $0x10] sm:$0xff] %v313_v2  ;;  %v317_v4 = vld [vmem:[%s1500_s3 + $0x40] sm:$0xff]  ;;  %v319_v5 = vld [vmem:[%s1500_s3 + $0x50] sm:$0xff]  ;;  %316 = vst [vmem:[%s1505_s4 + $0x18] sm:$0xff] %v315_v3 }
  0x19   : > { %318 = vst [vmem:[%s1505_s4 + $0x20] sm:$0xff] %v317_v4  ;;  %320 = vst [vmem:[%s1505_s4 + $0x28] sm:$0xff] %v319_v5  ;;  %v321_v6 = vld [vmem:[%s1500_s3 + $0x60] sm:$0xff]  ;;  %v323_v7 = vld [vmem:[%s1500_s3 + $0x70] sm:$0xff] }
  0x1a   : > { %v325_v8 = vld [vmem:[%s1500_s3 + $0x80] sm:$0xff]  ;;  %322 = vst [vmem:[%s1505_s4 + $0x30] sm:$0xff] %v321_v6  ;;  %324 = vst [vmem:[%s1505_s4 + $0x38] sm:$0xff] %v323_v7  ;;  %v327_v9 = vld [vmem:[%s1500_s3 + $0x90] sm:$0xff] }
  0x1b   : > { %326 = vst [vmem:[%s1505_s4 + $0x40] sm:$0xff] %v325_v8  ;;  %v329_v10 = vld [vmem:[%s1500_s3 + $0xa0] sm:$0xff]  ;;  %v331_v11 = vld [vmem:[%s1500_s3 + $0xb0] sm:$0xff]  ;;  %328 = vst [vmem:[%s1505_s4 + $0x48] sm:$0xff] %v327_v9 }
  0x1c   : > { %330 = vst [vmem:[%s1505_s4 + $0x50] sm:$0xff] %v329_v10  ;;  %332 = vst [vmem:[%s1505_s4 + $0x58] sm:$0xff] %v331_v11  ;;  %v333_v12 = vld [vmem:[%s1500_s3 + $0xc0] sm:$0xff]  ;;  %v335_v13 = vld [vmem:[%s1500_s3 + $0xd0] sm:$0xff] }
  0x1d   : > { %v337_v14 = vld [vmem:[%s1500_s3 + $0xe0] sm:$0xff]  ;;  %334 = vst [vmem:[%s1505_s4 + $0x60] sm:$0xff] %v333_v12  ;;  %336 = vst [vmem:[%s1505_s4 + $0x68] sm:$0xff] %v335_v13  ;;  %v339_v15 = vld [vmem:[%s1500_s3 + $0xf0] sm:$0xff] }
  0x1e   : > { %338 = vst [vmem:[%s1505_s4 + $0x70] sm:$0xff] %v337_v14  ;;  %v341_v16 = vld [vmem:[%s1500_s3 + $0x100] sm:$0xff]  ;;  %v343_v17 = vld [vmem:[%s1500_s3 + $0x110] sm:$0xff]  ;;  %340 = vst [vmem:[%s1505_s4 + $0x78] sm:$0xff] %v339_v15 }
  0x1f   : > { %342 = vst [vmem:[%s1505_s4 + $0x80] sm:$0xff] %v341_v16  ;;  %344 = vst [vmem:[%s1505_s4 + $0x88] sm:$0xff] %v343_v17  ;;  %v345_v18 = vld [vmem:[%s1500_s3 + $0x120] sm:$0xff]  ;;  %v347_v19 = vld [vmem:[%s1500_s3 + $0x130] sm:$0xff] }
  0x20   : > { %v349_v20 = vld [vmem:[%s1500_s3 + $0x140] sm:$0xff]  ;;  %346 = vst [vmem:[%s1505_s4 + $0x90] sm:$0xff] %v345_v18  ;;  %348 = vst [vmem:[%s1505_s4 + $0x98] sm:$0xff] %v347_v19  ;;  %v351_v21 = vld [vmem:[%s1500_s3 + $0x150] sm:$0xff] }
  0x21   : > { %350 = vst [vmem:[%s1505_s4 + $0xa0] sm:$0xff] %v349_v20  ;;  %v353_v22 = vld [vmem:[%s1500_s3 + $0x160] sm:$0xff]  ;;  %v355_v23 = vld [vmem:[%s1500_s3 + $0x170] sm:$0xff]  ;;  %352 = vst [vmem:[%s1505_s4 + $0xa8] sm:$0xff] %v351_v21 }
  0x22   : > { %354 = vst [vmem:[%s1505_s4 + $0xb0] sm:$0xff] %v353_v22  ;;  %356 = vst [vmem:[%s1505_s4 + $0xb8] sm:$0xff] %v355_v23  ;;  %v357_v24 = vld [vmem:[%s1500_s3 + $0x180] sm:$0xff]  ;;  %v359_v25 = vld [vmem:[%s1500_s3 + $0x190] sm:$0xff] }
  0x23   : > { %v361_v26 = vld [vmem:[%s1500_s3 + $0x1a0] sm:$0xff]  ;;  %358 = vst [vmem:[%s1505_s4 + $0xc0] sm:$0xff] %v357_v24  ;;  %360 = vst [vmem:[%s1505_s4 + $0xc8] sm:$0xff] %v359_v25  ;;  %v363_v27 = vld [vmem:[%s1500_s3 + $0x1b0] sm:$0xff] }
  0x24   : > { %362 = vst [vmem:[%s1505_s4 + $0xd0] sm:$0xff] %v361_v26  ;;  %v365_v28 = vld [vmem:[%s1500_s3 + $0x1c0] sm:$0xff]  ;;  %v367_v29 = vld [vmem:[%s1500_s3 + $0x1d0] sm:$0xff]  ;;  %364 = vst [vmem:[%s1505_s4 + $0xd8] sm:$0xff] %v363_v27 }
  0x25   : > { %366 = vst [vmem:[%s1505_s4 + $0xe0] sm:$0xff] %v365_v28  ;;  %368 = vst [vmem:[%s1505_s4 + $0xe8] sm:$0xff] %v367_v29  ;;  %v369_v30 = vld [vmem:[%s1500_s3 + $0x1e0] sm:$0xff]  ;;  %v371_v31 = vld [vmem:[%s1500_s3 + $0x1f0] sm:$0xff] }
  0x26   : > { %v373_v32 = vld [vmem:[%s1500_s3 + $0x200] sm:$0xff]  ;;  %370 = vst [vmem:[%s1505_s4 + $0xf0] sm:$0xff] %v369_v30  ;;  %372 = vst [vmem:[%s1505_s4 + $0xf8] sm:$0xff] %v371_v31  ;;  %v375_v33 = vld [vmem:[%s1500_s3 + $0x210] sm:$0xff] }
  0x27   : > { %374 = vst [vmem:[%s1505_s4 + $0x100] sm:$0xff] %v373_v32  ;;  %v377_v34 = vld [vmem:[%s1500_s3 + $0x220] sm:$0xff]  ;;  %v379_v35 = vld [vmem:[%s1500_s3 + $0x230] sm:$0xff]  ;;  %376 = vst [vmem:[%s1505_s4 + $0x108] sm:$0xff] %v375_v33 }
  0x28   : > { %378 = vst [vmem:[%s1505_s4 + $0x110] sm:$0xff] %v377_v34  ;;  %380 = vst [vmem:[%s1505_s4 + $0x118] sm:$0xff] %v379_v35  ;;  %v381_v36 = vld [vmem:[%s1500_s3 + $0x240] sm:$0xff]  ;;  %v383_v37 = vld [vmem:[%s1500_s3 + $0x250] sm:$0xff] }
  0x29   : > { %v385_v38 = vld [vmem:[%s1500_s3 + $0x260] sm:$0xff]  ;;  %382 = vst [vmem:[%s1505_s4 + $0x120] sm:$0xff] %v381_v36  ;;  %384 = vst [vmem:[%s1505_s4 + $0x128] sm:$0xff] %v383_v37  ;;  %v387_v39 = vld [vmem:[%s1500_s3 + $0x270] sm:$0xff] }
  0x2a   : > { %386 = vst [vmem:[%s1505_s4 + $0x130] sm:$0xff] %v385_v38  ;;  %v389_v40 = vld [vmem:[%s1500_s3 + $0x280] sm:$0xff]  ;;  %v391_v41 = vld [vmem:[%s1500_s3 + $0x290] sm:$0xff]  ;;  %388 = vst [vmem:[%s1505_s4 + $0x138] sm:$0xff] %v387_v39 }
  0x2b   : > { %390 = vst [vmem:[%s1505_s4 + $0x140] sm:$0xff] %v389_v40  ;;  %392 = vst [vmem:[%s1505_s4 + $0x148] sm:$0xff] %v391_v41  ;;  %v393_v42 = vld [vmem:[%s1500_s3 + $0x2a0] sm:$0xff]  ;;  %v395_v43 = vld [vmem:[%s1500_s3 + $0x2b0] sm:$0xff] }
  0x2c   : > { %v397_v44 = vld [vmem:[%s1500_s3 + $0x2c0] sm:$0xff]  ;;  %394 = vst [vmem:[%s1505_s4 + $0x150] sm:$0xff] %v393_v42  ;;  %396 = vst [vmem:[%s1505_s4 + $0x158] sm:$0xff] %v395_v43  ;;  %v399_v45 = vld [vmem:[%s1500_s3 + $0x2d0] sm:$0xff] }
  0x2d   : > { %398 = vst [vmem:[%s1505_s4 + $0x160] sm:$0xff] %v397_v44  ;;  %v401_v46 = vld [vmem:[%s1500_s3 + $0x2e0] sm:$0xff]  ;;  %v403_v47 = vld [vmem:[%s1500_s3 + $0x2f0] sm:$0xff]  ;;  %400 = vst [vmem:[%s1505_s4 + $0x168] sm:$0xff] %v399_v45 }
  0x2e   : > { %402 = vst [vmem:[%s1505_s4 + $0x170] sm:$0xff] %v401_v46  ;;  %404 = vst [vmem:[%s1505_s4 + $0x178] sm:$0xff] %v403_v47  ;;  %v405_v48 = vld [vmem:[%s1500_s3 + $0x300] sm:$0xff]  ;;  %v407_v49 = vld [vmem:[%s1500_s3 + $0x310] sm:$0xff] }
  0x2f   : > { %v409_v50 = vld [vmem:[%s1500_s3 + $0x320] sm:$0xff]  ;;  %406 = vst [vmem:[%s1505_s4 + $0x180] sm:$0xff] %v405_v48  ;;  %408 = vst [vmem:[%s1505_s4 + $0x188] sm:$0xff] %v407_v49  ;;  %v411_v51 = vld [vmem:[%s1500_s3 + $0x330] sm:$0xff] }
  0x30   : > { %410 = vst [vmem:[%s1505_s4 + $0x190] sm:$0xff] %v409_v50  ;;  %v413_v52 = vld [vmem:[%s1500_s3 + $0x340] sm:$0xff]  ;;  %v415_v53 = vld [vmem:[%s1500_s3 + $0x350] sm:$0xff]  ;;  %412 = vst [vmem:[%s1505_s4 + $0x198] sm:$0xff] %v411_v51 }
  0x31   : > { %414 = vst [vmem:[%s1505_s4 + $0x1a0] sm:$0xff] %v413_v52  ;;  %416 = vst [vmem:[%s1505_s4 + $0x1a8] sm:$0xff] %v415_v53  ;;  %v417_v54 = vld [vmem:[%s1500_s3 + $0x360] sm:$0xff]  ;;  %v419_v55 = vld [vmem:[%s1500_s3 + $0x370] sm:$0xff] }
  0x32   : > { %v421_v56 = vld [vmem:[%s1500_s3 + $0x380] sm:$0xff]  ;;  %418 = vst [vmem:[%s1505_s4 + $0x1b0] sm:$0xff] %v417_v54  ;;  %420 = vst [vmem:[%s1505_s4 + $0x1b8] sm:$0xff] %v419_v55  ;;  %v423_v57 = vld [vmem:[%s1500_s3 + $0x390] sm:$0xff] }
  0x33   : > { %422 = vst [vmem:[%s1505_s4 + $0x1c0] sm:$0xff] %v421_v56  ;;  %v425_v58 = vld [vmem:[%s1500_s3 + $0x3a0] sm:$0xff]  ;;  %v427_v59 = vld [vmem:[%s1500_s3 + $0x3b0] sm:$0xff]  ;;  %424 = vst [vmem:[%s1505_s4 + $0x1c8] sm:$0xff] %v423_v57 }
  0x34   : > { %426 = vst [vmem:[%s1505_s4 + $0x1d0] sm:$0xff] %v425_v58  ;;  %428 = vst [vmem:[%s1505_s4 + $0x1d8] sm:$0xff] %v427_v59  ;;  %v429_v60 = vld [vmem:[%s1500_s3 + $0x3c0] sm:$0xff]  ;;  %v431_v61 = vld [vmem:[%s1500_s3 + $0x3d0] sm:$0xff] }
  0x35   : > { %v433_v62 = vld [vmem:[%s1500_s3 + $0x3e0] sm:$0xff]  ;;  %430 = vst [vmem:[%s1505_s4 + $0x1e0] sm:$0xff] %v429_v60  ;;  %432 = vst [vmem:[%s1505_s4 + $0x1e8] sm:$0xff] %v431_v61  ;;  %v435_v63 = vld [vmem:[%s1500_s3 + $0x3f0] sm:$0xff] }
  0x36   : > { %434 = vst [vmem:[%s1505_s4 + $0x1f0] sm:$0xff] %v433_v62  ;;  %436 = vst [vmem:[%s1505_s4 + $0x1f8] sm:$0xff] %v435_v63 }
  0x37 PF: > { %p1137_p7 = scmp.ge.s32.totalorder %s1420_s15, 1  ;;  %p441_p8 = scmp.lt.s32.totalorder %s1420_s15, 13 }
  0x39   : > { %p442_p9 = pnand %p1137_p7, %p441_p8 }
  0x3a   : > { %s448_s5 = sand.u32 (!%p442_p9), 1, %s1396_s9   ;;  %s1139_s6 = sshll.u32 (!%p442_p9), %s1404_s11, 2 }
  0x3b   : > { %445 = sbr.rel (%p442_p9) target bundleno = 343 (0x157), region = 62  ;;  %s1138_s7 = sshll.u32 (!%p442_p9), %s448_s5, 9 }
  0x3c   : > { %p484_p10 = scmp.lt.s32.totalorder (!%p442_p9), %s1139_s6, 23  ;;  %s1140_s8 = sshll.u32 (!%p442_p9), %s1408_s12, 1 }
  0x3d   : > { %p495_p11 = scmp.lt.s32.totalorder (!%p442_p9), %s1140_s8, 3  ;;  %s1648_s9 = scalar_lea.vmem (!%p442_p9), [#allocation2], %s1138_s7 }
  0x3e   : > { %p1142_p12 = scmp.ne.s32.totalorder (!%p442_p9), %s1404_s11, 0 }
  0x40   : > { %s1764_s6 = smov (!%p484_p10, %s1139_s6), 23  ;;  %s1766_s8 = smov (!%p495_p11, %s1140_s8), 3 }
  0x41   : > { %s488_s20 = scalar_lea.vmem %s1748_s0, %s1764_s6  ;;  %s1141_s21 = sshll.u32 %s1766_s8, 1 }
  0x42   : > { %s1646_s25 = scalar_lea.vmem %s1750_s2, %s1141_s21  ;;  %505 = sbr.rel (%p1142_p12) target bundleno = 73 (0x49), region = 70 }
  0x47   : > { %v1422_v0 = vmov 0.0  }
  0x48   : > { %506 = vst [vmem:[%s1646_s25] sm:$0xf] %v1422_v0 }
  0x49 PF: > { %v1270_v1 = vld [vmem:[%s1648_s9 + $0x74] ss:$8 sps:$4 sm:$0xff]   ;;  %v1274_v3 = vld [vmem:[%s1648_s9 + $0x70] ss:$8 sps:$4 sm:$0xff]   ;;  %v1276_v5 = vld [vmem:[%s1648_s9 + $0x64] ss:$8 sps:$4 sm:$0xff]   ;;  %v585_v41 = vlaneseq }
  0x4a   : > { %v1272_v2 = vld [vmem:[%s1648_s9 + $0x174] ss:$8 sps:$4 sm:$0xff]   ;;  %922 = vmatprep.subr.bf16.mxu0 %v1270_v1  ;;  %v1275_v4 = vld [vmem:[%s1648_s9 + $0x170] ss:$8 sps:$4 sm:$0xff]   ;;  %v1278_v6 = vld [vmem:[%s1648_s9 + $0x164] ss:$8 sps:$4 sm:$0xff]  }
  0x4b   : > { %963 = vmatprep.subr.bf16.mxu1 %v1272_v2  ;;  %923 = vmatpush1.bf16.msra.mxu0 %v1274_v3  ;;  %v1280_v7 = vld [vmem:[%s1648_s9 + $0x60] ss:$8 sps:$4 sm:$0xff]   ;;  %v1282_v9 = vld [vmem:[%s1648_s9 + $0x54] ss:$8 sps:$4 sm:$0xff]   ;;  %v1286_v11 = vld [vmem:[%s1648_s9 + $0x50] ss:$8 sps:$4 sm:$0xff]  }
  0x4c   : > { %964 = vmatpush1.bf16.msra.mxu1 %v1275_v4  ;;  %924 = vmatprep.subr.bf16.mxu0 %v1276_v5  ;;  %v1281_v8 = vld [vmem:[%s1648_s9 + $0x160] ss:$8 sps:$4 sm:$0xff]   ;;  %v1284_v10 = vld [vmem:[%s1648_s9 + $0x154] ss:$8 sps:$4 sm:$0xff]   ;;  %v1287_v12 = vld [vmem:[%s1648_s9 + $0x150] ss:$8 sps:$4 sm:$0xff]  }
  0x4d   : > { %965 = vmatprep.subr.bf16.mxu1 %v1278_v6  ;;  %v1288_v13 = vld [vmem:[%s1648_s9 + $0x44] ss:$8 sps:$4 sm:$0xff]   ;;  %v1292_v15 = vld [vmem:[%s1648_s9 + $0x40] ss:$8 sps:$4 sm:$0xff]   ;;  %v1294_v17 = vld [vmem:[%s1648_s9 + $0x34] ss:$8 sps:$4 sm:$0xff]  }
  0x4e   : > { %v1290_v14 = vld [vmem:[%s1648_s9 + $0x144] ss:$8 sps:$4 sm:$0xff]   ;;  %v1293_v16 = vld [vmem:[%s1648_s9 + $0x140] ss:$8 sps:$4 sm:$0xff]   ;;  %v1296_v18 = vld [vmem:[%s1648_s9 + $0x134] ss:$8 sps:$4 sm:$0xff]  }
  0x4f   : > { %925 = vmatpush1.bf16.msra.mxu0 %v1280_v7  ;;  %v1298_v19 = vld [vmem:[%s1648_s9 + $0x30] ss:$8 sps:$4 sm:$0xff]   ;;  %v1300_v21 = vld [vmem:[%s1648_s9 + $0x24] ss:$8 sps:$4 sm:$0xff]   ;;  %v1304_v23 = vld [vmem:[%s1648_s9 + $0x20] ss:$8 sps:$4 sm:$0xff]  }
  0x50   : > { %966 = vmatpush1.bf16.msra.mxu1 %v1281_v8  ;;  %926 = vmatprep.subr.bf16.mxu0 %v1282_v9  ;;  %v1299_v20 = vld [vmem:[%s1648_s9 + $0x130] ss:$8 sps:$4 sm:$0xff]   ;;  %v1302_v22 = vld [vmem:[%s1648_s9 + $0x124] ss:$8 sps:$4 sm:$0xff]   ;;  %v1305_v24 = vld [vmem:[%s1648_s9 + $0x120] ss:$8 sps:$4 sm:$0xff]  }
  0x51   : > { %967 = vmatprep.subr.bf16.mxu1 %v1284_v10  ;;  %v1306_v25 = vld [vmem:[%s1648_s9 + $0x14] ss:$8 sps:$4 sm:$0xff]   ;;  %v1310_v27 = vld [vmem:[%s1648_s9 + $0x10] ss:$8 sps:$4 sm:$0xff]   ;;  %v1312_v29 = vld [vmem:[%s1648_s9 + $0x4] ss:$8 sps:$4 sm:$0xff]  }
  0x52   : > { %v1308_v26 = vld [vmem:[%s1648_s9 + $0x114] ss:$8 sps:$4 sm:$0xff]   ;;  %v1311_v28 = vld [vmem:[%s1648_s9 + $0x110] ss:$8 sps:$4 sm:$0xff]   ;;  %v1314_v30 = vld [vmem:[%s1648_s9 + $0x104] ss:$8 sps:$4 sm:$0xff]  }
  0x53   : > { %927 = vmatpush1.bf16.msra.mxu0 %v1286_v11  ;;  %v1316_v31 = vld [vmem:[%s1648_s9] ss:$8 sps:$4 sm:$0xff]   ;;  %v1318_v33 = vld [vmem:[%s1648_s9 + $0xf4] ss:$8 sps:$4 sm:$0xff]   ;;  %v1322_v35 = vld [vmem:[%s1648_s9 + $0xf0] ss:$8 sps:$4 sm:$0xff]  }
  0x54   : > { %968 = vmatpush1.bf16.msra.mxu1 %v1287_v12  ;;  %928 = vmatprep.subr.bf16.mxu0 %v1288_v13  ;;  %v1317_v32 = vld [vmem:[%s1648_s9 + $0x100] ss:$8 sps:$4 sm:$0xff]   ;;  %v1320_v34 = vld [vmem:[%s1648_s9 + $0x1f4] ss:$8 sps:$4 sm:$0xff]   ;;  %v1323_v36 = vld [vmem:[%s1648_s9 + $0x1f0] ss:$8 sps:$4 sm:$0xff]  }
  0x55   : > { %969 = vmatprep.subr.bf16.mxu1 %v1290_v14  ;;  %v1324_v37 = vld [vmem:[%s1648_s9 + $0xe4] ss:$8 sps:$4 sm:$0xff]   ;;  %v1423_v39 = vmov 1966171168   ;;  %v1328_v42 = vld [vmem:[%s1648_s9 + $0xe0] ss:$8 sps:$4 sm:$0xff]  }
  0x56   : > { %v1326_v38 = vld [vmem:[%s1648_s9 + $0x1e4] ss:$8 sps:$4 sm:$0xff]   ;;  %v583_v40 = vunpack.c.l.s4 %v1423_v39  ;;  %v1329_v43 = vld [vmem:[%s1648_s9 + $0x1e0] ss:$8 sps:$4 sm:$0xff]   ;;  %v1330_v44 = vld [vmem:[%s1648_s9 + $0xd4] ss:$8 sps:$4 sm:$0xff]  }
  0x57   : > { %929 = vmatpush1.bf16.msra.mxu0 %v1292_v15  ;;  %v1332_v45 = vld [vmem:[%s1648_s9 + $0x1d4] ss:$8 sps:$4 sm:$0xff]   ;;  %v1694_v47 = vshrl.u32 %v585_v41, 7  ;;  %v1334_v48 = vld [vmem:[%s1648_s9 + $0xd0] ss:$8 sps:$4 sm:$0xff]  }
  0x58   : > { %970 = vmatpush1.bf16.msra.mxu1 %v1293_v16  ;;  %930 = vmatprep.subr.bf16.mxu0 %v1294_v17  ;;  %v584_v46 = vunpack.c.0.s8 %v583_v40  ;;  %v1335_v49 = vld [vmem:[%s1648_s9 + $0x1d0] ss:$8 sps:$4 sm:$0xff]   ;;  %v1336_v50 = vld [vmem:[%s1648_s9 + $0xc4] ss:$8 sps:$4 sm:$0xff]   ;;  %v1340_v54 = vld [vmem:[%s1648_s9 + $0xc0] ss:$8 sps:$4 sm:$0xff]  }
  0x59   : > { %971 = vmatprep.subr.bf16.mxu1 %v1296_v18  ;;  %v1338_v51 = vld [vmem:[%s1648_s9 + $0x1c4] ss:$8 sps:$4 sm:$0xff]   ;;  %v1143_v53 = vld.sshfl [vmem:[%s488_s20] sm:$0x33 pattern:$0x75316420] }
  0x5a   : > { %v587_v52 = vsub.s32 %v584_v46, %v1694_v47  ;;  %v1341_v55 = vld [vmem:[%s1648_s9 + $0x1c0] ss:$8 sps:$4 sm:$0xff]   ;;  %v581_v56 = vcombine.high %v1143_v53, %v1143_v53  ;;  %v1342_v57 = vld [vmem:[%s1648_s9 + $0xb4] ss:$8 sps:$4 sm:$0xff]   ;;  %v1346_v60 = vld [vmem:[%s1648_s9 + $0xb0] ss:$8 sps:$4 sm:$0xff]  }
  0x5b   : > { %931 = vmatpush1.bf16.msra.mxu0 %v1298_v19  ;;  %v1344_v58 = vld [vmem:[%s1648_s9 + $0x1b4] ss:$8 sps:$4 sm:$0xff]   ;;  %v1347_v61 = vld [vmem:[%s1648_s9 + $0x1b0] ss:$8 sps:$4 sm:$0xff]   ;;  %v1348_v63 = vld [vmem:[%s1648_s9 + $0xa4] ss:$8 sps:$4 sm:$0xff]  }
  0x5c   : > { %972 = vmatpush1.bf16.msra.mxu1 %v1299_v20  ;;  %932 = vmatprep.subr.bf16.mxu0 %v1300_v21  ;;  %v595_v59 = vrot.slane %v581_v56, %v587_v52  ;;  %v1350_v0 = vld [vmem:[%s1648_s9 + $0x1a4] ss:$8 sps:$4 sm:$0xff]   ;;  %v1352_v1 = vld [vmem:[%s1648_s9 + $0xa0] ss:$8 sps:$4 sm:$0xff]   ;;  %v1354_v3 = vld [vmem:[%s1648_s9 + $0x94] ss:$8 sps:$4 sm:$0xff]   ;;  %v588_v9 = vrot.slane %v1143_v53, %v587_v52 }
  0x5d   : > { %973 = vmatprep.subr.bf16.mxu1 %v1302_v22  ;;  %v1353_v2 = vld [vmem:[%s1648_s9 + $0x1a0] ss:$8 sps:$4 sm:$0xff]   ;;  %v1356_v4 = vld [vmem:[%s1648_s9 + $0x194] ss:$8 sps:$4 sm:$0xff]   ;;  %v1358_v5 = vld [vmem:[%s1648_s9 + $0x90] ss:$8 sps:$4 sm:$0xff]  }
  0x5e   : > { %v597_v62 = vcombine.high %v595_v59, %v595_v59  ;;  %954 = vmatprep.mubr.bf16.mxu0 %v595_v59  ;;  %v1359_v6 = vld [vmem:[%s1648_s9 + $0x190] ss:$8 sps:$4 sm:$0xff]   ;;  %v1360_v7 = vld [vmem:[%s1648_s9 + $0x84] ss:$8 sps:$4 sm:$0xff]   ;;  %v1364_v10 = vld [vmem:[%s1648_s9 + $0x80] ss:$8 sps:$4 sm:$0xff]   ;;  %v596_v12 = vcombine.high %v588_v9, %v588_v9 }
  0x5f   : > { %933 = vmatpush1.bf16.msra.mxu0 %v1304_v23  ;;  %v1362_v8 = vld [vmem:[%s1648_s9 + $0x184] ss:$8 sps:$4 sm:$0xff]   ;;  %v1365_v11 = vld [vmem:[%s1648_s9 + $0x180] ss:$8 sps:$4 sm:$0xff]   ;;  %v1424_v13 = vmov 1983009808  }
  0x60   : > { %974 = vmatpush1.bf16.msra.mxu1 %v1305_v24  ;;  %934 = vmatprep.subr.bf16.mxu0 %v1306_v25  ;;  %v1008_v14 = vunpack.c.l.s4 %v1424_v13 }
  0x61   : > { %975 = vmatprep.subr.bf16.mxu1 %v1308_v26  ;;  %995 = vmatprep.mubr.bf16.mxu1 %v597_v62  ;;  %v507_v26 = vld [vmem:[%s1646_s25] sm:$0xf] }
  0x62   : > { %v1009_v15 = vunpack.c.0.s8 %v1008_v14 }
  0x63   : > { %935 = vmatpush1.bf16.msra.mxu0 %v1310_v27 }
  0x64   : > { %976 = vmatpush1.bf16.msra.mxu1 %v1311_v28  ;;  %936 = vmatprep.subr.bf16.mxu0 %v1312_v29  ;;  %v1012_v22 = vsub.s32 %v1009_v15, %v1694_v47 }
  0x65   : > { %977 = vmatprep.subr.bf16.mxu1 %v1314_v30 }
  0x67   : > { %937 = vmatpush1.bf16.msra.mxu0 %v1316_v31 }
  0x68   : > { %978 = vmatpush1.bf16.msra.mxu1 %v1317_v32  ;;  %938 = vmatprep.subr.bf16.mxu0 %v1318_v33 }
  0x69   : > { %979 = vmatprep.subr.bf16.mxu1 %v1320_v34 }
  0x6b   : > { %939 = vmatpush2.bf16.msra.mxu0 %v1322_v35 }
  0x6c   : > { %980 = vmatpush2.bf16.msra.mxu1 %v1323_v36  ;;  %940 = vmatprep.subr.bf16.mxu0 %v1324_v37 }
  0x6d   : > { %981 = vmatprep.subr.bf16.mxu1 %v1326_v38 }
  0x6f   : > { %941 = vmatpush2.bf16.msra.mxu0 %v1328_v42 }
  0x70   : > { %982 = vmatpush2.bf16.msra.mxu1 %v1329_v43  ;;  %942 = vmatprep.subr.bf16.mxu0 %v1330_v44 }
  0x71   : > { %983 = vmatprep.subr.bf16.mxu1 %v1332_v45 }
  0x73   : > { %943 = vmatpush2.bf16.msra.mxu0 %v1334_v48 }
  0x74   : > { %984 = vmatpush2.bf16.msra.mxu1 %v1335_v49  ;;  %944 = vmatprep.subr.bf16.mxu0 %v1336_v50 }
  0x75   : > { %985 = vmatprep.subr.bf16.mxu1 %v1338_v51 }
  0x77   : > { %945 = vmatpush2.bf16.msra.mxu0 %v1340_v54 }
  0x78   : > { %986 = vmatpush2.bf16.msra.mxu1 %v1341_v55  ;;  %946 = vmatprep.subr.bf16.mxu0 %v1342_v57 }
  0x79   : > { %987 = vmatprep.subr.bf16.mxu1 %v1344_v58 }
  0x7b   : > { %947 = vmatpush2.bf16.msra.mxu0 %v1346_v60 }
  0x7c   : > { %988 = vmatpush2.bf16.msra.mxu1 %v1347_v61  ;;  %948 = vmatprep.subr.bf16.mxu0 %v1348_v63 }
  0x7d   : > { %989 = vmatprep.subr.bf16.mxu1 %v1350_v0 }
  0x7f   : > { %949 = vmatpush2.bf16.msra.mxu0 %v1352_v1 }
  0x80   : > { %990 = vmatpush2.bf16.msra.mxu1 %v1353_v2  ;;  %950 = vmatprep.subr.bf16.mxu0 %v1354_v3 }
  0x81   : > { %991 = vmatprep.subr.bf16.mxu1 %v1356_v4 }
  0x83   : > { %951 = vmatpush2.bf16.msra.mxu0 %v1358_v5 }
  0x84   : > { %992 = vmatpush2.bf16.msra.mxu1 %v1359_v6  ;;  %952 = vmatprep.subr.bf16.mxu0 %v1360_v7 }
  0x85   : > { %993 = vmatprep.subr.bf16.mxu1 %v1362_v8 }
  0x87   : > { %953 = vmatpush2.bf16.msra.mxu0 %v1364_v10 }
  0x88   : > { %994 = vmatpush2.bf16.msra.mxu1 %v1365_v11 }
  0x8a   : > { %955 = vmatmul.mubr.bf16.vlgmr.msra.gmra.mxu0 %v588_v9 }
  0x8b   : > { %996 = vmatmul.mubr.bf16.vlgmr.msra.gmra.mxu1 %v596_v12 }
 0x14a   : > { %v956_v16 = vpop.f32.mrf.mxu0 }
 0x14b   : > { %v997_v17 = vpop.f32.mrf.mxu1 }
 0x14c   : > { %v958_v18 = vpop.f32.mrf.mxu0  ;;  %v998_v20 = vadd.f32 %v997_v17, %v956_v16 }
 0x14d   : > { %v999_v19 = vpop.f32.mrf.mxu1 }
 0x14e   : > { %v1000_v21 = vadd.f32 %v999_v19, %v958_v18  ;;  %v960_v23 = vpop.f32.mrf.mxu0 }
 0x14f   : > { %v1001_v24 = vpop.f32.mrf.mxu1 }
 0x150   : > { %v1006_v25 = vcombine.low %v998_v20, %v1000_v21  ;;  %v961_v27 = vpop.f32.mrf.mxu0 }
 0x151   : > { %v1002_v28 = vpop.f32.mrf.mxu1 }
 0x152   : > { %v1013_v29 = vrot.slane %v1006_v25, %v1012_v22 }
 0x154   : > { %v1015_v30 = vadd.f32 %v1013_v29, %v507_v26 }
 0x156   : > { %1016 = vst [vmem:[%s1646_s25] sm:$0xf] %v1015_v30 }
 0x157 PF: > { %s12_s15 = sadd.s32 1, %s1420_s15   ;;  %s1751_s9 = smov %s1400_s10 }
 0x158   : > { %p9_p13 = scmp.ge.s32.totalorder %s12_s15, 14   ;;  %s1752_s10 = smov %s1491_s22 }
 0x159   : > { %s1753_s11 = smov %s1412_s13  ;;  %s1754_s12 = smov %s1416_s14 }
 0x15a   : > { %s1755_s13 = smov %s1758_s16  ;;  %s1756_s14 = smov %s1762_s17 }
 0x15b   :  { %11 = sbr.rel (!%p9_p13) target bundleno = 4 (0x4), region = 108 }

// kernel: gnn_v5_forward.57
= control target key start
LH: loop header
LB: loop body
LE: loop exit
PB: predicated region body
PF: predicated region fallthrough
CT: control target
= control target key end

     0   :  { %s1440_s9 = smov 0   ;;  %s1442_s10 = smov 0   ;;  %s1748_s0 = inlined_call_operand.vmem [shape: bf16[2,6144], index: 0, kind: input, shape index: {}]   ;;  %s1749_s1 = inlined_call_operand.vmem [shape: bf16[6144,512], index: 1, kind: input, shape index: {}]   ;;  %s1750_s2 = inlined_call_operand.vmem [shape: f32[2,512], index: 2, kind: output, shape index: {}]  }
   0x1   :  { %s1444_s11 = smov 0   ;;  %s1446_s12 = smov 0  }
   0x2   :  { %s1448_s13 = smov 0   ;;  %s1450_s14 = smov 0  }
   0x3   :  { %s1452_s15 = smov 0  }
   0x4 LB: > { %s24_s16 = sadd.s32 1, %s1412_s13  ;;  %s27_s17 = sadd.s32 1, %s1416_s14  ;;  %s1420_s15 = sphi %s1452_s15, %s12_s15   ;;  %s1416_s14 = sphi %s1450_s14, %s1756_s14   ;;  %s1412_s13 = sphi %s1448_s13, %s1755_s13   ;;  %s1408_s12 = sphi %s1446_s12, %s1754_s12   ;;  %s1404_s11 = sphi %s1444_s11, %s1753_s11   ;;  %s1400_s10 = sphi %s1442_s10, %s1752_s10   ;;  %s1396_s9 = sphi %s1440_s9, %s1751_s9  }
   0x5   : > { %p25_p0 = scmp.ge.s32.totalorder %s24_s16, 12  ;;  %p75_p1 = scmp.ne.s32.totalorder %s1400_s10, %s1396_s9 }
   0x6   : > { %p76_p2 = scmp.eq.s32.totalorder %s1420_s15, 0  ;;  %s68_s21 = sadd.s32 1, %s1400_s10 }
   0x7   : > { %s1758_s16 = smov (%p25_p0, %s24_s16), 0  ;;  %s1760_s17 = smov (!%p25_p0, %s27_s17), %s1416_s14 }
   0x8   : > { %p77_p3 = por %p76_p2, %p75_p1  ;;  %p29_p4 = scmp.ge.s32.totalorder %s1760_s17, 2 }
   0x9   : > { %s63_s18 = ssub.s32 %s1412_s13, %s1758_s16  ;;  %p1131_p6 = scmp.ge.s32.totalorder %s1420_s15, 24 }
   0xa   : > { %s1762_s17 = smov (%p29_p4, %s1760_s17), 0 }
   0xb   : > { %s64_s19 = ssub.s32 %s1416_s14, %s1762_s17  ;;  %129 = sbr.rel (%p1131_p6) target bundleno = 55 (0x37), region = 16 }
   0xc   : > { %s65_s20 = sor.u32 %s64_s19, %s63_s18 }
   0xd   : > { %p66_p5 = scmp.eq.s32.totalorder %s65_s20, 0 }
   0xf   : > { %s1491_s22 = scalar_select %p66_p5, %s1400_s10, %s68_s21  }
  0x10   : > { %144 = sbr.rel (!%p77_p3) target bundleno = 55 (0x37), region = 24  ;;  %s146_s23 = sand.u32 (%p77_p3), 1, %s1400_s10  }
  0x11   : > { %s1134_s24 = sshll.u32 (%p77_p3), %s1416_s14, 1  ;;  %s1132_s25 = sshll.u32 (%p77_p3), %s146_s23, 9 }
  0x12   : > { %s1210_s26 = sshll.u32 (%p77_p3), %s1412_s13, 8  ;;  %s1505_s4 = scalar_lea.vmem (%p77_p3), [#allocation2], %s1132_s25 }
  0x13   : > { %s152_s27 = sadd.s32 (%p77_p3), %s1210_s26, %s1134_s24 }
  0x14   : > { %s1136_s28 = sshll.u32 (%p77_p3), %s152_s27, 2 }
  0x15   : > { %s1500_s3 = scalar_lea.vmem %s1749_s1, %s1136_s28 }
  0x16   : > { %v309_v0 = vld [vmem:[%s1500_s3] sm:$0xff]  ;;  %v311_v1 = vld [vmem:[%s1500_s3 + $0x10] sm:$0xff] }
  0x17   : > { %v313_v2 = vld [vmem:[%s1500_s3 + $0x20] sm:$0xff]  ;;  %310 = vst [vmem:[%s1505_s4] sm:$0xff] %v309_v0  ;;  %312 = vst [vmem:[%s1505_s4 + $0x8] sm:$0xff] %v311_v1  ;;  %v315_v3 = vld [vmem:[%s1500_s3 + $0x30] sm:$0xff] }
  0x18   : > { %314 = vst [vmem:[%s1505_s4 + $0x10] sm:$0xff] %v313_v2  ;;  %v317_v4 = vld [vmem:[%s1500_s3 + $0x40] sm:$0xff]  ;;  %v319_v5 = vld [vmem:[%s1500_s3 + $0x50] sm:$0xff]  ;;  %316 = vst [vmem:[%s1505_s4 + $0x18] sm:$0xff] %v315_v3 }
  0x19   : > { %318 = vst [vmem:[%s1505_s4 + $0x20] sm:$0xff] %v317_v4  ;;  %320 = vst [vmem:[%s1505_s4 + $0x28] sm:$0xff] %v319_v5  ;;  %v321_v6 = vld [vmem:[%s1500_s3 + $0x60] sm:$0xff]  ;;  %v323_v7 = vld [vmem:[%s1500_s3 + $0x70] sm:$0xff] }
  0x1a   : > { %v325_v8 = vld [vmem:[%s1500_s3 + $0x80] sm:$0xff]  ;;  %322 = vst [vmem:[%s1505_s4 + $0x30] sm:$0xff] %v321_v6  ;;  %324 = vst [vmem:[%s1505_s4 + $0x38] sm:$0xff] %v323_v7  ;;  %v327_v9 = vld [vmem:[%s1500_s3 + $0x90] sm:$0xff] }
  0x1b   : > { %326 = vst [vmem:[%s1505_s4 + $0x40] sm:$0xff] %v325_v8  ;;  %v329_v10 = vld [vmem:[%s1500_s3 + $0xa0] sm:$0xff]  ;;  %v331_v11 = vld [vmem:[%s1500_s3 + $0xb0] sm:$0xff]  ;;  %328 = vst [vmem:[%s1505_s4 + $0x48] sm:$0xff] %v327_v9 }
  0x1c   : > { %330 = vst [vmem:[%s1505_s4 + $0x50] sm:$0xff] %v329_v10  ;;  %332 = vst [vmem:[%s1505_s4 + $0x58] sm:$0xff] %v331_v11  ;;  %v333_v12 = vld [vmem:[%s1500_s3 + $0xc0] sm:$0xff]  ;;  %v335_v13 = vld [vmem:[%s1500_s3 + $0xd0] sm:$0xff] }
  0x1d   : > { %v337_v14 = vld [vmem:[%s1500_s3 + $0xe0] sm:$0xff]  ;;  %334 = vst [vmem:[%s1505_s4 + $0x60] sm:$0xff] %v333_v12  ;;  %336 = vst [vmem:[%s1505_s4 + $0x68] sm:$0xff] %v335_v13  ;;  %v339_v15 = vld [vmem:[%s1500_s3 + $0xf0] sm:$0xff] }
  0x1e   : > { %338 = vst [vmem:[%s1505_s4 + $0x70] sm:$0xff] %v337_v14  ;;  %v341_v16 = vld [vmem:[%s1500_s3 + $0x100] sm:$0xff]  ;;  %v343_v17 = vld [vmem:[%s1500_s3 + $0x110] sm:$0xff]  ;;  %340 = vst [vmem:[%s1505_s4 + $0x78] sm:$0xff] %v339_v15 }
  0x1f   : > { %342 = vst [vmem:[%s1505_s4 + $0x80] sm:$0xff] %v341_v16  ;;  %344 = vst [vmem:[%s1505_s4 + $0x88] sm:$0xff] %v343_v17  ;;  %v345_v18 = vld [vmem:[%s1500_s3 + $0x120] sm:$0xff]  ;;  %v347_v19 = vld [vmem:[%s1500_s3 + $0x130] sm:$0xff] }
  0x20   : > { %v349_v20 = vld [vmem:[%s1500_s3 + $0x140] sm:$0xff]  ;;  %346 = vst [vmem:[%s1505_s4 + $0x90] sm:$0xff] %v345_v18  ;;  %348 = vst [vmem:[%s1505_s4 + $0x98] sm:$0xff] %v347_v19  ;;  %v351_v21 = vld [vmem:[%s1500_s3 + $0x150] sm:$0xff] }
  0x21   : > { %350 = vst [vmem:[%s1505_s4 + $0xa0] sm:$0xff] %v349_v20  ;;  %v353_v22 = vld [vmem:[%s1500_s3 + $0x160] sm:$0xff]  ;;  %v355_v23 = vld [vmem:[%s1500_s3 + $0x170] sm:$0xff]  ;;  %352 = vst [vmem:[%s1505_s4 + $0xa8] sm:$0xff] %v351_v21 }
  0x22   : > { %354 = vst [vmem:[%s1505_s4 + $0xb0] sm:$0xff] %v353_v22  ;;  %356 = vst [vmem:[%s1505_s4 + $0xb8] sm:$0xff] %v355_v23  ;;  %v357_v24 = vld [vmem:[%s1500_s3 + $0x180] sm:$0xff]  ;;  %v359_v25 = vld [vmem:[%s1500_s3 + $0x190] sm:$0xff] }
  0x23   : > { %v361_v26 = vld [vmem:[%s1500_s3 + $0x1a0] sm:$0xff]  ;;  %358 = vst [vmem:[%s1505_s4 + $0xc0] sm:$0xff] %v357_v24  ;;  %360 = vst [vmem:[%s1505_s4 + $0xc8] sm:$0xff] %v359_v25  ;;  %v363_v27 = vld [vmem:[%s1500_s3 + $0x1b0] sm:$0xff] }
  0x24   : > { %362 = vst [vmem:[%s1505_s4 + $0xd0] sm:$0xff] %v361_v26  ;;  %v365_v28 = vld [vmem:[%s1500_s3 + $0x1c0] sm:$0xff]  ;;  %v367_v29 = vld [vmem:[%s1500_s3 + $0x1d0] sm:$0xff]  ;;  %364 = vst [vmem:[%s1505_s4 + $0xd8] sm:$0xff] %v363_v27 }
  0x25   : > { %366 = vst [vmem:[%s1505_s4 + $0xe0] sm:$0xff] %v365_v28  ;;  %368 = vst [vmem:[%s1505_s4 + $0xe8] sm:$0xff] %v367_v29  ;;  %v369_v30 = vld [vmem:[%s1500_s3 + $0x1e0] sm:$0xff]  ;;  %v371_v31 = vld [vmem:[%s1500_s3 + $0x1f0] sm:$0xff] }
  0x26   : > { %v373_v32 = vld [vmem:[%s1500_s3 + $0x200] sm:$0xff]  ;;  %370 = vst [vmem:[%s1505_s4 + $0xf0] sm:$0xff] %v369_v30  ;;  %372 = vst [vmem:[%s1505_s4 + $0xf8] sm:$0xff] %v371_v31  ;;  %v375_v33 = vld [vmem:[%s1500_s3 + $0x210] sm:$0xff] }
  0x27   : > { %374 = vst [vmem:[%s1505_s4 + $0x100] sm:$0xff] %v373_v32  ;;  %v377_v34 = vld [vmem:[%s1500_s3 + $0x220] sm:$0xff]  ;;  %v379_v35 = vld [vmem:[%s1500_s3 + $0x230] sm:$0xff]  ;;  %376 = vst [vmem:[%s1505_s4 + $0x108] sm:$0xff] %v375_v33 }
  0x28   : > { %378 = vst [vmem:[%s1505_s4 + $0x110] sm:$0xff] %v377_v34  ;;  %380 = vst [vmem:[%s1505_s4 + $0x118] sm:$0xff] %v379_v35  ;;  %v381_v36 = vld [vmem:[%s1500_s3 + $0x240] sm:$0xff]  ;;  %v383_v37 = vld [vmem:[%s1500_s3 + $0x250] sm:$0xff] }
  0x29   : > { %v385_v38 = vld [vmem:[%s1500_s3 + $0x260] sm:$0xff]  ;;  %382 = vst [vmem:[%s1505_s4 + $0x120] sm:$0xff] %v381_v36  ;;  %384 = vst [vmem:[%s1505_s4 + $0x128] sm:$0xff] %v383_v37  ;;  %v387_v39 = vld [vmem:[%s1500_s3 + $0x270] sm:$0xff] }
  0x2a   : > { %386 = vst [vmem:[%s1505_s4 + $0x130] sm:$0xff] %v385_v38  ;;  %v389_v40 = vld [vmem:[%s1500_s3 + $0x280] sm:$0xff]  ;;  %v391_v41 = vld [vmem:[%s1500_s3 + $0x290] sm:$0xff]  ;;  %388 = vst [vmem:[%s1505_s4 + $0x138] sm:$0xff] %v387_v39 }
  0x2b   : > { %390 = vst [vmem:[%s1505_s4 + $0x140] sm:$0xff] %v389_v40  ;;  %392 = vst [vmem:[%s1505_s4 + $0x148] sm:$0xff] %v391_v41  ;;  %v393_v42 = vld [vmem:[%s1500_s3 + $0x2a0] sm:$0xff]  ;;  %v395_v43 = vld [vmem:[%s1500_s3 + $0x2b0] sm:$0xff] }
  0x2c   : > { %v397_v44 = vld [vmem:[%s1500_s3 + $0x2c0] sm:$0xff]  ;;  %394 = vst [vmem:[%s1505_s4 + $0x150] sm:$0xff] %v393_v42  ;;  %396 = vst [vmem:[%s1505_s4 + $0x158] sm:$0xff] %v395_v43  ;;  %v399_v45 = vld [vmem:[%s1500_s3 + $0x2d0] sm:$0xff] }
  0x2d   : > { %398 = vst [vmem:[%s1505_s4 + $0x160] sm:$0xff] %v397_v44  ;;  %v401_v46 = vld [vmem:[%s1500_s3 + $0x2e0] sm:$0xff]  ;;  %v403_v47 = vld [vmem:[%s1500_s3 + $0x2f0] sm:$0xff]  ;;  %400 = vst [vmem:[%s1505_s4 + $0x168] sm:$0xff] %v399_v45 }
  0x2e   : > { %402 = vst [vmem:[%s1505_s4 + $0x170] sm:$0xff] %v401_v46  ;;  %404 = vst [vmem:[%s1505_s4 + $0x178] sm:$0xff] %v403_v47  ;;  %v405_v48 = vld [vmem:[%s1500_s3 + $0x300] sm:$0xff]  ;;  %v407_v49 = vld [vmem:[%s1500_s3 + $0x310] sm:$0xff] }
  0x2f   : > { %v409_v50 = vld [vmem:[%s1500_s3 + $0x320] sm:$0xff]  ;;  %406 = vst [vmem:[%s1505_s4 + $0x180] sm:$0xff] %v405_v48  ;;  %408 = vst [vmem:[%s1505_s4 + $0x188] sm:$0xff] %v407_v49  ;;  %v411_v51 = vld [vmem:[%s1500_s3 + $0x330] sm:$0xff] }
  0x30   : > { %410 = vst [vmem:[%s1505_s4 + $0x190] sm:$0xff] %v409_v50  ;;  %v413_v52 = vld [vmem:[%s1500_s3 + $0x340] sm:$0xff]  ;;  %v415_v53 = vld [vmem:[%s1500_s3 + $0x350] sm:$0xff]  ;;  %412 = vst [vmem:[%s1505_s4 + $0x198] sm:$0xff] %v411_v51 }
  0x31   : > { %414 = vst [vmem:[%s1505_s4 + $0x1a0] sm:$0xff] %v413_v52  ;;  %416 = vst [vmem:[%s1505_s4 + $0x1a8] sm:$0xff] %v415_v53  ;;  %v417_v54 = vld [vmem:[%s1500_s3 + $0x360] sm:$0xff]  ;;  %v419_v55 = vld [vmem:[%s1500_s3 + $0x370] sm:$0xff] }
  0x32   : > { %v421_v56 = vld [vmem:[%s1500_s3 + $0x380] sm:$0xff]  ;;  %418 = vst [vmem:[%s1505_s4 + $0x1b0] sm:$0xff] %v417_v54  ;;  %420 = vst [vmem:[%s1505_s4 + $0x1b8] sm:$0xff] %v419_v55  ;;  %v423_v57 = vld [vmem:[%s1500_s3 + $0x390] sm:$0xff] }
  0x33   : > { %422 = vst [vmem:[%s1505_s4 + $0x1c0] sm:$0xff] %v421_v56  ;;  %v425_v58 = vld [vmem:[%s1500_s3 + $0x3a0] sm:$0xff]  ;;  %v427_v59 = vld [vmem:[%s1500_s3 + $0x3b0] sm:$0xff]  ;;  %424 = vst [vmem:[%s1505_s4 + $0x1c8] sm:$0xff] %v423_v57 }
  0x34   : > { %426 = vst [vmem:[%s1505_s4 + $0x1d0] sm:$0xff] %v425_v58  ;;  %428 = vst [vmem:[%s1505_s4 + $0x1d8] sm:$0xff] %v427_v59  ;;  %v429_v60 = vld [vmem:[%s1500_s3 + $0x3c0] sm:$0xff]  ;;  %v431_v61 = vld [vmem:[%s1500_s3 + $0x3d0] sm:$0xff] }
  0x35   : > { %v433_v62 = vld [vmem:[%s1500_s3 + $0x3e0] sm:$0xff]  ;;  %430 = vst [vmem:[%s1505_s4 + $0x1e0] sm:$0xff] %v429_v60  ;;  %432 = vst [vmem:[%s1505_s4 + $0x1e8] sm:$0xff] %v431_v61  ;;  %v435_v63 = vld [vmem:[%s1500_s3 + $0x3f0] sm:$0xff] }
  0x36   : > { %434 = vst [vmem:[%s1505_s4 + $0x1f0] sm:$0xff] %v433_v62  ;;  %436 = vst [vmem:[%s1505_s4 + $0x1f8] sm:$0xff] %v435_v63 }
  0x37 PF: > { %p1137_p7 = scmp.ge.s32.totalorder %s1420_s15, 1  ;;  %p441_p8 = scmp.lt.s32.totalorder %s1420_s15, 25 }
  0x39   : > { %p442_p9 = pnand %p1137_p7, %p441_p8 }
  0x3a   : > { %s448_s5 = sand.u32 (!%p442_p9), 1, %s1396_s9   ;;  %s1139_s6 = sshll.u32 (!%p442_p9), %s1404_s11, 2 }
  0x3b   : > { %445 = sbr.rel (%p442_p9) target bundleno = 343 (0x157), region = 62  ;;  %s1138_s7 = sshll.u32 (!%p442_p9), %s448_s5, 9 }
  0x3c   : > { %p484_p10 = scmp.lt.s32.totalorder (!%p442_p9), %s1139_s6, 47  ;;  %s1140_s8 = sshll.u32 (!%p442_p9), %s1408_s12, 1 }
  0x3d   : > { %p495_p11 = scmp.lt.s32.totalorder (!%p442_p9), %s1140_s8, 3  ;;  %s1648_s9 = scalar_lea.vmem (!%p442_p9), [#allocation2], %s1138_s7 }
  0x3e   : > { %p1142_p12 = scmp.ne.s32.totalorder (!%p442_p9), %s1404_s11, 0 }
  0x40   : > { %s1764_s6 = smov (!%p484_p10, %s1139_s6), 47  ;;  %s1766_s8 = smov (!%p495_p11, %s1140_s8), 3 }
  0x41   : > { %s488_s20 = scalar_lea.vmem %s1748_s0, %s1764_s6  ;;  %s1141_s21 = sshll.u32 %s1766_s8, 1 }
  0x42   : > { %s1646_s25 = scalar_lea.vmem %s1750_s2, %s1141_s21  ;;  %505 = sbr.rel (%p1142_p12) target bundleno = 73 (0x49), region = 70 }
  0x47   : > { %v1422_v0 = vmov 0.0  }
  0x48   : > { %506 = vst [vmem:[%s1646_s25] sm:$0xf] %v1422_v0 }
  0x49 PF: > { %v1270_v1 = vld [vmem:[%s1648_s9 + $0x74] ss:$8 sps:$4 sm:$0xff]   ;;  %v1274_v3 = vld [vmem:[%s1648_s9 + $0x70] ss:$8 sps:$4 sm:$0xff]   ;;  %v1276_v5 = vld [vmem:[%s1648_s9 + $0x64] ss:$8 sps:$4 sm:$0xff]   ;;  %v585_v41 = vlaneseq }
  0x4a   : > { %v1272_v2 = vld [vmem:[%s1648_s9 + $0x174] ss:$8 sps:$4 sm:$0xff]   ;;  %922 = vmatprep.subr.bf16.mxu0 %v1270_v1  ;;  %v1275_v4 = vld [vmem:[%s1648_s9 + $0x170] ss:$8 sps:$4 sm:$0xff]   ;;  %v1278_v6 = vld [vmem:[%s1648_s9 + $0x164] ss:$8 sps:$4 sm:$0xff]  }
  0x4b   : > { %963 = vmatprep.subr.bf16.mxu1 %v1272_v2  ;;  %923 = vmatpush1.bf16.msra.mxu0 %v1274_v3  ;;  %v1280_v7 = vld [vmem:[%s1648_s9 + $0x60] ss:$8 sps:$4 sm:$0xff]   ;;  %v1282_v9 = vld [vmem:[%s1648_s9 + $0x54] ss:$8 sps:$4 sm:$0xff]   ;;  %v1286_v11 = vld [vmem:[%s1648_s9 + $0x50] ss:$8 sps:$4 sm:$0xff]  }
  0x4c   : > { %964 = vmatpush1.bf16.msra.mxu1 %v1275_v4  ;;  %924 = vmatprep.subr.bf16.mxu0 %v1276_v5  ;;  %v1281_v8 = vld [vmem:[%s1648_s9 + $0x160] ss:$8 sps:$4 sm:$0xff]   ;;  %v1284_v10 = vld [vmem:[%s1648_s9 + $0x154] ss:$8 sps:$4 sm:$0xff]   ;;  %v1287_v12 = vld [vmem:[%s1648_s9 + $0x150] ss:$8 sps:$4 sm:$0xff]  }
  0x4d   : > { %965 = vmatprep.subr.bf16.mxu1 %v1278_v6  ;;  %v1288_v13 = vld [vmem:[%s1648_s9 + $0x44] ss:$8 sps:$4 sm:$0xff]   ;;  %v1292_v15 = vld [vmem:[%s1648_s9 + $0x40] ss:$8 sps:$4 sm:$0xff]   ;;  %v1294_v17 = vld [vmem:[%s1648_s9 + $0x34] ss:$8 sps:$4 sm:$0xff]  }
  0x4e   : > { %v1290_v14 = vld [vmem:[%s1648_s9 + $0x144] ss:$8 sps:$4 sm:$0xff]   ;;  %v1293_v16 = vld [vmem:[%s1648_s9 + $0x140] ss:$8 sps:$4 sm:$0xff]   ;;  %v1296_v18 = vld [vmem:[%s1648_s9 + $0x134] ss:$8 sps:$4 sm:$0xff]  }
  0x4f   : > { %925 = vmatpush1.bf16.msra.mxu0 %v1280_v7  ;;  %v1298_v19 = vld [vmem:[%s1648_s9 + $0x30] ss:$8 sps:$4 sm:$0xff]   ;;  %v1300_v21 = vld [vmem:[%s1648_s9 + $0x24] ss:$8 sps:$4 sm:$0xff]   ;;  %v1304_v23 = vld [vmem:[%s1648_s9 + $0x20] ss:$8 sps:$4 sm:$0xff]  }
  0x50   : > { %966 = vmatpush1.bf16.msra.mxu1 %v1281_v8  ;;  %926 = vmatprep.subr.bf16.mxu0 %v1282_v9  ;;  %v1299_v20 = vld [vmem:[%s1648_s9 + $0x130] ss:$8 sps:$4 sm:$0xff]   ;;  %v1302_v22 = vld [vmem:[%s1648_s9 + $0x124] ss:$8 sps:$4 sm:$0xff]   ;;  %v1305_v24 = vld [vmem:[%s1648_s9 + $0x120] ss:$8 sps:$4 sm:$0xff]  }
  0x51   : > { %967 = vmatprep.subr.bf16.mxu1 %v1284_v10  ;;  %v1306_v25 = vld [vmem:[%s1648_s9 + $0x14] ss:$8 sps:$4 sm:$0xff]   ;;  %v1310_v27 = vld [vmem:[%s1648_s9 + $0x10] ss:$8 sps:$4 sm:$0xff]   ;;  %v1312_v29 = vld [vmem:[%s1648_s9 + $0x4] ss:$8 sps:$4 sm:$0xff]  }
  0x52   : > { %v1308_v26 = vld [vmem:[%s1648_s9 + $0x114] ss:$8 sps:$4 sm:$0xff]   ;;  %v1311_v28 = vld [vmem:[%s1648_s9 + $0x110] ss:$8 sps:$4 sm:$0xff]   ;;  %v1314_v30 = vld [vmem:[%s1648_s9 + $0x104] ss:$8 sps:$4 sm:$0xff]  }
  0x53   : > { %927 = vmatpush1.bf16.msra.mxu0 %v1286_v11  ;;  %v1316_v31 = vld [vmem:[%s1648_s9] ss:$8 sps:$4 sm:$0xff]   ;;  %v1318_v33 = vld [vmem:[%s1648_s9 + $0xf4] ss:$8 sps:$4 sm:$0xff]   ;;  %v1322_v35 = vld [vmem:[%s1648_s9 + $0xf0] ss:$8 sps:$4 sm:$0xff]  }
  0x54   : > { %968 = vmatpush1.bf16.msra.mxu1 %v1287_v12  ;;  %928 = vmatprep.subr.bf16.mxu0 %v1288_v13  ;;  %v1317_v32 = vld [vmem:[%s1648_s9 + $0x100] ss:$8 sps:$4 sm:$0xff]   ;;  %v1320_v34 = vld [vmem:[%s1648_s9 + $0x1f4] ss:$8 sps:$4 sm:$0xff]   ;;  %v1323_v36 = vld [vmem:[%s1648_s9 + $0x1f0] ss:$8 sps:$4 sm:$0xff]  }
  0x55   : > { %969 = vmatprep.subr.bf16.mxu1 %v1290_v14  ;;  %v1324_v37 = vld [vmem:[%s1648_s9 + $0xe4] ss:$8 sps:$4 sm:$0xff]   ;;  %v1423_v39 = vmov 1966171168   ;;  %v1328_v42 = vld [vmem:[%s1648_s9 + $0xe0] ss:$8 sps:$4 sm:$0xff]  }
  0x56   : > { %v1326_v38 = vld [vmem:[%s1648_s9 + $0x1e4] ss:$8 sps:$4 sm:$0xff]   ;;  %v583_v40 = vunpack.c.l.s4 %v1423_v39  ;;  %v1329_v43 = vld [vmem:[%s1648_s9 + $0x1e0] ss:$8 sps:$4 sm:$0xff]   ;;  %v1330_v44 = vld [vmem:[%s1648_s9 + $0xd4] ss:$8 sps:$4 sm:$0xff]  }
  0x57   : > { %929 = vmatpush1.bf16.msra.mxu0 %v1292_v15  ;;  %v1332_v45 = vld [vmem:[%s1648_s9 + $0x1d4] ss:$8 sps:$4 sm:$0xff]   ;;  %v1694_v47 = vshrl.u32 %v585_v41, 7  ;;  %v1334_v48 = vld [vmem:[%s1648_s9 + $0xd0] ss:$8 sps:$4 sm:$0xff]  }
  0x58   : > { %970 = vmatpush1.bf16.msra.mxu1 %v1293_v16  ;;  %930 = vmatprep.subr.bf16.mxu0 %v1294_v17  ;;  %v584_v46 = vunpack.c.0.s8 %v583_v40  ;;  %v1335_v49 = vld [vmem:[%s1648_s9 + $0x1d0] ss:$8 sps:$4 sm:$0xff]   ;;  %v1336_v50 = vld [vmem:[%s1648_s9 + $0xc4] ss:$8 sps:$4 sm:$0xff]   ;;  %v1340_v54 = vld [vmem:[%s1648_s9 + $0xc0] ss:$8 sps:$4 sm:$0xff]  }
  0x59   : > { %971 = vmatprep.subr.bf16.mxu1 %v1296_v18  ;;  %v1338_v51 = vld [vmem:[%s1648_s9 + $0x1c4] ss:$8 sps:$4 sm:$0xff]   ;;  %v1143_v53 = vld.sshfl [vmem:[%s488_s20] sm:$0x33 pattern:$0x75316420] }
  0x5a   : > { %v587_v52 = vsub.s32 %v584_v46, %v1694_v47  ;;  %v1341_v55 = vld [vmem:[%s1648_s9 + $0x1c0] ss:$8 sps:$4 sm:$0xff]   ;;  %v581_v56 = vcombine.high %v1143_v53, %v1143_v53  ;;  %v1342_v57 = vld [vmem:[%s1648_s9 + $0xb4] ss:$8 sps:$4 sm:$0xff]   ;;  %v1346_v60 = vld [vmem:[%s1648_s9 + $0xb0] ss:$8 sps:$4 sm:$0xff]  }
  0x5b   : > { %931 = vmatpush1.bf16.msra.mxu0 %v1298_v19  ;;  %v1344_v58 = vld [vmem:[%s1648_s9 + $0x1b4] ss:$8 sps:$4 sm:$0xff]   ;;  %v1347_v61 = vld [vmem:[%s1648_s9 + $0x1b0] ss:$8 sps:$4 sm:$0xff]   ;;  %v1348_v63 = vld [vmem:[%s1648_s9 + $0xa4] ss:$8 sps:$4 sm:$0xff]  }
  0x5c   : > { %972 = vmatpush1.bf16.msra.mxu1 %v1299_v20  ;;  %932 = vmatprep.subr.bf16.mxu0 %v1300_v21  ;;  %v595_v59 = vrot.slane %v581_v56, %v587_v52  ;;  %v1350_v0 = vld [vmem:[%s1648_s9 + $0x1a4] ss:$8 sps:$4 sm:$0xff]   ;;  %v1352_v1 = vld [vmem:[%s1648_s9 + $0xa0] ss:$8 sps:$4 sm:$0xff]   ;;  %v1354_v3 = vld [vmem:[%s1648_s9 + $0x94] ss:$8 sps:$4 sm:$0xff]   ;;  %v588_v9 = vrot.slane %v1143_v53, %v587_v52 }
  0x5d   : > { %973 = vmatprep.subr.bf16.mxu1 %v1302_v22  ;;  %v1353_v2 = vld [vmem:[%s1648_s9 + $0x1a0] ss:$8 sps:$4 sm:$0xff]   ;;  %v1356_v4 = vld [vmem:[%s1648_s9 + $0x194] ss:$8 sps:$4 sm:$0xff]   ;;  %v1358_v5 = vld [vmem:[%s1648_s9 + $0x90] ss:$8 sps:$4 sm:$0xff]  }
  0x5e   : > { %v597_v62 = vcombine.high %v595_v59, %v595_v59  ;;  %954 = vmatprep.mubr.bf16.mxu0 %v595_v59  ;;  %v1359_v6 = vld [vmem:[%s1648_s9 + $0x190] ss:$8 sps:$4 sm:$0xff]   ;;  %v1360_v7 = vld [vmem:[%s1648_s9 + $0x84] ss:$8 sps:$4 sm:$0xff]   ;;  %v1364_v10 = vld [vmem:[%s1648_s9 + $0x80] ss:$8 sps:$4 sm:$0xff]   ;;  %v596_v12 = vcombine.high %v588_v9, %v588_v9 }
  0x5f   : > { %933 = vmatpush1.bf16.msra.mxu0 %v1304_v23  ;;  %v1362_v8 = vld [vmem:[%s1648_s9 + $0x184] ss:$8 sps:$4 sm:$0xff]   ;;  %v1365_v11 = vld [vmem:[%s1648_s9 + $0x180] ss:$8 sps:$4 sm:$0xff]   ;;  %v1424_v13 = vmov 1983009808  }
  0x60   : > { %974 = vmatpush1.bf16.msra.mxu1 %v1305_v24  ;;  %934 = vmatprep.subr.bf16.mxu0 %v1306_v25  ;;  %v1008_v14 = vunpack.c.l.s4 %v1424_v13 }
  0x61   : > { %975 = vmatprep.subr.bf16.mxu1 %v1308_v26  ;;  %995 = vmatprep.mubr.bf16.mxu1 %v597_v62  ;;  %v507_v26 = vld [vmem:[%s1646_s25] sm:$0xf] }
  0x62   : > { %v1009_v15 = vunpack.c.0.s8 %v1008_v14 }
  0x63   : > { %935 = vmatpush1.bf16.msra.mxu0 %v1310_v27 }
  0x64   : > { %976 = vmatpush1.bf16.msra.mxu1 %v1311_v28  ;;  %936 = vmatprep.subr.bf16.mxu0 %v1312_v29  ;;  %v1012_v22 = vsub.s32 %v1009_v15, %v1694_v47 }
  0x65   : > { %977 = vmatprep.subr.bf16.mxu1 %v1314_v30 }
  0x67   : > { %937 = vmatpush1.bf16.msra.mxu0 %v1316_v31 }
  0x68   : > { %978 = vmatpush1.bf16.msra.mxu1 %v1317_v32  ;;  %938 = vmatprep.subr.bf16.mxu0 %v1318_v33 }
  0x69   : > { %979 = vmatprep.subr.bf16.mxu1 %v1320_v34 }
  0x6b   : > { %939 = vmatpush2.bf16.msra.mxu0 %v1322_v35 }
  0x6c   : > { %980 = vmatpush2.bf16.msra.mxu1 %v1323_v36  ;;  %940 = vmatprep.subr.bf16.mxu0 %v1324_v37 }
  0x6d   : > { %981 = vmatprep.subr.bf16.mxu1 %v1326_v38 }
  0x6f   : > { %941 = vmatpush2.bf16.msra.mxu0 %v1328_v42 }
  0x70   : > { %982 = vmatpush2.bf16.msra.mxu1 %v1329_v43  ;;  %942 = vmatprep.subr.bf16.mxu0 %v1330_v44 }
  0x71   : > { %983 = vmatprep.subr.bf16.mxu1 %v1332_v45 }
  0x73   : > { %943 = vmatpush2.bf16.msra.mxu0 %v1334_v48 }
  0x74   : > { %984 = vmatpush2.bf16.msra.mxu1 %v1335_v49  ;;  %944 = vmatprep.subr.bf16.mxu0 %v1336_v50 }
  0x75   : > { %985 = vmatprep.subr.bf16.mxu1 %v1338_v51 }
  0x77   : > { %945 = vmatpush2.bf16.msra.mxu0 %v1340_v54 }
  0x78   : > { %986 = vmatpush2.bf16.msra.mxu1 %v1341_v55  ;;  %946 = vmatprep.subr.bf16.mxu0 %v1342_v57 }
  0x79   : > { %987 = vmatprep.subr.bf16.mxu1 %v1344_v58 }
  0x7b   : > { %947 = vmatpush2.bf16.msra.mxu0 %v1346_v60 }
  0x7c   : > { %988 = vmatpush2.bf16.msra.mxu1 %v1347_v61  ;;  %948 = vmatprep.subr.bf16.mxu0 %v1348_v63 }
  0x7d   : > { %989 = vmatprep.subr.bf16.mxu1 %v1350_v0 }
  0x7f   : > { %949 = vmatpush2.bf16.msra.mxu0 %v1352_v1 }
  0x80   : > { %990 = vmatpush2.bf16.msra.mxu1 %v1353_v2  ;;  %950 = vmatprep.subr.bf16.mxu0 %v1354_v3 }
  0x81   : > { %991 = vmatprep.subr.bf16.mxu1 %v1356_v4 }
  0x83   : > { %951 = vmatpush2.bf16.msra.mxu0 %v1358_v5 }
  0x84   : > { %992 = vmatpush2.bf16.msra.mxu1 %v1359_v6  ;;  %952 = vmatprep.subr.bf16.mxu0 %v1360_v7 }
  0x85   : > { %993 = vmatprep.subr.bf16.mxu1 %v1362_v8 }
  0x87   : > { %953 = vmatpush2.bf16.msra.mxu0 %v1364_v10 }
  0x88   : > { %994 = vmatpush2.bf16.msra.mxu1 %v1365_v11 }
  0x8a   : > { %955 = vmatmul.mubr.bf16.vlgmr.msra.gmra.mxu0 %v588_v9 }
  0x8b   : > { %996 = vmatmul.mubr.bf16.vlgmr.msra.gmra.mxu1 %v596_v12 }
 0x14a   : > { %v956_v16 = vpop.f32.mrf.mxu0 }
 0x14b   : > { %v997_v17 = vpop.f32.mrf.mxu1 }
 0x14c   : > { %v958_v18 = vpop.f32.mrf.mxu0  ;;  %v998_v20 = vadd.f32 %v997_v17, %v956_v16 }
 0x14d   : > { %v999_v19 = vpop.f32.mrf.mxu1 }
 0x14e   : > { %v1000_v21 = vadd.f32 %v999_v19, %v958_v18  ;;  %v960_v23 = vpop.f32.mrf.mxu0 }
 0x14f   : > { %v1001_v24 = vpop.f32.mrf.mxu1 }
 0x150   : > { %v1006_v25 = vcombine.low %v998_v20, %v1000_v21  ;;  %v961_v27 = vpop.f32.mrf.mxu0 }
 0x151   : > { %v1002_v28 = vpop.f32.mrf.mxu1 }
 0x152   : > { %v1013_v29 = vrot.slane %v1006_v25, %v1012_v22 }
 0x154   : > { %v1015_v30 = vadd.f32 %v1013_v29, %v507_v26 }
 0x156   : > { %1016 = vst [vmem:[%s1646_s25] sm:$0xf] %v1015_v30 }
 0x157 PF: > { %s12_s15 = sadd.s32 1, %s1420_s15   ;;  %s1751_s9 = smov %s1400_s10 }
 0x158   : > { %p9_p13 = scmp.ge.s32.totalorder %s12_s15, 26   ;;  %s1752_s10 = smov %s1491_s22 }
 0x159   : > { %s1753_s11 = smov %s1412_s13  ;;  %s1754_s12 = smov %s1416_s14 }
 0x15a   : > { %s1755_s13 = smov %s1758_s16  ;;  %s1756_s14 = smov %s1762_s17 }
 0x15b   :  { %11 = sbr.rel (!%p9_p13) target bundleno = 4 (0x4), region = 108 }

</bundles_post_ra>
